<compile_context>
chip_gen: v6e
topology: v6e:2x2x1
jax: 0.10.0
libtpu: 0.0.40
codegen_flags: <defaults>
</compile_context>

<pallas_src>
import functools

import jax
import jax.numpy as jnp
from jax.experimental import pallas as pl
from jax.experimental.pallas import tpu as pltpu


def _round_up(x, m):
    return (x + m - 1) // m * m


# ----------------------------------------------------------------------------
# Pallas kernels
# ----------------------------------------------------------------------------

def _matmul_affine_kernel(*refs, has_residual):
    """o = (a @ b) * scale + bias [+ residual]; bf16 operands, f32 epilogue."""
    if has_residual:
        a_ref, b_ref, s_ref, c_ref, r_ref, o_ref = refs
    else:
        a_ref, b_ref, s_ref, c_ref, o_ref = refs
    acc = jnp.dot(a_ref[...], b_ref[...], preferred_element_type=jnp.float32)
    out = acc * s_ref[...] + c_ref[...]
    if has_residual:
        out = out + r_ref[...]
    o_ref[...] = out


def matmul_affine(a, b, scale, bias, residual=None, *, tile_m=256, tile_n=256):
    """out = a @ b * scale + bias (+ residual), M/N-tiled on the MXU.

    a: (M, K) any float dtype (cast to bf16);  b: (K, N) pre-packed bf16;
    scale/bias: (1, N) f32 row-broadcast; residual: optional (M, N) f32.
    """
    M, K = a.shape
    Kb, N = b.shape
    assert K == Kb, (K, Kb)

    tm = min(tile_m, _round_up(M, 8))
    Mp = _round_up(M, tm)
    tn = tile_n if (N > tile_n and N % tile_n == 0) else N

    a = a.astype(jnp.bfloat16)
    if Mp != M:
        a = jnp.pad(a, ((0, Mp - M), (0, 0)))

    scale = scale.reshape(1, N).astype(jnp.float32)
    bias = bias.reshape(1, N).astype(jnp.float32)

    has_residual = residual is not None
    operands = [a, b, scale, bias]
    in_specs = [
        pl.BlockSpec((tm, K), lambda i, j: (i, 0)),
        pl.BlockSpec((K, tn), lambda i, j: (0, j)),
        pl.BlockSpec((1, tn), lambda i, j: (0, j)),
        pl.BlockSpec((1, tn), lambda i, j: (0, j)),
    ]
    if has_residual:
        res = residual.astype(jnp.float32)
        if Mp != M:
            res = jnp.pad(res, ((0, Mp - M), (0, 0)))
        operands.append(res)
        in_specs.append(pl.BlockSpec((tm, tn), lambda i, j: (i, j)))

    bytes_accessed = (Mp * K + K * N) * 2 + Mp * N * 4 * (2 if has_residual else 1)
    out = pl.pallas_call(
        functools.partial(_matmul_affine_kernel, has_residual=has_residual),
        out_shape=jax.ShapeDtypeStruct((Mp, N), jnp.float32),
        grid=(Mp // tm, N // tn),
        in_specs=in_specs,
        out_specs=pl.BlockSpec((tm, tn), lambda i, j: (i, j)),
        compiler_params=pltpu.CompilerParams(
            dimension_semantics=("parallel", "parallel"),
            vmem_limit_bytes=32 * 1024 * 1024),
        cost_estimate=pl.CostEstimate(flops=2 * Mp * K * N,
                                      transcendentals=0,
                                      bytes_accessed=bytes_accessed),
    )(*operands)
    if Mp != M:
        out = out[:M]
    return out


def _stack_reduce_kernel(x_ref, o_ref, *, op):
    x = x_ref[...]
    if op == "max":
        o_ref[...] = jnp.max(x, axis=0)
    else:
        o_ref[...] = jnp.mean(x, axis=0)


def stack_reduce(x, op, *, tile_m=512):
    """Reduce (S, M, C) -> (M, C) with max or mean over the leading axis."""
    S, M, C = x.shape
    tm = min(tile_m, _round_up(M, 8))
    Mp = _round_up(M, tm)
    if Mp != M:
        x = jnp.pad(x, ((0, 0), (0, Mp - M), (0, 0)))
    out = pl.pallas_call(
        functools.partial(_stack_reduce_kernel, op=op),
        out_shape=jax.ShapeDtypeStruct((Mp, C), jnp.float32),
        grid=(Mp // tm,),
        in_specs=[pl.BlockSpec((S, tm, C), lambda i: (0, i, 0))],
        out_specs=pl.BlockSpec((tm, C), lambda i: (i, 0)),
        compiler_params=pltpu.CompilerParams(
            dimension_semantics=("parallel",),
            vmem_limit_bytes=32 * 1024 * 1024),
    )(x)
    if Mp != M:
        out = out[:M]
    return out


# ----------------------------------------------------------------------------
# JAX glue: im2col, conv wrapper, pooling windows
# ----------------------------------------------------------------------------

def im2col(x, kh, kw, stride, pad, *, k_align=128):
    """x: (N,H,W,C) -> patches (N*Ho*Wo, Kp) in (kh,kw,C) feature order.

    The K axis is zero-padded to a multiple of `k_align` inside the same
    concatenate that materializes the patches (no extra padding pass)."""
    if pad > 0:
        x = jnp.pad(x, ((0, 0), (pad, pad), (pad, pad), (0, 0)))
    N, H, W, C = x.shape
    Ho = (H - kh) // stride + 1
    Wo = (W - kw) // stride + 1
    cols = []
    for i in range(kh):
        for j in range(kw):
            cols.append(x[:, i:i + stride * Ho:stride, j:j + stride * Wo:stride, :])
    K = kh * kw * C
    Kp = _round_up(K, k_align)
    if Kp != K:
        cols.append(jnp.zeros((N, Ho, Wo, Kp - K), x.dtype))
    patches = jnp.concatenate(cols, axis=-1)
    return patches.reshape(N * Ho * Wo, Kp), (N, Ho, Wo)


def conv_affine(x, conv, *, stride, pad, residual=None):
    """NHWC conv via im2col + Pallas MXU matmul with fused BN affine (+residual)."""
    kh, kw = conv["kh"], conv["kw"]
    patches, (N, Ho, Wo) = im2col(x.astype(jnp.bfloat16), kh, kw, stride, pad)
    Cout = conv["wm"].shape[1]
    res2d = None
    if residual is not None:
        res2d = residual.reshape(N * Ho * Wo, Cout)
    out = matmul_affine(patches, conv["wm"], conv["scale"], conv["bias"], res2d)
    return out.reshape(N, Ho, Wo, Cout)


def maxpool_3x3_s2_p1(x):
    N, H, W, C = x.shape
    xp = jnp.pad(x, ((0, 0), (1, 1), (1, 1), (0, 0)), constant_values=-jnp.inf)
    Ho = (H + 2 - 3) // 2 + 1
    Wo = (W + 2 - 3) // 2 + 1
    slices = []
    for i in range(3):
        for j in range(3):
            s = xp[:, i:i + 2 * Ho - 1:2, j:j + 2 * Wo - 1:2, :]
            slices.append(s.reshape(N * Ho * Wo, C))
    out = stack_reduce(jnp.stack(slices, axis=0), "max")
    return out.reshape(N, Ho, Wo, C)


def avgpool_2x2_s2(x):
    N, H, W, C = x.shape
    Ho, Wo = H // 2, W // 2
    slices = []
    for i in range(2):
        for j in range(2):
            s = x[:, i:i + 2 * Ho - 1:2, j:j + 2 * Wo - 1:2, :]
            slices.append(s.reshape(N * Ho * Wo, C))
    out = stack_reduce(jnp.stack(slices, axis=0), "mean")
    return out.reshape(N, Ho, Wo, C)


def global_avgpool(x):
    N, H, W, C = x.shape
    stack = jnp.transpose(x.reshape(N, H * W, C), (1, 0, 2))  # (HW, N, C)
    return stack_reduce(stack, "mean")                        # (N, C)


def bireal_block(x, blk):
    """Bi-Real basic block: bn(binconv3x3(sign(x))) + shortcut(x).

    The BN affine and the residual add are fused into the conv matmul epilogue."""
    ds = blk["downsample"]
    if ds is None:
        residual = x
    else:
        r = avgpool_2x2_s2(x) if ds["avgpool"] else x
        residual = conv_affine(r, ds["conv"], stride=1, pad=0)
    xb = jnp.sign(x).astype(jnp.bfloat16)   # torch.sign semantics (sign(0)=0), exact in bf16
    return conv_affine(xb, blk["conv"], stride=blk["stride"], pad=1, residual=residual)


# ----------------------------------------------------------------------------
# Parameters: raw init (PyTorch-like) + one-time pre-packing for the kernels
# ----------------------------------------------------------------------------

def _init_bn(key, c):
    k1, k2, k3, k4 = jax.random.split(key, 4)
    gamma = 1.0 + 0.1 * jax.random.normal(k1, (c,), jnp.float32)
    beta = 0.1 * jax.random.normal(k2, (c,), jnp.float32)
    mean = 0.1 * jax.random.normal(k3, (c,), jnp.float32)
    var = 1.0 + 0.1 * jax.random.uniform(k4, (c,), jnp.float32)
    return (gamma, beta, mean, var)


def _init_conv(key, cout, cin, kh, kw):
    fan_in = cin * kh * kw
    return jax.random.normal(key, (cout, cin, kh, kw), jnp.float32) * (2.0 / fan_in) ** 0.5


def init_birealnet_params(key, layers=(1, 1, 1, 1), num_classes=10):
    keys = iter(jax.random.split(key, 256))
    params = {}
    params["conv1_w"] = _init_conv(next(keys), 64, 3, 7, 7)
    params["bn1"] = _init_bn(next(keys), 64)

    inplanes = 64
    planes_list = (64, 128, 256, 512)
    strides = (1, 2, 2, 2)
    for li, (planes, nblocks, stride) in enumerate(zip(planes_list, layers, strides)):
        blocks = []
        for b in range(nblocks):
            s = stride if b == 0 else 1
            downsample = None
            if b == 0 and s != 1:
                downsample = {"avgpool": True,
                              "conv_w": _init_conv(next(keys), planes, inplanes, 1, 1),
                              "bn": _init_bn(next(keys), planes)}
            elif b == 0 and inplanes != planes:
                downsample = {"avgpool": False,
                              "conv_w": _init_conv(next(keys), planes, inplanes, 1, 1),
                              "bn": _init_bn(next(keys), planes)}
            blocks.append({"conv_w": _init_conv(next(keys), planes, inplanes, 3, 3),
                           "bn": _init_bn(next(keys), planes),
                           "stride": s,
                           "downsample": downsample})
            inplanes = planes
        params[f"layer{li + 1}"] = blocks

    params["fc_w"] = jax.random.normal(next(keys), (num_classes, 512), jnp.float32) * (1.0 / 512.0) ** 0.5
    params["fc_b"] = 0.01 * jax.random.normal(next(keys), (num_classes,), jnp.float32)
    return params


def _fold_bn(bn, eps=1e-5):
    gamma, beta, mean, var = bn
    scale = gamma / jnp.sqrt(var + eps)
    bias = beta - mean * scale
    return scale, bias


def _prep_conv(w, bn, *, binary, k_align=128):
    """Fold BN (+ Bi-Real |w|-mean alpha for binary convs) and pre-pack the
    weight into a K-aligned (kh*kw*Cin -> Kp, Cout) bf16 matmul operand."""
    Cout, Cin, kh, kw = w.shape
    scale, bias = _fold_bn(bn)
    if binary:
        alpha = jnp.mean(jnp.abs(w), axis=(1, 2, 3))   # per-out-channel scale
        scale = scale * alpha                          # fold alpha into the BN scale
        w = jnp.sign(w)                                # weight operand stays exactly +-1
    wm = jnp.transpose(w, (2, 3, 1, 0)).reshape(kh * kw * Cin, Cout)
    K = kh * kw * Cin
    Kp = _round_up(K, k_align)
    wm_p = jnp.zeros((Kp, Cout), jnp.bfloat16).at[:K].set(wm.astype(jnp.bfloat16))
    return {"wm": wm_p,
            "scale": scale.reshape(1, Cout).astype(jnp.float32),
            "bias": bias.reshape(1, Cout).astype(jnp.float32),
            "kh": kh, "kw": kw}


def prepare_params(params):
    """One-time pre-packing of all weights / folded BN for the forward pass."""
    prep = {"stem": _prep_conv(params["conv1_w"], params["bn1"], binary=False)}
    for li in range(1, 5):
        blocks = []
        for blk in params[f"layer{li}"]:
            p = {"conv": _prep_conv(blk["conv_w"], blk["bn"], binary=True),
                 "stride": blk["stride"]}
            ds = blk["downsample"]
            if ds is None:
                p["downsample"] = None
            else:
                p["downsample"] = {"avgpool": ds["avgpool"],
                                   "conv": _prep_conv(ds["conv_w"], ds["bn"], binary=False)}
            blocks.append(p)
        prep[f"layer{li}"] = blocks
    num_classes = params["fc_b"].shape[0]
    prep["fc"] = {"wm": params["fc_w"].T.astype(jnp.bfloat16),           # (512, nc)
                  "scale": jnp.ones((1, num_classes), jnp.float32),
                  "bias": params["fc_b"].reshape(1, num_classes).astype(jnp.float32)}
    return prep


# ----------------------------------------------------------------------------
# Forward pass
# ----------------------------------------------------------------------------

def birealnet_forward(prep, x_nchw):
    # NCHW (PyTorch) -> NHWC (kernel layout)
    x = jnp.transpose(x_nchw, (0, 2, 3, 1)).astype(jnp.float32)
    x = conv_affine(x, prep["stem"], stride=2, pad=3)          # 7x7 s2 p3 + BN
    x = maxpool_3x3_s2_p1(x)
    for lname in ("layer1", "layer2", "layer3", "layer4"):
        for blk in prep[lname]:
            x = bireal_block(x, blk)
    x = global_avgpool(x)                                      # (N, 512)
    return matmul_affine(x, prep["fc"]["wm"], prep["fc"]["scale"], prep["fc"]["bias"])


if __name__ == "__main__":
    key = jax.random.PRNGKey(0)
    kp, kx = jax.random.split(key)
    params = init_birealnet_params(kp, layers=(1, 1, 1, 1), num_classes=10)
    prep = prepare_params(params)                 # one-time weight packing / BN fold
    x = jax.random.normal(kx, (2, 3, 32, 32), jnp.float32)   # NCHW like PyTorch
    fwd = jax.jit(lambda inp: birealnet_forward(prep, inp))
    out = jax.block_until_ready(fwd(x))
    assert out.shape == (2, 10), out.shape
    assert jnp.all(jnp.isfinite(out))
    print("KERNEL_OK")
</pallas_src>

<mosaic_0001>
module attributes {stable_mosaic.version = 11 : i64} {
  func.func @_matmul_affine_kernel(%arg0: i32, %arg1: i32, %arg2: memref<256x256xbf16, #tpu.memory_space<vmem>>, %arg3: memref<256x64xbf16, #tpu.memory_space<vmem>>, %arg4: memref<1x64xf32, #tpu.memory_space<vmem>>, %arg5: memref<1x64xf32, #tpu.memory_space<vmem>>, %arg6: memref<256x64xf32, #tpu.memory_space<vmem>>) attributes {dimension_semantics = [#tpu.dimension_semantics<parallel>, #tpu.dimension_semantics<parallel>], iteration_bounds = array<i64: 2, 1>, scalar_prefetch = 0 : i64, scratch_operands = 0 : i64, tpu.core_type = #tpu.core_type<tc>, window_params = [{transform_indices = @transform_0, window_bounds = array<i64: 256, 256>}, {transform_indices = @transform_1, window_bounds = array<i64: 256, 64>}, {transform_indices = @transform_2, window_bounds = array<i64: 1, 64>}, {transform_indices = @transform_3, window_bounds = array<i64: 1, 64>}, {transform_indices = @transform_4, window_bounds = array<i64: 256, 64>}]} {
    %c0 = arith.constant 0 : index
    %c0_0 = arith.constant 0 : index
    %0 = vector.load %arg2[%c0, %c0_0] : memref<256x256xbf16, #tpu.memory_space<vmem>>, vector<256x256xbf16>
    %c0_1 = arith.constant 0 : index
    %c0_2 = arith.constant 0 : index
    %1 = vector.load %arg3[%c0_1, %c0_2] : memref<256x64xbf16, #tpu.memory_space<vmem>>, vector<256x64xbf16>
    %cst = arith.constant dense<0.000000e+00> : vector<256x64xf32>
    %2 = tpu.matmul %0, %1, %cst {dimension_numbers = #tpu.dot_dimension_numbers<[1], [0], [0], [1], [0, 0, 1, 1], [], []>} : vector<256x256xbf16>, vector<256x64xbf16>, vector<256x64xf32> -> vector<256x64xf32>
    %c0_3 = arith.constant 0 : index
    %c0_4 = arith.constant 0 : index
    %3 = vector.load %arg4[%c0_3, %c0_4] : memref<1x64xf32, #tpu.memory_space<vmem>>, vector<1x64xf32>
    %4 = vector.broadcast %3 : vector<1x64xf32> to vector<256x64xf32>
    %5 = arith.mulf %2, %4 : vector<256x64xf32>
    %c0_5 = arith.constant 0 : index
    %c0_6 = arith.constant 0 : index
    %6 = vector.load %arg5[%c0_5, %c0_6] : memref<1x64xf32, #tpu.memory_space<vmem>>, vector<1x64xf32>
    %7 = vector.broadcast %6 : vector<1x64xf32> to vector<256x64xf32>
    %8 = arith.addf %5, %7 : vector<256x64xf32>
    %c0_7 = arith.constant 0 : index
    %c0_8 = arith.constant 0 : index
    %9 = vector.load %arg6[%c0_7, %c0_8] : memref<256x64xf32, #tpu.memory_space<vmem>>, vector<256x64xf32>
    tpu.vector_store %arg6[%c0_7, %c0_8], %8 {strides = array<i32>} : memref<256x64xf32, #tpu.memory_space<vmem>>, vector<256x64xf32>,
    return
  }
  func.func @transform_0(%arg0: i32, %arg1: i32) -> (i32, i32) {
    %c0_i32 = arith.constant 0 : i32
    %c0_i32_0 = arith.constant 0 : i32
    return %arg0, %c0_i32 : i32, i32
  }
  func.func @transform_1(%arg0: i32, %arg1: i32) -> (i32, i32) {
    %c0_i32 = arith.constant 0 : i32
    %c0_i32_0 = arith.constant 0 : i32
    return %c0_i32, %arg1 : i32, i32
  }
  func.func @transform_2(%arg0: i32, %arg1: i32) -> (i32, i32) {
    %c0_i32 = arith.constant 0 : i32
    %c0_i32_0 = arith.constant 0 : i32
    return %c0_i32, %arg1 : i32, i32
  }
  func.func @transform_3(%arg0: i32, %arg1: i32) -> (i32, i32) {
    %c0_i32 = arith.constant 0 : i32
    %c0_i32_0 = arith.constant 0 : i32
    return %c0_i32, %arg1 : i32, i32
  }
  func.func @transform_4(%arg0: i32, %arg1: i32) -> (i32, i32) {
    %c0_i32 = arith.constant 0 : i32
    return %arg0, %arg1 : i32, i32
  }
}

module attributes {stable_mosaic.version = 11 : i64} {
  func.func @_stack_reduce_kernel(%arg0: i32, %arg1: memref<9x128x64xf32, #tpu.memory_space<vmem>>, %arg2: memref<128x64xf32, #tpu.memory_space<vmem>>) attributes {dimension_semantics = [#tpu.dimension_semantics<parallel>], iteration_bounds = array<i64: 1>, scalar_prefetch = 0 : i64, scratch_operands = 0 : i64, tpu.core_type = #tpu.core_type<tc>, window_params = [{transform_indices = @transform_0, window_bounds = array<i64: 9, 128, 64>}, {transform_indices = @transform_1, window_bounds = array<i64: 128, 64>}]} {
    %c0 = arith.constant 0 : index
    %c0_0 = arith.constant 0 : index
    %c0_1 = arith.constant 0 : index
    %0 = vector.load %arg1[%c0, %c0_0, %c0_1] : memref<9x128x64xf32, #tpu.memory_space<vmem>>, vector<9x128x64xf32>
    %cst = arith.constant dense<0xFF800000> : vector<128x64xf32>
    %1 = vector.multi_reduction <maximumf>, %0, %cst [0] : vector<9x128x64xf32> to vector<128x64xf32>
    %c0_2 = arith.constant 0 : index
    %c0_3 = arith.constant 0 : index
    %2 = vector.load %arg2[%c0_2, %c0_3] : memref<128x64xf32, #tpu.memory_space<vmem>>, vector<128x64xf32>
    tpu.vector_store %arg2[%c0_2, %c0_3], %1 {strides = array<i32>} : memref<128x64xf32, #tpu.memory_space<vmem>>, vector<128x64xf32>,
    return
  }
  func.func @transform_0(%arg0: i32) -> (i32, i32, i32) {
    %c0_i32 = arith.constant 0 : i32
    %c0_i32_0 = arith.constant 0 : i32
    %c0_i32_1 = arith.constant 0 : i32
    return %c0_i32, %arg0, %c0_i32_0 : i32, i32, i32
  }
  func.func @transform_1(%arg0: i32) -> (i32, i32) {
    %c0_i32 = arith.constant 0 : i32
    %c0_i32_0 = arith.constant 0 : i32
    return %arg0, %c0_i32 : i32, i32
  }
}

module attributes {stable_mosaic.version = 11 : i64} {
  func.func @_matmul_affine_kernel(%arg0: i32, %arg1: i32, %arg2: memref<128x640xbf16, #tpu.memory_space<vmem>>, %arg3: memref<640x64xbf16, #tpu.memory_space<vmem>>, %arg4: memref<1x64xf32, #tpu.memory_space<vmem>>, %arg5: memref<1x64xf32, #tpu.memory_space<vmem>>, %arg6: memref<128x64xf32, #tpu.memory_space<vmem>>, %arg7: memref<128x64xf32, #tpu.memory_space<vmem>>) attributes {dimension_semantics = [#tpu.dimension_semantics<parallel>, #tpu.dimension_semantics<parallel>], iteration_bounds = array<i64: 1, 1>, scalar_prefetch = 0 : i64, scratch_operands = 0 : i64, tpu.core_type = #tpu.core_type<tc>, window_params = [{transform_indices = @transform_0, window_bounds = array<i64: 128, 640>}, {transform_indices = @transform_1, window_bounds = array<i64: 640, 64>}, {transform_indices = @transform_2, window_bounds = array<i64: 1, 64>}, {transform_indices = @transform_3, window_bounds = array<i64: 1, 64>}, {transform_indices = @transform_4, window_bounds = array<i64: 128, 64>}, {transform_indices = @transform_5, window_bounds = array<i64: 128, 64>}]} {
    %c0 = arith.constant 0 : index
    %c0_0 = arith.constant 0 : index
    %0 = vector.load %arg2[%c0, %c0_0] : memref<128x640xbf16, #tpu.memory_space<vmem>>, vector<128x640xbf16>
    %c0_1 = arith.constant 0 : index
    %c0_2 = arith.constant 0 : index
    %1 = vector.load %arg3[%c0_1, %c0_2] : memref<640x64xbf16, #tpu.memory_space<vmem>>, vector<640x64xbf16>
    %cst = arith.constant dense<0.000000e+00> : vector<128x64xf32>
    %2 = tpu.matmul %0, %1, %cst {dimension_numbers = #tpu.dot_dimension_numbers<[1], [0], [0], [1], [0, 0, 1, 1], [], []>} : vector<128x640xbf16>, vector<640x64xbf16>, vector<128x64xf32> -> vector<128x64xf32>
    %c0_3 = arith.constant 0 : index
    %c0_4 = arith.constant 0 : index
    %3 = vector.load %arg4[%c0_3, %c0_4] : memref<1x64xf32, #tpu.memory_space<vmem>>, vector<1x64xf32>
    %4 = vector.broadcast %3 : vector<1x64xf32> to vector<128x64xf32>
    %5 = arith.mulf %2, %4 : vector<128x64xf32>
    %c0_5 = arith.constant 0 : index
    %c0_6 = arith.constant 0 : index
    %6 = vector.load %arg5[%c0_5, %c0_6] : memref<1x64xf32, #tpu.memory_space<vmem>>, vector<1x64xf32>
    %7 = vector.broadcast %6 : vector<1x64xf32> to vector<128x64xf32>
    %8 = arith.addf %5, %7 : vector<128x64xf32>
    %c0_7 = arith.constant 0 : index
    %c0_8 = arith.constant 0 : index
    %9 = vector.load %arg6[%c0_7, %c0_8] : memref<128x64xf32, #tpu.memory_space<vmem>>, vector<128x64xf32>
    %10 = arith.addf %8, %9 : vector<128x64xf32>
    %c0_9 = arith.constant 0 : index
    %c0_10 = arith.constant 0 : index
    %11 = vector.load %arg7[%c0_9, %c0_10] : memref<128x64xf32, #tpu.memory_space<vmem>>, vector<128x64xf32>
    tpu.vector_store %arg7[%c0_9, %c0_10], %10 {strides = array<i32>} : memref<128x64xf32, #tpu.memory_space<vmem>>, vector<128x64xf32>,
    return
  }
  func.func @transform_0(%arg0: i32, %arg1: i32) -> (i32, i32) {
    %c0_i32 = arith.constant 0 : i32
    %c0_i32_0 = arith.constant 0 : i32
    return %arg0, %c0_i32 : i32, i32
  }
  func.func @transform_1(%arg0: i32, %arg1: i32) -> (i32, i32) {
    %c0_i32 = arith.constant 0 : i32
    %c0_i32_0 = arith.constant 0 : i32
    return %c0_i32, %arg1 : i32, i32
  }
  func.func @transform_2(%arg0: i32, %arg1: i32) -> (i32, i32) {
    %c0_i32 = arith.constant 0 : i32
    %c0_i32_0 = arith.constant 0 : i32
    return %c0_i32, %arg1 : i32, i32
  }
  func.func @transform_3(%arg0: i32, %arg1: i32) -> (i32, i32) {
    %c0_i32 = arith.constant 0 : i32
    %c0_i32_0 = arith.constant 0 : i32
    return %c0_i32, %arg1 : i32, i32
  }
  func.func @transform_4(%arg0: i32, %arg1: i32) -> (i32, i32) {
    %c0_i32 = arith.constant 0 : i32
    return %arg0, %arg1 : i32, i32
  }
  func.func @transform_5(%arg0: i32, %arg1: i32) -> (i32, i32) {
    %c0_i32 = arith.constant 0 : i32
    return %arg0, %arg1 : i32, i32
  }
}

module attributes {stable_mosaic.version = 11 : i64} {
  func.func @_stack_reduce_kernel(%arg0: i32, %arg1: memref<4x32x64xf32, #tpu.memory_space<vmem>>, %arg2: memref<32x64xf32, #tpu.memory_space<vmem>>) attributes {dimension_semantics = [#tpu.dimension_semantics<parallel>], iteration_bounds = array<i64: 1>, scalar_prefetch = 0 : i64, scratch_operands = 0 : i64, tpu.core_type = #tpu.core_type<tc>, window_params = [{transform_indices = @transform_0, window_bounds = array<i64: 4, 32, 64>}, {transform_indices = @transform_1, window_bounds = array<i64: 32, 64>}]} {
    %c0 = arith.constant 0 : index
    %c0_0 = arith.constant 0 : index
    %c0_1 = arith.constant 0 : index
    %0 = vector.load %arg1[%c0, %c0_0, %c0_1] : memref<4x32x64xf32, #tpu.memory_space<vmem>>, vector<4x32x64xf32>
    %cst = arith.constant dense<0.000000e+00> : vector<32x64xf32>
    %1 = vector.multi_reduction <add>, %0, %cst [0] : vector<4x32x64xf32> to vector<32x64xf32>
    %cst_2 = arith.constant 4.000000e+00 : f32
    %2 = vector.broadcast %cst_2 : f32 to vector<32x64xf32>
    %3 = arith.divf %1, %2 : vector<32x64xf32>
    %c0_3 = arith.constant 0 : index
    %c0_4 = arith.constant 0 : index
    %4 = vector.load %arg2[%c0_3, %c0_4] : memref<32x64xf32, #tpu.memory_space<vmem>>, vector<32x64xf32>
    tpu.vector_store %arg2[%c0_3, %c0_4], %3 {strides = array<i32>} : memref<32x64xf32, #tpu.memory_space<vmem>>, vector<32x64xf32>,
    return
  }
  func.func @transform_0(%arg0: i32) -> (i32, i32, i32) {
    %c0_i32 = arith.constant 0 : i32
    %c0_i32_0 = arith.constant 0 : i32
    %c0_i32_1 = arith.constant 0 : i32
    return %c0_i32, %arg0, %c0_i32_0 : i32, i32, i32
  }
  func.func @transform_1(%arg0: i32) -> (i32, i32) {
    %c0_i32 = arith.constant 0 : i32
    %c0_i32_0 = arith.constant 0 : i32
    return %arg0, %c0_i32 : i32, i32
  }
}

module attributes {stable_mosaic.version = 11 : i64} {
  func.func @_matmul_affine_kernel(%arg0: i32, %arg1: i32, %arg2: memref<32x128xbf16, #tpu.memory_space<vmem>>, %arg3: memref<128x128xbf16, #tpu.memory_space<vmem>>, %arg4: memref<1x128xf32, #tpu.memory_space<vmem>>, %arg5: memref<1x128xf32, #tpu.memory_space<vmem>>, %arg6: memref<32x128xf32, #tpu.memory_space<vmem>>) attributes {dimension_semantics = [#tpu.dimension_semantics<parallel>, #tpu.dimension_semantics<parallel>], iteration_bounds = array<i64: 1, 1>, scalar_prefetch = 0 : i64, scratch_operands = 0 : i64, tpu.core_type = #tpu.core_type<tc>, window_params = [{transform_indices = @transform_0, window_bounds = array<i64: 32, 128>}, {transform_indices = @transform_1, window_bounds = array<i64: 128, 128>}, {transform_indices = @transform_2, window_bounds = array<i64: 1, 128>}, {transform_indices = @transform_3, window_bounds = array<i64: 1, 128>}, {transform_indices = @transform_4, window_bounds = array<i64: 32, 128>}]} {
    %c0 = arith.constant 0 : index
    %c0_0 = arith.constant 0 : index
    %0 = vector.load %arg2[%c0, %c0_0] : memref<32x128xbf16, #tpu.memory_space<vmem>>, vector<32x128xbf16>
    %c0_1 = arith.constant 0 : index
    %c0_2 = arith.constant 0 : index
    %1 = vector.load %arg3[%c0_1, %c0_2] : memref<128x128xbf16, #tpu.memory_space<vmem>>, vector<128x128xbf16>
    %cst = arith.constant dense<0.000000e+00> : vector<32x128xf32>
    %2 = tpu.matmul %0, %1, %cst {dimension_numbers = #tpu.dot_dimension_numbers<[1], [0], [0], [1], [0, 0, 1, 1], [], []>} : vector<32x128xbf16>, vector<128x128xbf16>, vector<32x128xf32> -> vector<32x128xf32>
    %c0_3 = arith.constant 0 : index
    %c0_4 = arith.constant 0 : index
    %3 = vector.load %arg4[%c0_3, %c0_4] : memref<1x128xf32, #tpu.memory_space<vmem>>, vector<1x128xf32>
    %4 = vector.broadcast %3 : vector<1x128xf32> to vector<32x128xf32>
    %5 = arith.mulf %2, %4 : vector<32x128xf32>
    %c0_5 = arith.constant 0 : index
    %c0_6 = arith.constant 0 : index
    %6 = vector.load %arg5[%c0_5, %c0_6] : memref<1x128xf32, #tpu.memory_space<vmem>>, vector<1x128xf32>
    %7 = vector.broadcast %6 : vector<1x128xf32> to vector<32x128xf32>
    %8 = arith.addf %5, %7 : vector<32x128xf32>
    %c0_7 = arith.constant 0 : index
    %c0_8 = arith.constant 0 : index
    %9 = vector.load %arg6[%c0_7, %c0_8] : memref<32x128xf32, #tpu.memory_space<vmem>>, vector<32x128xf32>
    tpu.vector_store %arg6[%c0_7, %c0_8], %8 {strides = array<i32>} : memref<32x128xf32, #tpu.memory_space<vmem>>, vector<32x128xf32>,
    return
  }
  func.func @transform_0(%arg0: i32, %arg1: i32) -> (i32, i32) {
    %c0_i32 = arith.constant 0 : i32
    %c0_i32_0 = arith.constant 0 : i32
    return %arg0, %c0_i32 : i32, i32
  }
  func.func @transform_1(%arg0: i32, %arg1: i32) -> (i32, i32) {
    %c0_i32 = arith.constant 0 : i32
    %c0_i32_0 = arith.constant 0 : i32
    return %c0_i32, %arg1 : i32, i32
  }
  func.func @transform_2(%arg0: i32, %arg1: i32) -> (i32, i32) {
    %c0_i32 = arith.constant 0 : i32
    %c0_i32_0 = arith.constant 0 : i32
    return %c0_i32, %arg1 : i32, i32
  }
  func.func @transform_3(%arg0: i32, %arg1: i32) -> (i32, i32) {
    %c0_i32 = arith.constant 0 : i32
    %c0_i32_0 = arith.constant 0 : i32
    return %c0_i32, %arg1 : i32, i32
  }
  func.func @transform_4(%arg0: i32, %arg1: i32) -> (i32, i32) {
    %c0_i32 = arith.constant 0 : i32
    return %arg0, %arg1 : i32, i32
  }
}

module attributes {stable_mosaic.version = 11 : i64} {
  func.func @_matmul_affine_kernel(%arg0: i32, %arg1: i32, %arg2: memref<32x640xbf16, #tpu.memory_space<vmem>>, %arg3: memref<640x128xbf16, #tpu.memory_space<vmem>>, %arg4: memref<1x128xf32, #tpu.memory_space<vmem>>, %arg5: memref<1x128xf32, #tpu.memory_space<vmem>>, %arg6: memref<32x128xf32, #tpu.memory_space<vmem>>, %arg7: memref<32x128xf32, #tpu.memory_space<vmem>>) attributes {dimension_semantics = [#tpu.dimension_semantics<parallel>, #tpu.dimension_semantics<parallel>], iteration_bounds = array<i64: 1, 1>, scalar_prefetch = 0 : i64, scratch_operands = 0 : i64, tpu.core_type = #tpu.core_type<tc>, window_params = [{transform_indices = @transform_0, window_bounds = array<i64: 32, 640>}, {transform_indices = @transform_1, window_bounds = array<i64: 640, 128>}, {transform_indices = @transform_2, window_bounds = array<i64: 1, 128>}, {transform_indices = @transform_3, window_bounds = array<i64: 1, 128>}, {transform_indices = @transform_4, window_bounds = array<i64: 32, 128>}, {transform_indices = @transform_5, window_bounds = array<i64: 32, 128>}]} {
    %c0 = arith.constant 0 : index
    %c0_0 = arith.constant 0 : index
    %0 = vector.load %arg2[%c0, %c0_0] : memref<32x640xbf16, #tpu.memory_space<vmem>>, vector<32x640xbf16>
    %c0_1 = arith.constant 0 : index
    %c0_2 = arith.constant 0 : index
    %1 = vector.load %arg3[%c0_1, %c0_2] : memref<640x128xbf16, #tpu.memory_space<vmem>>, vector<640x128xbf16>
    %cst = arith.constant dense<0.000000e+00> : vector<32x128xf32>
    %2 = tpu.matmul %0, %1, %cst {dimension_numbers = #tpu.dot_dimension_numbers<[1], [0], [0], [1], [0, 0, 1, 1], [], []>} : vector<32x640xbf16>, vector<640x128xbf16>, vector<32x128xf32> -> vector<32x128xf32>
    %c0_3 = arith.constant 0 : index
    %c0_4 = arith.constant 0 : index
    %3 = vector.load %arg4[%c0_3, %c0_4] : memref<1x128xf32, #tpu.memory_space<vmem>>, vector<1x128xf32>
    %4 = vector.broadcast %3 : vector<1x128xf32> to vector<32x128xf32>
    %5 = arith.mulf %2, %4 : vector<32x128xf32>
    %c0_5 = arith.constant 0 : index
    %c0_6 = arith.constant 0 : index
    %6 = vector.load %arg5[%c0_5, %c0_6] : memref<1x128xf32, #tpu.memory_space<vmem>>, vector<1x128xf32>
    %7 = vector.broadcast %6 : vector<1x128xf32> to vector<32x128xf32>
    %8 = arith.addf %5, %7 : vector<32x128xf32>
    %c0_7 = arith.constant 0 : index
    %c0_8 = arith.constant 0 : index
    %9 = vector.load %arg6[%c0_7, %c0_8] : memref<32x128xf32, #tpu.memory_space<vmem>>, vector<32x128xf32>
    %10 = arith.addf %8, %9 : vector<32x128xf32>
    %c0_9 = arith.constant 0 : index
    %c0_10 = arith.constant 0 : index
    %11 = vector.load %arg7[%c0_9, %c0_10] : memref<32x128xf32, #tpu.memory_space<vmem>>, vector<32x128xf32>
    tpu.vector_store %arg7[%c0_9, %c0_10], %10 {strides = array<i32>} : memref<32x128xf32, #tpu.memory_space<vmem>>, vector<32x128xf32>,
    return
  }
  func.func @transform_0(%arg0: i32, %arg1: i32) -> (i32, i32) {
    %c0_i32 = arith.constant 0 : i32
    %c0_i32_0 = arith.constant 0 : i32
    return %arg0, %c0_i32 : i32, i32
  }
  func.func @transform_1(%arg0: i32, %arg1: i32) -> (i32, i32) {
    %c0_i32 = arith.constant 0 : i32
    %c0_i32_0 = arith.constant 0 : i32
    return %c0_i32, %arg1 : i32, i32
  }
  func.func @transform_2(%arg0: i32, %arg1: i32) -> (i32, i32) {
    %c0_i32 = arith.constant 0 : i32
    %c0_i32_0 = arith.constant 0 : i32
    return %c0_i32, %arg1 : i32, i32
  }
  func.func @transform_3(%arg0: i32, %arg1: i32) -> (i32, i32) {
    %c0_i32 = arith.constant 0 : i32
    %c0_i32_0 = arith.constant 0 : i32
    return %c0_i32, %arg1 : i32, i32
  }
  func.func @transform_4(%arg0: i32, %arg1: i32) -> (i32, i32) {
    %c0_i32 = arith.constant 0 : i32
    return %arg0, %arg1 : i32, i32
  }
  func.func @transform_5(%arg0: i32, %arg1: i32) -> (i32, i32) {
    %c0_i32 = arith.constant 0 : i32
    return %arg0, %arg1 : i32, i32
  }
}

module attributes {stable_mosaic.version = 11 : i64} {
  func.func @_stack_reduce_kernel(%arg0: i32, %arg1: memref<4x8x128xf32, #tpu.memory_space<vmem>>, %arg2: memref<8x128xf32, #tpu.memory_space<vmem>>) attributes {dimension_semantics = [#tpu.dimension_semantics<parallel>], iteration_bounds = array<i64: 1>, scalar_prefetch = 0 : i64, scratch_operands = 0 : i64, tpu.core_type = #tpu.core_type<tc>, window_params = [{transform_indices = @transform_0, window_bounds = array<i64: 4, 8, 128>}, {transform_indices = @transform_1, window_bounds = array<i64: 8, 128>}]} {
    %c0 = arith.constant 0 : index
    %c0_0 = arith.constant 0 : index
    %c0_1 = arith.constant 0 : index
    %0 = vector.load %arg1[%c0, %c0_0, %c0_1] : memref<4x8x128xf32, #tpu.memory_space<vmem>>, vector<4x8x128xf32>
    %cst = arith.constant dense<0.000000e+00> : vector<8x128xf32>
    %1 = vector.multi_reduction <add>, %0, %cst [0] : vector<4x8x128xf32> to vector<8x128xf32>
    %cst_2 = arith.constant 4.000000e+00 : f32
    %2 = vector.broadcast %cst_2 : f32 to vector<8x128xf32>
    %3 = arith.divf %1, %2 : vector<8x128xf32>
    %c0_3 = arith.constant 0 : index
    %c0_4 = arith.constant 0 : index
    %4 = vector.load %arg2[%c0_3, %c0_4] : memref<8x128xf32, #tpu.memory_space<vmem>>, vector<8x128xf32>
    tpu.vector_store %arg2[%c0_3, %c0_4], %3 {strides = array<i32>} : memref<8x128xf32, #tpu.memory_space<vmem>>, vector<8x128xf32>,
    return
  }
  func.func @transform_0(%arg0: i32) -> (i32, i32, i32) {
    %c0_i32 = arith.constant 0 : i32
    %c0_i32_0 = arith.constant 0 : i32
    %c0_i32_1 = arith.constant 0 : i32
    return %c0_i32, %arg0, %c0_i32_0 : i32, i32, i32
  }
  func.func @transform_1(%arg0: i32) -> (i32, i32) {
    %c0_i32 = arith.constant 0 : i32
    %c0_i32_0 = arith.constant 0 : i32
    return %arg0, %c0_i32 : i32, i32
  }
}

module attributes {stable_mosaic.version = 11 : i64} {
  func.func @_matmul_affine_kernel(%arg0: i32, %arg1: i32, %arg2: memref<8x128xbf16, #tpu.memory_space<vmem>>, %arg3: memref<128x256xbf16, #tpu.memory_space<vmem>>, %arg4: memref<1x256xf32, #tpu.memory_space<vmem>>, %arg5: memref<1x256xf32, #tpu.memory_space<vmem>>, %arg6: memref<8x256xf32, #tpu.memory_space<vmem>>) attributes {dimension_semantics = [#tpu.dimension_semantics<parallel>, #tpu.dimension_semantics<parallel>], iteration_bounds = array<i64: 1, 1>, scalar_prefetch = 0 : i64, scratch_operands = 0 : i64, tpu.core_type = #tpu.core_type<tc>, window_params = [{transform_indices = @transform_0, window_bounds = array<i64: 8, 128>}, {transform_indices = @transform_1, window_bounds = array<i64: 128, 256>}, {transform_indices = @transform_2, window_bounds = array<i64: 1, 256>}, {transform_indices = @transform_3, window_bounds = array<i64: 1, 256>}, {transform_indices = @transform_4, window_bounds = array<i64: 8, 256>}]} {
    %c0 = arith.constant 0 : index
    %c0_0 = arith.constant 0 : index
    %0 = vector.load %arg2[%c0, %c0_0] : memref<8x128xbf16, #tpu.memory_space<vmem>>, vector<8x128xbf16>
    %c0_1 = arith.constant 0 : index
    %c0_2 = arith.constant 0 : index
    %1 = vector.load %arg3[%c0_1, %c0_2] : memref<128x256xbf16, #tpu.memory_space<vmem>>, vector<128x256xbf16>
    %cst = arith.constant dense<0.000000e+00> : vector<8x256xf32>
    %2 = tpu.matmul %0, %1, %cst {dimension_numbers = #tpu.dot_dimension_numbers<[1], [0], [0], [1], [0, 0, 1, 1], [], []>} : vector<8x128xbf16>, vector<128x256xbf16>, vector<8x256xf32> -> vector<8x256xf32>
    %c0_3 = arith.constant 0 : index
    %c0_4 = arith.constant 0 : index
    %3 = vector.load %arg4[%c0_3, %c0_4] : memref<1x256xf32, #tpu.memory_space<vmem>>, vector<1x256xf32>
    %4 = vector.broadcast %3 : vector<1x256xf32> to vector<8x256xf32>
    %5 = arith.mulf %2, %4 : vector<8x256xf32>
    %c0_5 = arith.constant 0 : index
    %c0_6 = arith.constant 0 : index
    %6 = vector.load %arg5[%c0_5, %c0_6] : memref<1x256xf32, #tpu.memory_space<vmem>>, vector<1x256xf32>
    %7 = vector.broadcast %6 : vector<1x256xf32> to vector<8x256xf32>
    %8 = arith.addf %5, %7 : vector<8x256xf32>
    %c0_7 = arith.constant 0 : index
    %c0_8 = arith.constant 0 : index
    %9 = vector.load %arg6[%c0_7, %c0_8] : memref<8x256xf32, #tpu.memory_space<vmem>>, vector<8x256xf32>
    tpu.vector_store %arg6[%c0_7, %c0_8], %8 {strides = array<i32>} : memref<8x256xf32, #tpu.memory_space<vmem>>, vector<8x256xf32>,
    return
  }
  func.func @transform_0(%arg0: i32, %arg1: i32) -> (i32, i32) {
    %c0_i32 = arith.constant 0 : i32
    %c0_i32_0 = arith.constant 0 : i32
    return %arg0, %c0_i32 : i32, i32
  }
  func.func @transform_1(%arg0: i32, %arg1: i32) -> (i32, i32) {
    %c0_i32 = arith.constant 0 : i32
    %c0_i32_0 = arith.constant 0 : i32
    return %c0_i32, %arg1 : i32, i32
  }
  func.func @transform_2(%arg0: i32, %arg1: i32) -> (i32, i32) {
    %c0_i32 = arith.constant 0 : i32
    %c0_i32_0 = arith.constant 0 : i32
    return %c0_i32, %arg1 : i32, i32
  }
  func.func @transform_3(%arg0: i32, %arg1: i32) -> (i32, i32) {
    %c0_i32 = arith.constant 0 : i32
    %c0_i32_0 = arith.constant 0 : i32
    return %c0_i32, %arg1 : i32, i32
  }
  func.func @transform_4(%arg0: i32, %arg1: i32) -> (i32, i32) {
    %c0_i32 = arith.constant 0 : i32
    return %arg0, %arg1 : i32, i32
  }
}

module attributes {stable_mosaic.version = 11 : i64} {
  func.func @_stack_reduce_kernel(%arg0: i32, %arg1: memref<4x8x256xf32, #tpu.memory_space<vmem>>, %arg2: memref<8x256xf32, #tpu.memory_space<vmem>>) attributes {dimension_semantics = [#tpu.dimension_semantics<parallel>], iteration_bounds = array<i64: 1>, scalar_prefetch = 0 : i64, scratch_operands = 0 : i64, tpu.core_type = #tpu.core_type<tc>, window_params = [{transform_indices = @transform_0, window_bounds = array<i64: 4, 8, 256>}, {transform_indices = @transform_1, window_bounds = array<i64: 8, 256>}]} {
    %c0 = arith.constant 0 : index
    %c0_0 = arith.constant 0 : index
    %c0_1 = arith.constant 0 : index
    %0 = vector.load %arg1[%c0, %c0_0, %c0_1] : memref<4x8x256xf32, #tpu.memory_space<vmem>>, vector<4x8x256xf32>
    %cst = arith.constant dense<0.000000e+00> : vector<8x256xf32>
    %1 = vector.multi_reduction <add>, %0, %cst [0] : vector<4x8x256xf32> to vector<8x256xf32>
    %cst_2 = arith.constant 4.000000e+00 : f32
    %2 = vector.broadcast %cst_2 : f32 to vector<8x256xf32>
    %3 = arith.divf %1, %2 : vector<8x256xf32>
    %c0_3 = arith.constant 0 : index
    %c0_4 = arith.constant 0 : index
    %4 = vector.load %arg2[%c0_3, %c0_4] : memref<8x256xf32, #tpu.memory_space<vmem>>, vector<8x256xf32>
    tpu.vector_store %arg2[%c0_3, %c0_4], %3 {strides = array<i32>} : memref<8x256xf32, #tpu.memory_space<vmem>>, vector<8x256xf32>,
    return
  }
  func.func @transform_0(%arg0: i32) -> (i32, i32, i32) {
    %c0_i32 = arith.constant 0 : i32
    %c0_i32_0 = arith.constant 0 : i32
    %c0_i32_1 = arith.constant 0 : i32
    return %c0_i32, %arg0, %c0_i32_0 : i32, i32, i32
  }
  func.func @transform_1(%arg0: i32) -> (i32, i32) {
    %c0_i32 = arith.constant 0 : i32
    %c0_i32_0 = arith.constant 0 : i32
    return %arg0, %c0_i32 : i32, i32
  }
}

module attributes {stable_mosaic.version = 11 : i64} {
  func.func @_matmul_affine_kernel(%arg0: i32, %arg1: i32, %arg2: memref<8x1152xbf16, #tpu.memory_space<vmem>>, %arg3: memref<1152x256xbf16, #tpu.memory_space<vmem>>, %arg4: memref<1x256xf32, #tpu.memory_space<vmem>>, %arg5: memref<1x256xf32, #tpu.memory_space<vmem>>, %arg6: memref<8x256xf32, #tpu.memory_space<vmem>>, %arg7: memref<8x256xf32, #tpu.memory_space<vmem>>) attributes {dimension_semantics = [#tpu.dimension_semantics<parallel>, #tpu.dimension_semantics<parallel>], iteration_bounds = array<i64: 1, 1>, scalar_prefetch = 0 : i64, scratch_operands = 0 : i64, tpu.core_type = #tpu.core_type<tc>, window_params = [{transform_indices = @transform_0, window_bounds = array<i64: 8, 1152>}, {transform_indices = @transform_1, window_bounds = array<i64: 1152, 256>}, {transform_indices = @transform_2, window_bounds = array<i64: 1, 256>}, {transform_indices = @transform_3, window_bounds = array<i64: 1, 256>}, {transform_indices = @transform_4, window_bounds = array<i64: 8, 256>}, {transform_indices = @transform_5, window_bounds = array<i64: 8, 256>}]} {
    %c0 = arith.constant 0 : index
    %c0_0 = arith.constant 0 : index
    %0 = vector.load %arg2[%c0, %c0_0] : memref<8x1152xbf16, #tpu.memory_space<vmem>>, vector<8x1152xbf16>
    %c0_1 = arith.constant 0 : index
    %c0_2 = arith.constant 0 : index
    %1 = vector.load %arg3[%c0_1, %c0_2] : memref<1152x256xbf16, #tpu.memory_space<vmem>>, vector<1152x256xbf16>
    %cst = arith.constant dense<0.000000e+00> : vector<8x256xf32>
    %2 = tpu.matmul %0, %1, %cst {dimension_numbers = #tpu.dot_dimension_numbers<[1], [0], [0], [1], [0, 0, 1, 1], [], []>} : vector<8x1152xbf16>, vector<1152x256xbf16>, vector<8x256xf32> -> vector<8x256xf32>
    %c0_3 = arith.constant 0 : index
    %c0_4 = arith.constant 0 : index
    %3 = vector.load %arg4[%c0_3, %c0_4] : memref<1x256xf32, #tpu.memory_space<vmem>>, vector<1x256xf32>
    %4 = vector.broadcast %3 : vector<1x256xf32> to vector<8x256xf32>
    %5 = arith.mulf %2, %4 : vector<8x256xf32>
    %c0_5 = arith.constant 0 : index
    %c0_6 = arith.constant 0 : index
    %6 = vector.load %arg5[%c0_5, %c0_6] : memref<1x256xf32, #tpu.memory_space<vmem>>, vector<1x256xf32>
    %7 = vector.broadcast %6 : vector<1x256xf32> to vector<8x256xf32>
    %8 = arith.addf %5, %7 : vector<8x256xf32>
    %c0_7 = arith.constant 0 : index
    %c0_8 = arith.constant 0 : index
    %9 = vector.load %arg6[%c0_7, %c0_8] : memref<8x256xf32, #tpu.memory_space<vmem>>, vector<8x256xf32>
    %10 = arith.addf %8, %9 : vector<8x256xf32>
    %c0_9 = arith.constant 0 : index
    %c0_10 = arith.constant 0 : index
    %11 = vector.load %arg7[%c0_9, %c0_10] : memref<8x256xf32, #tpu.memory_space<vmem>>, vector<8x256xf32>
    tpu.vector_store %arg7[%c0_9, %c0_10], %10 {strides = array<i32>} : memref<8x256xf32, #tpu.memory_space<vmem>>, vector<8x256xf32>,
    return
  }
  func.func @transform_0(%arg0: i32, %arg1: i32) -> (i32, i32) {
    %c0_i32 = arith.constant 0 : i32
    %c0_i32_0 = arith.constant 0 : i32
    return %arg0, %c0_i32 : i32, i32
  }
  func.func @transform_1(%arg0: i32, %arg1: i32) -> (i32, i32) {
    %c0_i32 = arith.constant 0 : i32
    %c0_i32_0 = arith.constant 0 : i32
    return %c0_i32, %arg1 : i32, i32
  }
  func.func @transform_2(%arg0: i32, %arg1: i32) -> (i32, i32) {
    %c0_i32 = arith.constant 0 : i32
    %c0_i32_0 = arith.constant 0 : i32
    return %c0_i32, %arg1 : i32, i32
  }
  func.func @transform_3(%arg0: i32, %arg1: i32) -> (i32, i32) {
    %c0_i32 = arith.constant 0 : i32
    %c0_i32_0 = arith.constant 0 : i32
    return %c0_i32, %arg1 : i32, i32
  }
  func.func @transform_4(%arg0: i32, %arg1: i32) -> (i32, i32) {
    %c0_i32 = arith.constant 0 : i32
    return %arg0, %arg1 : i32, i32
  }
  func.func @transform_5(%arg0: i32, %arg1: i32) -> (i32, i32) {
    %c0_i32 = arith.constant 0 : i32
    return %arg0, %arg1 : i32, i32
  }
}

module attributes {stable_mosaic.version = 11 : i64} {
  func.func @_matmul_affine_kernel(%arg0: i32, %arg1: i32, %arg2: memref<8x256xbf16, #tpu.memory_space<vmem>>, %arg3: memref<256x256xbf16, #tpu.memory_space<vmem>>, %arg4: memref<1x256xf32, #tpu.memory_space<vmem>>, %arg5: memref<1x256xf32, #tpu.memory_space<vmem>>, %arg6: memref<8x256xf32, #tpu.memory_space<vmem>>) attributes {dimension_semantics = [#tpu.dimension_semantics<parallel>, #tpu.dimension_semantics<parallel>], iteration_bounds = array<i64: 1, 2>, scalar_prefetch = 0 : i64, scratch_operands = 0 : i64, tpu.core_type = #tpu.core_type<tc>, window_params = [{transform_indices = @transform_0, window_bounds = array<i64: 8, 256>}, {transform_indices = @transform_1, window_bounds = array<i64: 256, 256>}, {transform_indices = @transform_2, window_bounds = array<i64: 1, 256>}, {transform_indices = @transform_3, window_bounds = array<i64: 1, 256>}, {transform_indices = @transform_4, window_bounds = array<i64: 8, 256>}]} {
    %c0 = arith.constant 0 : index
    %c0_0 = arith.constant 0 : index
    %0 = vector.load %arg2[%c0, %c0_0] : memref<8x256xbf16, #tpu.memory_space<vmem>>, vector<8x256xbf16>
    %c0_1 = arith.constant 0 : index
    %c0_2 = arith.constant 0 : index
    %1 = vector.load %arg3[%c0_1, %c0_2] : memref<256x256xbf16, #tpu.memory_space<vmem>>, vector<256x256xbf16>
    %cst = arith.constant dense<0.000000e+00> : vector<8x256xf32>
    %2 = tpu.matmul %0, %1, %cst {dimension_numbers = #tpu.dot_dimension_numbers<[1], [0], [0], [1], [0, 0, 1, 1], [], []>} : vector<8x256xbf16>, vector<256x256xbf16>, vector<8x256xf32> -> vector<8x256xf32>
    %c0_3 = arith.constant 0 : index
    %c0_4 = arith.constant 0 : index
    %3 = vector.load %arg4[%c0_3, %c0_4] : memref<1x256xf32, #tpu.memory_space<vmem>>, vector<1x256xf32>
    %4 = vector.broadcast %3 : vector<1x256xf32> to vector<8x256xf32>
    %5 = arith.mulf %2, %4 : vector<8x256xf32>
    %c0_5 = arith.constant 0 : index
    %c0_6 = arith.constant 0 : index
    %6 = vector.load %arg5[%c0_5, %c0_6] : memref<1x256xf32, #tpu.memory_space<vmem>>, vector<1x256xf32>
    %7 = vector.broadcast %6 : vector<1x256xf32> to vector<8x256xf32>
    %8 = arith.addf %5, %7 : vector<8x256xf32>
    %c0_7 = arith.constant 0 : index
    %c0_8 = arith.constant 0 : index
    %9 = vector.load %arg6[%c0_7, %c0_8] : memref<8x256xf32, #tpu.memory_space<vmem>>, vector<8x256xf32>
    tpu.vector_store %arg6[%c0_7, %c0_8], %8 {strides = array<i32>} : memref<8x256xf32, #tpu.memory_space<vmem>>, vector<8x256xf32>,
    return
  }
  func.func @transform_0(%arg0: i32, %arg1: i32) -> (i32, i32) {
    %c0_i32 = arith.constant 0 : i32
    %c0_i32_0 = arith.constant 0 : i32
    return %arg0, %c0_i32 : i32, i32
  }
  func.func @transform_1(%arg0: i32, %arg1: i32) -> (i32, i32) {
    %c0_i32 = arith.constant 0 : i32
    %c0_i32_0 = arith.constant 0 : i32
    return %c0_i32, %arg1 : i32, i32
  }
  func.func @transform_2(%arg0: i32, %arg1: i32) -> (i32, i32) {
    %c0_i32 = arith.constant 0 : i32
    %c0_i32_0 = arith.constant 0 : i32
    return %c0_i32, %arg1 : i32, i32
  }
  func.func @transform_3(%arg0: i32, %arg1: i32) -> (i32, i32) {
    %c0_i32 = arith.constant 0 : i32
    %c0_i32_0 = arith.constant 0 : i32
    return %c0_i32, %arg1 : i32, i32
  }
  func.func @transform_4(%arg0: i32, %arg1: i32) -> (i32, i32) {
    %c0_i32 = arith.constant 0 : i32
    return %arg0, %arg1 : i32, i32
  }
}

module attributes {stable_mosaic.version = 11 : i64} {
  func.func @_matmul_affine_kernel(%arg0: i32, %arg1: i32, %arg2: memref<8x2304xbf16, #tpu.memory_space<vmem>>, %arg3: memref<2304x256xbf16, #tpu.memory_space<vmem>>, %arg4: memref<1x256xf32, #tpu.memory_space<vmem>>, %arg5: memref<1x256xf32, #tpu.memory_space<vmem>>, %arg6: memref<8x256xf32, #tpu.memory_space<vmem>>, %arg7: memref<8x256xf32, #tpu.memory_space<vmem>>) attributes {dimension_semantics = [#tpu.dimension_semantics<parallel>, #tpu.dimension_semantics<parallel>], iteration_bounds = array<i64: 1, 2>, scalar_prefetch = 0 : i64, scratch_operands = 0 : i64, tpu.core_type = #tpu.core_type<tc>, window_params = [{transform_indices = @transform_0, window_bounds = array<i64: 8, 2304>}, {transform_indices = @transform_1, window_bounds = array<i64: 2304, 256>}, {transform_indices = @transform_2, window_bounds = array<i64: 1, 256>}, {transform_indices = @transform_3, window_bounds = array<i64: 1, 256>}, {transform_indices = @transform_4, window_bounds = array<i64: 8, 256>}, {transform_indices = @transform_5, window_bounds = array<i64: 8, 256>}]} {
    %c0 = arith.constant 0 : index
    %c0_0 = arith.constant 0 : index
    %0 = vector.load %arg2[%c0, %c0_0] : memref<8x2304xbf16, #tpu.memory_space<vmem>>, vector<8x2304xbf16>
    %c0_1 = arith.constant 0 : index
    %c0_2 = arith.constant 0 : index
    %1 = vector.load %arg3[%c0_1, %c0_2] : memref<2304x256xbf16, #tpu.memory_space<vmem>>, vector<2304x256xbf16>
    %cst = arith.constant dense<0.000000e+00> : vector<8x256xf32>
    %2 = tpu.matmul %0, %1, %cst {dimension_numbers = #tpu.dot_dimension_numbers<[1], [0], [0], [1], [0, 0, 1, 1], [], []>} : vector<8x2304xbf16>, vector<2304x256xbf16>, vector<8x256xf32> -> vector<8x256xf32>
    %c0_3 = arith.constant 0 : index
    %c0_4 = arith.constant 0 : index
    %3 = vector.load %arg4[%c0_3, %c0_4] : memref<1x256xf32, #tpu.memory_space<vmem>>, vector<1x256xf32>
    %4 = vector.broadcast %3 : vector<1x256xf32> to vector<8x256xf32>
    %5 = arith.mulf %2, %4 : vector<8x256xf32>
    %c0_5 = arith.constant 0 : index
    %c0_6 = arith.constant 0 : index
    %6 = vector.load %arg5[%c0_5, %c0_6] : memref<1x256xf32, #tpu.memory_space<vmem>>, vector<1x256xf32>
    %7 = vector.broadcast %6 : vector<1x256xf32> to vector<8x256xf32>
    %8 = arith.addf %5, %7 : vector<8x256xf32>
    %c0_7 = arith.constant 0 : index
    %c0_8 = arith.constant 0 : index
    %9 = vector.load %arg6[%c0_7, %c0_8] : memref<8x256xf32, #tpu.memory_space<vmem>>, vector<8x256xf32>
    %10 = arith.addf %8, %9 : vector<8x256xf32>
    %c0_9 = arith.constant 0 : index
    %c0_10 = arith.constant 0 : index
    %11 = vector.load %arg7[%c0_9, %c0_10] : memref<8x256xf32, #tpu.memory_space<vmem>>, vector<8x256xf32>
    tpu.vector_store %arg7[%c0_9, %c0_10], %10 {strides = array<i32>} : memref<8x256xf32, #tpu.memory_space<vmem>>, vector<8x256xf32>,
    return
  }
  func.func @transform_0(%arg0: i32, %arg1: i32) -> (i32, i32) {
    %c0_i32 = arith.constant 0 : i32
    %c0_i32_0 = arith.constant 0 : i32
    return %arg0, %c0_i32 : i32, i32
  }
  func.func @transform_1(%arg0: i32, %arg1: i32) -> (i32, i32) {
    %c0_i32 = arith.constant 0 : i32
    %c0_i32_0 = arith.constant 0 : i32
    return %c0_i32, %arg1 : i32, i32
  }
  func.func @transform_2(%arg0: i32, %arg1: i32) -> (i32, i32) {
    %c0_i32 = arith.constant 0 : i32
    %c0_i32_0 = arith.constant 0 : i32
    return %c0_i32, %arg1 : i32, i32
  }
  func.func @transform_3(%arg0: i32, %arg1: i32) -> (i32, i32) {
    %c0_i32 = arith.constant 0 : i32
    %c0_i32_0 = arith.constant 0 : i32
    return %c0_i32, %arg1 : i32, i32
  }
  func.func @transform_4(%arg0: i32, %arg1: i32) -> (i32, i32) {
    %c0_i32 = arith.constant 0 : i32
    return %arg0, %arg1 : i32, i32
  }
  func.func @transform_5(%arg0: i32, %arg1: i32) -> (i32, i32) {
    %c0_i32 = arith.constant 0 : i32
    return %arg0, %arg1 : i32, i32
  }
}

module attributes {stable_mosaic.version = 11 : i64} {
  func.func @_stack_reduce_kernel(%arg0: i32, %arg1: memref<1x8x512xf32, #tpu.memory_space<vmem>>, %arg2: memref<8x512xf32, #tpu.memory_space<vmem>>) attributes {dimension_semantics = [#tpu.dimension_semantics<parallel>], iteration_bounds = array<i64: 1>, scalar_prefetch = 0 : i64, scratch_operands = 0 : i64, tpu.core_type = #tpu.core_type<tc>, window_params = [{transform_indices = @transform_0, window_bounds = array<i64: 1, 8, 512>}, {transform_indices = @transform_1, window_bounds = array<i64: 8, 512>}]} {
    %c0 = arith.constant 0 : index
    %c0_0 = arith.constant 0 : index
    %c0_1 = arith.constant 0 : index
    %0 = vector.load %arg1[%c0, %c0_0, %c0_1] : memref<1x8x512xf32, #tpu.memory_space<vmem>>, vector<1x8x512xf32>
    %cst = arith.constant dense<0.000000e+00> : vector<8x512xf32>
    %1 = vector.multi_reduction <add>, %0, %cst [0] : vector<1x8x512xf32> to vector<8x512xf32>
    %cst_2 = arith.constant 1.000000e+00 : f32
    %2 = vector.broadcast %cst_2 : f32 to vector<8x512xf32>
    %3 = arith.divf %1, %2 : vector<8x512xf32>
    %c0_3 = arith.constant 0 : index
    %c0_4 = arith.constant 0 : index
    %4 = vector.load %arg2[%c0_3, %c0_4] : memref<8x512xf32, #tpu.memory_space<vmem>>, vector<8x512xf32>
    tpu.vector_store %arg2[%c0_3, %c0_4], %3 {strides = array<i32>} : memref<8x512xf32, #tpu.memory_space<vmem>>, vector<8x512xf32>,
    return
  }
  func.func @transform_0(%arg0: i32) -> (i32, i32, i32) {
    %c0_i32 = arith.constant 0 : i32
    %c0_i32_0 = arith.constant 0 : i32
    %c0_i32_1 = arith.constant 0 : i32
    return %c0_i32, %arg0, %c0_i32_0 : i32, i32, i32
  }
  func.func @transform_1(%arg0: i32) -> (i32, i32) {
    %c0_i32 = arith.constant 0 : i32
    %c0_i32_0 = arith.constant 0 : i32
    return %arg0, %c0_i32 : i32, i32
  }
}

module attributes {stable_mosaic.version = 11 : i64} {
  func.func @_matmul_affine_kernel(%arg0: i32, %arg1: i32, %arg2: memref<8x512xbf16, #tpu.memory_space<vmem>>, %arg3: memref<512x10xbf16, #tpu.memory_space<vmem>>, %arg4: memref<1x10xf32, #tpu.memory_space<vmem>>, %arg5: memref<1x10xf32, #tpu.memory_space<vmem>>, %arg6: memref<8x10xf32, #tpu.memory_space<vmem>>) attributes {dimension_semantics = [#tpu.dimension_semantics<parallel>, #tpu.dimension_semantics<parallel>], iteration_bounds = array<i64: 1, 1>, scalar_prefetch = 0 : i64, scratch_operands = 0 : i64, tpu.core_type = #tpu.core_type<tc>, window_params = [{transform_indices = @transform_0, window_bounds = array<i64: 8, 512>}, {transform_indices = @transform_1, window_bounds = array<i64: 512, 10>}, {transform_indices = @transform_2, window_bounds = array<i64: 1, 10>}, {transform_indices = @transform_3, window_bounds = array<i64: 1, 10>}, {transform_indices = @transform_4, window_bounds = array<i64: 8, 10>}]} {
    %c0 = arith.constant 0 : index
    %c0_0 = arith.constant 0 : index
    %0 = vector.load %arg2[%c0, %c0_0] : memref<8x512xbf16, #tpu.memory_space<vmem>>, vector<8x512xbf16>
    %c0_1 = arith.constant 0 : index
    %c0_2 = arith.constant 0 : index
    %1 = vector.load %arg3[%c0_1, %c0_2] : memref<512x10xbf16, #tpu.memory_space<vmem>>, vector<512x10xbf16>
    %cst = arith.constant dense<0.000000e+00> : vector<8x10xf32>
    %2 = tpu.matmul %0, %1, %cst {dimension_numbers = #tpu.dot_dimension_numbers<[1], [0], [0], [1], [0, 0, 1, 1], [], []>} : vector<8x512xbf16>, vector<512x10xbf16>, vector<8x10xf32> -> vector<8x10xf32>
    %c0_3 = arith.constant 0 : index
    %c0_4 = arith.constant 0 : index
    %3 = vector.load %arg4[%c0_3, %c0_4] : memref<1x10xf32, #tpu.memory_space<vmem>>, vector<1x10xf32>
    %4 = vector.broadcast %3 : vector<1x10xf32> to vector<8x10xf32>
    %5 = arith.mulf %2, %4 : vector<8x10xf32>
    %c0_5 = arith.constant 0 : index
    %c0_6 = arith.constant 0 : index
    %6 = vector.load %arg5[%c0_5, %c0_6] : memref<1x10xf32, #tpu.memory_space<vmem>>, vector<1x10xf32>
    %7 = vector.broadcast %6 : vector<1x10xf32> to vector<8x10xf32>
    %8 = arith.addf %5, %7 : vector<8x10xf32>
    %c0_7 = arith.constant 0 : index
    %c0_8 = arith.constant 0 : index
    %9 = vector.load %arg6[%c0_7, %c0_8] : memref<8x10xf32, #tpu.memory_space<vmem>>, vector<8x10xf32>
    tpu.vector_store %arg6[%c0_7, %c0_8], %8 {strides = array<i32>} : memref<8x10xf32, #tpu.memory_space<vmem>>, vector<8x10xf32>,
    return
  }
  func.func @transform_0(%arg0: i32, %arg1: i32) -> (i32, i32) {
    %c0_i32 = arith.constant 0 : i32
    %c0_i32_0 = arith.constant 0 : i32
    return %arg0, %c0_i32 : i32, i32
  }
  func.func @transform_1(%arg0: i32, %arg1: i32) -> (i32, i32) {
    %c0_i32 = arith.constant 0 : i32
    %c0_i32_0 = arith.constant 0 : i32
    return %c0_i32, %arg1 : i32, i32
  }
  func.func @transform_2(%arg0: i32, %arg1: i32) -> (i32, i32) {
    %c0_i32 = arith.constant 0 : i32
    %c0_i32_0 = arith.constant 0 : i32
    return %c0_i32, %arg1 : i32, i32
  }
  func.func @transform_3(%arg0: i32, %arg1: i32) -> (i32, i32) {
    %c0_i32 = arith.constant 0 : i32
    %c0_i32_0 = arith.constant 0 : i32
    return %c0_i32, %arg1 : i32, i32
  }
  func.func @transform_4(%arg0: i32, %arg1: i32) -> (i32, i32) {
    %c0_i32 = arith.constant 0 : i32
    return %arg0, %arg1 : i32, i32
  }
}

</mosaic_0001>

<bundles_post_ra>
// kernel: _lambda_.14
= control target key start
LH: loop header
LB: loop body
LE: loop exit
PB: predicated region body
PF: predicated region fallthrough
CT: control target
= control target key end

     0   :  { %s1307_s15 = smov 0   ;;  %s1309_s16 = smov 0   ;;  %s1569_s0 = inlined_call_operand.vmem [shape: bf16[512,256], index: 0, kind: input, shape index: {}]   ;;  %s1570_s1 = inlined_call_operand.vmem [shape: bf16[256,64], index: 1, kind: input, shape index: {}]   ;;  %s1571_s2 = inlined_call_operand.vmem [shape: f32[1,64], index: 2, kind: input, shape index: {}]   ;;  %s1572_s3 = inlined_call_operand.vmem [shape: f32[1,64], index: 3, kind: input, shape index: {}]   ;;  %s1573_s4 = inlined_call_operand.vmem [shape: f32[512,64], index: 4, kind: output, shape index: {}]  }
   0x1   :  { %s1311_s17 = smov 0  }
   0x2 LB: > { %s26_s18 = sadd.s32 1, %s1276_s16  ;;  %p983_p0 = scmp.ge.s32.totalorder %s1280_s17, 1  ;;  %s1280_s17 = sphi %s1311_s17, %s14_s17   ;;  %s1276_s16 = sphi %s1309_s16, %s1575_s16   ;;  %s1272_s15 = sphi %s1307_s15, %s1574_s15  }
   0x3   : > { %p28_p1 = scmp.ge.s32.totalorder %s26_s18, 2  ;;  %p203_p2 = scmp.lt.s32.totalorder %s1280_s17, 3 }
   0x5   : > { %s1577_s18 = smov (%p28_p1, %s26_s18), 0  ;;  %p204_p3 = pnand %p983_p0, %p203_p2 }
   0x6   : > { %s984_s21 = sshll.u32 (!%p204_p3), %s1272_s15, 5 }
   0x7   : > { %207 = sbr.rel (%p204_p3) target bundleno = 307 (0x133), region = 36  ;;  %p244_p4 = scmp.lt.s32.totalorder (!%p204_p3), %s984_s21, 63 }
   0xc   : > { %v1194_v0 = vld [vmem:[%s1570_s1 + $0x78] sm:$0xff]   ;;  %v1196_v2 = vld [vmem:[%s1570_s1 + $0x70] sm:$0xff]   ;;  %v1198_v4 = vld [vmem:[%s1570_s1 + $0x68] sm:$0xff]   ;;  %s1579_s21 = smov (!%p244_p4, %s984_s21), 63  ;;  %vm829_vm0 = vcmask 523264  }
   0xd   : > { %v1195_v1 = vld [vmem:[%s1570_s1 + $0x38] sm:$0xff]   ;;  %1042 = vmatprep.subr.bf16.mxu0 %v1194_v0  ;;  %1154 = vmatprep.subr.bf16.mxu1 %v1194_v0  ;;  %v1197_v3 = vld [vmem:[%s1570_s1 + $0x30] sm:$0xff]   ;;  %v1199_v5 = vld [vmem:[%s1570_s1 + $0x28] sm:$0xff]   ;;  %s1041_s10 = sshll.u32 %s1579_s21, 3 }
   0xe   : > { %1043 = vmatpush3.bf16.msra.mxu0 %v1195_v1  ;;  %1162 = vmatpush3.bf16.msra.mxu1 %v1195_v1  ;;  %v1200_v6 = vld [vmem:[%s1570_s1 + $0x60] sm:$0xff]   ;;  %v1202_v8 = vld [vmem:[%s1570_s1 + $0x58] sm:$0xff]   ;;  %s1360_s15 = scalar_lea.vmem %s1569_s0, %s1041_s10  ;;  %v1204_v10 = vld [vmem:[%s1570_s1 + $0x50] sm:$0xff]  }
   0xf   : > { %1044 = vmatprep.subr.bf16.mxu0 %v1196_v2  ;;  %1155 = vmatprep.subr.bf16.mxu1 %v1196_v2  ;;  %v1201_v7 = vld [vmem:[%s1570_s1 + $0x20] sm:$0xff]   ;;  %v1203_v9 = vld [vmem:[%s1570_s1 + $0x18] sm:$0xff]   ;;  %v1205_v13 = vld [vmem:[%s1570_s1 + $0x10] sm:$0xff]  }
  0x10   : > { %v1212_v11 = vld [vmem:[%s1360_s15 + $0x4] ss:$8 sps:$4 sm:$0xff]   ;;  %v1210_v18 = vld [vmem:[%s1360_s15] ss:$8 sps:$4 sm:$0xff]   ;;  %v1216_v20 = vld [vmem:[%s1360_s15 + $0x14] ss:$8 sps:$4 sm:$0xff]  }
  0x11   : > { %v1215_v12 = vld [vmem:[%s1360_s15 + $0x84] ss:$8 sps:$4 sm:$0xff]   ;;  %622 = vmatprep.mubr.bf16.mxu0 %v1212_v11  ;;  %v1213_v19 = vld [vmem:[%s1360_s15 + $0x80] ss:$8 sps:$4 sm:$0xff]   ;;  %v1218_v21 = vld [vmem:[%s1360_s15 + $0x94] ss:$8 sps:$4 sm:$0xff]  }
  0x12   : > { %1045 = vmatpush3.bf16.msra.mxu0 %v1197_v3  ;;  %1163 = vmatpush3.bf16.msra.mxu1 %v1197_v3  ;;  %v1206_v14 = vld [vmem:[%s1570_s1 + $0x48] sm:$0xff]   ;;  %v1208_v16 = vld [vmem:[%s1570_s1 + $0x40] sm:$0xff]   ;;  %v1220_v22 = vld [vmem:[%s1360_s15 + $0x10] ss:$8 sps:$4 sm:$0xff]  }
  0x13   : > { %1046 = vmatprep.subr.bf16.mxu0 %v1198_v4  ;;  %1156 = vmatprep.subr.bf16.mxu1 %v1198_v4  ;;  %v1207_v15 = vld [vmem:[%s1570_s1 + $0x8] sm:$0xff]   ;;  %v1209_v17 = vld [vmem:[%s1570_s1] sm:$0xff]   ;;  %v1221_v23 = vld [vmem:[%s1360_s15 + $0x90] ss:$8 sps:$4 sm:$0xff]  }
  0x14   : > { %686 = vmatprep.mubr.bf16.mxu1 %v1215_v12  ;;  %v1222_v24 = vld [vmem:[%s1360_s15 + $0x24] ss:$8 sps:$4 sm:$0xff]   ;;  %v1226_v26 = vld [vmem:[%s1360_s15 + $0x20] ss:$8 sps:$4 sm:$0xff]   ;;  %v1228_v28 = vld [vmem:[%s1360_s15 + $0x34] ss:$8 sps:$4 sm:$0xff]  }
  0x15   : > { %v1224_v25 = vld [vmem:[%s1360_s15 + $0xa4] ss:$8 sps:$4 sm:$0xff]   ;;  %v1227_v27 = vld [vmem:[%s1360_s15 + $0xa0] ss:$8 sps:$4 sm:$0xff]   ;;  %v1230_v29 = vld [vmem:[%s1360_s15 + $0xb4] ss:$8 sps:$4 sm:$0xff]  }
  0x16   : > { %1047 = vmatpush3.bf16.msra.mxu0 %v1199_v5  ;;  %1164 = vmatpush3.bf16.msra.mxu1 %v1199_v5  ;;  %v1232_v30 = vld [vmem:[%s1360_s15 + $0x30] ss:$8 sps:$4 sm:$0xff]   ;;  %v1234_v32 = vld [vmem:[%s1360_s15 + $0x44] ss:$8 sps:$4 sm:$0xff]   ;;  %v1238_v34 = vld [vmem:[%s1360_s15 + $0x40] ss:$8 sps:$4 sm:$0xff]  }
  0x17   : > { %1048 = vmatprep.subr.bf16.mxu0 %v1200_v6  ;;  %1157 = vmatprep.subr.bf16.mxu1 %v1200_v6  ;;  %v1233_v31 = vld [vmem:[%s1360_s15 + $0xb0] ss:$8 sps:$4 sm:$0xff]   ;;  %v1236_v33 = vld [vmem:[%s1360_s15 + $0xc4] ss:$8 sps:$4 sm:$0xff]   ;;  %v1239_v35 = vld [vmem:[%s1360_s15 + $0xc0] ss:$8 sps:$4 sm:$0xff]  }
  0x18   : > { %v1240_v36 = vld [vmem:[%s1360_s15 + $0x54] ss:$8 sps:$4 sm:$0xff]   ;;  %v1244_v38 = vld [vmem:[%s1360_s15 + $0x50] ss:$8 sps:$4 sm:$0xff]   ;;  %v1246_v40 = vld [vmem:[%s1360_s15 + $0x64] ss:$8 sps:$4 sm:$0xff]  }
  0x19   : > { %v1242_v37 = vld [vmem:[%s1360_s15 + $0xd4] ss:$8 sps:$4 sm:$0xff]   ;;  %v1245_v39 = vld [vmem:[%s1360_s15 + $0xd0] ss:$8 sps:$4 sm:$0xff]   ;;  %v1248_v41 = vld [vmem:[%s1360_s15 + $0xe4] ss:$8 sps:$4 sm:$0xff]  }
  0x1a   : > { %1049 = vmatpush3.bf16.msra.mxu0 %v1201_v7  ;;  %1165 = vmatpush3.bf16.msra.mxu1 %v1201_v7  ;;  %v1250_v42 = vld [vmem:[%s1360_s15 + $0x60] ss:$8 sps:$4 sm:$0xff]   ;;  %v1252_v44 = vld [vmem:[%s1360_s15 + $0x74] ss:$8 sps:$4 sm:$0xff]   ;;  %v1256_v46 = vld [vmem:[%s1360_s15 + $0x70] ss:$8 sps:$4 sm:$0xff]  }
  0x1b   : > { %1050 = vmatprep.subr.bf16.mxu0 %v1202_v8  ;;  %1158 = vmatprep.subr.bf16.mxu1 %v1202_v8  ;;  %v1251_v43 = vld [vmem:[%s1360_s15 + $0xe0] ss:$8 sps:$4 sm:$0xff]   ;;  %v1254_v45 = vld [vmem:[%s1360_s15 + $0xf4] ss:$8 sps:$4 sm:$0xff]   ;;  %v1257_v47 = vld [vmem:[%s1360_s15 + $0xf0] ss:$8 sps:$4 sm:$0xff]   ;;  %s1432_s15 = scalar_lea.vmem %s1573_s4, %s1041_s10 }
  0x1c   : > { %v1418_v51 = vld [vmem:[%s1571_s2] ss:$0 sm:$0xff] }
  0x1d   : > { %v1423_v55 = vld [vmem:[%s1572_s3] ss:$0 sm:$0xff] }
  0x1e   : > { %1051 = vmatpush3.bf16.msra.mxu0 %v1203_v9  ;;  %1166 = vmatpush3.bf16.msra.mxu1 %v1203_v9 }
  0x1f   : > { %1052 = vmatprep.subr.bf16.mxu0 %v1204_v10  ;;  %1159 = vmatprep.subr.bf16.mxu1 %v1204_v10 }
  0x22   : > { %1053 = vmatpush3.bf16.msra.mxu0 %v1205_v13  ;;  %1167 = vmatpush3.bf16.msra.mxu1 %v1205_v13 }
  0x23   : > { %1054 = vmatprep.subr.bf16.mxu0 %v1206_v14  ;;  %1160 = vmatprep.subr.bf16.mxu1 %v1206_v14 }
  0x26   : > { %1055 = vmatpush3.bf16.msra.mxu0 %v1207_v15  ;;  %1168 = vmatpush3.bf16.msra.mxu1 %v1207_v15 }
  0x27   : > { %1056 = vmatprep.subr.bf16.mxu0 %v1208_v16  ;;  %1161 = vmatprep.subr.bf16.mxu1 %v1208_v16 }
  0x2a   : > { %1057 = vmatpush3.bf16.msra.mxu0 %v1209_v17  ;;  %1169 = vmatpush3.bf16.msra.mxu1 %v1209_v17 }
  0x2d   : > { %623 = vmatmul.mubr.bf16.vlgmr.msra.gmra.mxu0 %v1210_v18  ;;  %687 = vmatmul.mubr.bf16.vlgmr.msra.gmra.mxu1 %v1213_v19 }
  0x2e   : > { %630 = vmatprep.mubr.bf16.mxu0 %v1216_v20  ;;  %694 = vmatprep.mubr.bf16.mxu1 %v1218_v21 }
  0x35   : > { %631 = vmatmul.mubr.bf16.gmra.mxu0 %v1220_v22  ;;  %695 = vmatmul.mubr.bf16.gmra.mxu1 %v1221_v23 }
  0x36   : > { %638 = vmatprep.mubr.bf16.mxu0 %v1222_v24  ;;  %702 = vmatprep.mubr.bf16.mxu1 %v1224_v25 }
  0x3d   : > { %639 = vmatmul.mubr.bf16.gmra.mxu0 %v1226_v26  ;;  %703 = vmatmul.mubr.bf16.gmra.mxu1 %v1227_v27 }
  0x3e   : > { %646 = vmatprep.mubr.bf16.mxu0 %v1228_v28  ;;  %710 = vmatprep.mubr.bf16.mxu1 %v1230_v29 }
  0x45   : > { %647 = vmatmul.mubr.bf16.gmra.mxu0 %v1232_v30  ;;  %711 = vmatmul.mubr.bf16.gmra.mxu1 %v1233_v31 }
  0x46   : > { %654 = vmatprep.mubr.bf16.mxu0 %v1234_v32  ;;  %718 = vmatprep.mubr.bf16.mxu1 %v1236_v33 }
  0x4d   : > { %655 = vmatmul.mubr.bf16.gmra.mxu0 %v1238_v34  ;;  %719 = vmatmul.mubr.bf16.gmra.mxu1 %v1239_v35 }
  0x4e   : > { %662 = vmatprep.mubr.bf16.mxu0 %v1240_v36  ;;  %726 = vmatprep.mubr.bf16.mxu1 %v1242_v37 }
  0x55   : > { %663 = vmatmul.mubr.bf16.gmra.mxu0 %v1244_v38  ;;  %727 = vmatmul.mubr.bf16.gmra.mxu1 %v1245_v39 }
  0x56   : > { %670 = vmatprep.mubr.bf16.mxu0 %v1246_v40  ;;  %734 = vmatprep.mubr.bf16.mxu1 %v1248_v41 }
  0x5d   : > { %671 = vmatmul.mubr.bf16.gmra.mxu0 %v1250_v42  ;;  %735 = vmatmul.mubr.bf16.gmra.mxu1 %v1251_v43 }
  0x5e   : > { %678 = vmatprep.mubr.bf16.mxu0 %v1252_v44  ;;  %742 = vmatprep.mubr.bf16.mxu1 %v1254_v45 }
  0x65   : > { %679 = vmatmul.mubr.bf16.gmra.mxu0 %v1256_v46  ;;  %743 = vmatmul.mubr.bf16.gmra.mxu1 %v1257_v47 }
  0xed   : > { %v1058_v48 = vpop.f32.mrf.mxu0  ;;  %v1106_v49 = vpop.f32.mrf.mxu1 }
  0xef   : > { %v1059_v50 = vpop.f32.mrf.mxu0  ;;  %v1107_v52 = vpop.f32.mrf.mxu1 }
  0xf0   : > { %v1060_v53 = vadd.f32 %v1059_v50, %v1058_v48  ;;  %v1108_v54 = vadd.f32 %v1107_v52, %v1106_v49 }
  0xf1   : > { %v1061_v56 = vpop.f32.mrf.mxu0  ;;  %v1109_v57 = vpop.f32.mrf.mxu1 }
  0xf2   : > { %v758_v58 = vmul.f32 %v1060_v53, %v1418_v51  ;;  %v774_v59 = vmul.f32 %v1108_v54, %v1418_v51 }
  0xf3   : > { %v1062_v60 = vpop.f32.mrf.mxu0  ;;  %v1110_v61 = vpop.f32.mrf.mxu1 }
  0xf4   : > { %v797_v62 = vadd.f32 %v1423_v55, %v758_v58  ;;  %v813_v63 = vadd.f32 %v1423_v55, %v774_v59  ;;  %v1063_v0 = vadd.f32 %v1062_v60, %v1061_v56  ;;  %v1111_v1 = vadd.f32 %v1110_v61, %v1109_v57 }
  0xf5   : > { %v1064_v2 = vpop.f32.mrf.mxu0  ;;  %v1112_v3 = vpop.f32.mrf.mxu1 }
  0xf6   : > { %830 = vst.msk [vmem:[%s1432_s15] sm:$0xff] %vm829_vm0, %v797_v62  ;;  %846 = vst.msk [vmem:[%s1432_s15 + $0x80] sm:$0xff] %vm829_vm0, %v813_v63  ;;  %v759_v4 = vmul.f32 %v1063_v0, %v1418_v51  ;;  %v775_v5 = vmul.f32 %v1111_v1, %v1418_v51 }
  0xf7   : > { %v1065_v6 = vpop.f32.mrf.mxu0  ;;  %v1113_v7 = vpop.f32.mrf.mxu1 }
  0xf8   : > { %v798_v8 = vadd.f32 %v1423_v55, %v759_v4  ;;  %v814_v9 = vadd.f32 %v1423_v55, %v775_v5  ;;  %v1066_v10 = vadd.f32 %v1065_v6, %v1064_v2  ;;  %v1114_v11 = vadd.f32 %v1113_v7, %v1112_v3 }
  0xf9   : > { %v1067_v12 = vpop.f32.mrf.mxu0  ;;  %v1115_v13 = vpop.f32.mrf.mxu1 }
  0xfa   : > { %831 = vst.msk [vmem:[%s1432_s15 + $0x8] sm:$0xff] %vm829_vm0, %v798_v8  ;;  %847 = vst.msk [vmem:[%s1432_s15 + $0x88] sm:$0xff] %vm829_vm0, %v814_v9  ;;  %v760_v14 = vmul.f32 %v1066_v10, %v1418_v51  ;;  %v776_v15 = vmul.f32 %v1114_v11, %v1418_v51 }
  0xfb   : > { %v1068_v16 = vpop.f32.mrf.mxu0  ;;  %v1116_v17 = vpop.f32.mrf.mxu1 }
  0xfc   : > { %v799_v18 = vadd.f32 %v1423_v55, %v760_v14  ;;  %v815_v19 = vadd.f32 %v1423_v55, %v776_v15  ;;  %v1069_v20 = vadd.f32 %v1068_v16, %v1067_v12  ;;  %v1117_v21 = vadd.f32 %v1116_v17, %v1115_v13 }
  0xfd   : > { %v1070_v22 = vpop.f32.mrf.mxu0  ;;  %v1118_v23 = vpop.f32.mrf.mxu1 }
  0xfe   : > { %832 = vst.msk [vmem:[%s1432_s15 + $0x10] sm:$0xff] %vm829_vm0, %v799_v18  ;;  %848 = vst.msk [vmem:[%s1432_s15 + $0x90] sm:$0xff] %vm829_vm0, %v815_v19  ;;  %v761_v24 = vmul.f32 %v1069_v20, %v1418_v51  ;;  %v777_v25 = vmul.f32 %v1117_v21, %v1418_v51 }
  0xff   : > { %v1071_v26 = vpop.f32.mrf.mxu0  ;;  %v1119_v27 = vpop.f32.mrf.mxu1 }
 0x100   : > { %v800_v28 = vadd.f32 %v1423_v55, %v761_v24  ;;  %v816_v29 = vadd.f32 %v1423_v55, %v777_v25  ;;  %v1072_v30 = vadd.f32 %v1071_v26, %v1070_v22  ;;  %v1120_v31 = vadd.f32 %v1119_v27, %v1118_v23 }
 0x101   : > { %v1073_v32 = vpop.f32.mrf.mxu0  ;;  %v1121_v33 = vpop.f32.mrf.mxu1 }
 0x102   : > { %833 = vst.msk [vmem:[%s1432_s15 + $0x18] sm:$0xff] %vm829_vm0, %v800_v28  ;;  %849 = vst.msk [vmem:[%s1432_s15 + $0x98] sm:$0xff] %vm829_vm0, %v816_v29  ;;  %v762_v34 = vmul.f32 %v1072_v30, %v1418_v51  ;;  %v778_v35 = vmul.f32 %v1120_v31, %v1418_v51 }
 0x103   : > { %v1074_v36 = vpop.f32.mrf.mxu0  ;;  %v1122_v37 = vpop.f32.mrf.mxu1 }
 0x104   : > { %v801_v38 = vadd.f32 %v1423_v55, %v762_v34  ;;  %v817_v39 = vadd.f32 %v1423_v55, %v778_v35  ;;  %v1075_v40 = vadd.f32 %v1074_v36, %v1073_v32  ;;  %v1123_v41 = vadd.f32 %v1122_v37, %v1121_v33 }
 0x105   : > { %v1076_v42 = vpop.f32.mrf.mxu0  ;;  %v1124_v43 = vpop.f32.mrf.mxu1 }
 0x106   : > { %834 = vst.msk [vmem:[%s1432_s15 + $0x20] sm:$0xff] %vm829_vm0, %v801_v38  ;;  %850 = vst.msk [vmem:[%s1432_s15 + $0xa0] sm:$0xff] %vm829_vm0, %v817_v39  ;;  %v763_v44 = vmul.f32 %v1075_v40, %v1418_v51  ;;  %v779_v45 = vmul.f32 %v1123_v41, %v1418_v51 }
 0x107   : > { %v1077_v46 = vpop.f32.mrf.mxu0  ;;  %v1125_v47 = vpop.f32.mrf.mxu1 }
 0x108   : > { %v802_v48 = vadd.f32 %v1423_v55, %v763_v44  ;;  %v818_v49 = vadd.f32 %v1423_v55, %v779_v45  ;;  %v1078_v50 = vadd.f32 %v1077_v46, %v1076_v42  ;;  %v1126_v52 = vadd.f32 %v1125_v47, %v1124_v43 }
 0x109   : > { %v1079_v53 = vpop.f32.mrf.mxu0  ;;  %v1127_v54 = vpop.f32.mrf.mxu1 }
 0x10a   : > { %835 = vst.msk [vmem:[%s1432_s15 + $0x28] sm:$0xff] %vm829_vm0, %v802_v48  ;;  %851 = vst.msk [vmem:[%s1432_s15 + $0xa8] sm:$0xff] %vm829_vm0, %v818_v49  ;;  %v764_v56 = vmul.f32 %v1078_v50, %v1418_v51  ;;  %v780_v57 = vmul.f32 %v1126_v52, %v1418_v51 }
 0x10b   : > { %v1080_v58 = vpop.f32.mrf.mxu0  ;;  %v1128_v59 = vpop.f32.mrf.mxu1 }
 0x10c   : > { %v803_v60 = vadd.f32 %v1423_v55, %v764_v56  ;;  %v819_v61 = vadd.f32 %v1423_v55, %v780_v57  ;;  %v1081_v62 = vadd.f32 %v1080_v58, %v1079_v53  ;;  %v1129_v63 = vadd.f32 %v1128_v59, %v1127_v54 }
 0x10d   : > { %v1082_v0 = vpop.f32.mrf.mxu0  ;;  %v1130_v1 = vpop.f32.mrf.mxu1 }
 0x10e   : > { %836 = vst.msk [vmem:[%s1432_s15 + $0x30] sm:$0xff] %vm829_vm0, %v803_v60  ;;  %852 = vst.msk [vmem:[%s1432_s15 + $0xb0] sm:$0xff] %vm829_vm0, %v819_v61  ;;  %v765_v2 = vmul.f32 %v1081_v62, %v1418_v51  ;;  %v781_v3 = vmul.f32 %v1129_v63, %v1418_v51 }
 0x10f   : > { %v1083_v4 = vpop.f32.mrf.mxu0  ;;  %v1131_v5 = vpop.f32.mrf.mxu1 }
 0x110   : > { %v804_v6 = vadd.f32 %v1423_v55, %v765_v2  ;;  %v820_v7 = vadd.f32 %v1423_v55, %v781_v3  ;;  %v1084_v8 = vadd.f32 %v1083_v4, %v1082_v0  ;;  %v1132_v9 = vadd.f32 %v1131_v5, %v1130_v1 }
 0x111   : > { %v1085_v10 = vpop.f32.mrf.mxu0  ;;  %v1133_v11 = vpop.f32.mrf.mxu1 }
 0x112   : > { %837 = vst.msk [vmem:[%s1432_s15 + $0x38] sm:$0xff] %vm829_vm0, %v804_v6  ;;  %853 = vst.msk [vmem:[%s1432_s15 + $0xb8] sm:$0xff] %vm829_vm0, %v820_v7  ;;  %v766_v12 = vmul.f32 %v1084_v8, %v1418_v51  ;;  %v782_v13 = vmul.f32 %v1132_v9, %v1418_v51 }
 0x113   : > { %v1086_v14 = vpop.f32.mrf.mxu0  ;;  %v1134_v15 = vpop.f32.mrf.mxu1 }
 0x114   : > { %v805_v16 = vadd.f32 %v1423_v55, %v766_v12  ;;  %v821_v17 = vadd.f32 %v1423_v55, %v782_v13  ;;  %v1087_v18 = vadd.f32 %v1086_v14, %v1085_v10  ;;  %v1135_v19 = vadd.f32 %v1134_v15, %v1133_v11 }
 0x115   : > { %v1088_v20 = vpop.f32.mrf.mxu0  ;;  %v1136_v21 = vpop.f32.mrf.mxu1 }
 0x116   : > { %838 = vst.msk [vmem:[%s1432_s15 + $0x40] sm:$0xff] %vm829_vm0, %v805_v16  ;;  %854 = vst.msk [vmem:[%s1432_s15 + $0xc0] sm:$0xff] %vm829_vm0, %v821_v17  ;;  %v767_v22 = vmul.f32 %v1087_v18, %v1418_v51  ;;  %v783_v23 = vmul.f32 %v1135_v19, %v1418_v51 }
 0x117   : > { %v1089_v24 = vpop.f32.mrf.mxu0  ;;  %v1137_v25 = vpop.f32.mrf.mxu1 }
 0x118   : > { %v806_v26 = vadd.f32 %v1423_v55, %v767_v22  ;;  %v822_v27 = vadd.f32 %v1423_v55, %v783_v23  ;;  %v1090_v28 = vadd.f32 %v1089_v24, %v1088_v20  ;;  %v1138_v29 = vadd.f32 %v1137_v25, %v1136_v21 }
 0x119   : > { %v1091_v30 = vpop.f32.mrf.mxu0  ;;  %v1139_v31 = vpop.f32.mrf.mxu1 }
 0x11a   : > { %839 = vst.msk [vmem:[%s1432_s15 + $0x48] sm:$0xff] %vm829_vm0, %v806_v26  ;;  %855 = vst.msk [vmem:[%s1432_s15 + $0xc8] sm:$0xff] %vm829_vm0, %v822_v27  ;;  %v768_v32 = vmul.f32 %v1090_v28, %v1418_v51  ;;  %v784_v33 = vmul.f32 %v1138_v29, %v1418_v51 }
 0x11b   : > { %v1092_v34 = vpop.f32.mrf.mxu0  ;;  %v1140_v35 = vpop.f32.mrf.mxu1 }
 0x11c   : > { %v807_v36 = vadd.f32 %v1423_v55, %v768_v32  ;;  %v823_v37 = vadd.f32 %v1423_v55, %v784_v33  ;;  %v1093_v38 = vadd.f32 %v1092_v34, %v1091_v30  ;;  %v1141_v39 = vadd.f32 %v1140_v35, %v1139_v31 }
 0x11d   : > { %v1094_v40 = vpop.f32.mrf.mxu0  ;;  %v1142_v41 = vpop.f32.mrf.mxu1 }
 0x11e   : > { %840 = vst.msk [vmem:[%s1432_s15 + $0x50] sm:$0xff] %vm829_vm0, %v807_v36  ;;  %856 = vst.msk [vmem:[%s1432_s15 + $0xd0] sm:$0xff] %vm829_vm0, %v823_v37  ;;  %v769_v42 = vmul.f32 %v1093_v38, %v1418_v51  ;;  %v785_v43 = vmul.f32 %v1141_v39, %v1418_v51 }
 0x11f   : > { %v1095_v44 = vpop.f32.mrf.mxu0  ;;  %v1143_v45 = vpop.f32.mrf.mxu1 }
 0x120   : > { %v808_v46 = vadd.f32 %v1423_v55, %v769_v42  ;;  %v824_v47 = vadd.f32 %v1423_v55, %v785_v43  ;;  %v1096_v48 = vadd.f32 %v1095_v44, %v1094_v40  ;;  %v1144_v49 = vadd.f32 %v1143_v45, %v1142_v41 }
 0x121   : > { %v1097_v50 = vpop.f32.mrf.mxu0  ;;  %v1145_v52 = vpop.f32.mrf.mxu1 }
 0x122   : > { %841 = vst.msk [vmem:[%s1432_s15 + $0x58] sm:$0xff] %vm829_vm0, %v808_v46  ;;  %857 = vst.msk [vmem:[%s1432_s15 + $0xd8] sm:$0xff] %vm829_vm0, %v824_v47  ;;  %v770_v53 = vmul.f32 %v1096_v48, %v1418_v51  ;;  %v786_v54 = vmul.f32 %v1144_v49, %v1418_v51 }
 0x123   : > { %v1098_v56 = vpop.f32.mrf.mxu0  ;;  %v1146_v57 = vpop.f32.mrf.mxu1 }
 0x124   : > { %v809_v58 = vadd.f32 %v1423_v55, %v770_v53  ;;  %v825_v59 = vadd.f32 %v1423_v55, %v786_v54  ;;  %v1099_v60 = vadd.f32 %v1098_v56, %v1097_v50  ;;  %v1147_v61 = vadd.f32 %v1146_v57, %v1145_v52 }
 0x125   : > { %v1100_v62 = vpop.f32.mrf.mxu0  ;;  %v1148_v63 = vpop.f32.mrf.mxu1 }
 0x126   : > { %842 = vst.msk [vmem:[%s1432_s15 + $0x60] sm:$0xff] %vm829_vm0, %v809_v58  ;;  %858 = vst.msk [vmem:[%s1432_s15 + $0xe0] sm:$0xff] %vm829_vm0, %v825_v59  ;;  %v771_v0 = vmul.f32 %v1099_v60, %v1418_v51  ;;  %v787_v1 = vmul.f32 %v1147_v61, %v1418_v51 }
 0x127   : > { %v1101_v2 = vpop.f32.mrf.mxu0  ;;  %v1149_v3 = vpop.f32.mrf.mxu1 }
 0x128   : > { %v810_v4 = vadd.f32 %v1423_v55, %v771_v0  ;;  %v826_v5 = vadd.f32 %v1423_v55, %v787_v1  ;;  %v1102_v6 = vadd.f32 %v1101_v2, %v1100_v62  ;;  %v1150_v7 = vadd.f32 %v1149_v3, %v1148_v63 }
 0x129   : > { %v1103_v8 = vpop.f32.mrf.mxu0  ;;  %v1151_v9 = vpop.f32.mrf.mxu1 }
 0x12a   : > { %843 = vst.msk [vmem:[%s1432_s15 + $0x68] sm:$0xff] %vm829_vm0, %v810_v4  ;;  %859 = vst.msk [vmem:[%s1432_s15 + $0xe8] sm:$0xff] %vm829_vm0, %v826_v5  ;;  %v772_v10 = vmul.f32 %v1102_v6, %v1418_v51  ;;  %v788_v11 = vmul.f32 %v1150_v7, %v1418_v51 }
 0x12b   : > { %v1104_v12 = vpop.f32.mrf.mxu0  ;;  %v1152_v13 = vpop.f32.mrf.mxu1 }
 0x12c   : > { %v811_v14 = vadd.f32 %v1423_v55, %v772_v10  ;;  %v827_v15 = vadd.f32 %v1423_v55, %v788_v11  ;;  %v1105_v16 = vadd.f32 %v1104_v12, %v1103_v8  ;;  %v1153_v17 = vadd.f32 %v1152_v13, %v1151_v9 }
 0x12e   : > { %844 = vst.msk [vmem:[%s1432_s15 + $0x70] sm:$0xff] %vm829_vm0, %v811_v14  ;;  %860 = vst.msk [vmem:[%s1432_s15 + $0xf0] sm:$0xff] %vm829_vm0, %v827_v15  ;;  %v773_v18 = vmul.f32 %v1105_v16, %v1418_v51  ;;  %v789_v19 = vmul.f32 %v1153_v17, %v1418_v51 }
 0x130   : > { %v812_v20 = vadd.f32 %v1423_v55, %v773_v18  ;;  %v828_v21 = vadd.f32 %v1423_v55, %v789_v19 }
 0x132   : > { %845 = vst.msk [vmem:[%s1432_s15 + $0x78] sm:$0xff] %vm829_vm0, %v812_v20  ;;  %861 = vst.msk [vmem:[%s1432_s15 + $0xf8] sm:$0xff] %vm829_vm0, %v828_v21 }
 0x133 PF: > { %s14_s17 = sadd.s32 1, %s1280_s17   ;;  %s1574_s15 = smov %s1276_s16 }
 0x134   : > { %p11_p5 = scmp.ge.s32.totalorder %s14_s17, 4   ;;  %s1575_s16 = smov %s1577_s18 }
 0x136   :  { %13 = sbr.rel (!%p11_p5) target bundleno = 2 (0x2), region = 75 }

// kernel: _lambda_.15
= control target key start
LH: loop header
LB: loop body
LE: loop exit
PB: predicated region body
PF: predicated region fallthrough
CT: control target
= control target key end

     0   :  { %vm152_vm0 = vcmask 523264   ;;  %s1095_s0 = inlined_call_operand.vmem [shape: f32[9,128,64], index: 0, kind: input, shape index: {}]   ;;  %s1096_s1 = inlined_call_operand.vmem [shape: f32[128,64], index: 1, kind: output, shape index: {}]  }
   0x1   :  { %v8_v0 = vld [vmem:[%s1095_s0] sm:$0xff]  ;;  %v9_v13 = vld [vmem:[%s1095_s0 + $0x8] sm:$0xff]  ;;  %v10_v32 = vld [vmem:[%s1095_s0 + $0x10] sm:$0xff] }
   0x2   :  { %v24_v1 = vld [vmem:[%s1095_s0 + $0x80] sm:$0xff]  ;;  %v153_v5 = vsel %vm152_vm0, %v8_v0, -inf  ;;  %v25_v14 = vld [vmem:[%s1095_s0 + $0x88] sm:$0xff]  ;;  %v170_v19 = vsel %vm152_vm0, %v9_v13, -inf  ;;  %v26_v33 = vld [vmem:[%s1095_s0 + $0x90] sm:$0xff]  ;;  %v187_v38 = vsel %vm152_vm0, %v10_v32, -inf }
   0x3   :  { %v40_v2 = vld [vmem:[%s1095_s0 + $0x100] sm:$0xff]  ;;  %v154_v6 = vsel %vm152_vm0, %v24_v1, -inf  ;;  %v41_v15 = vld [vmem:[%s1095_s0 + $0x108] sm:$0xff]  ;;  %v171_v20 = vsel %vm152_vm0, %v25_v14, -inf  ;;  %v42_v34 = vld [vmem:[%s1095_s0 + $0x110] sm:$0xff]  ;;  %v188_v39 = vsel %vm152_vm0, %v26_v33, -inf }
   0x4   :  { %v56_v3 = vld [vmem:[%s1095_s0 + $0x180] sm:$0xff]  ;;  %v156_v7 = vsel %vm152_vm0, %v40_v2, -inf  ;;  %v155_v11 = vmax.f32 %v153_v5, %v154_v6  ;;  %v57_v18 = vld [vmem:[%s1095_s0 + $0x188] sm:$0xff]  ;;  %v173_v21 = vsel %vm152_vm0, %v41_v15, -inf  ;;  %v172_v27 = vmax.f32 %v170_v19, %v171_v20  ;;  %v58_v37 = vld [vmem:[%s1095_s0 + $0x190] sm:$0xff] }
   0x5   :  { %v72_v4 = vld [vmem:[%s1095_s0 + $0x200] sm:$0xff]  ;;  %v158_v12 = vsel %vm152_vm0, %v56_v3, -inf  ;;  %v73_v24 = vld [vmem:[%s1095_s0 + $0x208] sm:$0xff]  ;;  %v175_v31 = vsel %vm152_vm0, %v57_v18, -inf  ;;  %v190_v40 = vsel %vm152_vm0, %v42_v34, -inf  ;;  %v74_v45 = vld [vmem:[%s1095_s0 + $0x210] sm:$0xff]  ;;  %v189_v46 = vmax.f32 %v187_v38, %v188_v39 }
   0x6   :  { %v88_v8 = vld [vmem:[%s1095_s0 + $0x280] sm:$0xff]  ;;  %v157_v17 = vmax.f32 %v155_v11, %v156_v7  ;;  %v160_v22 = vsel %vm152_vm0, %v72_v4, -inf  ;;  %v89_v25 = vld [vmem:[%s1095_s0 + $0x288] sm:$0xff]  ;;  %v174_v36 = vmax.f32 %v172_v27, %v173_v21  ;;  %v177_v44 = vsel %vm152_vm0, %v73_v24, -inf  ;;  %v11_v51 = vld [vmem:[%s1095_s0 + $0x18] sm:$0xff] }
   0x7   :  { %v104_v9 = vld [vmem:[%s1095_s0 + $0x300] sm:$0xff]  ;;  %v162_v23 = vsel %vm152_vm0, %v88_v8, -inf  ;;  %v105_v26 = vld [vmem:[%s1095_s0 + $0x308] sm:$0xff]  ;;  %v179_v48 = vsel %vm152_vm0, %v89_v25, -inf  ;;  %v192_v50 = vsel %vm152_vm0, %v58_v37, -inf  ;;  %v27_v52 = vld [vmem:[%s1095_s0 + $0x98] sm:$0xff]  ;;  %v191_v58 = vmax.f32 %v189_v46, %v190_v40 }
   0x8   :  { %v120_v10 = vld [vmem:[%s1095_s0 + $0x380] sm:$0xff]  ;;  %v159_v28 = vmax.f32 %v157_v17, %v158_v12  ;;  %v164_v29 = vsel %vm152_vm0, %v104_v9, -inf  ;;  %v121_v35 = vld [vmem:[%s1095_s0 + $0x388] sm:$0xff]  ;;  %v176_v47 = vmax.f32 %v174_v36, %v175_v31  ;;  %v181_v49 = vsel %vm152_vm0, %v105_v26, -inf  ;;  %v43_v53 = vld [vmem:[%s1095_s0 + $0x118] sm:$0xff] }
   0x9   :  { %v136_v16 = vld [vmem:[%s1095_s0 + $0x400] sm:$0xff]  ;;  %v166_v30 = vsel %vm152_vm0, %v120_v10, -inf  ;;  %v137_v43 = vld [vmem:[%s1095_s0 + $0x408] sm:$0xff]  ;;  %v183_v55 = vsel %vm152_vm0, %v121_v35, -inf  ;;  %v90_v56 = vld [vmem:[%s1095_s0 + $0x290] sm:$0xff]  ;;  %v204_v60 = vsel %vm152_vm0, %v11_v51, -inf  ;;  %v193_v4 = vmax.f32 %v191_v58, %v192_v50 }
   0xa   :  { %v161_v41 = vmax.f32 %v159_v28, %v160_v22  ;;  %v168_v42 = vsel %vm152_vm0, %v136_v16, -inf  ;;  %v106_v57 = vld [vmem:[%s1095_s0 + $0x310] sm:$0xff]  ;;  %v59_v59 = vld [vmem:[%s1095_s0 + $0x198] sm:$0xff]  ;;  %v178_v61 = vmax.f32 %v176_v47, %v177_v44  ;;  %v194_v62 = vsel %vm152_vm0, %v74_v45, -inf  ;;  %v12_v6 = vld [vmem:[%s1095_s0 + $0x20] sm:$0xff] }
   0xb   :  { %v75_v63 = vld [vmem:[%s1095_s0 + $0x218] sm:$0xff]  ;;  %v205_v0 = vsel %vm152_vm0, %v27_v52, -inf  ;;  %v207_v1 = vsel %vm152_vm0, %v43_v53, -inf  ;;  %v185_v3 = vsel %vm152_vm0, %v137_v43, -inf  ;;  %v28_v7 = vld [vmem:[%s1095_s0 + $0xa0] sm:$0xff]  ;;  %v196_v10 = vsel %vm152_vm0, %v90_v56, -inf }
   0xc   :  { %v163_v54 = vmax.f32 %v161_v41, %v162_v23  ;;  %v206_v5 = vmax.f32 %v204_v60, %v205_v0  ;;  %v44_v8 = vld [vmem:[%s1095_s0 + $0x120] sm:$0xff]  ;;  %v180_v9 = vmax.f32 %v178_v61, %v179_v48  ;;  %v198_v11 = vsel %vm152_vm0, %v106_v57, -inf  ;;  %v122_v14 = vld [vmem:[%s1095_s0 + $0x390] sm:$0xff]  ;;  %v91_v16 = vld [vmem:[%s1095_s0 + $0x298] sm:$0xff] }
   0xd   :  { %v209_v12 = vsel %vm152_vm0, %v59_v59, -inf  ;;  %v195_v15 = vmax.f32 %v193_v4, %v194_v62  ;;  %v211_v18 = vsel %vm152_vm0, %v75_v63, -inf  ;;  %v60_v19 = vld [vmem:[%s1095_s0 + $0x1a0] sm:$0xff]  ;;  %v138_v21 = vld [vmem:[%s1095_s0 + $0x410] sm:$0xff]  ;;  %v221_v22 = vsel %vm152_vm0, %v12_v6, -inf  ;;  %v107_v27 = vld [vmem:[%s1095_s0 + $0x318] sm:$0xff] }
   0xe   :  { %v165_v2 = vmax.f32 %v163_v54, %v164_v29  ;;  %v208_v17 = vmax.f32 %v206_v5, %v207_v1  ;;  %v182_v20 = vmax.f32 %v180_v9, %v181_v49  ;;  %v222_v23 = vsel %vm152_vm0, %v28_v7, -inf  ;;  %v76_v29 = vld [vmem:[%s1095_s0 + $0x220] sm:$0xff]  ;;  %v13_v31 = vld [vmem:[%s1095_s0 + $0x28] sm:$0xff]  ;;  %v123_v39 = vld [vmem:[%s1095_s0 + $0x398] sm:$0xff] }
   0xf   :  { %v224_v24 = vsel %vm152_vm0, %v44_v8, -inf  ;;  %v197_v26 = vmax.f32 %v195_v15, %v196_v10  ;;  %v200_v33 = vsel %vm152_vm0, %v122_v14, -inf  ;;  %v213_v34 = vsel %vm152_vm0, %v91_v16, -inf  ;;  %v29_v36 = vld [vmem:[%s1095_s0 + $0xa8] sm:$0xff]  ;;  %v92_v41 = vld [vmem:[%s1095_s0 + $0x2a0] sm:$0xff]  ;;  %v139_v50 = vld [vmem:[%s1095_s0 + $0x418] sm:$0xff] }
  0x10   :  { %v167_v13 = vmax.f32 %v165_v2, %v166_v30  ;;  %v210_v28 = vmax.f32 %v208_v17, %v209_v12  ;;  %v223_v30 = vmax.f32 %v221_v22, %v222_v23  ;;  %v184_v32 = vmax.f32 %v182_v20, %v183_v55  ;;  %v45_v43 = vld [vmem:[%s1095_s0 + $0x128] sm:$0xff]  ;;  %v108_v52 = vld [vmem:[%s1095_s0 + $0x320] sm:$0xff]  ;;  %v14_v60 = vld [vmem:[%s1095_s0 + $0x30] sm:$0xff] }
  0x11   :  { %v226_v35 = vsel %vm152_vm0, %v60_v19, -inf  ;;  %v199_v37 = vmax.f32 %v197_v26, %v198_v11  ;;  %v202_v38 = vsel %vm152_vm0, %v138_v21, -inf  ;;  %v215_v45 = vsel %vm152_vm0, %v107_v27, -inf  ;;  %v61_v47 = vld [vmem:[%s1095_s0 + $0x1a8] sm:$0xff]  ;;  %v30_v61 = vld [vmem:[%s1095_s0 + $0xb0] sm:$0xff]  ;;  %v124_v0 = vld [vmem:[%s1095_s0 + $0x3a0] sm:$0xff] }
  0x12   :  { %v169_v25 = vmax.f32 %v167_v13, %v168_v42  ;;  %v212_v40 = vmax.f32 %v210_v28, %v211_v18  ;;  %v225_v42 = vmax.f32 %v223_v30, %v224_v24  ;;  %v186_v44 = vmax.f32 %v184_v32, %v185_v3  ;;  %v77_v54 = vld [vmem:[%s1095_s0 + $0x228] sm:$0xff]  ;;  %v46_v3 = vld [vmem:[%s1095_s0 + $0x130] sm:$0xff]  ;;  %v140_v11 = vld [vmem:[%s1095_s0 + $0x420] sm:$0xff] }
  0x13   :  { %v228_v46 = vsel %vm152_vm0, %v76_v29, -inf  ;;  %v238_v48 = vsel %vm152_vm0, %v13_v31, -inf  ;;  %v201_v49 = vmax.f32 %v199_v37, %v200_v33  ;;  %v239_v55 = vsel %vm152_vm0, %v29_v36, -inf  ;;  %v93_v6 = vld [vmem:[%s1095_s0 + $0x2a8] sm:$0xff]  ;;  %v62_v9 = vld [vmem:[%s1095_s0 + $0x1b0] sm:$0xff]  ;;  %v15_v21 = vld [vmem:[%s1095_s0 + $0x38] sm:$0xff] }
  0x14   :  { %425 = vst.msk [vmem:[%s1096_s1] sm:$0xff] %vm152_vm0, %v169_v25  ;;  %v214_v51 = vmax.f32 %v212_v40, %v213_v34  ;;  %v227_v53 = vmax.f32 %v225_v42, %v226_v35  ;;  %426 = vst.msk [vmem:[%s1096_s1 + $0x8] sm:$0xff] %vm152_vm0, %v186_v44  ;;  %v217_v56 = vsel %vm152_vm0, %v123_v39, -inf  ;;  %v230_v57 = vsel %vm152_vm0, %v92_v41, -inf  ;;  %v109_v13 = vld [vmem:[%s1095_s0 + $0x328] sm:$0xff]  ;;  %v78_v18 = vld [vmem:[%s1095_s0 + $0x230] sm:$0xff] }
  0x15   :  { %v240_v58 = vmax.f32 %v238_v48, %v239_v55  ;;  %v241_v59 = vsel %vm152_vm0, %v45_v43, -inf  ;;  %v203_v62 = vmax.f32 %v201_v49, %v202_v38  ;;  %v243_v2 = vsel %vm152_vm0, %v61_v47, -inf  ;;  %v31_v22 = vld [vmem:[%s1095_s0 + $0xb8] sm:$0xff]  ;;  %v125_v29 = vld [vmem:[%s1095_s0 + $0x3a8] sm:$0xff]  ;;  %v94_v32 = vld [vmem:[%s1095_s0 + $0x2b0] sm:$0xff] }
  0x16   :  { %v216_v63 = vmax.f32 %v214_v51, %v215_v45  ;;  %v229_v1 = vmax.f32 %v227_v53, %v228_v46  ;;  %v219_v4 = vsel %vm152_vm0, %v139_v50, -inf  ;;  %v232_v5 = vsel %vm152_vm0, %v108_v52, -inf  ;;  %v47_v27 = vld [vmem:[%s1095_s0 + $0x138] sm:$0xff]  ;;  %v141_v36 = vld [vmem:[%s1095_s0 + $0x428] sm:$0xff]  ;;  %v110_v37 = vld [vmem:[%s1095_s0 + $0x330] sm:$0xff] }
  0x17   :  { %v242_v7 = vmax.f32 %v240_v58, %v241_v59  ;;  %v245_v8 = vsel %vm152_vm0, %v77_v54, -inf  ;;  %427 = vst.msk [vmem:[%s1096_s1 + $0x10] sm:$0xff] %vm152_vm0, %v203_v62  ;;  %v255_v14 = vsel %vm152_vm0, %v14_v60, -inf  ;;  %v256_v15 = vsel %vm152_vm0, %v30_v61, -inf  ;;  %v63_v34 = vld [vmem:[%s1095_s0 + $0x1b8] sm:$0xff]  ;;  %v16_v46 = vld [vmem:[%s1095_s0 + $0x40] sm:$0xff] }
  0x18   :  { %v218_v10 = vmax.f32 %v216_v63, %v217_v56  ;;  %v231_v12 = vmax.f32 %v229_v1, %v230_v57  ;;  %v234_v16 = vsel %vm152_vm0, %v124_v0, -inf  ;;  %v257_v19 = vmax.f32 %v255_v14, %v256_v15  ;;  %v79_v43 = vld [vmem:[%s1095_s0 + $0x238] sm:$0xff]  ;;  %v32_v47 = vld [vmem:[%s1095_s0 + $0xc0] sm:$0xff]  ;;  %v126_v50 = vld [vmem:[%s1095_s0 + $0x3b0] sm:$0xff] }
  0x19   :  { %v244_v17 = vmax.f32 %v242_v7, %v243_v2  ;;  %v258_v20 = vsel %vm152_vm0, %v46_v3, -inf  ;;  %v247_v25 = vsel %vm152_vm0, %v93_v6, -inf  ;;  %v260_v26 = vsel %vm152_vm0, %v62_v9, -inf  ;;  %v95_v56 = vld [vmem:[%s1095_s0 + $0x2b8] sm:$0xff]  ;;  %v48_v58 = vld [vmem:[%s1095_s0 + $0x140] sm:$0xff]  ;;  %v142_v60 = vld [vmem:[%s1095_s0 + $0x430] sm:$0xff] }
  0x1a   :  { %v220_v23 = vmax.f32 %v218_v10, %v219_v4  ;;  %v233_v24 = vmax.f32 %v231_v12, %v232_v5  ;;  %v236_v28 = vsel %vm152_vm0, %v140_v11, -inf  ;;  %v249_v31 = vsel %vm152_vm0, %v109_v13, -inf  ;;  %v64_v59 = vld [vmem:[%s1095_s0 + $0x1c0] sm:$0xff]  ;;  %v111_v3 = vld [vmem:[%s1095_s0 + $0x338] sm:$0xff]  ;;  %v17_v7 = vld [vmem:[%s1095_s0 + $0x48] sm:$0xff] }
  0x1b   :  { %v246_v30 = vmax.f32 %v244_v17, %v245_v8  ;;  %v259_v33 = vmax.f32 %v257_v19, %v258_v20  ;;  %v262_v38 = vsel %vm152_vm0, %v78_v18, -inf  ;;  %v272_v39 = vsel %vm152_vm0, %v15_v21, -inf  ;;  %v80_v5 = vld [vmem:[%s1095_s0 + $0x240] sm:$0xff]  ;;  %v33_v12 = vld [vmem:[%s1095_s0 + $0xc8] sm:$0xff]  ;;  %v127_v15 = vld [vmem:[%s1095_s0 + $0x3b8] sm:$0xff] }
  0x1c   :  { %428 = vst.msk [vmem:[%s1096_s1 + $0x18] sm:$0xff] %vm152_vm0, %v220_v23  ;;  %v235_v35 = vmax.f32 %v233_v24, %v234_v16  ;;  %v273_v40 = vsel %vm152_vm0, %v31_v22, -inf  ;;  %v275_v45 = vsel %vm152_vm0, %v47_v27, -inf  ;;  %v251_v49 = vsel %vm152_vm0, %v125_v29, -inf  ;;  %v96_v17 = vld [vmem:[%s1095_s0 + $0x2c0] sm:$0xff]  ;;  %v49_v19 = vld [vmem:[%s1095_s0 + $0x148] sm:$0xff] }
  0x1d   :  { %v248_v41 = vmax.f32 %v246_v30, %v247_v25  ;;  %v261_v42 = vmax.f32 %v259_v33, %v260_v26  ;;  %v274_v44 = vmax.f32 %v272_v39, %v273_v40  ;;  %v264_v51 = vsel %vm152_vm0, %v94_v32, -inf  ;;  %v65_v23 = vld [vmem:[%s1095_s0 + $0x1c8] sm:$0xff]  ;;  %v143_v26 = vld [vmem:[%s1095_s0 + $0x438] sm:$0xff]  ;;  %v128_v40 = vld [vmem:[%s1095_s0 + $0x3c0] sm:$0xff] }
  0x1e   :  { %v237_v48 = vmax.f32 %v235_v35, %v236_v28  ;;  %v277_v52 = vsel %vm152_vm0, %v63_v34, -inf  ;;  %v253_v54 = vsel %vm152_vm0, %v141_v36, -inf  ;;  %v266_v61 = vsel %vm152_vm0, %v110_v37, -inf  ;;  %v112_v28 = vld [vmem:[%s1095_s0 + $0x340] sm:$0xff]  ;;  %v81_v30 = vld [vmem:[%s1095_s0 + $0x248] sm:$0xff]  ;;  %v18_v36 = vld [vmem:[%s1095_s0 + $0x50] sm:$0xff] }
  0x1f   :  { %v250_v53 = vmax.f32 %v248_v41, %v249_v31  ;;  %v263_v55 = vmax.f32 %v261_v42, %v262_v38  ;;  %v276_v57 = vmax.f32 %v274_v44, %v275_v45  ;;  %v279_v62 = vsel %vm152_vm0, %v79_v43, -inf  ;;  %v34_v37 = vld [vmem:[%s1095_s0 + $0xd0] sm:$0xff] }
  0x20   :  { %429 = vst.msk [vmem:[%s1096_s1 + $0x20] sm:$0xff] %vm152_vm0, %v237_v48  ;;  %v289_v63 = vsel %vm152_vm0, %v16_v46, -inf  ;;  %v290_v0 = vsel %vm152_vm0, %v32_v47, -inf  ;;  %v268_v8 = vsel %vm152_vm0, %v126_v50, -inf  ;;  %v281_v9 = vsel %vm152_vm0, %v95_v56, -inf  ;;  %v50_v43 = vld [vmem:[%s1095_s0 + $0x150] sm:$0xff] }
  0x21   :  { %v252_v1 = vmax.f32 %v250_v53, %v251_v49  ;;  %v265_v2 = vmax.f32 %v263_v55, %v264_v51  ;;  %v278_v4 = vmax.f32 %v276_v57, %v277_v52  ;;  %v291_v6 = vmax.f32 %v289_v63, %v290_v0  ;;  %v97_v46 = vld [vmem:[%s1095_s0 + $0x2c8] sm:$0xff]  ;;  %v66_v49 = vld [vmem:[%s1095_s0 + $0x1d0] sm:$0xff]  ;;  %v144_v51 = vld [vmem:[%s1095_s0 + $0x440] sm:$0xff] }
  0x22   :  { %v292_v10 = vsel %vm152_vm0, %v48_v58, -inf  ;;  %v294_v11 = vsel %vm152_vm0, %v64_v59, -inf  ;;  %v270_v20 = vsel %vm152_vm0, %v142_v60, -inf  ;;  %v283_v21 = vsel %vm152_vm0, %v111_v3, -inf  ;;  %v113_v53 = vld [vmem:[%s1095_s0 + $0x348] sm:$0xff]  ;;  %v82_v58 = vld [vmem:[%s1095_s0 + $0x250] sm:$0xff] }
  0x23   :  { %v254_v13 = vmax.f32 %v252_v1, %v253_v54  ;;  %v267_v14 = vmax.f32 %v265_v2, %v266_v61  ;;  %v280_v16 = vmax.f32 %v278_v4, %v279_v62  ;;  %v293_v18 = vmax.f32 %v291_v6, %v292_v10  ;;  %v19_v61 = vld [vmem:[%s1095_s0 + $0x58] sm:$0xff] }
  0x24   :  { %v296_v22 = vsel %vm152_vm0, %v80_v5, -inf  ;;  %v306_v24 = vsel %vm152_vm0, %v17_v7, -inf  ;;  %v307_v31 = vsel %vm152_vm0, %v33_v12, -inf  ;;  %v285_v32 = vsel %vm152_vm0, %v127_v15, -inf  ;;  %v35_v62 = vld [vmem:[%s1095_s0 + $0xd8] sm:$0xff]  ;;  %v129_v5 = vld [vmem:[%s1095_s0 + $0x3c8] sm:$0xff] }
  0x25   :  { %430 = vst.msk [vmem:[%s1096_s1 + $0x28] sm:$0xff] %vm152_vm0, %v254_v13  ;;  %v269_v25 = vmax.f32 %v267_v14, %v268_v8  ;;  %v282_v27 = vmax.f32 %v280_v16, %v281_v9  ;;  %v295_v29 = vmax.f32 %v293_v18, %v294_v11  ;;  %v298_v33 = vsel %vm152_vm0, %v96_v17, -inf  ;;  %v51_v3 = vld [vmem:[%s1095_s0 + $0x158] sm:$0xff]  ;;  %v98_v8 = vld [vmem:[%s1095_s0 + $0x2d0] sm:$0xff]  ;;  %v145_v12 = vld [vmem:[%s1095_s0 + $0x448] sm:$0xff] }
  0x26   :  { %v308_v34 = vmax.f32 %v306_v24, %v307_v31  ;;  %v309_v35 = vsel %vm152_vm0, %v49_v19, -inf  ;;  %v311_v42 = vsel %vm152_vm0, %v65_v23, -inf  ;;  %v287_v44 = vsel %vm152_vm0, %v143_v26, -inf  ;;  %v67_v10 = vld [vmem:[%s1095_s0 + $0x1d8] sm:$0xff]  ;;  %v114_v13 = vld [vmem:[%s1095_s0 + $0x350] sm:$0xff]  ;;  %v36_v23 = vld [vmem:[%s1095_s0 + $0xe0] sm:$0xff] }
  0x27   :  { %v271_v38 = vmax.f32 %v269_v25, %v270_v20  ;;  %v284_v39 = vmax.f32 %v282_v27, %v283_v21  ;;  %v297_v41 = vmax.f32 %v295_v29, %v296_v22  ;;  %v300_v45 = vsel %vm152_vm0, %v112_v28, -inf  ;;  %v83_v19 = vld [vmem:[%s1095_s0 + $0x258] sm:$0xff]  ;;  %v20_v22 = vld [vmem:[%s1095_s0 + $0x60] sm:$0xff]  ;;  %v130_v26 = vld [vmem:[%s1095_s0 + $0x3d0] sm:$0xff] }
  0x28   :  { %v310_v47 = vmax.f32 %v308_v34, %v309_v35  ;;  %v313_v48 = vsel %vm152_vm0, %v81_v30, -inf  ;;  %v323_v54 = vsel %vm152_vm0, %v18_v36, -inf  ;;  %v324_v55 = vsel %vm152_vm0, %v34_v37, -inf  ;;  %v52_v34 = vld [vmem:[%s1095_s0 + $0x160] sm:$0xff]  ;;  %v146_v36 = vld [vmem:[%s1095_s0 + $0x450] sm:$0xff] }
  0x29   :  { %431 = vst.msk [vmem:[%s1096_s1 + $0x30] sm:$0xff] %vm152_vm0, %v271_v38  ;;  %v286_v50 = vmax.f32 %v284_v39, %v285_v32  ;;  %v299_v52 = vmax.f32 %v297_v41, %v298_v33  ;;  %v302_v56 = vsel %vm152_vm0, %v128_v40, -inf  ;;  %v325_v59 = vmax.f32 %v323_v54, %v324_v55  ;;  %v99_v32 = vld [vmem:[%s1095_s0 + $0x2d8] sm:$0xff]  ;;  %v68_v35 = vld [vmem:[%s1095_s0 + $0x1e0] sm:$0xff] }
  0x2a   :  { %v312_v57 = vmax.f32 %v310_v47, %v311_v42  ;;  %v326_v60 = vsel %vm152_vm0, %v50_v43, -inf  ;;  %v315_v1 = vsel %vm152_vm0, %v97_v46, -inf  ;;  %v328_v2 = vsel %vm152_vm0, %v66_v49, -inf  ;;  %v115_v43 = vld [vmem:[%s1095_s0 + $0x358] sm:$0xff]  ;;  %v21_v47 = vld [vmem:[%s1095_s0 + $0x68] sm:$0xff] }
  0x2b   :  { %v288_v63 = vmax.f32 %v286_v50, %v287_v44  ;;  %v301_v0 = vmax.f32 %v299_v52, %v300_v45  ;;  %v304_v4 = vsel %vm152_vm0, %v144_v51, -inf  ;;  %v317_v7 = vsel %vm152_vm0, %v113_v53, -inf  ;;  %v84_v45 = vld [vmem:[%s1095_s0 + $0x260] sm:$0xff]  ;;  %v37_v52 = vld [vmem:[%s1095_s0 + $0xe8] sm:$0xff]  ;;  %v131_v55 = vld [vmem:[%s1095_s0 + $0x3d8] sm:$0xff] }
  0x2c   :  { %v314_v6 = vmax.f32 %v312_v57, %v313_v48  ;;  %v327_v9 = vmax.f32 %v325_v59, %v326_v60  ;;  %v330_v14 = vsel %vm152_vm0, %v82_v58, -inf  ;;  %v340_v15 = vsel %vm152_vm0, %v19_v61, -inf  ;;  %v100_v57 = vld [vmem:[%s1095_s0 + $0x2e0] sm:$0xff]  ;;  %v53_v59 = vld [vmem:[%s1095_s0 + $0x168] sm:$0xff] }
  0x2d   :  { %432 = vst.msk [vmem:[%s1096_s1 + $0x38] sm:$0xff] %vm152_vm0, %v288_v63  ;;  %v303_v11 = vmax.f32 %v301_v0, %v302_v56  ;;  %v341_v16 = vsel %vm152_vm0, %v35_v62, -inf  ;;  %v343_v21 = vsel %vm152_vm0, %v51_v3, -inf  ;;  %v319_v25 = vsel %vm152_vm0, %v129_v5, -inf  ;;  %v69_v63 = vld [vmem:[%s1095_s0 + $0x1e8] sm:$0xff] }
  0x2e   :  { %v316_v17 = vmax.f32 %v314_v6, %v315_v1  ;;  %v329_v18 = vmax.f32 %v327_v9, %v328_v2  ;;  %v342_v20 = vmax.f32 %v340_v15, %v341_v16  ;;  %v332_v27 = vsel %vm152_vm0, %v98_v8, -inf  ;;  %v147_v2 = vld [vmem:[%s1095_s0 + $0x458] sm:$0xff]  ;;  %v85_v6 = vld [vmem:[%s1095_s0 + $0x268] sm:$0xff]  ;;  %v132_v16 = vld [vmem:[%s1095_s0 + $0x3e0] sm:$0xff] }
  0x2f   :  { %v305_v24 = vmax.f32 %v303_v11, %v304_v4  ;;  %v345_v28 = vsel %vm152_vm0, %v67_v10, -inf  ;;  %v321_v30 = vsel %vm152_vm0, %v145_v12, -inf  ;;  %v334_v37 = vsel %vm152_vm0, %v114_v13, -inf  ;;  %v116_v4 = vld [vmem:[%s1095_s0 + $0x360] sm:$0xff]  ;;  %v22_v12 = vld [vmem:[%s1095_s0 + $0x70] sm:$0xff] }
  0x30   :  { %v318_v29 = vmax.f32 %v316_v17, %v317_v7  ;;  %v331_v31 = vmax.f32 %v329_v18, %v330_v14  ;;  %v344_v33 = vmax.f32 %v342_v20, %v343_v21  ;;  %v347_v38 = vsel %vm152_vm0, %v83_v19, -inf  ;;  %v38_v13 = vld [vmem:[%s1095_s0 + $0xf0] sm:$0xff] }
  0x31   :  { %433 = vst.msk [vmem:[%s1096_s1 + $0x40] sm:$0xff] %vm152_vm0, %v305_v24  ;;  %v357_v39 = vsel %vm152_vm0, %v20_v22, -inf  ;;  %v358_v40 = vsel %vm152_vm0, %v36_v23, -inf  ;;  %v336_v48 = vsel %vm152_vm0, %v130_v26, -inf  ;;  %v349_v49 = vsel %vm152_vm0, %v99_v32, -inf  ;;  %v54_v19 = vld [vmem:[%s1095_s0 + $0x170] sm:$0xff] }
  0x32   :  { %v320_v41 = vmax.f32 %v318_v29, %v319_v25  ;;  %v333_v42 = vmax.f32 %v331_v31, %v332_v27  ;;  %v346_v44 = vmax.f32 %v344_v33, %v345_v28  ;;  %v359_v46 = vmax.f32 %v357_v39, %v358_v40  ;;  %v101_v22 = vld [vmem:[%s1095_s0 + $0x2e8] sm:$0xff]  ;;  %v70_v25 = vld [vmem:[%s1095_s0 + $0x1f0] sm:$0xff]  ;;  %v148_v27 = vld [vmem:[%s1095_s0 + $0x460] sm:$0xff] }
  0x33   :  { %v360_v50 = vsel %vm152_vm0, %v52_v34, -inf  ;;  %v362_v51 = vsel %vm152_vm0, %v68_v35, -inf  ;;  %v338_v60 = vsel %vm152_vm0, %v146_v36, -inf  ;;  %v351_v61 = vsel %vm152_vm0, %v115_v43, -inf  ;;  %v117_v29 = vld [vmem:[%s1095_s0 + $0x368] sm:$0xff]  ;;  %v86_v34 = vld [vmem:[%s1095_s0 + $0x270] sm:$0xff] }
  0x34   :  { %v322_v53 = vmax.f32 %v320_v41, %v321_v30  ;;  %v335_v54 = vmax.f32 %v333_v42, %v334_v37  ;;  %v348_v56 = vmax.f32 %v346_v44, %v347_v38  ;;  %v361_v58 = vmax.f32 %v359_v46, %v360_v50  ;;  %v23_v37 = vld [vmem:[%s1095_s0 + $0x78] sm:$0xff] }
  0x35   :  { %v364_v62 = vsel %vm152_vm0, %v84_v45, -inf  ;;  %v374_v0 = vsel %vm152_vm0, %v21_v47, -inf  ;;  %v375_v7 = vsel %vm152_vm0, %v37_v52, -inf  ;;  %v353_v8 = vsel %vm152_vm0, %v131_v55, -inf  ;;  %v39_v38 = vld [vmem:[%s1095_s0 + $0xf8] sm:$0xff]  ;;  %v133_v45 = vld [vmem:[%s1095_s0 + $0x3e8] sm:$0xff] }
  0x36   :  { %434 = vst.msk [vmem:[%s1096_s1 + $0x48] sm:$0xff] %vm152_vm0, %v322_v53  ;;  %v337_v1 = vmax.f32 %v335_v54, %v336_v48  ;;  %v350_v3 = vmax.f32 %v348_v56, %v349_v49  ;;  %v363_v5 = vmax.f32 %v361_v58, %v362_v51  ;;  %v366_v9 = vsel %vm152_vm0, %v100_v57, -inf  ;;  %v55_v43 = vld [vmem:[%s1095_s0 + $0x178] sm:$0xff]  ;;  %v102_v48 = vld [vmem:[%s1095_s0 + $0x2f0] sm:$0xff]  ;;  %v149_v55 = vld [vmem:[%s1095_s0 + $0x468] sm:$0xff] }
  0x37   :  { %v376_v10 = vmax.f32 %v374_v0, %v375_v7  ;;  %v377_v11 = vsel %vm152_vm0, %v53_v59, -inf  ;;  %v379_v18 = vsel %vm152_vm0, %v69_v63, -inf  ;;  %v355_v20 = vsel %vm152_vm0, %v147_v2, -inf  ;;  %v71_v50 = vld [vmem:[%s1095_s0 + $0x1f8] sm:$0xff]  ;;  %v118_v57 = vld [vmem:[%s1095_s0 + $0x370] sm:$0xff] }
  0x38   :  { %v339_v14 = vmax.f32 %v337_v1, %v338_v60  ;;  %v352_v15 = vmax.f32 %v350_v3, %v351_v61  ;;  %v365_v17 = vmax.f32 %v363_v5, %v364_v62  ;;  %v368_v21 = vsel %vm152_vm0, %v116_v4, -inf  ;;  %v87_v59 = vld [vmem:[%s1095_s0 + $0x278] sm:$0xff]  ;;  %v134_v3 = vld [vmem:[%s1095_s0 + $0x3f0] sm:$0xff] }
  0x39   :  { %v378_v23 = vmax.f32 %v376_v10, %v377_v11  ;;  %v381_v24 = vsel %vm152_vm0, %v85_v6, -inf  ;;  %v391_v30 = vsel %vm152_vm0, %v22_v12, -inf  ;;  %v392_v31 = vsel %vm152_vm0, %v38_v13, -inf  ;;  %v103_v5 = vld [vmem:[%s1095_s0 + $0x2f8] sm:$0xff]  ;;  %v150_v11 = vld [vmem:[%s1095_s0 + $0x470] sm:$0xff] }
  0x3a   :  { %435 = vst.msk [vmem:[%s1096_s1 + $0x50] sm:$0xff] %vm152_vm0, %v339_v14  ;;  %v354_v26 = vmax.f32 %v352_v15, %v353_v8  ;;  %v367_v28 = vmax.f32 %v365_v17, %v366_v9  ;;  %v370_v32 = vsel %vm152_vm0, %v132_v16, -inf  ;;  %v393_v35 = vmax.f32 %v391_v30, %v392_v31  ;;  %v119_v13 = vld [vmem:[%s1095_s0 + $0x378] sm:$0xff] }
  0x3b   :  { %v380_v33 = vmax.f32 %v378_v23, %v379_v18  ;;  %v394_v36 = vsel %vm152_vm0, %v54_v19, -inf  ;;  %v383_v41 = vsel %vm152_vm0, %v101_v22, -inf  ;;  %v396_v42 = vsel %vm152_vm0, %v70_v25, -inf  ;;  %v135_v19 = vld [vmem:[%s1095_s0 + $0x3f8] sm:$0xff] }
  0x3c   :  { %v356_v39 = vmax.f32 %v354_v26, %v355_v20  ;;  %v369_v40 = vmax.f32 %v367_v28, %v368_v21  ;;  %v372_v44 = vsel %vm152_vm0, %v148_v27, -inf  ;;  %v385_v47 = vsel %vm152_vm0, %v117_v29, -inf }
  0x3d   :  { %v382_v46 = vmax.f32 %v380_v33, %v381_v24  ;;  %v395_v49 = vmax.f32 %v393_v35, %v394_v36  ;;  %v398_v52 = vsel %vm152_vm0, %v86_v34, -inf  ;;  %v408_v53 = vsel %vm152_vm0, %v23_v37, -inf  ;;  %v151_v24 = vld [vmem:[%s1095_s0 + $0x478] sm:$0xff] }
  0x3e   :  { %436 = vst.msk [vmem:[%s1096_s1 + $0x58] sm:$0xff] %vm152_vm0, %v356_v39  ;;  %v371_v51 = vmax.f32 %v369_v40, %v370_v32  ;;  %v409_v54 = vsel %vm152_vm0, %v39_v38, -inf  ;;  %v411_v61 = vsel %vm152_vm0, %v55_v43, -inf  ;;  %v387_v63 = vsel %vm152_vm0, %v133_v45, -inf }
  0x3f   :  { %v384_v56 = vmax.f32 %v382_v46, %v383_v41  ;;  %v397_v58 = vmax.f32 %v395_v49, %v396_v42  ;;  %v410_v60 = vmax.f32 %v408_v53, %v409_v54  ;;  %v400_v0 = vsel %vm152_vm0, %v102_v48, -inf }
  0x40   :  { %v373_v62 = vmax.f32 %v371_v51, %v372_v44  ;;  %v413_v1 = vsel %vm152_vm0, %v71_v50, -inf  ;;  %v389_v7 = vsel %vm152_vm0, %v149_v55, -inf  ;;  %v402_v8 = vsel %vm152_vm0, %v118_v57, -inf }
  0x41   :  { %v386_v2 = vmax.f32 %v384_v56, %v385_v47  ;;  %v399_v4 = vmax.f32 %v397_v58, %v398_v52  ;;  %v412_v6 = vmax.f32 %v410_v60, %v411_v61  ;;  %v415_v9 = vsel %vm152_vm0, %v87_v59, -inf }
  0x42   :  { %437 = vst.msk [vmem:[%s1096_s1 + $0x60] sm:$0xff] %vm152_vm0, %v373_v62  ;;  %v404_v15 = vsel %vm152_vm0, %v134_v3, -inf  ;;  %v417_v16 = vsel %vm152_vm0, %v103_v5, -inf  ;;  %v406_v21 = vsel %vm152_vm0, %v150_v11, -inf  ;;  %v419_v22 = vsel %vm152_vm0, %v119_v13, -inf }
  0x43   :  { %v388_v10 = vmax.f32 %v386_v2, %v387_v63  ;;  %v401_v12 = vmax.f32 %v399_v4, %v400_v0  ;;  %v414_v14 = vmax.f32 %v412_v6, %v413_v1  ;;  %v421_v26 = vsel %vm152_vm0, %v135_v19, -inf }
  0x44   :  { %v423_v29 = vsel %vm152_vm0, %v151_v24, -inf }
  0x45   :  { %v390_v17 = vmax.f32 %v388_v10, %v389_v7  ;;  %v403_v18 = vmax.f32 %v401_v12, %v402_v8  ;;  %v416_v20 = vmax.f32 %v414_v14, %v415_v9 }
  0x47   :  { %438 = vst.msk [vmem:[%s1096_s1 + $0x68] sm:$0xff] %vm152_vm0, %v390_v17  ;;  %v405_v23 = vmax.f32 %v403_v18, %v404_v15  ;;  %v418_v25 = vmax.f32 %v416_v20, %v417_v16 }
  0x49   :  { %v407_v27 = vmax.f32 %v405_v23, %v406_v21  ;;  %v420_v28 = vmax.f32 %v418_v25, %v419_v22 }
  0x4b   :  { %439 = vst.msk [vmem:[%s1096_s1 + $0x70] sm:$0xff] %vm152_vm0, %v407_v27  ;;  %v422_v30 = vmax.f32 %v420_v28, %v421_v26 }
  0x4d   :  { %v424_v31 = vmax.f32 %v422_v30, %v423_v29 }
  0x4f   :  { %440 = vst.msk [vmem:[%s1096_s1 + $0x78] sm:$0xff] %vm152_vm0, %v424_v31 }

// kernel: _lambda_.16
= control target key start
LH: loop header
LB: loop body
LE: loop exit
PB: predicated region body
PF: predicated region fallthrough
CT: control target
= control target key end

     0   :  { %vm966_vm0 = vcmask 523264   ;;  %s1799_s1 = inlined_call_operand.vmem [shape: bf16[640,64], index: 1, kind: input, shape index: {}]   ;;  %s1800_s0 = inlined_call_operand.vmem [shape: bf16[128,640], index: 0, kind: input, shape index: {}]   ;;  %s1801_s2 = inlined_call_operand.vmem [shape: f32[1,64], index: 2, kind: input, shape index: {}]   ;;  %s1802_s3 = inlined_call_operand.vmem [shape: f32[1,64], index: 3, kind: input, shape index: {}]   ;;  %s1803_s4 = inlined_call_operand.vmem [shape: f32[128,64], index: 4, kind: input, shape index: {}]   ;;  %s1804_s5 = inlined_call_operand.vmem [shape: f32[128,64], index: 5, kind: output, shape index: {}]  }
   0x1   :  { %v1261_v0 = vld [vmem:[%s1799_s1 + $0x78] sm:$0xff]   ;;  %v1265_v4 = vld [vmem:[%s1799_s1 + $0x70] sm:$0xff]   ;;  %v1269_v8 = vld [vmem:[%s1799_s1 + $0x68] sm:$0xff]  }
   0x2   :  { %v1262_v1 = vld [vmem:[%s1799_s1 + $0xf8] sm:$0xff]   ;;  %1069 = vmatprep.subr.bf16.mxu0 %v1261_v0  ;;  %v1266_v5 = vld [vmem:[%s1799_s1 + $0xf0] sm:$0xff]   ;;  %v1270_v9 = vld [vmem:[%s1799_s1 + $0xe8] sm:$0xff]  }
   0x3   :  { %v1263_v2 = vld [vmem:[%s1799_s1 + $0x38] sm:$0xff]   ;;  %1133 = vmatprep.subr.bf16.mxu1 %v1262_v1  ;;  %v1267_v6 = vld [vmem:[%s1799_s1 + $0x30] sm:$0xff]   ;;  %v1271_v10 = vld [vmem:[%s1799_s1 + $0x28] sm:$0xff]  }
   0x4   :  { %v1264_v3 = vld [vmem:[%s1799_s1 + $0xb8] sm:$0xff]   ;;  %1070 = vmatpush3.bf16.msra.mxu0 %v1263_v2  ;;  %v1268_v7 = vld [vmem:[%s1799_s1 + $0xb0] sm:$0xff]   ;;  %v1272_v11 = vld [vmem:[%s1799_s1 + $0xa8] sm:$0xff]  }
   0x5   :  { %1134 = vmatpush3.bf16.msra.mxu1 %v1264_v3  ;;  %1071 = vmatprep.subr.bf16.mxu0 %v1265_v4  ;;  %v1273_v12 = vld [vmem:[%s1799_s1 + $0x60] sm:$0xff]   ;;  %v1277_v16 = vld [vmem:[%s1799_s1 + $0x58] sm:$0xff]   ;;  %v1281_v20 = vld [vmem:[%s1799_s1 + $0x50] sm:$0xff]  }
   0x6   :  { %1135 = vmatprep.subr.bf16.mxu1 %v1266_v5  ;;  %v1274_v13 = vld [vmem:[%s1799_s1 + $0xe0] sm:$0xff]   ;;  %v1278_v17 = vld [vmem:[%s1799_s1 + $0xd8] sm:$0xff]   ;;  %v1282_v21 = vld [vmem:[%s1799_s1 + $0xd0] sm:$0xff]  }
   0x7   :  { %v1275_v14 = vld [vmem:[%s1799_s1 + $0x20] sm:$0xff]   ;;  %v1279_v18 = vld [vmem:[%s1799_s1 + $0x18] sm:$0xff]   ;;  %v1283_v22 = vld [vmem:[%s1799_s1 + $0x10] sm:$0xff]  }
   0x8   :  { %1072 = vmatpush3.bf16.msra.mxu0 %v1267_v6  ;;  %v1276_v15 = vld [vmem:[%s1799_s1 + $0xa0] sm:$0xff]   ;;  %v1280_v19 = vld [vmem:[%s1799_s1 + $0x98] sm:$0xff]   ;;  %v1284_v23 = vld [vmem:[%s1799_s1 + $0x90] sm:$0xff]  }
   0x9   :  { %1136 = vmatpush3.bf16.msra.mxu1 %v1268_v7  ;;  %1073 = vmatprep.subr.bf16.mxu0 %v1269_v8  ;;  %v1285_v24 = vld [vmem:[%s1799_s1 + $0x48] sm:$0xff]   ;;  %v1289_v28 = vld [vmem:[%s1799_s1 + $0x40] sm:$0xff]   ;;  %v1299_v36 = vld [vmem:[%s1799_s1 + $0x138] sm:$0xff]  }
   0xa   :  { %1137 = vmatprep.subr.bf16.mxu1 %v1270_v9  ;;  %v1286_v25 = vld [vmem:[%s1799_s1 + $0xc8] sm:$0xff]   ;;  %v1290_v29 = vld [vmem:[%s1799_s1 + $0xc0] sm:$0xff]   ;;  %v1306_v39 = vld [vmem:[%s1799_s1 + $0x130] sm:$0xff]  }
   0xb   :  { %v1287_v26 = vld [vmem:[%s1799_s1 + $0x8] sm:$0xff]   ;;  %v1291_v30 = vld [vmem:[%s1799_s1] sm:$0xff]   ;;  %v1309_v43 = vld [vmem:[%s1800_s0 + $0x5c] ss:$20 sps:$4 sm:$0xff]  }
   0xc   :  { %1074 = vmatpush3.bf16.msra.mxu0 %v1271_v10  ;;  %v1288_v27 = vld [vmem:[%s1799_s1 + $0x88] sm:$0xff]   ;;  %v1292_v31 = vld [vmem:[%s1799_s1 + $0x80] sm:$0xff]   ;;  %v1314_v48 = vld [vmem:[%s1800_s0 + $0x7c] ss:$20 sps:$4 sm:$0xff]  }
   0xd   :  { %1138 = vmatpush3.bf16.msra.mxu1 %v1272_v11  ;;  %1075 = vmatprep.subr.bf16.mxu0 %v1273_v12  ;;  %v1293_v32 = vld [vmem:[%s1800_s0] ss:$20 sps:$4 sm:$0xff]   ;;  %v1295_v33 = vld [vmem:[%s1800_s0 + $0x4] ss:$20 sps:$4 sm:$0xff]   ;;  %v1296_v34 = vld [vmem:[%s1800_s0 + $0x8] ss:$20 sps:$4 sm:$0xff]  }
   0xe   :  { %1139 = vmatprep.subr.bf16.mxu1 %v1274_v13  ;;  %v1298_v35 = vld [vmem:[%s1800_s0 + $0xc] ss:$20 sps:$4 sm:$0xff]   ;;  %629 = vmatprep.mubr.bf16.mxu0 %v1295_v33  ;;  %v1302_v38 = vld [vmem:[%s1800_s0 + $0x34] ss:$20 sps:$4 sm:$0xff]   ;;  %v1305_v41 = vld [vmem:[%s1800_s0 + $0x30] ss:$20 sps:$4 sm:$0xff]  }
   0xf   :  { %726 = vmatprep.mubr.bf16.mxu1 %v1298_v35  ;;  %v1300_v37 = vld [vmem:[%s1800_s0 + $0x2c] ss:$20 sps:$4 sm:$0xff]   ;;  %v1304_v40 = vld [vmem:[%s1800_s0 + $0x28] ss:$20 sps:$4 sm:$0xff]   ;;  %v1311_v46 = vld [vmem:[%s1800_s0 + $0x50] ss:$20 sps:$4 sm:$0xff]  }
  0x10   :  { %1076 = vmatpush3.bf16.msra.mxu0 %v1275_v14  ;;  %v1307_v42 = vld [vmem:[%s1800_s0 + $0x54] ss:$20 sps:$4 sm:$0xff]   ;;  %v1320_v45 = vld [vmem:[%s1799_s1 + $0x120] sm:$0xff]   ;;  %v1312_v47 = vld [vmem:[%s1800_s0 + $0x58] ss:$20 sps:$4 sm:$0xff]  }
  0x11   :  { %1140 = vmatpush3.bf16.msra.mxu1 %v1276_v15  ;;  %1077 = vmatprep.subr.bf16.mxu0 %v1277_v16  ;;  %v1313_v44 = vld [vmem:[%s1799_s1 + $0x128] sm:$0xff]   ;;  %v1316_v49 = vld [vmem:[%s1800_s0 + $0x84] ss:$20 sps:$4 sm:$0xff]   ;;  %v1334_v51 = vld [vmem:[%s1799_s1 + $0x110] sm:$0xff]  }
  0x12   :  { %1141 = vmatprep.subr.bf16.mxu1 %v1278_v17  ;;  %v1327_v50 = vld [vmem:[%s1799_s1 + $0x118] sm:$0xff]   ;;  %v1319_v53 = vld [vmem:[%s1800_s0 + $0x80] ss:$20 sps:$4 sm:$0xff]   ;;  %v1341_v55 = vld [vmem:[%s1799_s1 + $0x108] sm:$0xff]  }
  0x13   :  { %v1318_v52 = vld [vmem:[%s1800_s0 + $0x78] ss:$20 sps:$4 sm:$0xff]   ;;  %v1348_v57 = vld [vmem:[%s1799_s1 + $0x100] sm:$0xff]   ;;  %v1326_v59 = vld [vmem:[%s1800_s0 + $0xa8] ss:$20 sps:$4 sm:$0xff]  }
  0x14   :  { %1078 = vmatpush3.bf16.msra.mxu0 %v1279_v18  ;;  %v1321_v54 = vld [vmem:[%s1800_s0 + $0xa4] ss:$20 sps:$4 sm:$0xff]   ;;  %v1323_v56 = vld [vmem:[%s1800_s0 + $0xac] ss:$20 sps:$4 sm:$0xff]   ;;  %v1330_v61 = vld [vmem:[%s1800_s0 + $0xd4] ss:$20 sps:$4 sm:$0xff]  }
  0x15   :  { %1142 = vmatpush3.bf16.msra.mxu1 %v1280_v19  ;;  %1079 = vmatprep.subr.bf16.mxu0 %v1281_v20  ;;  %v1325_v58 = vld [vmem:[%s1800_s0 + $0xa0] ss:$20 sps:$4 sm:$0xff]   ;;  %v1332_v62 = vld [vmem:[%s1800_s0 + $0xc8] ss:$20 sps:$4 sm:$0xff]   ;;  %v1333_v63 = vld [vmem:[%s1800_s0 + $0xd0] ss:$20 sps:$4 sm:$0xff]  }
  0x16   :  { %1143 = vmatprep.subr.bf16.mxu1 %v1282_v21  ;;  %v1328_v60 = vld [vmem:[%s1800_s0 + $0xcc] ss:$20 sps:$4 sm:$0xff]   ;;  %v1335_v0 = vld [vmem:[%s1800_s0 + $0xf4] ss:$20 sps:$4 sm:$0xff]   ;;  %v1337_v1 = vld [vmem:[%s1800_s0 + $0xfc] ss:$20 sps:$4 sm:$0xff]  }
  0x17   :  { %v1339_v2 = vld [vmem:[%s1800_s0 + $0xf0] ss:$20 sps:$4 sm:$0xff]   ;;  %v1340_v3 = vld [vmem:[%s1800_s0 + $0xf8] ss:$20 sps:$4 sm:$0xff]   ;;  %v1347_v7 = vld [vmem:[%s1800_s0 + $0x120] ss:$20 sps:$4 sm:$0xff]  }
  0x18   :  { %1080 = vmatpush3.bf16.msra.mxu0 %v1283_v22  ;;  %v1342_v4 = vld [vmem:[%s1800_s0 + $0x11c] ss:$20 sps:$4 sm:$0xff]   ;;  %v1344_v5 = vld [vmem:[%s1800_s0 + $0x124] ss:$20 sps:$4 sm:$0xff]   ;;  %v1353_v12 = vld [vmem:[%s1800_s0 + $0x60] ss:$20 sps:$4 sm:$0xff]  }
  0x19   :  { %1144 = vmatpush3.bf16.msra.mxu1 %v1284_v23  ;;  %1081 = vmatprep.subr.bf16.mxu0 %v1285_v24  ;;  %v1346_v6 = vld [vmem:[%s1800_s0 + $0x118] ss:$20 sps:$4 sm:$0xff]   ;;  %v1349_v8 = vld [vmem:[%s1800_s0 + $0x10] ss:$20 sps:$4 sm:$0xff]   ;;  %v1354_v13 = vld [vmem:[%s1800_s0 + $0x100] ss:$20 sps:$4 sm:$0xff]  }
  0x1a   :  { %1145 = vmatprep.subr.bf16.mxu1 %v1286_v25  ;;  %v1350_v9 = vld [vmem:[%s1800_s0 + $0xb0] ss:$20 sps:$4 sm:$0xff]   ;;  %v1351_v10 = vld [vmem:[%s1800_s0 + $0x38] ss:$20 sps:$4 sm:$0xff]   ;;  %v1355_v14 = vld [vmem:[%s1800_s0 + $0x88] ss:$20 sps:$4 sm:$0xff]  }
  0x1b   :  { %v1352_v11 = vld [vmem:[%s1800_s0 + $0xd8] ss:$20 sps:$4 sm:$0xff]   ;;  %v1356_v15 = vld [vmem:[%s1800_s0 + $0x128] ss:$20 sps:$4 sm:$0xff]  }
  0x1c   :  { %1082 = vmatpush3.bf16.msra.mxu0 %v1287_v26 }
  0x1d   :  { %1146 = vmatpush3.bf16.msra.mxu1 %v1288_v27  ;;  %1083 = vmatprep.subr.bf16.mxu0 %v1289_v28 }
  0x1e   :  { %1147 = vmatprep.subr.bf16.mxu1 %v1290_v29 }
  0x20   :  { %1084 = vmatpush3.bf16.msra.mxu0 %v1291_v30 }
  0x21   :  { %1148 = vmatpush3.bf16.msra.mxu1 %v1292_v31  ;;  %1213 = vmatprep.subr.bf16.mxu0 %v1299_v36 }
  0x22   :  { %1245 = vmatprep.subr.bf16.mxu1 %v1299_v36 }
  0x23   :  { %630 = vmatmul.mubr.bf16.vlgmr.msra.gmra.mxu0 %v1293_v32 }
  0x24   :  { %727 = vmatmul.mubr.bf16.vlgmr.msra.gmra.mxu1 %v1296_v34  ;;  %1214 = vmatpush3.bf16.msra.mxu0 %v1299_v36 }
  0x25   :  { %1253 = vmatpush3.bf16.msra.mxu1 %v1299_v36  ;;  %637 = vmatprep.mubr.bf16.mxu0 %v1300_v37 }
  0x26   :  { %734 = vmatprep.mubr.bf16.mxu1 %v1302_v38  ;;  %1215 = vmatprep.subr.bf16.mxu0 %v1306_v39 }
  0x27   :  { %1246 = vmatprep.subr.bf16.mxu1 %v1306_v39 }
  0x28   :  { %1216 = vmatpush3.bf16.msra.mxu0 %v1306_v39 }
  0x29   :  { %1254 = vmatpush3.bf16.msra.mxu1 %v1306_v39  ;;  %1217 = vmatprep.subr.bf16.mxu0 %v1313_v44 }
  0x2a   :  { %1247 = vmatprep.subr.bf16.mxu1 %v1313_v44 }
  0x2b   :  { %638 = vmatmul.mubr.bf16.gmra.mxu0 %v1304_v40 }
  0x2c   :  { %735 = vmatmul.mubr.bf16.gmra.mxu1 %v1305_v41  ;;  %645 = vmatprep.mubr.bf16.mxu0 %v1307_v42 }
  0x2d   :  { %742 = vmatprep.mubr.bf16.mxu1 %v1309_v43  ;;  %1218 = vmatpush3.bf16.msra.mxu0 %v1313_v44 }
  0x2e   :  { %1255 = vmatpush3.bf16.msra.mxu1 %v1313_v44  ;;  %1219 = vmatprep.subr.bf16.mxu0 %v1320_v45 }
  0x2f   :  { %1248 = vmatprep.subr.bf16.mxu1 %v1320_v45 }
  0x31   :  { %1220 = vmatpush3.bf16.msra.mxu0 %v1320_v45 }
  0x32   :  { %1256 = vmatpush3.bf16.msra.mxu1 %v1320_v45  ;;  %1221 = vmatprep.subr.bf16.mxu0 %v1327_v50 }
  0x33   :  { %646 = vmatmul.mubr.bf16.gmra.mxu0 %v1311_v46  ;;  %1249 = vmatprep.subr.bf16.mxu1 %v1327_v50 }
  0x34   :  { %743 = vmatmul.mubr.bf16.gmra.mxu1 %v1312_v47  ;;  %653 = vmatprep.mubr.bf16.mxu0 %v1314_v48 }
  0x35   :  { %750 = vmatprep.mubr.bf16.mxu1 %v1316_v49  ;;  %1222 = vmatpush3.bf16.msra.mxu0 %v1327_v50 }
  0x36   :  { %1257 = vmatpush3.bf16.msra.mxu1 %v1327_v50  ;;  %1223 = vmatprep.subr.bf16.mxu0 %v1334_v51 }
  0x37   :  { %1250 = vmatprep.subr.bf16.mxu1 %v1334_v51 }
  0x39   :  { %1224 = vmatpush3.bf16.msra.mxu0 %v1334_v51 }
  0x3a   :  { %1258 = vmatpush3.bf16.msra.mxu1 %v1334_v51  ;;  %1225 = vmatprep.subr.bf16.mxu0 %v1341_v55 }
  0x3b   :  { %654 = vmatmul.mubr.bf16.gmra.mxu0 %v1318_v52  ;;  %1251 = vmatprep.subr.bf16.mxu1 %v1341_v55 }
  0x3c   :  { %751 = vmatmul.mubr.bf16.gmra.mxu1 %v1319_v53  ;;  %661 = vmatprep.mubr.bf16.mxu0 %v1321_v54 }
  0x3d   :  { %758 = vmatprep.mubr.bf16.mxu1 %v1323_v56  ;;  %1226 = vmatpush3.bf16.msra.mxu0 %v1341_v55 }
  0x3e   :  { %1259 = vmatpush3.bf16.msra.mxu1 %v1341_v55  ;;  %1227 = vmatprep.subr.bf16.mxu0 %v1348_v57 }
  0x3f   :  { %1252 = vmatprep.subr.bf16.mxu1 %v1348_v57 }
  0x41   :  { %1228 = vmatpush3.bf16.msra.mxu0 %v1348_v57 }
  0x42   :  { %1260 = vmatpush3.bf16.msra.mxu1 %v1348_v57 }
  0x43   :  { %662 = vmatmul.mubr.bf16.gmra.mxu0 %v1325_v58 }
  0x44   :  { %759 = vmatmul.mubr.bf16.gmra.mxu1 %v1326_v59  ;;  %669 = vmatprep.mubr.bf16.mxu0 %v1328_v60 }
  0x45   :  { %766 = vmatprep.mubr.bf16.mxu1 %v1330_v61 }
  0x4b   :  { %670 = vmatmul.mubr.bf16.gmra.mxu0 %v1332_v62 }
  0x4c   :  { %767 = vmatmul.mubr.bf16.gmra.mxu1 %v1333_v63  ;;  %677 = vmatprep.mubr.bf16.mxu0 %v1335_v0 }
  0x4d   :  { %774 = vmatprep.mubr.bf16.mxu1 %v1337_v1 }
  0x53   :  { %678 = vmatmul.mubr.bf16.gmra.mxu0 %v1339_v2 }
  0x54   :  { %775 = vmatmul.mubr.bf16.gmra.mxu1 %v1340_v3  ;;  %685 = vmatprep.mubr.bf16.mxu0 %v1342_v4 }
  0x55   :  { %782 = vmatprep.mubr.bf16.mxu1 %v1344_v5 }
  0x5b   :  { %686 = vmatmul.mubr.bf16.gmra.mxu0 %v1346_v6 }
  0x5c   :  { %783 = vmatmul.mubr.bf16.gmra.mxu1 %v1347_v7  ;;  %1229 = vmatprep.mubr.bf16.mxu0 %v1349_v8 }
  0x5d   :  { %1237 = vmatprep.mubr.bf16.mxu1 %v1350_v9 }
  0x63   :  { %1230 = vmatmul.mubr.bf16.vlgmr.msra.gmra.mxu0 %v1351_v10 }
  0x64   :  { %1238 = vmatmul.mubr.bf16.vlgmr.msra.gmra.mxu1 %v1352_v11  ;;  %1233 = vmatprep.mubr.bf16.mxu0 %v1353_v12 }
  0x65   :  { %1241 = vmatprep.mubr.bf16.mxu1 %v1354_v13 }
  0x6b   :  { %1234 = vmatmul.mubr.bf16.gmra.mxu0 %v1355_v14 }
  0x6c   :  { %1242 = vmatmul.mubr.bf16.gmra.mxu1 %v1356_v15 }
  0xe3   :  { %v1085_v16 = vpop.f32.mrf.mxu0 }
  0xe4   :  { %v1149_v17 = vpop.f32.mrf.mxu1 }
  0xe5   :  { %v1086_v18 = vpop.f32.mrf.mxu0 }
  0xe6   :  { %v1150_v19 = vpop.f32.mrf.mxu1  ;;  %v1087_v7 = vadd.f32 %v1086_v18, %v1085_v16 }
  0xe7   :  { %v1088_v20 = vpop.f32.mrf.mxu0  ;;  %v1151_v8 = vadd.f32 %v1150_v19, %v1149_v17 }
  0xe8   :  { %v1152_v21 = vpop.f32.mrf.mxu1 }
  0xe9   :  { %v1089_v22 = vpop.f32.mrf.mxu0 }
  0xea   :  { %v1153_v23 = vpop.f32.mrf.mxu1  ;;  %v1090_v9 = vadd.f32 %v1089_v22, %v1088_v20 }
  0xeb   :  { %v1091_v24 = vpop.f32.mrf.mxu0  ;;  %v1154_v10 = vadd.f32 %v1153_v23, %v1152_v21 }
  0xec   :  { %v1155_v25 = vpop.f32.mrf.mxu1 }
  0xed   :  { %v1092_v26 = vpop.f32.mrf.mxu0 }
  0xee   :  { %v1156_v27 = vpop.f32.mrf.mxu1  ;;  %v1093_v12 = vadd.f32 %v1092_v26, %v1091_v24 }
  0xef   :  { %v1094_v28 = vpop.f32.mrf.mxu0  ;;  %v1157_v13 = vadd.f32 %v1156_v27, %v1155_v25 }
  0xf0   :  { %v1158_v29 = vpop.f32.mrf.mxu1 }
  0xf1   :  { %v1095_v30 = vpop.f32.mrf.mxu0 }
  0xf2   :  { %v1159_v31 = vpop.f32.mrf.mxu1  ;;  %v1096_v14 = vadd.f32 %v1095_v30, %v1094_v28  ;;  %v737_v30 = vadd.f32 %v1157_v13, %v1093_v12  ;;  %v944_v13 = vld [vmem:[%s1803_s4 + $0x50] sm:$0xff] }
  0xf3   :  { %v1097_v32 = vpop.f32.mrf.mxu0  ;;  %v1160_v15 = vadd.f32 %v1159_v31, %v1158_v29  ;;  %v729_v29 = vadd.f32 %v1151_v8, %v1087_v7 }
  0xf4   :  { %v1161_v33 = vpop.f32.mrf.mxu1 }
  0xf5   :  { %v1098_v34 = vpop.f32.mrf.mxu0  ;;  %v740_v31 = vadd.f32 %v1160_v15, %v1096_v14 }
  0xf6   :  { %v1162_v35 = vpop.f32.mrf.mxu1  ;;  %v1099_v18 = vadd.f32 %v1098_v34, %v1097_v32  ;;  %v1627_v32 = vadd.f32 %v1154_v10, %v1090_v9 }
  0xf7   :  { %v1100_v36 = vpop.f32.mrf.mxu0  ;;  %v1163_v17 = vadd.f32 %v1162_v35, %v1161_v33 }
  0xf8   :  { %v1164_v37 = vpop.f32.mrf.mxu1 }
  0xf9   :  { %v1101_v38 = vpop.f32.mrf.mxu0 }
  0xfa   :  { %v1165_v39 = vpop.f32.mrf.mxu1  ;;  %v1102_v19 = vadd.f32 %v1101_v38, %v1100_v36  ;;  %v1629_v36 = vadd.f32 %v1163_v17, %v1099_v18 }
  0xfb   :  { %v1103_v40 = vpop.f32.mrf.mxu0  ;;  %v1166_v20 = vadd.f32 %v1165_v39, %v1164_v37 }
  0xfc   :  { %v1167_v41 = vpop.f32.mrf.mxu1 }
  0xfd   :  { %v1104_v42 = vpop.f32.mrf.mxu0  ;;  %v1631_v38 = vadd.f32 %v1166_v20, %v1102_v19  ;;  %v934_v19 = vld [vmem:[%s1803_s4] sm:$0xff] }
  0xfe   :  { %v1168_v43 = vpop.f32.mrf.mxu1  ;;  %v1105_v21 = vadd.f32 %v1104_v42, %v1103_v40 }
  0xff   :  { %v1106_v44 = vpop.f32.mrf.mxu0  ;;  %v1169_v23 = vadd.f32 %v1168_v43, %v1167_v41 }
 0x100   :  { %v1170_v45 = vpop.f32.mrf.mxu1 }
 0x101   :  { %v1107_v46 = vpop.f32.mrf.mxu0  ;;  %v1633_v42 = vadd.f32 %v1169_v23, %v1105_v21 }
 0x102   :  { %v1171_v47 = vpop.f32.mrf.mxu1  ;;  %v1108_v34 = vadd.f32 %v1107_v46, %v1106_v44 }
 0x103   :  { %v1109_v48 = vpop.f32.mrf.mxu0  ;;  %v1172_v33 = vadd.f32 %v1171_v47, %v1170_v45 }
 0x104   :  { %v1173_v49 = vpop.f32.mrf.mxu1 }
 0x105   :  { %v1110_v50 = vpop.f32.mrf.mxu0 }
 0x106   :  { %v1174_v51 = vpop.f32.mrf.mxu1  ;;  %v1111_v37 = vadd.f32 %v1110_v50, %v1109_v48  ;;  %v1638_v48 = vld [vmem:[%s1801_s2] ss:$0 sm:$0xff] }
 0x107   :  { %v1112_v52 = vpop.f32.mrf.mxu0  ;;  %v1175_v39 = vadd.f32 %v1174_v51, %v1173_v49 }
 0x108   :  { %v1176_v53 = vpop.f32.mrf.mxu1 }
 0x109   :  { %v1113_v54 = vpop.f32.mrf.mxu0 }
 0x10a   :  { %v1177_v55 = vpop.f32.mrf.mxu1  ;;  %v1114_v40 = vadd.f32 %v1113_v54, %v1112_v52  ;;  %v1640_v54 = vadd.f32 %v1172_v33, %v1108_v34  ;;  %v937_v34 = vld [vmem:[%s1803_s4 + $0x18] sm:$0xff] }
 0x10b   :  { %v1115_v56 = vpop.f32.mrf.mxu0  ;;  %v1178_v43 = vadd.f32 %v1177_v55, %v1176_v53 }
 0x10c   :  { %v1179_v57 = vpop.f32.mrf.mxu1 }
 0x10d   :  { %v1116_v58 = vpop.f32.mrf.mxu0 }
 0x10e   :  { %v1180_v59 = vpop.f32.mrf.mxu1  ;;  %v1117_v26 = vadd.f32 %v1116_v58, %v1115_v56 }
 0x10f   :  { %v1118_v60 = vpop.f32.mrf.mxu0  ;;  %v1181_v25 = vadd.f32 %v1180_v59, %v1179_v57 }
 0x110   :  { %v1182_v61 = vpop.f32.mrf.mxu1 }
 0x111   :  { %v1119_v62 = vpop.f32.mrf.mxu0  ;;  %v769_v59 = vadd.f32 %v1181_v25, %v1117_v26  ;;  %v942_v25 = vld [vmem:[%s1803_s4 + $0x40] sm:$0xff] }
 0x112   :  { %v1183_v63 = vpop.f32.mrf.mxu1  ;;  %v1120_v56 = vadd.f32 %v1119_v62, %v1118_v60  ;;  %v1645_v60 = vld [vmem:[%s1802_s3] ss:$0 sm:$0xff] }
 0x113   :  { %v1121_v0 = vpop.f32.mrf.mxu0  ;;  %v1184_v57 = vadd.f32 %v1183_v63, %v1182_v61  ;;  %v761_v63 = vadd.f32 %v1175_v39, %v1111_v37 }
 0x114   :  { %v1185_v1 = vpop.f32.mrf.mxu1 }
 0x115   :  { %v1122_v2 = vpop.f32.mrf.mxu0 }
 0x116   :  { %v1186_v3 = vpop.f32.mrf.mxu1  ;;  %v1123_v7 = vadd.f32 %v1122_v2, %v1121_v0 }
 0x117   :  { %v1124_v4 = vpop.f32.mrf.mxu0  ;;  %v1187_v44 = vadd.f32 %v1186_v3, %v1185_v1  ;;  %v772_v3 = vadd.f32 %v1184_v57, %v1120_v56 }
 0x118   :  { %v1188_v5 = vpop.f32.mrf.mxu1 }
 0x119   :  { %v1125_v6 = vpop.f32.mrf.mxu0  ;;  %v777_v10 = vadd.f32 %v1187_v44, %v1123_v7 }
 0x11a   :  { %v1189_v11 = vpop.f32.mrf.mxu1  ;;  %v1126_v45 = vadd.f32 %v1125_v6, %v1124_v4  ;;  %v764_v4 = vadd.f32 %v1178_v43, %v1114_v40  ;;  %v945_v40 = vld [vmem:[%s1803_s4 + $0x58] sm:$0xff] }
 0x11b   :  { %v1127_v16 = vpop.f32.mrf.mxu0  ;;  %v1190_v46 = vadd.f32 %v1189_v11, %v1188_v5  ;;  %v936_v5 = vld [vmem:[%s1803_s4 + $0x10] sm:$0xff] }
 0x11c   :  { %v1191_v22 = vpop.f32.mrf.mxu1 }
 0x11d   :  { %v1128_v24 = vpop.f32.mrf.mxu0  ;;  %v1652_v11 = vadd.f32 %v1190_v46, %v1126_v45 }
 0x11e   :  { %v1192_v27 = vpop.f32.mrf.mxu1  ;;  %v1129_v49 = vadd.f32 %v1128_v24, %v1127_v16 }
 0x11f   :  { %v1130_v28 = vpop.f32.mrf.mxu0  ;;  %v1193_v50 = vadd.f32 %v1192_v27, %v1191_v22 }
 0x120   :  { %v1194_v35 = vpop.f32.mrf.mxu1 }
 0x121   :  { %v1131_v41 = vpop.f32.mrf.mxu0  ;;  %v785_v18 = vadd.f32 %v1193_v50, %v1129_v49 }
 0x122   :  { %v1195_v58 = vpop.f32.mrf.mxu1  ;;  %v1132_v53 = vadd.f32 %v1131_v41, %v1130_v28 }
 0x123   :  { %v1231_v47 = vpop.f32.mrf.mxu0  ;;  %v1196_v55 = vadd.f32 %v1195_v58, %v1194_v35 }
 0x124   :  { %v834_v51 = vadd.f32 %v1231_v47, %v737_v30  ;;  %v1239_v52 = vpop.f32.mrf.mxu1  ;;  %v943_v47 = vld [vmem:[%s1803_s4 + $0x48] sm:$0xff] }
 0x125   :  { %v866_v61 = vadd.f32 %v1239_v52, %v769_v59  ;;  %v825_v62 = vpop.f32.mrf.mxu0  ;;  %v788_v23 = vadd.f32 %v1196_v55, %v1132_v53  ;;  %v935_v59 = vld [vmem:[%s1803_s4 + $0x8] sm:$0xff]  ;;  %v940_v55 = vld [vmem:[%s1803_s4 + $0x30] sm:$0xff] }
 0x126   :  { %v897_v0 = vmul.f32 %v1638_v48, %v834_v51  ;;  %v826_v1 = vadd.f32 %v825_v62, %v729_v29  ;;  %v857_v2 = vpop.f32.mrf.mxu1 }
 0x127   :  { %v905_v6 = vmul.f32 %v1638_v48, %v866_v61  ;;  %v858_v8 = vadd.f32 %v857_v2, %v761_v63  ;;  %v1232_v9 = vpop.f32.mrf.mxu0 }
 0x128   :  { %v920_v12 = vadd.f32 %v1645_v60, %v897_v0  ;;  %v895_v14 = vmul.f32 %v1638_v48, %v826_v1  ;;  %v837_v15 = vadd.f32 %v1232_v9, %v740_v31  ;;  %v1240_v16 = vpop.f32.mrf.mxu1  ;;  %v948_v1 = vld [vmem:[%s1803_s4 + $0x70] sm:$0xff] }
 0x129   :  { %v928_v17 = vadd.f32 %v1645_v60, %v905_v6  ;;  %v903_v20 = vmul.f32 %v1638_v48, %v858_v8  ;;  %v869_v22 = vadd.f32 %v1240_v16, %v772_v3  ;;  %v828_v21 = vpop.f32.mrf.mxu0  ;;  %v938_v8 = vld [vmem:[%s1803_s4 + $0x20] sm:$0xff] }
 0x12a   :  { %v952_v24 = vadd.f32 %v936_v5, %v920_v12  ;;  %v918_v26 = vadd.f32 %v1645_v60, %v895_v14  ;;  %v898_v27 = vmul.f32 %v1638_v48, %v837_v15  ;;  %v829_v28 = vadd.f32 %v828_v21, %v1627_v32  ;;  %v860_v30 = vpop.f32.mrf.mxu1  ;;  %v946_v14 = vld [vmem:[%s1803_s4 + $0x60] sm:$0xff] }
 0x12b   :  { %v960_v29 = vadd.f32 %v944_v13, %v928_v17  ;;  %v926_v31 = vadd.f32 %v1645_v60, %v903_v20  ;;  %v906_v33 = vmul.f32 %v1638_v48, %v869_v22  ;;  %v861_v35 = vadd.f32 %v860_v30, %v764_v4  ;;  %v1235_v37 = vpop.f32.mrf.mxu0  ;;  %v941_v20 = vld [vmem:[%s1803_s4 + $0x38] sm:$0xff] }
 0x12c   :  { %969 = vst.msk [vmem:[%s1804_s5 + $0x10] sm:$0xff] %vm966_vm0, %v952_v24  ;;  %v950_v39 = vadd.f32 %v934_v19, %v918_v26  ;;  %v921_v32 = vadd.f32 %v1645_v60, %v898_v27  ;;  %v896_v41 = vmul.f32 %v1638_v48, %v829_v28  ;;  %v850_v43 = vadd.f32 %v1235_v37, %v1633_v42  ;;  %v1243_v56 = vpop.f32.mrf.mxu1  ;;  %v949_v24 = vld [vmem:[%s1803_s4 + $0x78] sm:$0xff]  ;;  %v939_v27 = vld [vmem:[%s1803_s4 + $0x28] sm:$0xff] }
 0x12d   :  { %977 = vst.msk [vmem:[%s1804_s5 + $0x50] sm:$0xff] %vm966_vm0, %v960_v29  ;;  %v958_v57 = vadd.f32 %v942_v25, %v926_v31  ;;  %v929_v58 = vadd.f32 %v1645_v60, %v906_v33  ;;  %v904_v7 = vmul.f32 %v1638_v48, %v861_v35  ;;  %v882_v44 = vadd.f32 %v1243_v56, %v785_v18  ;;  %v841_v45 = vpop.f32.mrf.mxu0  ;;  %v947_v31 = vld [vmem:[%s1803_s4 + $0x68] sm:$0xff] }
 0x12e   :  { %967 = vst.msk [vmem:[%s1804_s5] sm:$0xff] %vm966_vm0, %v950_v39  ;;  %v953_v42 = vadd.f32 %v937_v34, %v921_v32  ;;  %v919_v46 = vadd.f32 %v1645_v60, %v896_v41  ;;  %v901_v49 = vmul.f32 %v1638_v48, %v850_v43  ;;  %v842_v50 = vadd.f32 %v841_v45, %v1629_v36  ;;  %v873_v51 = vpop.f32.mrf.mxu1 }
 0x12f   :  { %975 = vst.msk [vmem:[%s1804_s5 + $0x40] sm:$0xff] %vm966_vm0, %v958_v57  ;;  %v961_v52 = vadd.f32 %v945_v40, %v929_v58  ;;  %v927_v53 = vadd.f32 %v1645_v60, %v904_v7  ;;  %v909_v61 = vmul.f32 %v1638_v48, %v882_v44  ;;  %v874_v62 = vadd.f32 %v873_v51, %v777_v10  ;;  %v1236_v63 = vpop.f32.mrf.mxu0 }
 0x130   :  { %970 = vst.msk [vmem:[%s1804_s5 + $0x18] sm:$0xff] %vm966_vm0, %v953_v42  ;;  %v951_v36 = vadd.f32 %v935_v59, %v919_v46  ;;  %v924_v0 = vadd.f32 %v1645_v60, %v901_v49  ;;  %v899_v2 = vmul.f32 %v1638_v48, %v842_v50  ;;  %v853_v3 = vadd.f32 %v1236_v63, %v1640_v54  ;;  %v1244_v4 = vpop.f32.mrf.mxu1 }
 0x131   :  { %978 = vst.msk [vmem:[%s1804_s5 + $0x58] sm:$0xff] %vm966_vm0, %v961_v52  ;;  %v959_v5 = vadd.f32 %v943_v47, %v927_v53  ;;  %v932_v6 = vadd.f32 %v1645_v60, %v909_v61  ;;  %v907_v9 = vmul.f32 %v1638_v48, %v874_v62  ;;  %v885_v10 = vadd.f32 %v1244_v4, %v788_v23  ;;  %v844_v12 = vpop.f32.mrf.mxu0 }
 0x132   :  { %968 = vst.msk [vmem:[%s1804_s5 + $0x8] sm:$0xff] %vm966_vm0, %v951_v36  ;;  %v956_v54 = vadd.f32 %v940_v55, %v924_v0  ;;  %v922_v13 = vadd.f32 %v1645_v60, %v899_v2  ;;  %v902_v15 = vmul.f32 %v1638_v48, %v853_v3  ;;  %v845_v16 = vadd.f32 %v844_v12, %v1631_v38  ;;  %v876_v18 = vpop.f32.mrf.mxu1 }
 0x133   :  { %976 = vst.msk [vmem:[%s1804_s5 + $0x48] sm:$0xff] %vm966_vm0, %v959_v5  ;;  %v964_v17 = vadd.f32 %v948_v1, %v932_v6  ;;  %v930_v19 = vadd.f32 %v1645_v60, %v907_v9  ;;  %v910_v22 = vmul.f32 %v1638_v48, %v885_v10  ;;  %v877_v21 = vadd.f32 %v876_v18, %v1652_v11 }
 0x134   :  { %973 = vst.msk [vmem:[%s1804_s5 + $0x30] sm:$0xff] %vm966_vm0, %v956_v54  ;;  %v954_v38 = vadd.f32 %v938_v8, %v922_v13  ;;  %v925_v23 = vadd.f32 %v1645_v60, %v902_v15  ;;  %v900_v26 = vmul.f32 %v1638_v48, %v845_v16 }
 0x135   :  { %981 = vst.msk [vmem:[%s1804_s5 + $0x70] sm:$0xff] %vm966_vm0, %v964_v17  ;;  %v962_v11 = vadd.f32 %v946_v14, %v930_v19  ;;  %v933_v25 = vadd.f32 %v1645_v60, %v910_v22  ;;  %v908_v28 = vmul.f32 %v1638_v48, %v877_v21 }
 0x136   :  { %971 = vst.msk [vmem:[%s1804_s5 + $0x20] sm:$0xff] %vm966_vm0, %v954_v38  ;;  %v957_v30 = vadd.f32 %v941_v20, %v925_v23  ;;  %v923_v29 = vadd.f32 %v1645_v60, %v900_v26 }
 0x137   :  { %979 = vst.msk [vmem:[%s1804_s5 + $0x60] sm:$0xff] %vm966_vm0, %v962_v11  ;;  %v965_v34 = vadd.f32 %v949_v24, %v933_v25  ;;  %v931_v48 = vadd.f32 %v1645_v60, %v908_v28 }
 0x138   :  { %974 = vst.msk [vmem:[%s1804_s5 + $0x38] sm:$0xff] %vm966_vm0, %v957_v30  ;;  %v955_v33 = vadd.f32 %v939_v27, %v923_v29 }
 0x139   :  { %982 = vst.msk [vmem:[%s1804_s5 + $0x78] sm:$0xff] %vm966_vm0, %v965_v34  ;;  %v963_v35 = vadd.f32 %v947_v31, %v931_v48 }
 0x13a   :  { %972 = vst.msk [vmem:[%s1804_s5 + $0x28] sm:$0xff] %vm966_vm0, %v955_v33 }
 0x13b   :  { %980 = vst.msk [vmem:[%s1804_s5 + $0x68] sm:$0xff] %vm966_vm0, %v963_v35 }

// kernel: _lambda_.17
= control target key start
LH: loop header
LB: loop body
LE: loop exit
PB: predicated region body
PF: predicated region fallthrough
CT: control target
= control target key end

     0   :  { %vm24_vm0 = vcmask 523264   ;;  %s156_s0 = inlined_call_operand.vmem [shape: f32[4,32,64], index: 0, kind: input, shape index: {}]   ;;  %s157_s1 = inlined_call_operand.vmem [shape: f32[32,64], index: 1, kind: output, shape index: {}]  }
   0x1   :  { %v8_v0 = vld [vmem:[%s156_s0] sm:$0xff]  ;;  %v9_v7 = vld [vmem:[%s156_s0 + $0x8] sm:$0xff]  ;;  %v10_v14 = vld [vmem:[%s156_s0 + $0x10] sm:$0xff] }
   0x2   :  { %v12_v1 = vld [vmem:[%s156_s0 + $0x20] sm:$0xff]  ;;  %v25_v4 = vsel %vm24_vm0, %v8_v0, 0.0  ;;  %v13_v8 = vld [vmem:[%s156_s0 + $0x28] sm:$0xff]  ;;  %v32_v12 = vsel %vm24_vm0, %v9_v7, 0.0  ;;  %v14_v18 = vld [vmem:[%s156_s0 + $0x30] sm:$0xff]  ;;  %v39_v21 = vsel %vm24_vm0, %v10_v14, 0.0 }
   0x3   :  { %v16_v2 = vld [vmem:[%s156_s0 + $0x40] sm:$0xff]  ;;  %v26_v5 = vsel %vm24_vm0, %v12_v1, 0.0  ;;  %v17_v10 = vld [vmem:[%s156_s0 + $0x48] sm:$0xff]  ;;  %v33_v13 = vsel %vm24_vm0, %v13_v8, 0.0  ;;  %v18_v19 = vld [vmem:[%s156_s0 + $0x50] sm:$0xff]  ;;  %v40_v24 = vsel %vm24_vm0, %v14_v18, 0.0 }
   0x4   :  { %v20_v3 = vld [vmem:[%s156_s0 + $0x60] sm:$0xff]  ;;  %v28_v6 = vsel %vm24_vm0, %v16_v2, 0.0  ;;  %v27_v9 = vadd.f32 %v26_v5, %v25_v4  ;;  %v21_v11 = vld [vmem:[%s156_s0 + $0x68] sm:$0xff]  ;;  %v34_v16 = vadd.f32 %v33_v13, %v32_v12  ;;  %v35_v17 = vsel %vm24_vm0, %v17_v10, 0.0  ;;  %v22_v20 = vld [vmem:[%s156_s0 + $0x70] sm:$0xff] }
   0x5   :  { %v30_v15 = vsel %vm24_vm0, %v20_v3, 0.0  ;;  %v37_v23 = vsel %vm24_vm0, %v21_v11, 0.0  ;;  %v42_v25 = vsel %vm24_vm0, %v18_v19, 0.0  ;;  %v11_v26 = vld [vmem:[%s156_s0 + $0x18] sm:$0xff]  ;;  %v41_v30 = vadd.f32 %v40_v24, %v39_v21 }
   0x6   :  { %v29_v22 = vadd.f32 %v28_v6, %v27_v9  ;;  %v15_v27 = vld [vmem:[%s156_s0 + $0x38] sm:$0xff]  ;;  %v36_v29 = vadd.f32 %v35_v17, %v34_v16  ;;  %v46_v32 = vsel %vm24_vm0, %v11_v26, 0.0  ;;  %v44_v35 = vsel %vm24_vm0, %v22_v20, 0.0 }
   0x7   :  { %v19_v28 = vld [vmem:[%s156_s0 + $0x58] sm:$0xff]  ;;  %v47_v33 = vsel %vm24_vm0, %v15_v27, 0.0  ;;  %v43_v39 = vadd.f32 %v42_v25, %v41_v30 }
   0x8   :  { %v23_v31 = vld [vmem:[%s156_s0 + $0x78] sm:$0xff]  ;;  %v31_v34 = vadd.f32 %v30_v15, %v29_v22  ;;  %v48_v36 = vadd.f32 %v47_v33, %v46_v32  ;;  %v49_v37 = vsel %vm24_vm0, %v19_v28, 0.0  ;;  %v38_v38 = vadd.f32 %v37_v23, %v36_v29 }
   0x9   :  { %v51_v40 = vsel %vm24_vm0, %v23_v31, 0.0  ;;  %v45_v44 = vadd.f32 %v44_v35, %v43_v39 }
   0xa   :  { %v54_v41 = vmul.f32 0.25, %v31_v34  ;;  %v50_v42 = vadd.f32 %v49_v37, %v48_v36  ;;  %v55_v43 = vmul.f32 0.25, %v38_v38 }
   0xb   :  { %v56_v46 = vmul.f32 0.25, %v45_v44 }
   0xc   :  { %58 = vst.msk [vmem:[%s157_s1] sm:$0xff] %vm24_vm0, %v54_v41  ;;  %v52_v45 = vadd.f32 %v51_v40, %v50_v42  ;;  %59 = vst.msk [vmem:[%s157_s1 + $0x8] sm:$0xff] %vm24_vm0, %v55_v43 }
   0xd   :  { %60 = vst.msk [vmem:[%s157_s1 + $0x10] sm:$0xff] %vm24_vm0, %v56_v46 }
   0xe   :  { %v57_v47 = vmul.f32 0.25, %v52_v45 }
  0x10   :  { %61 = vst.msk [vmem:[%s157_s1 + $0x18] sm:$0xff] %vm24_vm0, %v57_v47 }

// kernel: _lambda_.18
= control target key start
LH: loop header
LB: loop body
LE: loop exit
PB: predicated region body
PF: predicated region fallthrough
CT: control target
= control target key end

     0   :  { %s302_s1 = inlined_call_operand.vmem [shape: bf16[128,128], index: 1, kind: input, shape index: {}]   ;;  %s303_s0 = inlined_call_operand.vmem [shape: bf16[32,128], index: 0, kind: input, shape index: {}]   ;;  %s304_s2 = inlined_call_operand.vmem [shape: f32[1,128], index: 2, kind: input, shape index: {}]   ;;  %s305_s3 = inlined_call_operand.vmem [shape: f32[1,128], index: 3, kind: input, shape index: {}]   ;;  %s306_s4 = inlined_call_operand.vmem [shape: f32[32,128], index: 4, kind: output, shape index: {}]  }
   0x1   :  { %v219_v0 = vld [vmem:[%s302_s1 + $0x38] sm:$0xff]   ;;  %v220_v1 = vld [vmem:[%s302_s1 + $0x30] sm:$0xff]   ;;  %v221_v2 = vld [vmem:[%s302_s1 + $0x28] sm:$0xff]  }
   0x2   :  { %199 = vmatprep.subr.bf16.mxu0 %v219_v0  ;;  %v222_v3 = vld [vmem:[%s302_s1 + $0x20] sm:$0xff]   ;;  %v223_v5 = vld [vmem:[%s302_s1 + $0x18] sm:$0xff]   ;;  %v224_v6 = vld [vmem:[%s302_s1 + $0x10] sm:$0xff]  }
   0x3   :  { %200 = vmatpush3.bf16.msra.mxu0 %v219_v0  ;;  %v227_v4 = vld [vmem:[%s303_s0] sm:$0xff]   ;;  %v225_v7 = vld [vmem:[%s302_s1 + $0x8] sm:$0xff]  }
   0x4   :  { %201 = vmatprep.subr.bf16.mxu0 %v220_v1  ;;  %215 = vmatprep.mubr.bf16.mxu0 %v227_v4  ;;  %v226_v8 = vld [vmem:[%s302_s1] sm:$0xff]   ;;  %v228_v9 = vld [vmem:[%s303_s0 + $0x8] sm:$0xff]  }
   0x5   :  { %v187_v10 = vld [vmem:[%s304_s2] ss:$0 sm:$0xff] }
   0x6   :  { %v188_v12 = vld [vmem:[%s305_s3] ss:$0 sm:$0xff] }
   0x7   :  { %202 = vmatpush3.bf16.msra.mxu0 %v220_v1 }
   0x8   :  { %203 = vmatprep.subr.bf16.mxu0 %v221_v2 }
   0xb   :  { %204 = vmatpush3.bf16.msra.mxu0 %v221_v2 }
   0xc   :  { %205 = vmatprep.subr.bf16.mxu0 %v222_v3 }
   0xf   :  { %206 = vmatpush3.bf16.msra.mxu0 %v222_v3 }
  0x10   :  { %207 = vmatprep.subr.bf16.mxu0 %v223_v5 }
  0x13   :  { %208 = vmatpush3.bf16.msra.mxu0 %v223_v5 }
  0x14   :  { %209 = vmatprep.subr.bf16.mxu0 %v224_v6 }
  0x17   :  { %210 = vmatpush3.bf16.msra.mxu0 %v224_v6 }
  0x18   :  { %211 = vmatprep.subr.bf16.mxu0 %v225_v7 }
  0x1b   :  { %212 = vmatpush3.bf16.msra.mxu0 %v225_v7 }
  0x1c   :  { %213 = vmatprep.subr.bf16.mxu0 %v226_v8 }
  0x1f   :  { %214 = vmatpush3.bf16.msra.mxu0 %v226_v8 }
  0x22   :  { %216 = vmatmul.mubr.bf16.vlgmr.msra.gmra.mxu0 %v228_v9 }
  0xe2   :  { %v217_v11 = vpop.f32.mrf.mxu0 }
  0xe3   :  { %v156_v13 = vmul.f32 %v217_v11, %v187_v10 }
  0xe4   :  { %v132_v14 = vpop.f32.mrf.mxu0 }
  0xe5   :  { %v167_v15 = vadd.f32 %v188_v12, %v156_v13  ;;  %v154_v16 = vmul.f32 %v187_v10, %v132_v14 }
  0xe6   :  { %v218_v17 = vpop.f32.mrf.mxu0 }
  0xe7   :  { %171 = vst [vmem:[%s306_s4 + $0x10] sm:$0xff] %v167_v15  ;;  %v165_v18 = vadd.f32 %v188_v12, %v154_v16  ;;  %v157_v19 = vmul.f32 %v218_v17, %v187_v10 }
  0xe8   :  { %v135_v20 = vpop.f32.mrf.mxu0 }
  0xe9   :  { %169 = vst [vmem:[%s306_s4] sm:$0xff] %v165_v18  ;;  %v168_v21 = vadd.f32 %v188_v12, %v157_v19  ;;  %v155_v22 = vmul.f32 %v187_v10, %v135_v20 }
  0xeb   :  { %172 = vst [vmem:[%s306_s4 + $0x18] sm:$0xff] %v168_v21  ;;  %v166_v23 = vadd.f32 %v188_v12, %v155_v22 }
  0xed   :  { %170 = vst [vmem:[%s306_s4 + $0x8] sm:$0xff] %v166_v23 }

// kernel: _lambda_.20
= control target key start
LH: loop header
LB: loop body
LE: loop exit
PB: predicated region body
PF: predicated region fallthrough
CT: control target
= control target key end

     0   :  { %s47_s0 = inlined_call_operand.vmem [shape: f32[4,8,128], index: 0, kind: input, shape index: {}]   ;;  %s48_s1 = inlined_call_operand.vmem [shape: f32[8,128], index: 1, kind: output, shape index: {}]  }
   0x1   :  { %v8_v0 = vld [vmem:[%s47_s0] sm:$0xff]  ;;  %v9_v1 = vld [vmem:[%s47_s0 + $0x8] sm:$0xff]  ;;  %v10_v2 = vld [vmem:[%s47_s0 + $0x10] sm:$0xff] }
   0x2   :  { %v12_v3 = vadd.f32 %v9_v1, %v8_v0  ;;  %v11_v4 = vld [vmem:[%s47_s0 + $0x18] sm:$0xff] }
   0x4   :  { %v13_v5 = vadd.f32 %v12_v3, %v10_v2 }
   0x6   :  { %v14_v6 = vadd.f32 %v13_v5, %v11_v4 }
   0x8   :  { %v16_v7 = vmul.f32 0.25, %v14_v6 }
   0xa   :  { %17 = vst [vmem:[%s48_s1] sm:$0xff] %v16_v7 }

// kernel: _lambda_.21
= control target key start
LH: loop header
LB: loop body
LE: loop exit
PB: predicated region body
PF: predicated region fallthrough
CT: control target
= control target key end

     0   :  { %v231_v1 = vmov 0   ;;  %v158_v18 = vlaneseq  ;;  %s320_s1 = inlined_call_operand.vmem [shape: bf16[128,256], index: 1, kind: input, shape index: {}]   ;;  %s321_s0 = inlined_call_operand.vmem [shape: bf16[8,128], index: 0, kind: input, shape index: {}]   ;;  %s322_s2 = inlined_call_operand.vmem [shape: f32[1,256], index: 2, kind: input, shape index: {}]   ;;  %s323_s3 = inlined_call_operand.vmem [shape: f32[1,256], index: 3, kind: input, shape index: {}]   ;;  %s324_s4 = inlined_call_operand.vmem [shape: f32[8,256], index: 4, kind: output, shape index: {}]  }
   0x1   :  { %v207_v0 = vld [vmem:[%s320_s1 + $0x74] ss:$8 sps:$4 sm:$0xff]   ;;  %147 = vmatprep.mubr.bf16.mxu0 %v231_v1  ;;  %v209_v2 = vld [vmem:[%s320_s1 + $0x70] ss:$8 sps:$4 sm:$0xff]   ;;  %v210_v3 = vld [vmem:[%s320_s1 + $0x64] ss:$8 sps:$4 sm:$0xff]  }
   0x2   :  { %115 = vmatprep.subr.bf16.mxu0 %v207_v0  ;;  %v212_v4 = vld [vmem:[%s320_s1 + $0x60] ss:$8 sps:$4 sm:$0xff]   ;;  %v213_v5 = vld [vmem:[%s320_s1 + $0x54] ss:$8 sps:$4 sm:$0xff]   ;;  %v215_v6 = vld [vmem:[%s320_s1 + $0x50] ss:$8 sps:$4 sm:$0xff]  }
   0x3   :  { %116 = vmatpush1.bf16.msra.mxu0 %v209_v2  ;;  %v216_v7 = vld [vmem:[%s320_s1 + $0x44] ss:$8 sps:$4 sm:$0xff]   ;;  %v218_v8 = vld [vmem:[%s320_s1 + $0x40] ss:$8 sps:$4 sm:$0xff]   ;;  %v219_v9 = vld [vmem:[%s320_s1 + $0x34] ss:$8 sps:$4 sm:$0xff]  }
   0x4   :  { %117 = vmatprep.subr.bf16.mxu0 %v210_v3  ;;  %v221_v10 = vld [vmem:[%s320_s1 + $0x30] ss:$8 sps:$4 sm:$0xff]   ;;  %v222_v11 = vld [vmem:[%s320_s1 + $0x24] ss:$8 sps:$4 sm:$0xff]   ;;  %v224_v12 = vld [vmem:[%s320_s1 + $0x20] ss:$8 sps:$4 sm:$0xff]  }
   0x5   :  { %v225_v13 = vld [vmem:[%s320_s1 + $0x14] ss:$8 sps:$4 sm:$0xff]   ;;  %v227_v14 = vld [vmem:[%s320_s1 + $0x10] ss:$8 sps:$4 sm:$0xff]   ;;  %v228_v15 = vld [vmem:[%s320_s1 + $0x4] ss:$8 sps:$4 sm:$0xff]  }
   0x6   :  { %v230_v16 = vld [vmem:[%s320_s1] ss:$8 sps:$4 sm:$0xff]   ;;  %v159_v19 = vshrl.u32 %v158_v18, 7 }
   0x7   :  { %118 = vmatpush1.bf16.msra.mxu0 %v212_v4  ;;  %v18_v17 = vld [vmem:[%s321_s0] sm:$0xf] }
   0x8   :  { %119 = vmatprep.subr.bf16.mxu0 %v213_v5  ;;  %v160_v20 = vsub.s32 0, %v159_v19  ;;  %v156_v21 = vld [vmem:[%s322_s2] sm:$0x3]  ;;  %v164_v22 = vsub.s32 1, %v159_v19 }
   0x9   :  { %v170_v23 = vld [vmem:[%s323_s3] sm:$0x3] }
   0xa   :  { %v161_v24 = vrot.slane %v156_v21, %v160_v20  ;;  %v175_v25 = vrot.slane %v170_v23, %v160_v20  ;;  %v165_v26 = vrot.slane %v156_v21, %v164_v22  ;;  %v179_v29 = vrot.slane %v170_v23, %v164_v22 }
   0xb   :  { %120 = vmatpush1.bf16.msra.mxu0 %v215_v6 }
   0xc   :  { %121 = vmatprep.subr.bf16.mxu0 %v216_v7 }
   0xf   :  { %122 = vmatpush1.bf16.msra.mxu0 %v218_v8 }
  0x10   :  { %123 = vmatprep.subr.bf16.mxu0 %v219_v9 }
  0x13   :  { %124 = vmatpush1.bf16.msra.mxu0 %v221_v10 }
  0x14   :  { %125 = vmatprep.subr.bf16.mxu0 %v222_v11 }
  0x17   :  { %126 = vmatpush1.bf16.msra.mxu0 %v224_v12 }
  0x18   :  { %127 = vmatprep.subr.bf16.mxu0 %v225_v13 }
  0x1b   :  { %128 = vmatpush1.bf16.msra.mxu0 %v227_v14 }
  0x1c   :  { %129 = vmatprep.subr.bf16.mxu0 %v228_v15 }
  0x1f   :  { %130 = vmatpush1.bf16.msra.mxu0 %v230_v16 }
  0x22   :  { %148 = vmatmul.mubr.bf16.vlgmr.msra.gmra.mxu0 %v18_v17 }
  0xe2   :  { %v149_v27 = vpop.f32.mrf.mxu0 }
  0xe3   :  { %v168_v28 = vmul.f32 %v161_v24, %v149_v27 }
  0xe4   :  { %v151_v30 = vpop.f32.mrf.mxu0 }
  0xe5   :  { %v182_v31 = vadd.f32 %v175_v25, %v168_v28  ;;  %v169_v32 = vmul.f32 %v165_v26, %v151_v30 }
  0xe6   :  { %v153_v33 = vpop.f32.mrf.mxu0 }
  0xe7   :  { %184 = vst [vmem:[%s324_s4] sm:$0xff] %v182_v31  ;;  %v183_v34 = vadd.f32 %v179_v29, %v169_v32 }
  0xe8   :  { %v154_v35 = vpop.f32.mrf.mxu0 }
  0xe9   :  { %185 = vst [vmem:[%s324_s4 + $0x8] sm:$0xff] %v183_v34 }

// kernel: _lambda_.19
= control target key start
LH: loop header
LB: loop body
LE: loop exit
PB: predicated region body
PF: predicated region fallthrough
CT: control target
= control target key end

     0   :  { %s992_s1 = inlined_call_operand.vmem [shape: bf16[640,128], index: 1, kind: input, shape index: {}]   ;;  %s993_s0 = inlined_call_operand.vmem [shape: bf16[32,640], index: 0, kind: input, shape index: {}]   ;;  %s994_s2 = inlined_call_operand.vmem [shape: f32[1,128], index: 2, kind: input, shape index: {}]   ;;  %s995_s3 = inlined_call_operand.vmem [shape: f32[1,128], index: 3, kind: input, shape index: {}]   ;;  %s996_s4 = inlined_call_operand.vmem [shape: f32[32,128], index: 4, kind: input, shape index: {}]   ;;  %s997_s5 = inlined_call_operand.vmem [shape: f32[32,128], index: 5, kind: output, shape index: {}]  }
   0x1   :  { %v728_v0 = vld [vmem:[%s992_s1 + $0x78] sm:$0xff]   ;;  %v732_v4 = vld [vmem:[%s992_s1 + $0x70] sm:$0xff]   ;;  %v736_v8 = vld [vmem:[%s992_s1 + $0x68] sm:$0xff]  }
   0x2   :  { %v729_v1 = vld [vmem:[%s992_s1 + $0xf8] sm:$0xff]   ;;  %642 = vmatprep.subr.bf16.mxu0 %v728_v0  ;;  %v733_v5 = vld [vmem:[%s992_s1 + $0xf0] sm:$0xff]   ;;  %v737_v9 = vld [vmem:[%s992_s1 + $0xe8] sm:$0xff]  }
   0x3   :  { %v730_v2 = vld [vmem:[%s992_s1 + $0x38] sm:$0xff]   ;;  %670 = vmatprep.subr.bf16.mxu1 %v729_v1  ;;  %v734_v6 = vld [vmem:[%s992_s1 + $0x30] sm:$0xff]   ;;  %v738_v10 = vld [vmem:[%s992_s1 + $0x28] sm:$0xff]  }
   0x4   :  { %v731_v3 = vld [vmem:[%s992_s1 + $0xb8] sm:$0xff]   ;;  %643 = vmatpush3.bf16.msra.mxu0 %v730_v2  ;;  %v735_v7 = vld [vmem:[%s992_s1 + $0xb0] sm:$0xff]   ;;  %v739_v11 = vld [vmem:[%s992_s1 + $0xa8] sm:$0xff]  }
   0x5   :  { %671 = vmatpush3.bf16.msra.mxu1 %v731_v3  ;;  %644 = vmatprep.subr.bf16.mxu0 %v732_v4  ;;  %v740_v12 = vld [vmem:[%s992_s1 + $0x60] sm:$0xff]   ;;  %v744_v16 = vld [vmem:[%s992_s1 + $0x58] sm:$0xff]   ;;  %v748_v20 = vld [vmem:[%s992_s1 + $0x50] sm:$0xff]  }
   0x6   :  { %672 = vmatprep.subr.bf16.mxu1 %v733_v5  ;;  %v741_v13 = vld [vmem:[%s992_s1 + $0xe0] sm:$0xff]   ;;  %v745_v17 = vld [vmem:[%s992_s1 + $0xd8] sm:$0xff]   ;;  %v749_v21 = vld [vmem:[%s992_s1 + $0xd0] sm:$0xff]  }
   0x7   :  { %v742_v14 = vld [vmem:[%s992_s1 + $0x20] sm:$0xff]   ;;  %v746_v18 = vld [vmem:[%s992_s1 + $0x18] sm:$0xff]   ;;  %v750_v22 = vld [vmem:[%s992_s1 + $0x10] sm:$0xff]  }
   0x8   :  { %645 = vmatpush3.bf16.msra.mxu0 %v734_v6  ;;  %v743_v15 = vld [vmem:[%s992_s1 + $0xa0] sm:$0xff]   ;;  %v747_v19 = vld [vmem:[%s992_s1 + $0x98] sm:$0xff]   ;;  %v751_v23 = vld [vmem:[%s992_s1 + $0x90] sm:$0xff]  }
   0x9   :  { %673 = vmatpush3.bf16.msra.mxu1 %v735_v7  ;;  %646 = vmatprep.subr.bf16.mxu0 %v736_v8  ;;  %v752_v24 = vld [vmem:[%s992_s1 + $0x48] sm:$0xff]   ;;  %v756_v28 = vld [vmem:[%s992_s1 + $0x40] sm:$0xff]   ;;  %v766_v36 = vld [vmem:[%s992_s1 + $0x138] sm:$0xff]  }
   0xa   :  { %674 = vmatprep.subr.bf16.mxu1 %v737_v9  ;;  %v753_v25 = vld [vmem:[%s992_s1 + $0xc8] sm:$0xff]   ;;  %v757_v29 = vld [vmem:[%s992_s1 + $0xc0] sm:$0xff]   ;;  %v767_v37 = vld [vmem:[%s992_s1 + $0x130] sm:$0xff]  }
   0xb   :  { %v754_v26 = vld [vmem:[%s992_s1 + $0x8] sm:$0xff]   ;;  %v758_v30 = vld [vmem:[%s992_s1] sm:$0xff]   ;;  %v770_v45 = vld [vmem:[%s992_s1 + $0x118] sm:$0xff]  }
   0xc   :  { %647 = vmatpush3.bf16.msra.mxu0 %v738_v10  ;;  %v755_v27 = vld [vmem:[%s992_s1 + $0x88] sm:$0xff]   ;;  %v759_v31 = vld [vmem:[%s992_s1 + $0x80] sm:$0xff]   ;;  %v777_v46 = vld [vmem:[%s992_s1 + $0x110] sm:$0xff]  }
   0xd   :  { %675 = vmatpush3.bf16.msra.mxu1 %v739_v11  ;;  %648 = vmatprep.subr.bf16.mxu0 %v740_v12  ;;  %v760_v32 = vld [vmem:[%s993_s0] ss:$20 sps:$4 sm:$0xff]   ;;  %v762_v33 = vld [vmem:[%s993_s0 + $0x4] ss:$20 sps:$4 sm:$0xff]   ;;  %v763_v34 = vld [vmem:[%s993_s0 + $0x8] ss:$20 sps:$4 sm:$0xff]  }
   0xe   :  { %676 = vmatprep.subr.bf16.mxu1 %v741_v13  ;;  %v765_v35 = vld [vmem:[%s993_s0 + $0xc] ss:$20 sps:$4 sm:$0xff]   ;;  %437 = vmatprep.mubr.bf16.mxu0 %v762_v33  ;;  %v773_v40 = vld [vmem:[%s993_s0 + $0x34] ss:$20 sps:$4 sm:$0xff]   ;;  %v776_v42 = vld [vmem:[%s993_s0 + $0x30] ss:$20 sps:$4 sm:$0xff]  }
   0xf   :  { %486 = vmatprep.mubr.bf16.mxu1 %v765_v35  ;;  %v768_v38 = vld [vmem:[%s992_s1 + $0x128] sm:$0xff]   ;;  %v769_v43 = vld [vmem:[%s992_s1 + $0x120] sm:$0xff]  }
  0x10   :  { %649 = vmatpush3.bf16.msra.mxu0 %v742_v14  ;;  %v771_v39 = vld [vmem:[%s993_s0 + $0x2c] ss:$20 sps:$4 sm:$0xff]   ;;  %v775_v41 = vld [vmem:[%s993_s0 + $0x28] ss:$20 sps:$4 sm:$0xff]   ;;  %v780_v44 = vld [vmem:[%s993_s0 + $0x10] ss:$20 sps:$4 sm:$0xff]  }
  0x11   :  { %677 = vmatpush3.bf16.msra.mxu1 %v743_v15  ;;  %650 = vmatprep.subr.bf16.mxu0 %v744_v16  ;;  %v778_v47 = vld [vmem:[%s992_s1 + $0x108] sm:$0xff]   ;;  %v779_v48 = vld [vmem:[%s992_s1 + $0x100] sm:$0xff]  }
  0x12   :  { %678 = vmatprep.subr.bf16.mxu1 %v745_v17  ;;  %v781_v49 = vld [vmem:[%s993_s0 + $0x38] ss:$20 sps:$4 sm:$0xff]   ;;  %v640_v10 = vld [vmem:[%s994_s2] ss:$0 sm:$0xff] }
  0x13   :  { %v641_v15 = vld [vmem:[%s995_s3] ss:$0 sm:$0xff] }
  0x14   :  { %651 = vmatpush3.bf16.msra.mxu0 %v746_v18 }
  0x15   :  { %679 = vmatpush3.bf16.msra.mxu1 %v747_v19  ;;  %652 = vmatprep.subr.bf16.mxu0 %v748_v20  ;;  %v576_v20 = vld [vmem:[%s996_s4 + $0x10] sm:$0xff] }
  0x16   :  { %680 = vmatprep.subr.bf16.mxu1 %v749_v21 }
  0x18   :  { %653 = vmatpush3.bf16.msra.mxu0 %v750_v22 }
  0x19   :  { %681 = vmatpush3.bf16.msra.mxu1 %v751_v23  ;;  %654 = vmatprep.subr.bf16.mxu0 %v752_v24 }
  0x1a   :  { %682 = vmatprep.subr.bf16.mxu1 %v753_v25 }
  0x1c   :  { %655 = vmatpush3.bf16.msra.mxu0 %v754_v26  ;;  %v574_v26 = vld [vmem:[%s996_s4] sm:$0xff] }
  0x1d   :  { %683 = vmatpush3.bf16.msra.mxu1 %v755_v27  ;;  %656 = vmatprep.subr.bf16.mxu0 %v756_v28 }
  0x1e   :  { %684 = vmatprep.subr.bf16.mxu1 %v757_v29 }
  0x20   :  { %657 = vmatpush3.bf16.msra.mxu0 %v758_v30 }
  0x21   :  { %685 = vmatpush3.bf16.msra.mxu1 %v759_v31  ;;  %708 = vmatprep.subr.bf16.mxu0 %v766_v36 }
  0x23   :  { %438 = vmatmul.mubr.bf16.vlgmr.msra.gmra.mxu0 %v760_v32  ;;  %v577_v32 = vld [vmem:[%s996_s4 + $0x18] sm:$0xff] }
  0x24   :  { %487 = vmatmul.mubr.bf16.vlgmr.msra.gmra.mxu1 %v763_v34  ;;  %709 = vmatpush3.bf16.msra.mxu0 %v766_v36  ;;  %v575_v36 = vld [vmem:[%s996_s4 + $0x8] sm:$0xff] }
  0x25   :  { %710 = vmatprep.subr.bf16.mxu0 %v767_v37  ;;  %445 = vmatprep.mubr.bf16.mxu0 %v771_v39 }
  0x26   :  { %494 = vmatprep.mubr.bf16.mxu1 %v773_v40 }
  0x28   :  { %711 = vmatpush3.bf16.msra.mxu0 %v767_v37 }
  0x29   :  { %712 = vmatprep.subr.bf16.mxu0 %v768_v38 }
  0x2b   :  { %446 = vmatmul.mubr.bf16.gmra.mxu0 %v775_v41 }
  0x2c   :  { %495 = vmatmul.mubr.bf16.gmra.mxu1 %v776_v42  ;;  %713 = vmatpush3.bf16.msra.mxu0 %v768_v38 }
  0x2d   :  { %714 = vmatprep.subr.bf16.mxu0 %v769_v43  ;;  %724 = vmatprep.mubr.bf16.mxu0 %v780_v44 }
  0x30   :  { %715 = vmatpush3.bf16.msra.mxu0 %v769_v43 }
  0x31   :  { %716 = vmatprep.subr.bf16.mxu0 %v770_v45 }
  0x34   :  { %717 = vmatpush3.bf16.msra.mxu0 %v770_v45 }
  0x35   :  { %718 = vmatprep.subr.bf16.mxu0 %v777_v46 }
  0x38   :  { %719 = vmatpush3.bf16.msra.mxu0 %v777_v46 }
  0x39   :  { %720 = vmatprep.subr.bf16.mxu0 %v778_v47 }
  0x3c   :  { %721 = vmatpush3.bf16.msra.mxu0 %v778_v47 }
  0x3d   :  { %722 = vmatprep.subr.bf16.mxu0 %v779_v48 }
  0x40   :  { %723 = vmatpush3.bf16.msra.mxu0 %v779_v48 }
  0x43   :  { %725 = vmatmul.mubr.bf16.vlgmr.msra.gmra.mxu0 %v781_v49 }
  0xe3   :  { %v658_v50 = vpop.f32.mrf.mxu0 }
  0xe4   :  { %v686_v51 = vpop.f32.mrf.mxu1 }
  0xe5   :  { %v659_v52 = vpop.f32.mrf.mxu0 }
  0xe6   :  { %v687_v53 = vpop.f32.mrf.mxu1  ;;  %v660_v4 = vadd.f32 %v659_v52, %v658_v50 }
  0xe7   :  { %v661_v54 = vpop.f32.mrf.mxu0  ;;  %v688_v5 = vadd.f32 %v687_v53, %v686_v51 }
  0xe8   :  { %v689_v55 = vpop.f32.mrf.mxu1 }
  0xe9   :  { %v662_v56 = vpop.f32.mrf.mxu0  ;;  %v489_v14 = vadd.f32 %v688_v5, %v660_v4 }
  0xea   :  { %v690_v57 = vpop.f32.mrf.mxu1  ;;  %v663_v11 = vadd.f32 %v662_v56, %v661_v54 }
  0xeb   :  { %v664_v58 = vpop.f32.mrf.mxu0  ;;  %v691_v12 = vadd.f32 %v690_v57, %v689_v55 }
  0xec   :  { %v692_v59 = vpop.f32.mrf.mxu1 }
  0xed   :  { %v665_v60 = vpop.f32.mrf.mxu0  ;;  %v492_v25 = vadd.f32 %v691_v12, %v663_v11 }
  0xee   :  { %v693_v61 = vpop.f32.mrf.mxu1  ;;  %v666_v0 = vadd.f32 %v665_v60, %v664_v58 }
  0xef   :  { %v667_v62 = vpop.f32.mrf.mxu0  ;;  %v694_v1 = vadd.f32 %v693_v61, %v692_v59 }
  0xf0   :  { %v695_v63 = vpop.f32.mrf.mxu1 }
  0xf1   :  { %v668_v2 = vpop.f32.mrf.mxu0  ;;  %v497_v8 = vadd.f32 %v694_v1, %v666_v0 }
  0xf2   :  { %v696_v3 = vpop.f32.mrf.mxu1  ;;  %v669_v6 = vadd.f32 %v668_v2, %v667_v62 }
  0xf3   :  { %v697_v7 = vadd.f32 %v696_v3, %v695_v63 }
  0xf5   :  { %v500_v19 = vadd.f32 %v697_v7, %v669_v6 }
 0x103   :  { %v726_v9 = vpop.f32.mrf.mxu0 }
 0x104   :  { %v546_v13 = vadd.f32 %v726_v9, %v497_v8 }
 0x105   :  { %v537_v16 = vpop.f32.mrf.mxu0 }
 0x106   :  { %v561_v17 = vmul.f32 %v640_v10, %v546_v13  ;;  %v538_v18 = vadd.f32 %v537_v16, %v489_v14 }
 0x107   :  { %v727_v21 = vpop.f32.mrf.mxu0 }
 0x108   :  { %v572_v22 = vadd.f32 %v641_v15, %v561_v17  ;;  %v559_v23 = vmul.f32 %v640_v10, %v538_v18  ;;  %v549_v24 = vadd.f32 %v727_v21, %v500_v19 }
 0x109   :  { %v540_v27 = vpop.f32.mrf.mxu0 }
 0x10a   :  { %v580_v28 = vadd.f32 %v576_v20, %v572_v22  ;;  %v570_v29 = vadd.f32 %v641_v15, %v559_v23  ;;  %v562_v30 = vmul.f32 %v640_v10, %v549_v24  ;;  %v541_v31 = vadd.f32 %v540_v27, %v492_v25 }
 0x10c   :  { %584 = vst [vmem:[%s997_s5 + $0x10] sm:$0xff] %v580_v28  ;;  %v578_v33 = vadd.f32 %v574_v26, %v570_v29  ;;  %v573_v34 = vadd.f32 %v641_v15, %v562_v30  ;;  %v560_v35 = vmul.f32 %v640_v10, %v541_v31 }
 0x10e   :  { %582 = vst [vmem:[%s997_s5] sm:$0xff] %v578_v33  ;;  %v581_v37 = vadd.f32 %v577_v32, %v573_v34  ;;  %v571_v38 = vadd.f32 %v641_v15, %v560_v35 }
 0x110   :  { %585 = vst [vmem:[%s997_s5 + $0x18] sm:$0xff] %v581_v37  ;;  %v579_v39 = vadd.f32 %v575_v36, %v571_v38 }
 0x112   :  { %583 = vst [vmem:[%s997_s5 + $0x8] sm:$0xff] %v579_v39 }

// kernel: _lambda_.23
= control target key start
LH: loop header
LB: loop body
LE: loop exit
PB: predicated region body
PF: predicated region fallthrough
CT: control target
= control target key end

     0   :  { %s71_s0 = inlined_call_operand.vmem [shape: f32[4,8,256], index: 0, kind: input, shape index: {}]   ;;  %s72_s1 = inlined_call_operand.vmem [shape: f32[8,256], index: 1, kind: output, shape index: {}]  }
   0x1   :  { %v8_v0 = vld [vmem:[%s71_s0] sm:$0xff]  ;;  %v10_v1 = vld [vmem:[%s71_s0 + $0x10] sm:$0xff]  ;;  %v9_v4 = vld [vmem:[%s71_s0 + $0x8] sm:$0xff] }
   0x2   :  { %v12_v2 = vld [vmem:[%s71_s0 + $0x20] sm:$0xff]  ;;  %v16_v3 = vadd.f32 %v10_v1, %v8_v0  ;;  %v11_v5 = vld [vmem:[%s71_s0 + $0x18] sm:$0xff]  ;;  %v14_v6 = vld [vmem:[%s71_s0 + $0x30] sm:$0xff] }
   0x3   :  { %v13_v7 = vld [vmem:[%s71_s0 + $0x28] sm:$0xff]  ;;  %v19_v8 = vadd.f32 %v11_v5, %v9_v4  ;;  %v15_v10 = vld [vmem:[%s71_s0 + $0x38] sm:$0xff] }
   0x4   :  { %v17_v9 = vadd.f32 %v16_v3, %v12_v2 }
   0x5   :  { %v20_v11 = vadd.f32 %v19_v8, %v13_v7 }
   0x6   :  { %v18_v12 = vadd.f32 %v17_v9, %v14_v6 }
   0x7   :  { %v21_v13 = vadd.f32 %v20_v11, %v15_v10 }
   0x8   :  { %v23_v14 = vmul.f32 0.25, %v18_v12 }
   0x9   :  { %v24_v15 = vmul.f32 0.25, %v21_v13 }
   0xa   :  { %25 = vst [vmem:[%s72_s1] sm:$0xff] %v23_v14 }
   0xb   :  { %26 = vst [vmem:[%s72_s1 + $0x8] sm:$0xff] %v24_v15 }

// kernel: _lambda_.24
= control target key start
LH: loop header
LB: loop body
LE: loop exit
PB: predicated region body
PF: predicated region fallthrough
CT: control target
= control target key end

     0   :  { %s1037_s15 = smov 0   ;;  %s1039_s16 = smov 0   ;;  %s1219_s0 = inlined_call_operand.vmem [shape: bf16[8,256], index: 0, kind: input, shape index: {}]   ;;  %s1220_s1 = inlined_call_operand.vmem [shape: bf16[256,512], index: 1, kind: input, shape index: {}]   ;;  %s1221_s2 = inlined_call_operand.vmem [shape: f32[1,512], index: 2, kind: input, shape index: {}]   ;;  %s1222_s3 = inlined_call_operand.vmem [shape: f32[1,512], index: 3, kind: input, shape index: {}]   ;;  %s1223_s4 = inlined_call_operand.vmem [shape: f32[8,512], index: 4, kind: output, shape index: {}]  }
   0x1   :  { %s1041_s17 = smov 0   ;;  %s1043_s18 = smov 0  }
   0x2   :  { %s1045_s19 = smov 0  }
   0x3 LB: > { %s23_s20 = sadd.s32 1, %s1006_s18  ;;  %p66_p1 = scmp.ne.s32.totalorder %s998_s16, %s994_s15  ;;  %s1010_s19 = sphi %s1045_s19, %s14_s19   ;;  %s1006_s18 = sphi %s1043_s18, %s1227_s18   ;;  %s1002_s17 = sphi %s1041_s17, %s1226_s17   ;;  %s998_s16 = sphi %s1039_s16, %s1225_s16   ;;  %s994_s15 = sphi %s1037_s15, %s1224_s15  }
   0x4   : > { %p24_p0 = scmp.ge.s32.totalorder %s23_s20, 2  ;;  %p67_p2 = scmp.eq.s32.totalorder %s1010_s19, 0 }
   0x5   : > { %s59_s22 = sadd.s32 1, %s998_s16  ;;  %p835_p5 = scmp.ge.s32.totalorder %s1010_s19, 2 }
   0x6   : > { %s1229_s20 = smov (%p24_p0, %s23_s20), 0  ;;  %p68_p3 = por %p67_p2, %p66_p1 }
   0x7   : > { %s56_s21 = ssub.s32 %s1006_s18, %s1229_s20  ;;  %180 = sbr.rel (%p835_p5) target bundleno = 32 (0x20), region = 20 }
   0x8   : > { %p57_p4 = scmp.eq.s32.totalorder %s56_s21, 0 }
   0xa   : > { %s1072_s23 = scalar_select %p57_p4, %s998_s16, %s59_s22  }
   0xc   : > { %183 = sbr.rel (!%p68_p3) target bundleno = 32 (0x20), region = 24  ;;  %s185_s24 = sand.u32 (%p68_p3), 1, %s998_s16  }
   0xd   : > { %s881_s25 = sshll.u32 (%p68_p3), %s1006_s18, 3  ;;  %s836_s26 = sshll.u32 (%p68_p3), %s185_s24, 8 }
   0xe   : > { %s1080_s29 = scalar_lea.vmem (%p68_p3), %s1220_s1, %s881_s25  ;;  %s1085_s30 = scalar_lea.vmem (%p68_p3), [#allocation2], %s836_s26 }
   0xf   : > { %v281_v0 = vld [vmem:[%s1080_s29] sm:$0xff] (%p68_p3)  ;;  %v283_v1 = vld [vmem:[%s1080_s29 + $0x10] sm:$0xff] (%p68_p3) }
  0x10   : > { %v285_v2 = vld [vmem:[%s1080_s29 + $0x20] sm:$0xff] (%p68_p3)  ;;  %282 = vst [vmem:[%s1085_s30] sm:$0xff] (%p68_p3), %v281_v0  ;;  %284 = vst [vmem:[%s1085_s30 + $0x8] sm:$0xff] (%p68_p3), %v283_v1  ;;  %v287_v3 = vld [vmem:[%s1080_s29 + $0x30] sm:$0xff] (%p68_p3) }
  0x11   : > { %286 = vst [vmem:[%s1085_s30 + $0x10] sm:$0xff] %v285_v2  ;;  %v289_v4 = vld [vmem:[%s1080_s29 + $0x40] sm:$0xff]  ;;  %v291_v5 = vld [vmem:[%s1080_s29 + $0x50] sm:$0xff]  ;;  %288 = vst [vmem:[%s1085_s30 + $0x18] sm:$0xff] %v287_v3 }
  0x12   : > { %290 = vst [vmem:[%s1085_s30 + $0x20] sm:$0xff] %v289_v4  ;;  %292 = vst [vmem:[%s1085_s30 + $0x28] sm:$0xff] %v291_v5  ;;  %v293_v6 = vld [vmem:[%s1080_s29 + $0x60] sm:$0xff]  ;;  %v295_v7 = vld [vmem:[%s1080_s29 + $0x70] sm:$0xff] }
  0x13   : > { %v297_v8 = vld [vmem:[%s1080_s29 + $0x80] sm:$0xff]  ;;  %294 = vst [vmem:[%s1085_s30 + $0x30] sm:$0xff] %v293_v6  ;;  %296 = vst [vmem:[%s1085_s30 + $0x38] sm:$0xff] %v295_v7  ;;  %v299_v9 = vld [vmem:[%s1080_s29 + $0x90] sm:$0xff] }
  0x14   : > { %298 = vst [vmem:[%s1085_s30 + $0x40] sm:$0xff] %v297_v8  ;;  %v301_v10 = vld [vmem:[%s1080_s29 + $0xa0] sm:$0xff]  ;;  %v303_v11 = vld [vmem:[%s1080_s29 + $0xb0] sm:$0xff]  ;;  %300 = vst [vmem:[%s1085_s30 + $0x48] sm:$0xff] %v299_v9 }
  0x15   : > { %302 = vst [vmem:[%s1085_s30 + $0x50] sm:$0xff] %v301_v10  ;;  %304 = vst [vmem:[%s1085_s30 + $0x58] sm:$0xff] %v303_v11  ;;  %v305_v12 = vld [vmem:[%s1080_s29 + $0xc0] sm:$0xff]  ;;  %v307_v13 = vld [vmem:[%s1080_s29 + $0xd0] sm:$0xff] }
  0x16   : > { %v309_v14 = vld [vmem:[%s1080_s29 + $0xe0] sm:$0xff]  ;;  %306 = vst [vmem:[%s1085_s30 + $0x60] sm:$0xff] %v305_v12  ;;  %308 = vst [vmem:[%s1085_s30 + $0x68] sm:$0xff] %v307_v13  ;;  %v311_v15 = vld [vmem:[%s1080_s29 + $0xf0] sm:$0xff] }
  0x17   : > { %310 = vst [vmem:[%s1085_s30 + $0x70] sm:$0xff] %v309_v14  ;;  %v313_v16 = vld [vmem:[%s1080_s29 + $0x100] sm:$0xff]  ;;  %v315_v17 = vld [vmem:[%s1080_s29 + $0x110] sm:$0xff]  ;;  %312 = vst [vmem:[%s1085_s30 + $0x78] sm:$0xff] %v311_v15 }
  0x18   : > { %314 = vst [vmem:[%s1085_s30 + $0x80] sm:$0xff] %v313_v16  ;;  %316 = vst [vmem:[%s1085_s30 + $0x88] sm:$0xff] %v315_v17  ;;  %v317_v18 = vld [vmem:[%s1080_s29 + $0x120] sm:$0xff]  ;;  %v319_v19 = vld [vmem:[%s1080_s29 + $0x130] sm:$0xff] }
  0x19   : > { %v321_v20 = vld [vmem:[%s1080_s29 + $0x140] sm:$0xff]  ;;  %318 = vst [vmem:[%s1085_s30 + $0x90] sm:$0xff] %v317_v18  ;;  %320 = vst [vmem:[%s1085_s30 + $0x98] sm:$0xff] %v319_v19  ;;  %v323_v21 = vld [vmem:[%s1080_s29 + $0x150] sm:$0xff] }
  0x1a   : > { %322 = vst [vmem:[%s1085_s30 + $0xa0] sm:$0xff] %v321_v20  ;;  %v325_v22 = vld [vmem:[%s1080_s29 + $0x160] sm:$0xff]  ;;  %v327_v23 = vld [vmem:[%s1080_s29 + $0x170] sm:$0xff]  ;;  %324 = vst [vmem:[%s1085_s30 + $0xa8] sm:$0xff] %v323_v21 }
  0x1b   : > { %326 = vst [vmem:[%s1085_s30 + $0xb0] sm:$0xff] %v325_v22  ;;  %328 = vst [vmem:[%s1085_s30 + $0xb8] sm:$0xff] %v327_v23  ;;  %v329_v24 = vld [vmem:[%s1080_s29 + $0x180] sm:$0xff]  ;;  %v331_v25 = vld [vmem:[%s1080_s29 + $0x190] sm:$0xff] }
  0x1c   : > { %v333_v26 = vld [vmem:[%s1080_s29 + $0x1a0] sm:$0xff]  ;;  %330 = vst [vmem:[%s1085_s30 + $0xc0] sm:$0xff] %v329_v24  ;;  %332 = vst [vmem:[%s1085_s30 + $0xc8] sm:$0xff] %v331_v25  ;;  %v335_v27 = vld [vmem:[%s1080_s29 + $0x1b0] sm:$0xff] }
  0x1d   : > { %334 = vst [vmem:[%s1085_s30 + $0xd0] sm:$0xff] %v333_v26  ;;  %v337_v28 = vld [vmem:[%s1080_s29 + $0x1c0] sm:$0xff]  ;;  %v339_v29 = vld [vmem:[%s1080_s29 + $0x1d0] sm:$0xff]  ;;  %336 = vst [vmem:[%s1085_s30 + $0xd8] sm:$0xff] %v335_v27 }
  0x1e   : > { %338 = vst [vmem:[%s1085_s30 + $0xe0] sm:$0xff] %v337_v28  ;;  %340 = vst [vmem:[%s1085_s30 + $0xe8] sm:$0xff] %v339_v29  ;;  %v341_v30 = vld [vmem:[%s1080_s29 + $0x1e0] sm:$0xff]  ;;  %v343_v31 = vld [vmem:[%s1080_s29 + $0x1f0] sm:$0xff] }
  0x1f   : > { %342 = vst [vmem:[%s1085_s30 + $0xf0] sm:$0xff] %v341_v30  ;;  %344 = vst [vmem:[%s1085_s30 + $0xf8] sm:$0xff] %v343_v31 }
  0x20 PF: > { %p839_p6 = scmp.ge.s32.totalorder %s1010_s19, 1  ;;  %p365_p7 = scmp.lt.s32.totalorder %s1010_s19, 3 }
  0x22   : > { %p366_p8 = pnand %p839_p6, %p365_p7 }
  0x23   : > { %s372_s5 = sand.u32 (!%p366_p8), 1, %s994_s15   ;;  %s841_s10 = sshll.u32 (!%p366_p8), %s1002_s17, 1 }
  0x24   : > { %369 = sbr.rel (%p366_p8) target bundleno = 306 (0x132), region = 70  ;;  %s840_s8 = sshll.u32 (!%p366_p8), %s372_s5, 8 }
  0x25   : > { %s1158_s9 = scalar_lea.vmem (!%p366_p8), [#allocation2], %s840_s8  ;;  %p421_p9 = scmp.lt.s32.totalorder (!%p366_p8), %s841_s10, 3 }
  0x29   : > { %v1154_v32 = vld [vmem:[%s1219_s0] sm:$0xff]  ;;  %v922_v34 = vld [vmem:[%s1158_s9 + $0x74] ss:$8 sps:$4 sm:$0xff]   ;;  %v924_v35 = vld [vmem:[%s1158_s9 + $0x70] ss:$8 sps:$4 sm:$0xff]   ;;  %v683_v3 = vlaneseq  ;;  %s1231_s10 = smov (!%p421_p9, %s841_s10), 3 }
  0x2a   : > { %v846_v33 = vcombine.high %v1154_v32, %v1154_v32  ;;  %640 = vmatprep.subr.bf16.mxu0 %v922_v34  ;;  %v925_v36 = vld [vmem:[%s1158_s9 + $0x64] ss:$8 sps:$4 sm:$0xff]   ;;  %v927_v37 = vld [vmem:[%s1158_s9 + $0x60] ss:$8 sps:$4 sm:$0xff]   ;;  %v928_v38 = vld [vmem:[%s1158_s9 + $0x54] ss:$8 sps:$4 sm:$0xff]   ;;  %v845_v2 = vcombine.low %v1154_v32, %v1154_v32  ;;  %s423_s13 = scalar_lea.vmem %s1221_s2, %s1231_s10  ;;  %s428_s21 = scalar_lea.vmem %s1222_s3, %s1231_s10 }
  0x2b   : > { %641 = vmatpush1.bf16.msra.mxu0 %v924_v35  ;;  %v930_v39 = vld [vmem:[%s1158_s9 + $0x50] ss:$8 sps:$4 sm:$0xff]   ;;  %v931_v40 = vld [vmem:[%s1158_s9 + $0x44] ss:$8 sps:$4 sm:$0xff]   ;;  %v933_v41 = vld [vmem:[%s1158_s9 + $0x40] ss:$8 sps:$4 sm:$0xff]  }
  0x2c   : > { %672 = vmatprep.mubr.bf16.mxu0 %v846_v33  ;;  %642 = vmatprep.subr.bf16.mxu0 %v925_v36  ;;  %v934_v42 = vld [vmem:[%s1158_s9 + $0x34] ss:$8 sps:$4 sm:$0xff]   ;;  %v936_v43 = vld [vmem:[%s1158_s9 + $0x30] ss:$8 sps:$4 sm:$0xff]   ;;  %v937_v44 = vld [vmem:[%s1158_s9 + $0x24] ss:$8 sps:$4 sm:$0xff]  }
  0x2d   : > { %v939_v45 = vld [vmem:[%s1158_s9 + $0x20] ss:$8 sps:$4 sm:$0xff]   ;;  %v940_v46 = vld [vmem:[%s1158_s9 + $0x14] ss:$8 sps:$4 sm:$0xff]   ;;  %v942_v47 = vld [vmem:[%s1158_s9 + $0x10] ss:$8 sps:$4 sm:$0xff]  }
  0x2e   : > { %v943_v48 = vld [vmem:[%s1158_s9 + $0x4] ss:$8 sps:$4 sm:$0xff]   ;;  %v945_v49 = vld [vmem:[%s1158_s9] ss:$8 sps:$4 sm:$0xff]   ;;  %v946_v50 = vld [vmem:[%s1158_s9 + $0xf4] ss:$8 sps:$4 sm:$0xff]  }
  0x2f   : > { %643 = vmatpush1.bf16.msra.mxu0 %v927_v37  ;;  %v948_v51 = vld [vmem:[%s1158_s9 + $0xf0] ss:$8 sps:$4 sm:$0xff]   ;;  %v949_v52 = vld [vmem:[%s1158_s9 + $0xe4] ss:$8 sps:$4 sm:$0xff]   ;;  %v951_v53 = vld [vmem:[%s1158_s9 + $0xe0] ss:$8 sps:$4 sm:$0xff]  }
  0x30   : > { %644 = vmatprep.subr.bf16.mxu0 %v928_v38  ;;  %v952_v54 = vld [vmem:[%s1158_s9 + $0xd4] ss:$8 sps:$4 sm:$0xff]   ;;  %v954_v55 = vld [vmem:[%s1158_s9 + $0xd0] ss:$8 sps:$4 sm:$0xff]   ;;  %v955_v56 = vld [vmem:[%s1158_s9 + $0xc4] ss:$8 sps:$4 sm:$0xff]  }
  0x31   : > { %v957_v57 = vld [vmem:[%s1158_s9 + $0xc0] ss:$8 sps:$4 sm:$0xff]   ;;  %v958_v58 = vld [vmem:[%s1158_s9 + $0xb4] ss:$8 sps:$4 sm:$0xff]   ;;  %v960_v59 = vld [vmem:[%s1158_s9 + $0xb0] ss:$8 sps:$4 sm:$0xff]  }
  0x32   : > { %v961_v60 = vld [vmem:[%s1158_s9 + $0xa4] ss:$8 sps:$4 sm:$0xff]   ;;  %v963_v61 = vld [vmem:[%s1158_s9 + $0xa0] ss:$8 sps:$4 sm:$0xff]   ;;  %v964_v62 = vld [vmem:[%s1158_s9 + $0x94] ss:$8 sps:$4 sm:$0xff]  }
  0x33   : > { %645 = vmatpush1.bf16.msra.mxu0 %v930_v39  ;;  %v966_v63 = vld [vmem:[%s1158_s9 + $0x90] ss:$8 sps:$4 sm:$0xff]   ;;  %v967_v0 = vld [vmem:[%s1158_s9 + $0x84] ss:$8 sps:$4 sm:$0xff]   ;;  %v969_v1 = vld [vmem:[%s1158_s9 + $0x80] ss:$8 sps:$4 sm:$0xff]  }
  0x34   : > { %646 = vmatprep.subr.bf16.mxu0 %v931_v40  ;;  %v684_v4 = vshrl.u32 %v683_v3, 7  ;;  %v681_v6 = vld [vmem:[%s423_s13] sm:$0x3]  ;;  %s844_s22 = sshll.u32 %s1231_s10, 3 }
  0x35   : > { %v695_v8 = vld [vmem:[%s428_s21] sm:$0x3]  ;;  %s438_s25 = scalar_lea.vmem %s1223_s4, %s844_s22 }
  0x36   : > { %v685_v5 = vsub.s32 0, %v684_v4  ;;  %v689_v7 = vsub.s32 1, %v684_v4 }
  0x37   : > { %647 = vmatpush1.bf16.msra.mxu0 %v933_v41 }
  0x38   : > { %648 = vmatprep.subr.bf16.mxu0 %v934_v42  ;;  %v686_v9 = vrot.slane %v681_v6, %v685_v5  ;;  %v700_v10 = vrot.slane %v695_v8, %v685_v5  ;;  %v690_v11 = vrot.slane %v681_v6, %v689_v7  ;;  %v704_v14 = vrot.slane %v695_v8, %v689_v7 }
  0x3b   : > { %649 = vmatpush1.bf16.msra.mxu0 %v936_v43 }
  0x3c   : > { %650 = vmatprep.subr.bf16.mxu0 %v937_v44 }
  0x3f   : > { %651 = vmatpush1.bf16.msra.mxu0 %v939_v45 }
  0x40   : > { %652 = vmatprep.subr.bf16.mxu0 %v940_v46 }
  0x43   : > { %653 = vmatpush1.bf16.msra.mxu0 %v942_v47 }
  0x44   : > { %654 = vmatprep.subr.bf16.mxu0 %v943_v48 }
  0x47   : > { %655 = vmatpush1.bf16.msra.mxu0 %v945_v49 }
  0x48   : > { %656 = vmatprep.subr.bf16.mxu0 %v946_v50 }
  0x4b   : > { %657 = vmatpush2.bf16.msra.mxu0 %v948_v51 }
  0x4c   : > { %658 = vmatprep.subr.bf16.mxu0 %v949_v52 }
  0x4f   : > { %659 = vmatpush2.bf16.msra.mxu0 %v951_v53 }
  0x50   : > { %660 = vmatprep.subr.bf16.mxu0 %v952_v54 }
  0x53   : > { %661 = vmatpush2.bf16.msra.mxu0 %v954_v55 }
  0x54   : > { %662 = vmatprep.subr.bf16.mxu0 %v955_v56 }
  0x57   : > { %663 = vmatpush2.bf16.msra.mxu0 %v957_v57 }
  0x58   : > { %664 = vmatprep.subr.bf16.mxu0 %v958_v58 }
  0x5b   : > { %665 = vmatpush2.bf16.msra.mxu0 %v960_v59 }
  0x5c   : > { %666 = vmatprep.subr.bf16.mxu0 %v961_v60 }
  0x5f   : > { %667 = vmatpush2.bf16.msra.mxu0 %v963_v61 }
  0x60   : > { %668 = vmatprep.subr.bf16.mxu0 %v964_v62 }
  0x63   : > { %669 = vmatpush2.bf16.msra.mxu0 %v966_v63 }
  0x64   : > { %670 = vmatprep.subr.bf16.mxu0 %v967_v0 }
  0x67   : > { %671 = vmatpush2.bf16.msra.mxu0 %v969_v1 }
  0x6a   : > { %673 = vmatmul.mubr.bf16.vlgmr.msra.gmra.mxu0 %v845_v2 }
 0x12a   : > { %v674_v12 = vpop.f32.mrf.mxu0 }
 0x12b   : > { %v693_v13 = vmul.f32 %v686_v9, %v674_v12 }
 0x12c   : > { %v676_v15 = vpop.f32.mrf.mxu0 }
 0x12d   : > { %v707_v16 = vadd.f32 %v700_v10, %v693_v13  ;;  %v694_v17 = vmul.f32 %v690_v11, %v676_v15 }
 0x12e   : > { %v678_v18 = vpop.f32.mrf.mxu0 }
 0x12f   : > { %709 = vst [vmem:[%s438_s25] sm:$0xff] %v707_v16  ;;  %v708_v19 = vadd.f32 %v704_v14, %v694_v17 }
 0x130   : > { %v679_v20 = vpop.f32.mrf.mxu0 }
 0x131   : > { %710 = vst [vmem:[%s438_s25 + $0x8] sm:$0xff] %v708_v19 }
 0x132 PF: > { %s14_s19 = sadd.s32 1, %s1010_s19   ;;  %s1224_s15 = smov %s998_s16 }
 0x133   : > { %p11_p10 = scmp.ge.s32.totalorder %s14_s19, 4   ;;  %s1225_s16 = smov %s1072_s23 }
 0x134   : > { %s1226_s17 = smov %s1006_s18  ;;  %s1227_s18 = smov %s1229_s20 }
 0x135   :  { %13 = sbr.rel (!%p11_p10) target bundleno = 3 (0x3), region = 118 }

// kernel: _lambda_.26
= control target key start
LH: loop header
LB: loop body
LE: loop exit
PB: predicated region body
PF: predicated region fallthrough
CT: control target
= control target key end

     0   :  { %s58_s0 = inlined_call_operand.vmem [shape: f32[1,8,512], index: 0, kind: input, shape index: {}]   ;;  %s59_s1 = inlined_call_operand.vmem [shape: f32[8,512], index: 1, kind: output, shape index: {}]  }
   0x1   :  { %v8_v0 = vld [vmem:[%s58_s0] sm:$0xff]  ;;  %v9_v1 = vld [vmem:[%s58_s0 + $0x8] sm:$0xff]  ;;  %v10_v2 = vld [vmem:[%s58_s0 + $0x10] sm:$0xff] }
   0x2   :  { %16 = vst [vmem:[%s59_s1] sm:$0xff] %v8_v0  ;;  %17 = vst [vmem:[%s59_s1 + $0x8] sm:$0xff] %v9_v1  ;;  %v11_v3 = vld [vmem:[%s58_s0 + $0x18] sm:$0xff] }
   0x3   :  { %18 = vst [vmem:[%s59_s1 + $0x10] sm:$0xff] %v10_v2  ;;  %19 = vst [vmem:[%s59_s1 + $0x18] sm:$0xff] %v11_v3 }

// kernel: _lambda_.22
= control target key start
LH: loop header
LB: loop body
LE: loop exit
PB: predicated region body
PF: predicated region fallthrough
CT: control target
= control target key end

     0   :  { %s2052_s1 = inlined_call_operand.vmem [shape: bf16[1152,256], index: 1, kind: input, shape index: {}]   ;;  %s2053_s0 = inlined_call_operand.vmem [shape: bf16[8,1152], index: 0, kind: input, shape index: {}]   ;;  %s2054_s2 = inlined_call_operand.vmem [shape: f32[1,256], index: 2, kind: input, shape index: {}]   ;;  %s2055_s3 = inlined_call_operand.vmem [shape: f32[1,256], index: 3, kind: input, shape index: {}]   ;;  %s2056_s4 = inlined_call_operand.vmem [shape: f32[8,256], index: 4, kind: input, shape index: {}]   ;;  %s2057_s5 = inlined_call_operand.vmem [shape: f32[8,256], index: 5, kind: output, shape index: {}]  }
   0x1   :  { %v1319_v0 = vld [vmem:[%s2052_s1 + $0x74] ss:$8 sps:$4 sm:$0xff]   ;;  %v1323_v2 = vld [vmem:[%s2052_s1 + $0x70] ss:$8 sps:$4 sm:$0xff]   ;;  %v1325_v4 = vld [vmem:[%s2052_s1 + $0x64] ss:$8 sps:$4 sm:$0xff]  }
   0x2   :  { %v1321_v1 = vld [vmem:[%s2052_s1 + $0x174] ss:$8 sps:$4 sm:$0xff]   ;;  %922 = vmatprep.subr.bf16.mxu0 %v1319_v0  ;;  %v1324_v3 = vld [vmem:[%s2052_s1 + $0x170] ss:$8 sps:$4 sm:$0xff]   ;;  %v1327_v5 = vld [vmem:[%s2052_s1 + $0x164] ss:$8 sps:$4 sm:$0xff]  }
   0x3   :  { %963 = vmatprep.subr.bf16.mxu1 %v1321_v1  ;;  %923 = vmatpush1.bf16.msra.mxu0 %v1323_v2  ;;  %v1329_v6 = vld [vmem:[%s2052_s1 + $0x60] ss:$8 sps:$4 sm:$0xff]   ;;  %v1331_v8 = vld [vmem:[%s2052_s1 + $0x54] ss:$8 sps:$4 sm:$0xff]   ;;  %v1335_v10 = vld [vmem:[%s2052_s1 + $0x50] ss:$8 sps:$4 sm:$0xff]  }
   0x4   :  { %964 = vmatpush1.bf16.msra.mxu1 %v1324_v3  ;;  %924 = vmatprep.subr.bf16.mxu0 %v1325_v4  ;;  %v1330_v7 = vld [vmem:[%s2052_s1 + $0x160] ss:$8 sps:$4 sm:$0xff]   ;;  %v1333_v9 = vld [vmem:[%s2052_s1 + $0x154] ss:$8 sps:$4 sm:$0xff]   ;;  %v1336_v11 = vld [vmem:[%s2052_s1 + $0x150] ss:$8 sps:$4 sm:$0xff]  }
   0x5   :  { %965 = vmatprep.subr.bf16.mxu1 %v1327_v5  ;;  %v1337_v12 = vld [vmem:[%s2052_s1 + $0x44] ss:$8 sps:$4 sm:$0xff]   ;;  %v1341_v14 = vld [vmem:[%s2052_s1 + $0x40] ss:$8 sps:$4 sm:$0xff]   ;;  %v1343_v16 = vld [vmem:[%s2052_s1 + $0x34] ss:$8 sps:$4 sm:$0xff]  }
   0x6   :  { %v1339_v13 = vld [vmem:[%s2052_s1 + $0x144] ss:$8 sps:$4 sm:$0xff]   ;;  %v1342_v15 = vld [vmem:[%s2052_s1 + $0x140] ss:$8 sps:$4 sm:$0xff]   ;;  %v1345_v17 = vld [vmem:[%s2052_s1 + $0x134] ss:$8 sps:$4 sm:$0xff]  }
   0x7   :  { %925 = vmatpush1.bf16.msra.mxu0 %v1329_v6  ;;  %v1347_v18 = vld [vmem:[%s2052_s1 + $0x30] ss:$8 sps:$4 sm:$0xff]   ;;  %v1349_v20 = vld [vmem:[%s2052_s1 + $0x24] ss:$8 sps:$4 sm:$0xff]   ;;  %v1353_v22 = vld [vmem:[%s2052_s1 + $0x20] ss:$8 sps:$4 sm:$0xff]  }
   0x8   :  { %966 = vmatpush1.bf16.msra.mxu1 %v1330_v7  ;;  %926 = vmatprep.subr.bf16.mxu0 %v1331_v8  ;;  %v1348_v19 = vld [vmem:[%s2052_s1 + $0x130] ss:$8 sps:$4 sm:$0xff]   ;;  %v1351_v21 = vld [vmem:[%s2052_s1 + $0x124] ss:$8 sps:$4 sm:$0xff]   ;;  %v1354_v23 = vld [vmem:[%s2052_s1 + $0x120] ss:$8 sps:$4 sm:$0xff]  }
   0x9   :  { %967 = vmatprep.subr.bf16.mxu1 %v1333_v9  ;;  %v1355_v24 = vld [vmem:[%s2052_s1 + $0x14] ss:$8 sps:$4 sm:$0xff]   ;;  %v1359_v26 = vld [vmem:[%s2052_s1 + $0x10] ss:$8 sps:$4 sm:$0xff]   ;;  %v1361_v28 = vld [vmem:[%s2052_s1 + $0x4] ss:$8 sps:$4 sm:$0xff]  }
   0xa   :  { %v1357_v25 = vld [vmem:[%s2052_s1 + $0x114] ss:$8 sps:$4 sm:$0xff]   ;;  %v1360_v27 = vld [vmem:[%s2052_s1 + $0x110] ss:$8 sps:$4 sm:$0xff]   ;;  %v1363_v29 = vld [vmem:[%s2052_s1 + $0x104] ss:$8 sps:$4 sm:$0xff]  }
   0xb   :  { %927 = vmatpush1.bf16.msra.mxu0 %v1335_v10  ;;  %v1365_v30 = vld [vmem:[%s2052_s1] ss:$8 sps:$4 sm:$0xff]   ;;  %v1367_v32 = vld [vmem:[%s2052_s1 + $0xf4] ss:$8 sps:$4 sm:$0xff]   ;;  %v1371_v34 = vld [vmem:[%s2052_s1 + $0xf0] ss:$8 sps:$4 sm:$0xff]  }
   0xc   :  { %968 = vmatpush1.bf16.msra.mxu1 %v1336_v11  ;;  %928 = vmatprep.subr.bf16.mxu0 %v1337_v12  ;;  %v1366_v31 = vld [vmem:[%s2052_s1 + $0x100] ss:$8 sps:$4 sm:$0xff]   ;;  %v1369_v33 = vld [vmem:[%s2052_s1 + $0x1f4] ss:$8 sps:$4 sm:$0xff]   ;;  %v1372_v35 = vld [vmem:[%s2052_s1 + $0x1f0] ss:$8 sps:$4 sm:$0xff]  }
   0xd   :  { %969 = vmatprep.subr.bf16.mxu1 %v1339_v13  ;;  %v1373_v36 = vld [vmem:[%s2052_s1 + $0xe4] ss:$8 sps:$4 sm:$0xff]   ;;  %v1377_v38 = vld [vmem:[%s2052_s1 + $0xe0] ss:$8 sps:$4 sm:$0xff]   ;;  %v1379_v40 = vld [vmem:[%s2052_s1 + $0xd4] ss:$8 sps:$4 sm:$0xff]  }
   0xe   :  { %v1375_v37 = vld [vmem:[%s2052_s1 + $0x1e4] ss:$8 sps:$4 sm:$0xff]   ;;  %v1378_v39 = vld [vmem:[%s2052_s1 + $0x1e0] ss:$8 sps:$4 sm:$0xff]   ;;  %v1381_v41 = vld [vmem:[%s2052_s1 + $0x1d4] ss:$8 sps:$4 sm:$0xff]  }
   0xf   :  { %929 = vmatpush1.bf16.msra.mxu0 %v1341_v14  ;;  %v1383_v42 = vld [vmem:[%s2052_s1 + $0xd0] ss:$8 sps:$4 sm:$0xff]   ;;  %v1385_v44 = vld [vmem:[%s2052_s1 + $0xc4] ss:$8 sps:$4 sm:$0xff]   ;;  %v1389_v49 = vld [vmem:[%s2052_s1 + $0xc0] ss:$8 sps:$4 sm:$0xff]  }
  0x10   :  { %970 = vmatpush1.bf16.msra.mxu1 %v1342_v15  ;;  %930 = vmatprep.subr.bf16.mxu0 %v1343_v16  ;;  %v1384_v43 = vld [vmem:[%s2052_s1 + $0x1d0] ss:$8 sps:$4 sm:$0xff]   ;;  %v1387_v45 = vld [vmem:[%s2052_s1 + $0x1c4] ss:$8 sps:$4 sm:$0xff]   ;;  %v1390_v50 = vld [vmem:[%s2052_s1 + $0x1c0] ss:$8 sps:$4 sm:$0xff]  }
  0x11   :  { %971 = vmatprep.subr.bf16.mxu1 %v1345_v17  ;;  %v21_v46 = vld [vmem:[%s2053_s0] sm:$0xff]  ;;  %v22_v48 = vld [vmem:[%s2053_s0 + $0x8] sm:$0xff]  ;;  %v1391_v52 = vld [vmem:[%s2052_s1 + $0xb4] ss:$8 sps:$4 sm:$0xff]  }
  0x12   :  { %v1166_v47 = vcombine.high %v21_v46, %v21_v46  ;;  %v1168_v51 = vcombine.high %v22_v48, %v22_v48  ;;  %v1393_v53 = vld [vmem:[%s2052_s1 + $0x1b4] ss:$8 sps:$4 sm:$0xff]   ;;  %v1395_v54 = vld [vmem:[%s2052_s1 + $0xb0] ss:$8 sps:$4 sm:$0xff]   ;;  %v1397_v56 = vld [vmem:[%s2052_s1 + $0xa4] ss:$8 sps:$4 sm:$0xff]   ;;  %v1165_v6 = vcombine.low %v21_v46, %v21_v46  ;;  %v1167_v7 = vcombine.low %v22_v48, %v22_v48 }
  0x13   :  { %931 = vmatpush1.bf16.msra.mxu0 %v1347_v18  ;;  %v1396_v55 = vld [vmem:[%s2052_s1 + $0x1b0] ss:$8 sps:$4 sm:$0xff]   ;;  %v1399_v57 = vld [vmem:[%s2052_s1 + $0x1a4] ss:$8 sps:$4 sm:$0xff]   ;;  %v1401_v58 = vld [vmem:[%s2052_s1 + $0xa0] ss:$8 sps:$4 sm:$0xff]  }
  0x14   :  { %972 = vmatpush1.bf16.msra.mxu1 %v1348_v19  ;;  %932 = vmatprep.subr.bf16.mxu0 %v1349_v20  ;;  %v1402_v59 = vld [vmem:[%s2052_s1 + $0x1a0] ss:$8 sps:$4 sm:$0xff]   ;;  %v1403_v60 = vld [vmem:[%s2052_s1 + $0x94] ss:$8 sps:$4 sm:$0xff]   ;;  %v1407_v62 = vld [vmem:[%s2052_s1 + $0x90] ss:$8 sps:$4 sm:$0xff]  }
  0x15   :  { %973 = vmatprep.subr.bf16.mxu1 %v1351_v21  ;;  %954 = vmatprep.mubr.bf16.mxu0 %v1166_v47  ;;  %v1405_v61 = vld [vmem:[%s2052_s1 + $0x194] ss:$8 sps:$4 sm:$0xff]   ;;  %v1408_v63 = vld [vmem:[%s2052_s1 + $0x190] ss:$8 sps:$4 sm:$0xff]   ;;  %v1409_v0 = vld [vmem:[%s2052_s1 + $0x84] ss:$8 sps:$4 sm:$0xff]  }
  0x16   :  { %995 = vmatprep.mubr.bf16.mxu1 %v1168_v51  ;;  %v1411_v1 = vld [vmem:[%s2052_s1 + $0x184] ss:$8 sps:$4 sm:$0xff]   ;;  %v1413_v2 = vld [vmem:[%s2052_s1 + $0x80] ss:$8 sps:$4 sm:$0xff]   ;;  %v1421_v4 = vld [vmem:[%s2052_s1 + $0x274] ss:$8 sps:$4 sm:$0xff]  }
  0x17   :  { %933 = vmatpush1.bf16.msra.mxu0 %v1353_v22  ;;  %v1414_v3 = vld [vmem:[%s2052_s1 + $0x180] ss:$8 sps:$4 sm:$0xff]   ;;  %v1424_v5 = vld [vmem:[%s2052_s1 + $0x374] ss:$8 sps:$4 sm:$0xff]   ;;  %v1419_v8 = vld [vmem:[%s2052_s1 + $0x270] ss:$8 sps:$4 sm:$0xff]  }
  0x18   :  { %974 = vmatpush1.bf16.msra.mxu1 %v1354_v23  ;;  %934 = vmatprep.subr.bf16.mxu0 %v1355_v24  ;;  %v1422_v9 = vld [vmem:[%s2052_s1 + $0x370] ss:$8 sps:$4 sm:$0xff]   ;;  %v1427_v10 = vld [vmem:[%s2052_s1 + $0x264] ss:$8 sps:$4 sm:$0xff]   ;;  %v1425_v12 = vld [vmem:[%s2052_s1 + $0x260] ss:$8 sps:$4 sm:$0xff]  }
  0x19   :  { %975 = vmatprep.subr.bf16.mxu1 %v1357_v25  ;;  %v1430_v11 = vld [vmem:[%s2052_s1 + $0x364] ss:$8 sps:$4 sm:$0xff]   ;;  %v1428_v13 = vld [vmem:[%s2052_s1 + $0x360] ss:$8 sps:$4 sm:$0xff]   ;;  %v1433_v14 = vld [vmem:[%s2052_s1 + $0x254] ss:$8 sps:$4 sm:$0xff]  }
  0x1a   :  { %v1436_v15 = vld [vmem:[%s2052_s1 + $0x354] ss:$8 sps:$4 sm:$0xff]   ;;  %v1431_v16 = vld [vmem:[%s2052_s1 + $0x250] ss:$8 sps:$4 sm:$0xff]   ;;  %v1439_v18 = vld [vmem:[%s2052_s1 + $0x244] ss:$8 sps:$4 sm:$0xff]  }
  0x1b   :  { %935 = vmatpush1.bf16.msra.mxu0 %v1359_v26  ;;  %v1434_v17 = vld [vmem:[%s2052_s1 + $0x350] ss:$8 sps:$4 sm:$0xff]   ;;  %v1442_v19 = vld [vmem:[%s2052_s1 + $0x344] ss:$8 sps:$4 sm:$0xff]   ;;  %v1437_v20 = vld [vmem:[%s2052_s1 + $0x240] ss:$8 sps:$4 sm:$0xff]  }
  0x1c   :  { %976 = vmatpush1.bf16.msra.mxu1 %v1360_v27  ;;  %936 = vmatprep.subr.bf16.mxu0 %v1361_v28  ;;  %v1440_v21 = vld [vmem:[%s2052_s1 + $0x340] ss:$8 sps:$4 sm:$0xff]   ;;  %v1445_v22 = vld [vmem:[%s2052_s1 + $0x234] ss:$8 sps:$4 sm:$0xff]   ;;  %v1443_v24 = vld [vmem:[%s2052_s1 + $0x230] ss:$8 sps:$4 sm:$0xff]  }
  0x1d   :  { %977 = vmatprep.subr.bf16.mxu1 %v1363_v29  ;;  %v1448_v23 = vld [vmem:[%s2052_s1 + $0x334] ss:$8 sps:$4 sm:$0xff]   ;;  %v1446_v25 = vld [vmem:[%s2052_s1 + $0x330] ss:$8 sps:$4 sm:$0xff]   ;;  %v1451_v26 = vld [vmem:[%s2052_s1 + $0x224] ss:$8 sps:$4 sm:$0xff]  }
  0x1e   :  { %v1454_v27 = vld [vmem:[%s2052_s1 + $0x324] ss:$8 sps:$4 sm:$0xff]   ;;  %v1449_v28 = vld [vmem:[%s2052_s1 + $0x220] ss:$8 sps:$4 sm:$0xff]   ;;  %v1484_v51 = vld [vmem:[%s2052_s1 + $0x3d4] ss:$8 sps:$4 sm:$0xff]  }
  0x1f   :  { %937 = vmatpush1.bf16.msra.mxu0 %v1365_v30  ;;  %v1452_v29 = vld [vmem:[%s2052_s1 + $0x320] ss:$8 sps:$4 sm:$0xff]   ;;  %v1457_v30 = vld [vmem:[%s2052_s1 + $0x214] ss:$8 sps:$4 sm:$0xff]   ;;  %v1475_v46 = vld [vmem:[%s2052_s1 + $0x2e4] ss:$8 sps:$4 sm:$0xff]  }
  0x20   :  { %978 = vmatpush1.bf16.msra.mxu1 %v1366_v31  ;;  %938 = vmatprep.subr.bf16.mxu0 %v1367_v32  ;;  %v1460_v31 = vld [vmem:[%s2052_s1 + $0x314] ss:$8 sps:$4 sm:$0xff]   ;;  %v1478_v47 = vld [vmem:[%s2052_s1 + $0x3e4] ss:$8 sps:$4 sm:$0xff]   ;;  %v1473_v48 = vld [vmem:[%s2052_s1 + $0x2e0] ss:$8 sps:$4 sm:$0xff]  }
  0x21   :  { %979 = vmatprep.subr.bf16.mxu1 %v1369_v33  ;;  %v1854_v32 = vld [vmem:[%s2053_s0 + $0x10] sm:$0xff] }
  0x22   :  { %v1455_v33 = vld [vmem:[%s2052_s1 + $0x210] ss:$8 sps:$4 sm:$0xff]  }
  0x23   :  { %939 = vmatpush2.bf16.msra.mxu0 %v1371_v34  ;;  %v1458_v34 = vld [vmem:[%s2052_s1 + $0x310] ss:$8 sps:$4 sm:$0xff]  }
  0x24   :  { %980 = vmatpush2.bf16.msra.mxu1 %v1372_v35  ;;  %940 = vmatprep.subr.bf16.mxu0 %v1373_v36  ;;  %v1170_v35 = vcombine.high %v1854_v32, %v1854_v32  ;;  %v1867_v36 = vld [vmem:[%s2053_s0 + $0x18] sm:$0xff] }
  0x25   :  { %981 = vmatprep.subr.bf16.mxu1 %v1375_v37  ;;  %v1463_v37 = vld [vmem:[%s2052_s1 + $0x204] ss:$8 sps:$4 sm:$0xff]  }
  0x27   :  { %941 = vmatpush2.bf16.msra.mxu0 %v1377_v38  ;;  %v1172_v38 = vcombine.high %v1867_v36, %v1867_v36 }
  0x28   :  { %982 = vmatpush2.bf16.msra.mxu1 %v1378_v39  ;;  %942 = vmatprep.subr.bf16.mxu0 %v1379_v40  ;;  %v1466_v39 = vld [vmem:[%s2052_s1 + $0x304] ss:$8 sps:$4 sm:$0xff]   ;;  %v1461_v40 = vld [vmem:[%s2052_s1 + $0x200] ss:$8 sps:$4 sm:$0xff]  }
  0x29   :  { %983 = vmatprep.subr.bf16.mxu1 %v1381_v41  ;;  %v1464_v41 = vld [vmem:[%s2052_s1 + $0x300] ss:$8 sps:$4 sm:$0xff]  }
  0x2b   :  { %943 = vmatpush2.bf16.msra.mxu0 %v1383_v42  ;;  %v1469_v42 = vld [vmem:[%s2052_s1 + $0x2f4] ss:$8 sps:$4 sm:$0xff]  }
  0x2c   :  { %984 = vmatpush2.bf16.msra.mxu1 %v1384_v43  ;;  %944 = vmatprep.subr.bf16.mxu0 %v1385_v44  ;;  %v1472_v43 = vld [vmem:[%s2052_s1 + $0x3f4] ss:$8 sps:$4 sm:$0xff]   ;;  %v1467_v44 = vld [vmem:[%s2052_s1 + $0x2f0] ss:$8 sps:$4 sm:$0xff]  }
  0x2d   :  { %985 = vmatprep.subr.bf16.mxu1 %v1387_v45  ;;  %v1470_v45 = vld [vmem:[%s2052_s1 + $0x3f0] ss:$8 sps:$4 sm:$0xff]  }
  0x2f   :  { %945 = vmatpush2.bf16.msra.mxu0 %v1389_v49  ;;  %v1476_v49 = vld [vmem:[%s2052_s1 + $0x3e0] ss:$8 sps:$4 sm:$0xff]  }
  0x30   :  { %986 = vmatpush2.bf16.msra.mxu1 %v1390_v50  ;;  %946 = vmatprep.subr.bf16.mxu0 %v1391_v52  ;;  %v1481_v50 = vld [vmem:[%s2052_s1 + $0x2d4] ss:$8 sps:$4 sm:$0xff]   ;;  %v1479_v52 = vld [vmem:[%s2052_s1 + $0x2d0] ss:$8 sps:$4 sm:$0xff]  }
  0x31   :  { %987 = vmatprep.subr.bf16.mxu1 %v1393_v53  ;;  %v1482_v53 = vld [vmem:[%s2052_s1 + $0x3d0] ss:$8 sps:$4 sm:$0xff]  }
  0x33   :  { %947 = vmatpush2.bf16.msra.mxu0 %v1395_v54  ;;  %v1487_v54 = vld [vmem:[%s2052_s1 + $0x2c4] ss:$8 sps:$4 sm:$0xff]  }
  0x34   :  { %988 = vmatpush2.bf16.msra.mxu1 %v1396_v55  ;;  %948 = vmatprep.subr.bf16.mxu0 %v1397_v56  ;;  %v1490_v55 = vld [vmem:[%s2052_s1 + $0x3c4] ss:$8 sps:$4 sm:$0xff]   ;;  %v1485_v56 = vld [vmem:[%s2052_s1 + $0x2c0] ss:$8 sps:$4 sm:$0xff]  }
  0x35   :  { %989 = vmatprep.subr.bf16.mxu1 %v1399_v57  ;;  %v1488_v57 = vld [vmem:[%s2052_s1 + $0x3c0] ss:$8 sps:$4 sm:$0xff]  }
  0x37   :  { %949 = vmatpush2.bf16.msra.mxu0 %v1401_v58  ;;  %v1493_v58 = vld [vmem:[%s2052_s1 + $0x2b4] ss:$8 sps:$4 sm:$0xff]  }
  0x38   :  { %990 = vmatpush2.bf16.msra.mxu1 %v1402_v59  ;;  %950 = vmatprep.subr.bf16.mxu0 %v1403_v60  ;;  %v1496_v59 = vld [vmem:[%s2052_s1 + $0x3b4] ss:$8 sps:$4 sm:$0xff]   ;;  %v1491_v60 = vld [vmem:[%s2052_s1 + $0x2b0] ss:$8 sps:$4 sm:$0xff]  }
  0x39   :  { %991 = vmatprep.subr.bf16.mxu1 %v1405_v61  ;;  %v1494_v61 = vld [vmem:[%s2052_s1 + $0x3b0] ss:$8 sps:$4 sm:$0xff]  }
  0x3b   :  { %951 = vmatpush2.bf16.msra.mxu0 %v1407_v62  ;;  %v1499_v62 = vld [vmem:[%s2052_s1 + $0x2a4] ss:$8 sps:$4 sm:$0xff]  }
  0x3c   :  { %992 = vmatpush2.bf16.msra.mxu1 %v1408_v63  ;;  %952 = vmatprep.subr.bf16.mxu0 %v1409_v0  ;;  %v1502_v63 = vld [vmem:[%s2052_s1 + $0x3a4] ss:$8 sps:$4 sm:$0xff]   ;;  %v1497_v0 = vld [vmem:[%s2052_s1 + $0x2a0] ss:$8 sps:$4 sm:$0xff]  }
  0x3d   :  { %993 = vmatprep.subr.bf16.mxu1 %v1411_v1  ;;  %v1500_v1 = vld [vmem:[%s2052_s1 + $0x3a0] ss:$8 sps:$4 sm:$0xff]  }
  0x3f   :  { %953 = vmatpush2.bf16.msra.mxu0 %v1413_v2  ;;  %v1505_v2 = vld [vmem:[%s2052_s1 + $0x294] ss:$8 sps:$4 sm:$0xff]  }
  0x40   :  { %994 = vmatpush2.bf16.msra.mxu1 %v1414_v3  ;;  %1004 = vmatprep.subr.bf16.mxu0 %v1421_v4  ;;  %v1508_v3 = vld [vmem:[%s2052_s1 + $0x394] ss:$8 sps:$4 sm:$0xff]   ;;  %v1503_v4 = vld [vmem:[%s2052_s1 + $0x290] ss:$8 sps:$4 sm:$0xff]  }
  0x41   :  { %1045 = vmatprep.subr.bf16.mxu1 %v1424_v5  ;;  %v1506_v5 = vld [vmem:[%s2052_s1 + $0x390] ss:$8 sps:$4 sm:$0xff]  }
  0x42   :  { %955 = vmatmul.mubr.bf16.vlgmr.msra.gmra.mxu0 %v1165_v6  ;;  %v1511_v6 = vld [vmem:[%s2052_s1 + $0x284] ss:$8 sps:$4 sm:$0xff]  }
  0x43   :  { %996 = vmatmul.mubr.bf16.vlgmr.msra.gmra.mxu1 %v1167_v7  ;;  %1005 = vmatpush1.bf16.msra.mxu0 %v1419_v8  ;;  %v1514_v7 = vld [vmem:[%s2052_s1 + $0x384] ss:$8 sps:$4 sm:$0xff]   ;;  %v1509_v8 = vld [vmem:[%s2052_s1 + $0x280] ss:$8 sps:$4 sm:$0xff]  }
  0x44   :  { %1046 = vmatpush1.bf16.msra.mxu1 %v1422_v9  ;;  %1006 = vmatprep.subr.bf16.mxu0 %v1427_v10  ;;  %v1512_v9 = vld [vmem:[%s2052_s1 + $0x380] ss:$8 sps:$4 sm:$0xff]   ;;  %v1519_v10 = vld [vmem:[%s2052_s1 + $0x474] ss:$8 sps:$4 sm:$0xff]  }
  0x45   :  { %1047 = vmatprep.subr.bf16.mxu1 %v1430_v11  ;;  %1036 = vmatprep.mubr.bf16.mxu0 %v1170_v35  ;;  %v1169_v11 = vcombine.low %v1854_v32, %v1854_v32 }
  0x46   :  { %1077 = vmatprep.mubr.bf16.mxu1 %v1172_v38 }
  0x47   :  { %1007 = vmatpush1.bf16.msra.mxu0 %v1425_v12  ;;  %v1171_v12 = vcombine.low %v1867_v36, %v1867_v36 }
  0x48   :  { %1048 = vmatpush1.bf16.msra.mxu1 %v1428_v13  ;;  %1008 = vmatprep.subr.bf16.mxu0 %v1433_v14  ;;  %v1517_v13 = vld [vmem:[%s2052_s1 + $0x470] ss:$8 sps:$4 sm:$0xff]   ;;  %v1524_v14 = vld [vmem:[%s2052_s1 + $0x464] ss:$8 sps:$4 sm:$0xff]  }
  0x49   :  { %1049 = vmatprep.subr.bf16.mxu1 %v1436_v15  ;;  %v1522_v15 = vld [vmem:[%s2052_s1 + $0x460] ss:$8 sps:$4 sm:$0xff]  }
  0x4b   :  { %1009 = vmatpush1.bf16.msra.mxu0 %v1431_v16  ;;  %v1544_v16 = vmov 0  }
  0x4c   :  { %1050 = vmatpush1.bf16.msra.mxu1 %v1434_v17  ;;  %1010 = vmatprep.subr.bf16.mxu0 %v1439_v18  ;;  %v1527_v17 = vld [vmem:[%s2052_s1 + $0x454] ss:$8 sps:$4 sm:$0xff]   ;;  %v1525_v18 = vld [vmem:[%s2052_s1 + $0x450] ss:$8 sps:$4 sm:$0xff]  }
  0x4d   :  { %1051 = vmatprep.subr.bf16.mxu1 %v1442_v19  ;;  %v1530_v19 = vld [vmem:[%s2052_s1 + $0x444] ss:$8 sps:$4 sm:$0xff]  }
  0x4f   :  { %1011 = vmatpush1.bf16.msra.mxu0 %v1437_v20  ;;  %v1528_v20 = vld [vmem:[%s2052_s1 + $0x440] ss:$8 sps:$4 sm:$0xff]  }
  0x50   :  { %1052 = vmatpush1.bf16.msra.mxu1 %v1440_v21  ;;  %1012 = vmatprep.subr.bf16.mxu0 %v1445_v22  ;;  %v1533_v21 = vld [vmem:[%s2052_s1 + $0x434] ss:$8 sps:$4 sm:$0xff]   ;;  %v1531_v22 = vld [vmem:[%s2052_s1 + $0x430] ss:$8 sps:$4 sm:$0xff]  }
  0x51   :  { %1053 = vmatprep.subr.bf16.mxu1 %v1448_v23  ;;  %v1536_v23 = vld [vmem:[%s2052_s1 + $0x424] ss:$8 sps:$4 sm:$0xff]  }
  0x53   :  { %1013 = vmatpush1.bf16.msra.mxu0 %v1443_v24  ;;  %v1534_v24 = vld [vmem:[%s2052_s1 + $0x420] ss:$8 sps:$4 sm:$0xff]  }
  0x54   :  { %1054 = vmatpush1.bf16.msra.mxu1 %v1446_v25  ;;  %1014 = vmatprep.subr.bf16.mxu0 %v1451_v26  ;;  %v1539_v25 = vld [vmem:[%s2052_s1 + $0x414] ss:$8 sps:$4 sm:$0xff]   ;;  %v1537_v26 = vld [vmem:[%s2052_s1 + $0x410] ss:$8 sps:$4 sm:$0xff]  }
  0x55   :  { %1055 = vmatprep.subr.bf16.mxu1 %v1454_v27  ;;  %v1542_v27 = vld [vmem:[%s2052_s1 + $0x404] ss:$8 sps:$4 sm:$0xff]  }
  0x57   :  { %1015 = vmatpush1.bf16.msra.mxu0 %v1449_v28  ;;  %v1540_v28 = vld [vmem:[%s2052_s1 + $0x400] ss:$8 sps:$4 sm:$0xff]  }
  0x58   :  { %1056 = vmatpush1.bf16.msra.mxu1 %v1452_v29  ;;  %1016 = vmatprep.subr.bf16.mxu0 %v1457_v30  ;;  %v1543_v29 = vld [vmem:[%s2053_s0 + $0x20] ss:$0 sps:$4 sm:$0xff]  }
  0x59   :  { %1057 = vmatprep.subr.bf16.mxu1 %v1460_v31 }
  0x5b   :  { %1017 = vmatpush1.bf16.msra.mxu0 %v1455_v33 }
  0x5c   :  { %1058 = vmatpush1.bf16.msra.mxu1 %v1458_v34  ;;  %1018 = vmatprep.subr.bf16.mxu0 %v1463_v37 }
  0x5d   :  { %1059 = vmatprep.subr.bf16.mxu1 %v1466_v39 }
  0x5f   :  { %1019 = vmatpush1.bf16.msra.mxu0 %v1461_v40 }
  0x60   :  { %1060 = vmatpush1.bf16.msra.mxu1 %v1464_v41  ;;  %1020 = vmatprep.subr.bf16.mxu0 %v1469_v42 }
  0x61   :  { %1061 = vmatprep.subr.bf16.mxu1 %v1472_v43 }
  0x63   :  { %1021 = vmatpush2.bf16.msra.mxu0 %v1467_v44 }
  0x64   :  { %1062 = vmatpush2.bf16.msra.mxu1 %v1470_v45  ;;  %1022 = vmatprep.subr.bf16.mxu0 %v1475_v46 }
  0x65   :  { %1063 = vmatprep.subr.bf16.mxu1 %v1478_v47 }
  0x67   :  { %1023 = vmatpush2.bf16.msra.mxu0 %v1473_v48  ;;  %v1129_v48 = vlaneseq }
  0x68   :  { %1064 = vmatpush2.bf16.msra.mxu1 %v1476_v49  ;;  %1024 = vmatprep.subr.bf16.mxu0 %v1481_v50 }
  0x69   :  { %1065 = vmatprep.subr.bf16.mxu1 %v1484_v51  ;;  %v1130_v49 = vshrl.u32 %v1129_v48, 7 }
  0x6b   :  { %1025 = vmatpush2.bf16.msra.mxu0 %v1479_v52  ;;  %v1131_v51 = vsub.s32 0, %v1130_v49  ;;  %v1127_v52 = vld [vmem:[%s2054_s2] sm:$0x3] }
  0x6c   :  { %1066 = vmatpush2.bf16.msra.mxu1 %v1482_v53  ;;  %1026 = vmatprep.subr.bf16.mxu0 %v1487_v54  ;;  %v1135_v54 = vsub.s32 1, %v1130_v49 }
  0x6d   :  { %1067 = vmatprep.subr.bf16.mxu1 %v1490_v55  ;;  %v1141_v55 = vld [vmem:[%s2055_s3] sm:$0x3] }
  0x6f   :  { %1027 = vmatpush2.bf16.msra.mxu0 %v1485_v56 }
  0x70   :  { %1068 = vmatpush2.bf16.msra.mxu1 %v1488_v57  ;;  %1028 = vmatprep.subr.bf16.mxu0 %v1493_v58  ;;  %v1132_v57 = vrot.slane %v1127_v52, %v1131_v51 }
  0x71   :  { %1069 = vmatprep.subr.bf16.mxu1 %v1496_v59 }
  0x73   :  { %1029 = vmatpush2.bf16.msra.mxu0 %v1491_v60 }
  0x74   :  { %1070 = vmatpush2.bf16.msra.mxu1 %v1494_v61  ;;  %1030 = vmatprep.subr.bf16.mxu0 %v1499_v62  ;;  %v1146_v61 = vrot.slane %v1141_v55, %v1131_v51  ;;  %v1136_v62 = vrot.slane %v1127_v52, %v1135_v54 }
  0x75   :  { %1071 = vmatprep.subr.bf16.mxu1 %v1502_v63 }
  0x77   :  { %1031 = vmatpush2.bf16.msra.mxu0 %v1497_v0 }
  0x78   :  { %1072 = vmatpush2.bf16.msra.mxu1 %v1500_v1  ;;  %1032 = vmatprep.subr.bf16.mxu0 %v1505_v2  ;;  %v1150_v2 = vrot.slane %v1141_v55, %v1135_v54 }
  0x79   :  { %1073 = vmatprep.subr.bf16.mxu1 %v1508_v3  ;;  %v1155_v3 = vld [vmem:[%s2056_s4] sm:$0xff] }
  0x7b   :  { %1033 = vmatpush2.bf16.msra.mxu0 %v1503_v4 }
  0x7c   :  { %1074 = vmatpush2.bf16.msra.mxu1 %v1506_v5  ;;  %1034 = vmatprep.subr.bf16.mxu0 %v1511_v6 }
  0x7d   :  { %1075 = vmatprep.subr.bf16.mxu1 %v1514_v7  ;;  %v1156_v7 = vld [vmem:[%s2056_s4 + $0x8] sm:$0xff] }
  0x7f   :  { %1035 = vmatpush2.bf16.msra.mxu0 %v1509_v8 }
  0x80   :  { %1076 = vmatpush2.bf16.msra.mxu1 %v1512_v9  ;;  %1086 = vmatprep.subr.bf16.mxu0 %v1519_v10 }
  0x82   :  { %1037 = vmatmul.mubr.bf16.vlgmr.msra.gmra.mxu0 %v1169_v11 }
  0x83   :  { %1078 = vmatmul.mubr.bf16.vlgmr.msra.gmra.mxu1 %v1171_v12  ;;  %1087 = vmatpush1.bf16.msra.mxu0 %v1517_v13 }
  0x84   :  { %1118 = vmatprep.mubr.bf16.mxu0 %v1544_v16  ;;  %1088 = vmatprep.subr.bf16.mxu0 %v1524_v14 }
  0x87   :  { %1089 = vmatpush1.bf16.msra.mxu0 %v1522_v15 }
  0x88   :  { %1090 = vmatprep.subr.bf16.mxu0 %v1527_v17 }
  0x8b   :  { %1091 = vmatpush1.bf16.msra.mxu0 %v1525_v18 }
  0x8c   :  { %1092 = vmatprep.subr.bf16.mxu0 %v1530_v19 }
  0x8f   :  { %1093 = vmatpush1.bf16.msra.mxu0 %v1528_v20 }
  0x90   :  { %1094 = vmatprep.subr.bf16.mxu0 %v1533_v21 }
  0x93   :  { %1095 = vmatpush1.bf16.msra.mxu0 %v1531_v22 }
  0x94   :  { %1096 = vmatprep.subr.bf16.mxu0 %v1536_v23 }
  0x97   :  { %1097 = vmatpush1.bf16.msra.mxu0 %v1534_v24 }
  0x98   :  { %1098 = vmatprep.subr.bf16.mxu0 %v1539_v25 }
  0x9b   :  { %1099 = vmatpush1.bf16.msra.mxu0 %v1537_v26 }
  0x9c   :  { %1100 = vmatprep.subr.bf16.mxu0 %v1542_v27 }
  0x9f   :  { %1101 = vmatpush1.bf16.msra.mxu0 %v1540_v28 }
  0xa2   :  { %1119 = vmatmul.mubr.bf16.vlgmr.msra.gmra.mxu0 %v1543_v29 }
 0x102   :  { %v956_v30 = vpop.f32.mrf.mxu0 }
 0x103   :  { %v997_v31 = vpop.f32.mrf.mxu1 }
 0x104   :  { %v998_v32 = vadd.f32 %v997_v31, %v956_v30  ;;  %v958_v33 = vpop.f32.mrf.mxu0 }
 0x105   :  { %v999_v34 = vpop.f32.mrf.mxu1 }
 0x106   :  { %v1000_v35 = vadd.f32 %v999_v34, %v958_v33  ;;  %v960_v36 = vpop.f32.mrf.mxu0 }
 0x107   :  { %v1001_v37 = vpop.f32.mrf.mxu1 }
 0x108   :  { %v961_v38 = vpop.f32.mrf.mxu0 }
 0x109   :  { %v1002_v39 = vpop.f32.mrf.mxu1 }
 0x142   :  { %v1038_v40 = vpop.f32.mrf.mxu0 }
 0x143   :  { %v1079_v41 = vpop.f32.mrf.mxu1  ;;  %v1039_v50 = vadd.f32 %v1038_v40, %v998_v32 }
 0x144   :  { %v1040_v42 = vpop.f32.mrf.mxu0 }
 0x145   :  { %v1081_v43 = vpop.f32.mrf.mxu1  ;;  %v1041_v53 = vadd.f32 %v1040_v42, %v1000_v35  ;;  %v1080_v56 = vadd.f32 %v1079_v41, %v1039_v50 }
 0x146   :  { %v1042_v44 = vpop.f32.mrf.mxu0 }
 0x147   :  { %v1083_v45 = vpop.f32.mrf.mxu1  ;;  %v1082_v59 = vadd.f32 %v1081_v43, %v1041_v53 }
 0x148   :  { %v1043_v46 = vpop.f32.mrf.mxu0 }
 0x149   :  { %v1084_v47 = vpop.f32.mrf.mxu1 }
 0x162   :  { %v1120_v58 = vpop.f32.mrf.mxu0 }
 0x163   :  { %v1121_v60 = vadd.f32 %v1120_v58, %v1080_v56 }
 0x164   :  { %v1122_v63 = vpop.f32.mrf.mxu0 }
 0x165   :  { %v1139_v0 = vmul.f32 %v1132_v57, %v1121_v60  ;;  %v1123_v1 = vadd.f32 %v1122_v63, %v1082_v59 }
 0x166   :  { %v1124_v4 = vpop.f32.mrf.mxu0 }
 0x167   :  { %v1153_v5 = vadd.f32 %v1146_v61, %v1139_v0  ;;  %v1140_v6 = vmul.f32 %v1136_v62, %v1123_v1 }
 0x168   :  { %v1125_v8 = vpop.f32.mrf.mxu0 }
 0x169   :  { %v1157_v9 = vadd.f32 %v1155_v3, %v1153_v5  ;;  %v1154_v10 = vadd.f32 %v1150_v2, %v1140_v6 }
 0x16b   :  { %1159 = vst [vmem:[%s2057_s5] sm:$0xff] %v1157_v9  ;;  %v1158_v11 = vadd.f32 %v1156_v7, %v1154_v10 }
 0x16d   :  { %1160 = vst [vmem:[%s2057_s5 + $0x8] sm:$0xff] %v1158_v11 }

// kernel: _lambda_.27
= control target key start
LH: loop header
LB: loop body
LE: loop exit
PB: predicated region body
PF: predicated region fallthrough
CT: control target
= control target key end

     0   :  { %vm386_vm0 = vcmask 80896   ;;  %s646_s1 = inlined_call_operand.vmem [shape: bf16[512,10], index: 1, kind: input, shape index: {}]   ;;  %s647_s0 = inlined_call_operand.vmem [shape: bf16[8,512], index: 0, kind: input, shape index: {}]   ;;  %s648_s2 = inlined_call_operand.vmem [shape: f32[1,10], index: 2, kind: input, shape index: {}]   ;;  %s649_s3 = inlined_call_operand.vmem [shape: f32[1,10], index: 3, kind: input, shape index: {}]   ;;  %s650_s4 = inlined_call_operand.vmem [shape: f32[8,10], index: 4, kind: output, shape index: {}]  }
   0x1   :  { %v474_v0 = vld [vmem:[%s646_s1 + $0x78] sm:$0xff]   ;;  %v478_v4 = vld [vmem:[%s646_s1 + $0x70] sm:$0xff]   ;;  %v482_v8 = vld [vmem:[%s646_s1 + $0x68] sm:$0xff]  }
   0x2   :  { %v475_v1 = vld [vmem:[%s646_s1 + $0xf8] sm:$0xff]   ;;  %430 = vmatprep.subr.bf16.mxu0 %v474_v0  ;;  %v479_v5 = vld [vmem:[%s646_s1 + $0xf0] sm:$0xff]   ;;  %v483_v9 = vld [vmem:[%s646_s1 + $0xe8] sm:$0xff]  }
   0x3   :  { %v476_v2 = vld [vmem:[%s646_s1 + $0x38] sm:$0xff]   ;;  %452 = vmatprep.subr.bf16.mxu1 %v475_v1  ;;  %v480_v6 = vld [vmem:[%s646_s1 + $0x30] sm:$0xff]   ;;  %v484_v10 = vld [vmem:[%s646_s1 + $0x28] sm:$0xff]  }
   0x4   :  { %v477_v3 = vld [vmem:[%s646_s1 + $0xb8] sm:$0xff]   ;;  %431 = vmatpush3.bf16.msra.mxu0 %v476_v2  ;;  %v481_v7 = vld [vmem:[%s646_s1 + $0xb0] sm:$0xff]   ;;  %v485_v11 = vld [vmem:[%s646_s1 + $0xa8] sm:$0xff]  }
   0x5   :  { %453 = vmatpush3.bf16.msra.mxu1 %v477_v3  ;;  %432 = vmatprep.subr.bf16.mxu0 %v478_v4  ;;  %v486_v12 = vld [vmem:[%s646_s1 + $0x60] sm:$0xff]   ;;  %v490_v16 = vld [vmem:[%s646_s1 + $0x58] sm:$0xff]   ;;  %v494_v20 = vld [vmem:[%s646_s1 + $0x50] sm:$0xff]  }
   0x6   :  { %454 = vmatprep.subr.bf16.mxu1 %v479_v5  ;;  %v487_v13 = vld [vmem:[%s646_s1 + $0xe0] sm:$0xff]   ;;  %v491_v17 = vld [vmem:[%s646_s1 + $0xd8] sm:$0xff]   ;;  %v495_v21 = vld [vmem:[%s646_s1 + $0xd0] sm:$0xff]  }
   0x7   :  { %v488_v14 = vld [vmem:[%s646_s1 + $0x20] sm:$0xff]   ;;  %v492_v18 = vld [vmem:[%s646_s1 + $0x18] sm:$0xff]   ;;  %v496_v22 = vld [vmem:[%s646_s1 + $0x10] sm:$0xff]  }
   0x8   :  { %433 = vmatpush3.bf16.msra.mxu0 %v480_v6  ;;  %v489_v15 = vld [vmem:[%s646_s1 + $0xa0] sm:$0xff]   ;;  %v493_v19 = vld [vmem:[%s646_s1 + $0x98] sm:$0xff]   ;;  %v497_v23 = vld [vmem:[%s646_s1 + $0x90] sm:$0xff]  }
   0x9   :  { %455 = vmatpush3.bf16.msra.mxu1 %v481_v7  ;;  %434 = vmatprep.subr.bf16.mxu0 %v482_v8  ;;  %v498_v24 = vld [vmem:[%s646_s1 + $0x48] sm:$0xff]   ;;  %v502_v28 = vld [vmem:[%s646_s1 + $0x40] sm:$0xff]  }
   0xa   :  { %456 = vmatprep.subr.bf16.mxu1 %v483_v9  ;;  %v499_v25 = vld [vmem:[%s646_s1 + $0xc8] sm:$0xff]   ;;  %v503_v29 = vld [vmem:[%s646_s1 + $0xc0] sm:$0xff]  }
   0xb   :  { %v500_v26 = vld [vmem:[%s646_s1 + $0x8] sm:$0xff]   ;;  %v504_v30 = vld [vmem:[%s646_s1] sm:$0xff]  }
   0xc   :  { %435 = vmatpush3.bf16.msra.mxu0 %v484_v10  ;;  %v501_v27 = vld [vmem:[%s646_s1 + $0x88] sm:$0xff]   ;;  %v505_v31 = vld [vmem:[%s646_s1 + $0x80] sm:$0xff]  }
   0xd   :  { %457 = vmatpush3.bf16.msra.mxu1 %v485_v11  ;;  %436 = vmatprep.subr.bf16.mxu0 %v486_v12  ;;  %v18_v32 = vld [vmem:[%s647_s0] sm:$0xff]  ;;  %v19_v33 = vld [vmem:[%s647_s0 + $0x8] sm:$0xff] }
   0xe   :  { %458 = vmatprep.subr.bf16.mxu1 %v487_v13  ;;  %v392_v34 = vcombine.low %v18_v32, %v18_v32  ;;  %v393_v35 = vcombine.high %v18_v32, %v18_v32  ;;  %v394_v36 = vcombine.low %v19_v33, %v19_v33  ;;  %v395_v37 = vcombine.high %v19_v33, %v19_v33  ;;  %v428_v44 = vld [vmem:[%s648_s2] ss:$0 sm:$0xff] }
   0xf   :  { %v429_v48 = vld [vmem:[%s649_s3] ss:$0 sm:$0xff] }
  0x10   :  { %437 = vmatpush3.bf16.msra.mxu0 %v488_v14  ;;  %322 = vmatprep.mubr.bf16.mxu0 %v393_v35 }
  0x11   :  { %459 = vmatpush3.bf16.msra.mxu1 %v489_v15  ;;  %438 = vmatprep.subr.bf16.mxu0 %v490_v16 }
  0x12   :  { %460 = vmatprep.subr.bf16.mxu1 %v491_v17  ;;  %362 = vmatprep.mubr.bf16.mxu1 %v395_v37 }
  0x14   :  { %439 = vmatpush3.bf16.msra.mxu0 %v492_v18 }
  0x15   :  { %461 = vmatpush3.bf16.msra.mxu1 %v493_v19  ;;  %440 = vmatprep.subr.bf16.mxu0 %v494_v20 }
  0x16   :  { %462 = vmatprep.subr.bf16.mxu1 %v495_v21 }
  0x18   :  { %441 = vmatpush3.bf16.msra.mxu0 %v496_v22 }
  0x19   :  { %463 = vmatpush3.bf16.msra.mxu1 %v497_v23  ;;  %442 = vmatprep.subr.bf16.mxu0 %v498_v24 }
  0x1a   :  { %464 = vmatprep.subr.bf16.mxu1 %v499_v25 }
  0x1c   :  { %443 = vmatpush3.bf16.msra.mxu0 %v500_v26 }
  0x1d   :  { %465 = vmatpush3.bf16.msra.mxu1 %v501_v27  ;;  %444 = vmatprep.subr.bf16.mxu0 %v502_v28 }
  0x1e   :  { %466 = vmatprep.subr.bf16.mxu1 %v503_v29 }
  0x20   :  { %445 = vmatpush3.bf16.msra.mxu0 %v504_v30 }
  0x21   :  { %467 = vmatpush3.bf16.msra.mxu1 %v505_v31 }
  0x23   :  { %323 = vmatmul.mubr.bf16.vlgmr.msra.gmra.mxu0 %v392_v34 }
  0x24   :  { %363 = vmatmul.mubr.bf16.vlgmr.msra.gmra.mxu1 %v394_v36 }
  0xe3   :  { %v446_v38 = vpop.f32.mrf.mxu0 }
  0xe4   :  { %v468_v39 = vpop.f32.mrf.mxu1 }
  0xe5   :  { %v447_v40 = vpop.f32.mrf.mxu0 }
  0xe6   :  { %v469_v41 = vpop.f32.mrf.mxu1  ;;  %v448_v42 = vadd.f32 %v447_v40, %v446_v38 }
  0xe7   :  { %v470_v43 = vadd.f32 %v469_v41, %v468_v39  ;;  %v449_v45 = vpop.f32.mrf.mxu0 }
  0xe8   :  { %v471_v46 = vpop.f32.mrf.mxu1 }
  0xe9   :  { %v365_v47 = vadd.f32 %v470_v43, %v448_v42  ;;  %v450_v49 = vpop.f32.mrf.mxu0 }
  0xea   :  { %v472_v50 = vpop.f32.mrf.mxu1 }
  0xeb   :  { %v377_v51 = vmul.f32 %v428_v44, %v365_v47 }
  0xed   :  { %v385_v52 = vadd.f32 %v429_v48, %v377_v51 }
  0xef   :  { %387 = vst.msk [vmem:[%s650_s4] sm:$0xff] %vm386_vm0, %v385_v52 }

// kernel: _lambda_.25
= control target key start
LH: loop header
LB: loop body
LE: loop exit
PB: predicated region body
PF: predicated region fallthrough
CT: control target
= control target key end

     0   :  { %s4753_s18 = smov 0   ;;  %s4755_s19 = smov 0   ;;  %s5784_s0 = inlined_call_operand.vmem [shape: bf16[8,2304], index: 0, kind: input, shape index: {}]   ;;  %s5785_s1 = inlined_call_operand.vmem [shape: bf16[2304,512], index: 1, kind: input, shape index: {}]   ;;  %s5786_s2 = inlined_call_operand.vmem [shape: f32[1,512], index: 2, kind: input, shape index: {}]   ;;  %s5787_s3 = inlined_call_operand.vmem [shape: f32[1,512], index: 3, kind: input, shape index: {}]   ;;  %s5788_s4 = inlined_call_operand.vmem [shape: f32[8,512], index: 4, kind: input, shape index: {}]   ;;  %s5789_s5 = inlined_call_operand.vmem [shape: f32[8,512], index: 5, kind: output, shape index: {}]  }
   0x1   :  { %s4757_s20 = smov 0   ;;  %s4759_s21 = smov 0  }
   0x2   :  { %s4761_s22 = smov 0  }
   0x3 LB: > { %s24_s23 = sadd.s32 1, %s4717_s21  ;;  %p67_p1 = scmp.ne.s32.totalorder %s4709_s19, %s4705_s18  ;;  %s4721_s22 = sphi %s4761_s22, %s15_s22   ;;  %s4717_s21 = sphi %s4759_s21, %s5793_s21   ;;  %s4713_s20 = sphi %s4757_s20, %s5792_s20   ;;  %s4709_s19 = sphi %s4755_s19, %s5791_s19   ;;  %s4705_s18 = sphi %s4753_s18, %s5790_s18  }
   0x4   : > { %p25_p0 = scmp.ge.s32.totalorder %s24_s23, 2  ;;  %p68_p2 = scmp.eq.s32.totalorder %s4721_s22, 0 }
   0x5   : > { %s60_s25 = sadd.s32 1, %s4709_s19  ;;  %p3872_p5 = scmp.ge.s32.totalorder %s4721_s22, 2 }
   0x6   : > { %s5795_s23 = smov (%p25_p0, %s24_s23), 0  ;;  %p69_p3 = por %p68_p2, %p67_p1 }
   0x7   : > { %s57_s24 = ssub.s32 %s4717_s21, %s5795_s23  ;;  %209 = sbr.rel (%p3872_p5) target bundleno = 160 (0xa0), region = 20 }
   0x8   : > { %p58_p4 = scmp.eq.s32.totalorder %s57_s24, 0 }
   0xa   : > { %s4788_s26 = scalar_select %p58_p4, %s4709_s19, %s60_s25  }
   0xc   : > { %212 = sbr.rel (!%p69_p3) target bundleno = 160 (0xa0), region = 24  ;;  %s214_s27 = sand.u32 (%p69_p3), 1, %s4709_s19  }
   0xd   : > { %s4190_s28 = sshll.u32 (%p69_p3), %s4717_s21, 3  ;;  %s4191_s29 = smul.u32 (%p69_p3), 2304, %s214_s27 }
   0xe   : > { %s4796_s7 = scalar_lea.vmem (%p69_p3), %s5785_s1, %s4190_s28 }
   0xf   : > { %v822_v0 = vld [vmem:[%s4796_s7] sm:$0xff] (%p69_p3)  ;;  %v824_v1 = vld [vmem:[%s4796_s7 + $0x10] sm:$0xff] (%p69_p3)  ;;  %s4804_s8 = scalar_lea.vmem (%p69_p3), [#allocation2], %s4191_s29 }
  0x10   : > { %v826_v2 = vld [vmem:[%s4796_s7 + $0x20] sm:$0xff] (%p69_p3)  ;;  %v828_v3 = vld [vmem:[%s4796_s7 + $0x30] sm:$0xff] (%p69_p3)  ;;  %823 = vst [vmem:[%s4804_s8] sm:$0xff] (%p69_p3), %v822_v0  ;;  %825 = vst [vmem:[%s4804_s8 + $0x8] sm:$0xff] (%p69_p3), %v824_v1 }
  0x11   : > { %v830_v4 = vld [vmem:[%s4796_s7 + $0x40] sm:$0xff]  ;;  %v832_v5 = vld [vmem:[%s4796_s7 + $0x50] sm:$0xff]  ;;  %827 = vst [vmem:[%s4804_s8 + $0x10] sm:$0xff] %v826_v2  ;;  %829 = vst [vmem:[%s4804_s8 + $0x18] sm:$0xff] %v828_v3 }
  0x12   : > { %831 = vst [vmem:[%s4804_s8 + $0x20] sm:$0xff] %v830_v4  ;;  %833 = vst [vmem:[%s4804_s8 + $0x28] sm:$0xff] %v832_v5  ;;  %v834_v6 = vld [vmem:[%s4796_s7 + $0x60] sm:$0xff]  ;;  %v836_v7 = vld [vmem:[%s4796_s7 + $0x70] sm:$0xff] }
  0x13   : > { %v838_v8 = vld [vmem:[%s4796_s7 + $0x80] sm:$0xff]  ;;  %835 = vst [vmem:[%s4804_s8 + $0x30] sm:$0xff] %v834_v6  ;;  %837 = vst [vmem:[%s4804_s8 + $0x38] sm:$0xff] %v836_v7  ;;  %v840_v9 = vld [vmem:[%s4796_s7 + $0x90] sm:$0xff] }
  0x14   : > { %839 = vst [vmem:[%s4804_s8 + $0x40] sm:$0xff] %v838_v8  ;;  %v842_v10 = vld [vmem:[%s4796_s7 + $0xa0] sm:$0xff]  ;;  %v844_v11 = vld [vmem:[%s4796_s7 + $0xb0] sm:$0xff]  ;;  %841 = vst [vmem:[%s4804_s8 + $0x48] sm:$0xff] %v840_v9 }
  0x15   : > { %843 = vst [vmem:[%s4804_s8 + $0x50] sm:$0xff] %v842_v10  ;;  %845 = vst [vmem:[%s4804_s8 + $0x58] sm:$0xff] %v844_v11  ;;  %v846_v12 = vld [vmem:[%s4796_s7 + $0xc0] sm:$0xff]  ;;  %v848_v13 = vld [vmem:[%s4796_s7 + $0xd0] sm:$0xff] }
  0x16   : > { %v850_v14 = vld [vmem:[%s4796_s7 + $0xe0] sm:$0xff]  ;;  %847 = vst [vmem:[%s4804_s8 + $0x60] sm:$0xff] %v846_v12  ;;  %849 = vst [vmem:[%s4804_s8 + $0x68] sm:$0xff] %v848_v13  ;;  %v852_v15 = vld [vmem:[%s4796_s7 + $0xf0] sm:$0xff] }
  0x17   : > { %851 = vst [vmem:[%s4804_s8 + $0x70] sm:$0xff] %v850_v14  ;;  %v854_v16 = vld [vmem:[%s4796_s7 + $0x100] sm:$0xff]  ;;  %v856_v17 = vld [vmem:[%s4796_s7 + $0x110] sm:$0xff]  ;;  %853 = vst [vmem:[%s4804_s8 + $0x78] sm:$0xff] %v852_v15 }
  0x18   : > { %855 = vst [vmem:[%s4804_s8 + $0x80] sm:$0xff] %v854_v16  ;;  %857 = vst [vmem:[%s4804_s8 + $0x88] sm:$0xff] %v856_v17  ;;  %v858_v18 = vld [vmem:[%s4796_s7 + $0x120] sm:$0xff]  ;;  %v860_v19 = vld [vmem:[%s4796_s7 + $0x130] sm:$0xff] }
  0x19   : > { %v862_v20 = vld [vmem:[%s4796_s7 + $0x140] sm:$0xff]  ;;  %859 = vst [vmem:[%s4804_s8 + $0x90] sm:$0xff] %v858_v18  ;;  %861 = vst [vmem:[%s4804_s8 + $0x98] sm:$0xff] %v860_v19  ;;  %v864_v21 = vld [vmem:[%s4796_s7 + $0x150] sm:$0xff] }
  0x1a   : > { %863 = vst [vmem:[%s4804_s8 + $0xa0] sm:$0xff] %v862_v20  ;;  %v866_v22 = vld [vmem:[%s4796_s7 + $0x160] sm:$0xff]  ;;  %v868_v23 = vld [vmem:[%s4796_s7 + $0x170] sm:$0xff]  ;;  %865 = vst [vmem:[%s4804_s8 + $0xa8] sm:$0xff] %v864_v21 }
  0x1b   : > { %867 = vst [vmem:[%s4804_s8 + $0xb0] sm:$0xff] %v866_v22  ;;  %869 = vst [vmem:[%s4804_s8 + $0xb8] sm:$0xff] %v868_v23  ;;  %v870_v24 = vld [vmem:[%s4796_s7 + $0x180] sm:$0xff]  ;;  %v872_v25 = vld [vmem:[%s4796_s7 + $0x190] sm:$0xff] }
  0x1c   : > { %v874_v26 = vld [vmem:[%s4796_s7 + $0x1a0] sm:$0xff]  ;;  %871 = vst [vmem:[%s4804_s8 + $0xc0] sm:$0xff] %v870_v24  ;;  %873 = vst [vmem:[%s4804_s8 + $0xc8] sm:$0xff] %v872_v25  ;;  %v876_v27 = vld [vmem:[%s4796_s7 + $0x1b0] sm:$0xff] }
  0x1d   : > { %875 = vst [vmem:[%s4804_s8 + $0xd0] sm:$0xff] %v874_v26  ;;  %v878_v28 = vld [vmem:[%s4796_s7 + $0x1c0] sm:$0xff]  ;;  %v880_v29 = vld [vmem:[%s4796_s7 + $0x1d0] sm:$0xff]  ;;  %877 = vst [vmem:[%s4804_s8 + $0xd8] sm:$0xff] %v876_v27 }
  0x1e   : > { %879 = vst [vmem:[%s4804_s8 + $0xe0] sm:$0xff] %v878_v28  ;;  %881 = vst [vmem:[%s4804_s8 + $0xe8] sm:$0xff] %v880_v29  ;;  %v882_v30 = vld [vmem:[%s4796_s7 + $0x1e0] sm:$0xff]  ;;  %v884_v31 = vld [vmem:[%s4796_s7 + $0x1f0] sm:$0xff] }
  0x1f   : > { %v886_v32 = vld [vmem:[%s4796_s7 + $0x200] sm:$0xff]  ;;  %883 = vst [vmem:[%s4804_s8 + $0xf0] sm:$0xff] %v882_v30  ;;  %885 = vst [vmem:[%s4804_s8 + $0xf8] sm:$0xff] %v884_v31  ;;  %v888_v33 = vld [vmem:[%s4796_s7 + $0x210] sm:$0xff] }
  0x20   : > { %887 = vst [vmem:[%s4804_s8 + $0x100] sm:$0xff] %v886_v32  ;;  %v890_v34 = vld [vmem:[%s4796_s7 + $0x220] sm:$0xff]  ;;  %v892_v35 = vld [vmem:[%s4796_s7 + $0x230] sm:$0xff]  ;;  %889 = vst [vmem:[%s4804_s8 + $0x108] sm:$0xff] %v888_v33 }
  0x21   : > { %891 = vst [vmem:[%s4804_s8 + $0x110] sm:$0xff] %v890_v34  ;;  %893 = vst [vmem:[%s4804_s8 + $0x118] sm:$0xff] %v892_v35  ;;  %v894_v36 = vld [vmem:[%s4796_s7 + $0x240] sm:$0xff]  ;;  %v896_v37 = vld [vmem:[%s4796_s7 + $0x250] sm:$0xff] }
  0x22   : > { %v898_v38 = vld [vmem:[%s4796_s7 + $0x260] sm:$0xff]  ;;  %895 = vst [vmem:[%s4804_s8 + $0x120] sm:$0xff] %v894_v36  ;;  %897 = vst [vmem:[%s4804_s8 + $0x128] sm:$0xff] %v896_v37  ;;  %v900_v39 = vld [vmem:[%s4796_s7 + $0x270] sm:$0xff] }
  0x23   : > { %899 = vst [vmem:[%s4804_s8 + $0x130] sm:$0xff] %v898_v38  ;;  %v902_v40 = vld [vmem:[%s4796_s7 + $0x280] sm:$0xff]  ;;  %v904_v41 = vld [vmem:[%s4796_s7 + $0x290] sm:$0xff]  ;;  %901 = vst [vmem:[%s4804_s8 + $0x138] sm:$0xff] %v900_v39 }
  0x24   : > { %903 = vst [vmem:[%s4804_s8 + $0x140] sm:$0xff] %v902_v40  ;;  %905 = vst [vmem:[%s4804_s8 + $0x148] sm:$0xff] %v904_v41  ;;  %v906_v42 = vld [vmem:[%s4796_s7 + $0x2a0] sm:$0xff]  ;;  %v908_v43 = vld [vmem:[%s4796_s7 + $0x2b0] sm:$0xff] }
  0x25   : > { %v910_v44 = vld [vmem:[%s4796_s7 + $0x2c0] sm:$0xff]  ;;  %907 = vst [vmem:[%s4804_s8 + $0x150] sm:$0xff] %v906_v42  ;;  %909 = vst [vmem:[%s4804_s8 + $0x158] sm:$0xff] %v908_v43  ;;  %v912_v45 = vld [vmem:[%s4796_s7 + $0x2d0] sm:$0xff] }
  0x26   : > { %911 = vst [vmem:[%s4804_s8 + $0x160] sm:$0xff] %v910_v44  ;;  %v914_v46 = vld [vmem:[%s4796_s7 + $0x2e0] sm:$0xff]  ;;  %v916_v47 = vld [vmem:[%s4796_s7 + $0x2f0] sm:$0xff]  ;;  %913 = vst [vmem:[%s4804_s8 + $0x168] sm:$0xff] %v912_v45 }
  0x27   : > { %915 = vst [vmem:[%s4804_s8 + $0x170] sm:$0xff] %v914_v46  ;;  %917 = vst [vmem:[%s4804_s8 + $0x178] sm:$0xff] %v916_v47  ;;  %v918_v48 = vld [vmem:[%s4796_s7 + $0x300] sm:$0xff]  ;;  %v920_v49 = vld [vmem:[%s4796_s7 + $0x310] sm:$0xff] }
  0x28   : > { %v922_v50 = vld [vmem:[%s4796_s7 + $0x320] sm:$0xff]  ;;  %919 = vst [vmem:[%s4804_s8 + $0x180] sm:$0xff] %v918_v48  ;;  %921 = vst [vmem:[%s4804_s8 + $0x188] sm:$0xff] %v920_v49  ;;  %v924_v51 = vld [vmem:[%s4796_s7 + $0x330] sm:$0xff] }
  0x29   : > { %923 = vst [vmem:[%s4804_s8 + $0x190] sm:$0xff] %v922_v50  ;;  %v926_v52 = vld [vmem:[%s4796_s7 + $0x340] sm:$0xff]  ;;  %v928_v53 = vld [vmem:[%s4796_s7 + $0x350] sm:$0xff]  ;;  %925 = vst [vmem:[%s4804_s8 + $0x198] sm:$0xff] %v924_v51 }
  0x2a   : > { %927 = vst [vmem:[%s4804_s8 + $0x1a0] sm:$0xff] %v926_v52  ;;  %929 = vst [vmem:[%s4804_s8 + $0x1a8] sm:$0xff] %v928_v53  ;;  %v930_v54 = vld [vmem:[%s4796_s7 + $0x360] sm:$0xff]  ;;  %v932_v55 = vld [vmem:[%s4796_s7 + $0x370] sm:$0xff] }
  0x2b   : > { %v934_v56 = vld [vmem:[%s4796_s7 + $0x380] sm:$0xff]  ;;  %931 = vst [vmem:[%s4804_s8 + $0x1b0] sm:$0xff] %v930_v54  ;;  %933 = vst [vmem:[%s4804_s8 + $0x1b8] sm:$0xff] %v932_v55  ;;  %v936_v57 = vld [vmem:[%s4796_s7 + $0x390] sm:$0xff] }
  0x2c   : > { %935 = vst [vmem:[%s4804_s8 + $0x1c0] sm:$0xff] %v934_v56  ;;  %v938_v58 = vld [vmem:[%s4796_s7 + $0x3a0] sm:$0xff]  ;;  %v940_v59 = vld [vmem:[%s4796_s7 + $0x3b0] sm:$0xff]  ;;  %937 = vst [vmem:[%s4804_s8 + $0x1c8] sm:$0xff] %v936_v57 }
  0x2d   : > { %939 = vst [vmem:[%s4804_s8 + $0x1d0] sm:$0xff] %v938_v58  ;;  %941 = vst [vmem:[%s4804_s8 + $0x1d8] sm:$0xff] %v940_v59  ;;  %v942_v60 = vld [vmem:[%s4796_s7 + $0x3c0] sm:$0xff]  ;;  %v944_v61 = vld [vmem:[%s4796_s7 + $0x3d0] sm:$0xff] }
  0x2e   : > { %v946_v62 = vld [vmem:[%s4796_s7 + $0x3e0] sm:$0xff]  ;;  %943 = vst [vmem:[%s4804_s8 + $0x1e0] sm:$0xff] %v942_v60  ;;  %945 = vst [vmem:[%s4804_s8 + $0x1e8] sm:$0xff] %v944_v61  ;;  %v948_v63 = vld [vmem:[%s4796_s7 + $0x3f0] sm:$0xff] }
  0x2f   : > { %947 = vst [vmem:[%s4804_s8 + $0x1f0] sm:$0xff] %v946_v62  ;;  %v950_v0 = vld [vmem:[%s4796_s7 + $0x400] sm:$0xff]  ;;  %v952_v1 = vld [vmem:[%s4796_s7 + $0x410] sm:$0xff]  ;;  %949 = vst [vmem:[%s4804_s8 + $0x1f8] sm:$0xff] %v948_v63 }
  0x30   : > { %951 = vst [vmem:[%s4804_s8 + $0x200] sm:$0xff] %v950_v0  ;;  %953 = vst [vmem:[%s4804_s8 + $0x208] sm:$0xff] %v952_v1  ;;  %v954_v2 = vld [vmem:[%s4796_s7 + $0x420] sm:$0xff]  ;;  %v956_v3 = vld [vmem:[%s4796_s7 + $0x430] sm:$0xff] }
  0x31   : > { %v958_v4 = vld [vmem:[%s4796_s7 + $0x440] sm:$0xff]  ;;  %955 = vst [vmem:[%s4804_s8 + $0x210] sm:$0xff] %v954_v2  ;;  %957 = vst [vmem:[%s4804_s8 + $0x218] sm:$0xff] %v956_v3  ;;  %v960_v5 = vld [vmem:[%s4796_s7 + $0x450] sm:$0xff] }
  0x32   : > { %959 = vst [vmem:[%s4804_s8 + $0x220] sm:$0xff] %v958_v4  ;;  %v962_v6 = vld [vmem:[%s4796_s7 + $0x460] sm:$0xff]  ;;  %v964_v7 = vld [vmem:[%s4796_s7 + $0x470] sm:$0xff]  ;;  %961 = vst [vmem:[%s4804_s8 + $0x228] sm:$0xff] %v960_v5 }
  0x33   : > { %963 = vst [vmem:[%s4804_s8 + $0x230] sm:$0xff] %v962_v6  ;;  %965 = vst [vmem:[%s4804_s8 + $0x238] sm:$0xff] %v964_v7  ;;  %v966_v8 = vld [vmem:[%s4796_s7 + $0x480] sm:$0xff]  ;;  %v968_v9 = vld [vmem:[%s4796_s7 + $0x490] sm:$0xff] }
  0x34   : > { %v970_v10 = vld [vmem:[%s4796_s7 + $0x4a0] sm:$0xff]  ;;  %967 = vst [vmem:[%s4804_s8 + $0x240] sm:$0xff] %v966_v8  ;;  %969 = vst [vmem:[%s4804_s8 + $0x248] sm:$0xff] %v968_v9  ;;  %v972_v11 = vld [vmem:[%s4796_s7 + $0x4b0] sm:$0xff] }
  0x35   : > { %971 = vst [vmem:[%s4804_s8 + $0x250] sm:$0xff] %v970_v10  ;;  %v974_v12 = vld [vmem:[%s4796_s7 + $0x4c0] sm:$0xff]  ;;  %v976_v13 = vld [vmem:[%s4796_s7 + $0x4d0] sm:$0xff]  ;;  %973 = vst [vmem:[%s4804_s8 + $0x258] sm:$0xff] %v972_v11 }
  0x36   : > { %975 = vst [vmem:[%s4804_s8 + $0x260] sm:$0xff] %v974_v12  ;;  %977 = vst [vmem:[%s4804_s8 + $0x268] sm:$0xff] %v976_v13  ;;  %v978_v14 = vld [vmem:[%s4796_s7 + $0x4e0] sm:$0xff]  ;;  %v980_v15 = vld [vmem:[%s4796_s7 + $0x4f0] sm:$0xff] }
  0x37   : > { %v982_v16 = vld [vmem:[%s4796_s7 + $0x500] sm:$0xff]  ;;  %979 = vst [vmem:[%s4804_s8 + $0x270] sm:$0xff] %v978_v14  ;;  %981 = vst [vmem:[%s4804_s8 + $0x278] sm:$0xff] %v980_v15  ;;  %v984_v17 = vld [vmem:[%s4796_s7 + $0x510] sm:$0xff] }
  0x38   : > { %983 = vst [vmem:[%s4804_s8 + $0x280] sm:$0xff] %v982_v16  ;;  %v986_v18 = vld [vmem:[%s4796_s7 + $0x520] sm:$0xff]  ;;  %v988_v19 = vld [vmem:[%s4796_s7 + $0x530] sm:$0xff]  ;;  %985 = vst [vmem:[%s4804_s8 + $0x288] sm:$0xff] %v984_v17 }
  0x39   : > { %987 = vst [vmem:[%s4804_s8 + $0x290] sm:$0xff] %v986_v18  ;;  %989 = vst [vmem:[%s4804_s8 + $0x298] sm:$0xff] %v988_v19  ;;  %v990_v20 = vld [vmem:[%s4796_s7 + $0x540] sm:$0xff]  ;;  %v992_v21 = vld [vmem:[%s4796_s7 + $0x550] sm:$0xff] }
  0x3a   : > { %v994_v22 = vld [vmem:[%s4796_s7 + $0x560] sm:$0xff]  ;;  %991 = vst [vmem:[%s4804_s8 + $0x2a0] sm:$0xff] %v990_v20  ;;  %993 = vst [vmem:[%s4804_s8 + $0x2a8] sm:$0xff] %v992_v21  ;;  %v996_v23 = vld [vmem:[%s4796_s7 + $0x570] sm:$0xff] }
  0x3b   : > { %995 = vst [vmem:[%s4804_s8 + $0x2b0] sm:$0xff] %v994_v22  ;;  %v998_v24 = vld [vmem:[%s4796_s7 + $0x580] sm:$0xff]  ;;  %v1000_v25 = vld [vmem:[%s4796_s7 + $0x590] sm:$0xff]  ;;  %997 = vst [vmem:[%s4804_s8 + $0x2b8] sm:$0xff] %v996_v23 }
  0x3c   : > { %999 = vst [vmem:[%s4804_s8 + $0x2c0] sm:$0xff] %v998_v24  ;;  %1001 = vst [vmem:[%s4804_s8 + $0x2c8] sm:$0xff] %v1000_v25  ;;  %v1002_v26 = vld [vmem:[%s4796_s7 + $0x5a0] sm:$0xff]  ;;  %v1004_v27 = vld [vmem:[%s4796_s7 + $0x5b0] sm:$0xff] }
  0x3d   : > { %v1006_v28 = vld [vmem:[%s4796_s7 + $0x5c0] sm:$0xff]  ;;  %1003 = vst [vmem:[%s4804_s8 + $0x2d0] sm:$0xff] %v1002_v26  ;;  %1005 = vst [vmem:[%s4804_s8 + $0x2d8] sm:$0xff] %v1004_v27  ;;  %v1008_v29 = vld [vmem:[%s4796_s7 + $0x5d0] sm:$0xff] }
  0x3e   : > { %1007 = vst [vmem:[%s4804_s8 + $0x2e0] sm:$0xff] %v1006_v28  ;;  %v1010_v30 = vld [vmem:[%s4796_s7 + $0x5e0] sm:$0xff]  ;;  %v1012_v31 = vld [vmem:[%s4796_s7 + $0x5f0] sm:$0xff]  ;;  %1009 = vst [vmem:[%s4804_s8 + $0x2e8] sm:$0xff] %v1008_v29 }
  0x3f   : > { %1011 = vst [vmem:[%s4804_s8 + $0x2f0] sm:$0xff] %v1010_v30  ;;  %1013 = vst [vmem:[%s4804_s8 + $0x2f8] sm:$0xff] %v1012_v31  ;;  %v1014_v32 = vld [vmem:[%s4796_s7 + $0x600] sm:$0xff]  ;;  %v1016_v33 = vld [vmem:[%s4796_s7 + $0x610] sm:$0xff] }
  0x40   : > { %v1018_v34 = vld [vmem:[%s4796_s7 + $0x620] sm:$0xff]  ;;  %1015 = vst [vmem:[%s4804_s8 + $0x300] sm:$0xff] %v1014_v32  ;;  %1017 = vst [vmem:[%s4804_s8 + $0x308] sm:$0xff] %v1016_v33  ;;  %v1020_v35 = vld [vmem:[%s4796_s7 + $0x630] sm:$0xff] }
  0x41   : > { %1019 = vst [vmem:[%s4804_s8 + $0x310] sm:$0xff] %v1018_v34  ;;  %v1022_v36 = vld [vmem:[%s4796_s7 + $0x640] sm:$0xff]  ;;  %v1024_v37 = vld [vmem:[%s4796_s7 + $0x650] sm:$0xff]  ;;  %1021 = vst [vmem:[%s4804_s8 + $0x318] sm:$0xff] %v1020_v35 }
  0x42   : > { %1023 = vst [vmem:[%s4804_s8 + $0x320] sm:$0xff] %v1022_v36  ;;  %1025 = vst [vmem:[%s4804_s8 + $0x328] sm:$0xff] %v1024_v37  ;;  %v1026_v38 = vld [vmem:[%s4796_s7 + $0x660] sm:$0xff]  ;;  %v1028_v39 = vld [vmem:[%s4796_s7 + $0x670] sm:$0xff] }
  0x43   : > { %v1030_v40 = vld [vmem:[%s4796_s7 + $0x680] sm:$0xff]  ;;  %1027 = vst [vmem:[%s4804_s8 + $0x330] sm:$0xff] %v1026_v38  ;;  %1029 = vst [vmem:[%s4804_s8 + $0x338] sm:$0xff] %v1028_v39  ;;  %v1032_v41 = vld [vmem:[%s4796_s7 + $0x690] sm:$0xff] }
  0x44   : > { %1031 = vst [vmem:[%s4804_s8 + $0x340] sm:$0xff] %v1030_v40  ;;  %v1034_v42 = vld [vmem:[%s4796_s7 + $0x6a0] sm:$0xff]  ;;  %v1036_v43 = vld [vmem:[%s4796_s7 + $0x6b0] sm:$0xff]  ;;  %1033 = vst [vmem:[%s4804_s8 + $0x348] sm:$0xff] %v1032_v41 }
  0x45   : > { %1035 = vst [vmem:[%s4804_s8 + $0x350] sm:$0xff] %v1034_v42  ;;  %1037 = vst [vmem:[%s4804_s8 + $0x358] sm:$0xff] %v1036_v43  ;;  %v1038_v44 = vld [vmem:[%s4796_s7 + $0x6c0] sm:$0xff]  ;;  %v1040_v45 = vld [vmem:[%s4796_s7 + $0x6d0] sm:$0xff] }
  0x46   : > { %v1042_v46 = vld [vmem:[%s4796_s7 + $0x6e0] sm:$0xff]  ;;  %1039 = vst [vmem:[%s4804_s8 + $0x360] sm:$0xff] %v1038_v44  ;;  %1041 = vst [vmem:[%s4804_s8 + $0x368] sm:$0xff] %v1040_v45  ;;  %v1044_v47 = vld [vmem:[%s4796_s7 + $0x6f0] sm:$0xff] }
  0x47   : > { %1043 = vst [vmem:[%s4804_s8 + $0x370] sm:$0xff] %v1042_v46  ;;  %v1046_v48 = vld [vmem:[%s4796_s7 + $0x700] sm:$0xff]  ;;  %v1048_v49 = vld [vmem:[%s4796_s7 + $0x710] sm:$0xff]  ;;  %1045 = vst [vmem:[%s4804_s8 + $0x378] sm:$0xff] %v1044_v47 }
  0x48   : > { %1047 = vst [vmem:[%s4804_s8 + $0x380] sm:$0xff] %v1046_v48  ;;  %1049 = vst [vmem:[%s4804_s8 + $0x388] sm:$0xff] %v1048_v49  ;;  %v1050_v50 = vld [vmem:[%s4796_s7 + $0x720] sm:$0xff]  ;;  %v1052_v51 = vld [vmem:[%s4796_s7 + $0x730] sm:$0xff] }
  0x49   : > { %v1054_v52 = vld [vmem:[%s4796_s7 + $0x740] sm:$0xff]  ;;  %1051 = vst [vmem:[%s4804_s8 + $0x390] sm:$0xff] %v1050_v50  ;;  %1053 = vst [vmem:[%s4804_s8 + $0x398] sm:$0xff] %v1052_v51  ;;  %v1056_v53 = vld [vmem:[%s4796_s7 + $0x750] sm:$0xff] }
  0x4a   : > { %1055 = vst [vmem:[%s4804_s8 + $0x3a0] sm:$0xff] %v1054_v52  ;;  %v1058_v54 = vld [vmem:[%s4796_s7 + $0x760] sm:$0xff]  ;;  %v1060_v55 = vld [vmem:[%s4796_s7 + $0x770] sm:$0xff]  ;;  %1057 = vst [vmem:[%s4804_s8 + $0x3a8] sm:$0xff] %v1056_v53 }
  0x4b   : > { %1059 = vst [vmem:[%s4804_s8 + $0x3b0] sm:$0xff] %v1058_v54  ;;  %1061 = vst [vmem:[%s4804_s8 + $0x3b8] sm:$0xff] %v1060_v55  ;;  %v1062_v56 = vld [vmem:[%s4796_s7 + $0x780] sm:$0xff]  ;;  %v1064_v57 = vld [vmem:[%s4796_s7 + $0x790] sm:$0xff] }
  0x4c   : > { %v1066_v58 = vld [vmem:[%s4796_s7 + $0x7a0] sm:$0xff]  ;;  %1063 = vst [vmem:[%s4804_s8 + $0x3c0] sm:$0xff] %v1062_v56  ;;  %1065 = vst [vmem:[%s4804_s8 + $0x3c8] sm:$0xff] %v1064_v57  ;;  %v1068_v59 = vld [vmem:[%s4796_s7 + $0x7b0] sm:$0xff] }
  0x4d   : > { %1067 = vst [vmem:[%s4804_s8 + $0x3d0] sm:$0xff] %v1066_v58  ;;  %v1070_v60 = vld [vmem:[%s4796_s7 + $0x7c0] sm:$0xff]  ;;  %v1072_v61 = vld [vmem:[%s4796_s7 + $0x7d0] sm:$0xff]  ;;  %1069 = vst [vmem:[%s4804_s8 + $0x3d8] sm:$0xff] %v1068_v59 }
  0x4e   : > { %1071 = vst [vmem:[%s4804_s8 + $0x3e0] sm:$0xff] %v1070_v60  ;;  %1073 = vst [vmem:[%s4804_s8 + $0x3e8] sm:$0xff] %v1072_v61  ;;  %v1074_v62 = vld [vmem:[%s4796_s7 + $0x7e0] sm:$0xff]  ;;  %v1076_v63 = vld [vmem:[%s4796_s7 + $0x7f0] sm:$0xff] }
  0x4f   : > { %v1078_v0 = vld [vmem:[%s4796_s7 + $0x800] sm:$0xff]  ;;  %1075 = vst [vmem:[%s4804_s8 + $0x3f0] sm:$0xff] %v1074_v62  ;;  %1077 = vst [vmem:[%s4804_s8 + $0x3f8] sm:$0xff] %v1076_v63  ;;  %v1080_v1 = vld [vmem:[%s4796_s7 + $0x810] sm:$0xff] }
  0x50   : > { %1079 = vst [vmem:[%s4804_s8 + $0x400] sm:$0xff] %v1078_v0  ;;  %v1082_v2 = vld [vmem:[%s4796_s7 + $0x820] sm:$0xff]  ;;  %v1084_v3 = vld [vmem:[%s4796_s7 + $0x830] sm:$0xff]  ;;  %1081 = vst [vmem:[%s4804_s8 + $0x408] sm:$0xff] %v1080_v1 }
  0x51   : > { %1083 = vst [vmem:[%s4804_s8 + $0x410] sm:$0xff] %v1082_v2  ;;  %1085 = vst [vmem:[%s4804_s8 + $0x418] sm:$0xff] %v1084_v3  ;;  %v1086_v4 = vld [vmem:[%s4796_s7 + $0x840] sm:$0xff]  ;;  %v1088_v5 = vld [vmem:[%s4796_s7 + $0x850] sm:$0xff] }
  0x52   : > { %v1090_v6 = vld [vmem:[%s4796_s7 + $0x860] sm:$0xff]  ;;  %1087 = vst [vmem:[%s4804_s8 + $0x420] sm:$0xff] %v1086_v4  ;;  %1089 = vst [vmem:[%s4804_s8 + $0x428] sm:$0xff] %v1088_v5  ;;  %v1092_v7 = vld [vmem:[%s4796_s7 + $0x870] sm:$0xff] }
  0x53   : > { %1091 = vst [vmem:[%s4804_s8 + $0x430] sm:$0xff] %v1090_v6  ;;  %v1094_v8 = vld [vmem:[%s4796_s7 + $0x880] sm:$0xff]  ;;  %v1096_v9 = vld [vmem:[%s4796_s7 + $0x890] sm:$0xff]  ;;  %1093 = vst [vmem:[%s4804_s8 + $0x438] sm:$0xff] %v1092_v7 }
  0x54   : > { %1095 = vst [vmem:[%s4804_s8 + $0x440] sm:$0xff] %v1094_v8  ;;  %1097 = vst [vmem:[%s4804_s8 + $0x448] sm:$0xff] %v1096_v9  ;;  %v1098_v10 = vld [vmem:[%s4796_s7 + $0x8a0] sm:$0xff]  ;;  %v1100_v11 = vld [vmem:[%s4796_s7 + $0x8b0] sm:$0xff] }
  0x55   : > { %v1102_v12 = vld [vmem:[%s4796_s7 + $0x8c0] sm:$0xff]  ;;  %1099 = vst [vmem:[%s4804_s8 + $0x450] sm:$0xff] %v1098_v10  ;;  %1101 = vst [vmem:[%s4804_s8 + $0x458] sm:$0xff] %v1100_v11  ;;  %v1104_v13 = vld [vmem:[%s4796_s7 + $0x8d0] sm:$0xff] }
  0x56   : > { %1103 = vst [vmem:[%s4804_s8 + $0x460] sm:$0xff] %v1102_v12  ;;  %v1106_v14 = vld [vmem:[%s4796_s7 + $0x8e0] sm:$0xff]  ;;  %v1108_v15 = vld [vmem:[%s4796_s7 + $0x8f0] sm:$0xff]  ;;  %1105 = vst [vmem:[%s4804_s8 + $0x468] sm:$0xff] %v1104_v13 }
  0x57   : > { %1107 = vst [vmem:[%s4804_s8 + $0x470] sm:$0xff] %v1106_v14  ;;  %1109 = vst [vmem:[%s4804_s8 + $0x478] sm:$0xff] %v1108_v15  ;;  %v1110_v16 = vld [vmem:[%s4796_s7 + $0x900] sm:$0xff]  ;;  %v1112_v17 = vld [vmem:[%s4796_s7 + $0x910] sm:$0xff] }
  0x58   : > { %v1114_v18 = vld [vmem:[%s4796_s7 + $0x920] sm:$0xff]  ;;  %1111 = vst [vmem:[%s4804_s8 + $0x480] sm:$0xff] %v1110_v16  ;;  %1113 = vst [vmem:[%s4804_s8 + $0x488] sm:$0xff] %v1112_v17  ;;  %v1116_v19 = vld [vmem:[%s4796_s7 + $0x930] sm:$0xff] }
  0x59   : > { %1115 = vst [vmem:[%s4804_s8 + $0x490] sm:$0xff] %v1114_v18  ;;  %v1118_v20 = vld [vmem:[%s4796_s7 + $0x940] sm:$0xff]  ;;  %v1120_v21 = vld [vmem:[%s4796_s7 + $0x950] sm:$0xff]  ;;  %1117 = vst [vmem:[%s4804_s8 + $0x498] sm:$0xff] %v1116_v19 }
  0x5a   : > { %1119 = vst [vmem:[%s4804_s8 + $0x4a0] sm:$0xff] %v1118_v20  ;;  %1121 = vst [vmem:[%s4804_s8 + $0x4a8] sm:$0xff] %v1120_v21  ;;  %v1122_v22 = vld [vmem:[%s4796_s7 + $0x960] sm:$0xff]  ;;  %v1124_v23 = vld [vmem:[%s4796_s7 + $0x970] sm:$0xff] }
  0x5b   : > { %v1126_v24 = vld [vmem:[%s4796_s7 + $0x980] sm:$0xff]  ;;  %1123 = vst [vmem:[%s4804_s8 + $0x4b0] sm:$0xff] %v1122_v22  ;;  %1125 = vst [vmem:[%s4804_s8 + $0x4b8] sm:$0xff] %v1124_v23  ;;  %v1128_v25 = vld [vmem:[%s4796_s7 + $0x990] sm:$0xff] }
  0x5c   : > { %1127 = vst [vmem:[%s4804_s8 + $0x4c0] sm:$0xff] %v1126_v24  ;;  %v1130_v26 = vld [vmem:[%s4796_s7 + $0x9a0] sm:$0xff]  ;;  %v1132_v27 = vld [vmem:[%s4796_s7 + $0x9b0] sm:$0xff]  ;;  %1129 = vst [vmem:[%s4804_s8 + $0x4c8] sm:$0xff] %v1128_v25 }
  0x5d   : > { %1131 = vst [vmem:[%s4804_s8 + $0x4d0] sm:$0xff] %v1130_v26  ;;  %1133 = vst [vmem:[%s4804_s8 + $0x4d8] sm:$0xff] %v1132_v27  ;;  %v1134_v28 = vld [vmem:[%s4796_s7 + $0x9c0] sm:$0xff]  ;;  %v1136_v29 = vld [vmem:[%s4796_s7 + $0x9d0] sm:$0xff] }
  0x5e   : > { %v1138_v30 = vld [vmem:[%s4796_s7 + $0x9e0] sm:$0xff]  ;;  %1135 = vst [vmem:[%s4804_s8 + $0x4e0] sm:$0xff] %v1134_v28  ;;  %1137 = vst [vmem:[%s4804_s8 + $0x4e8] sm:$0xff] %v1136_v29  ;;  %v1140_v31 = vld [vmem:[%s4796_s7 + $0x9f0] sm:$0xff] }
  0x5f   : > { %1139 = vst [vmem:[%s4804_s8 + $0x4f0] sm:$0xff] %v1138_v30  ;;  %v1142_v32 = vld [vmem:[%s4796_s7 + $0xa00] sm:$0xff]  ;;  %v1144_v33 = vld [vmem:[%s4796_s7 + $0xa10] sm:$0xff]  ;;  %1141 = vst [vmem:[%s4804_s8 + $0x4f8] sm:$0xff] %v1140_v31 }
  0x60   : > { %1143 = vst [vmem:[%s4804_s8 + $0x500] sm:$0xff] %v1142_v32  ;;  %1145 = vst [vmem:[%s4804_s8 + $0x508] sm:$0xff] %v1144_v33  ;;  %v1146_v34 = vld [vmem:[%s4796_s7 + $0xa20] sm:$0xff]  ;;  %v1148_v35 = vld [vmem:[%s4796_s7 + $0xa30] sm:$0xff] }
  0x61   : > { %v1150_v36 = vld [vmem:[%s4796_s7 + $0xa40] sm:$0xff]  ;;  %1147 = vst [vmem:[%s4804_s8 + $0x510] sm:$0xff] %v1146_v34  ;;  %1149 = vst [vmem:[%s4804_s8 + $0x518] sm:$0xff] %v1148_v35  ;;  %v1152_v37 = vld [vmem:[%s4796_s7 + $0xa50] sm:$0xff] }
  0x62   : > { %1151 = vst [vmem:[%s4804_s8 + $0x520] sm:$0xff] %v1150_v36  ;;  %v1154_v38 = vld [vmem:[%s4796_s7 + $0xa60] sm:$0xff]  ;;  %v1156_v39 = vld [vmem:[%s4796_s7 + $0xa70] sm:$0xff]  ;;  %1153 = vst [vmem:[%s4804_s8 + $0x528] sm:$0xff] %v1152_v37 }
  0x63   : > { %1155 = vst [vmem:[%s4804_s8 + $0x530] sm:$0xff] %v1154_v38  ;;  %1157 = vst [vmem:[%s4804_s8 + $0x538] sm:$0xff] %v1156_v39  ;;  %v1158_v40 = vld [vmem:[%s4796_s7 + $0xa80] sm:$0xff]  ;;  %v1160_v41 = vld [vmem:[%s4796_s7 + $0xa90] sm:$0xff] }
  0x64   : > { %v1162_v42 = vld [vmem:[%s4796_s7 + $0xaa0] sm:$0xff]  ;;  %1159 = vst [vmem:[%s4804_s8 + $0x540] sm:$0xff] %v1158_v40  ;;  %1161 = vst [vmem:[%s4804_s8 + $0x548] sm:$0xff] %v1160_v41  ;;  %v1164_v43 = vld [vmem:[%s4796_s7 + $0xab0] sm:$0xff] }
  0x65   : > { %1163 = vst [vmem:[%s4804_s8 + $0x550] sm:$0xff] %v1162_v42  ;;  %v1166_v44 = vld [vmem:[%s4796_s7 + $0xac0] sm:$0xff]  ;;  %v1168_v45 = vld [vmem:[%s4796_s7 + $0xad0] sm:$0xff]  ;;  %1165 = vst [vmem:[%s4804_s8 + $0x558] sm:$0xff] %v1164_v43 }
  0x66   : > { %1167 = vst [vmem:[%s4804_s8 + $0x560] sm:$0xff] %v1166_v44  ;;  %1169 = vst [vmem:[%s4804_s8 + $0x568] sm:$0xff] %v1168_v45  ;;  %v1170_v46 = vld [vmem:[%s4796_s7 + $0xae0] sm:$0xff]  ;;  %v1172_v47 = vld [vmem:[%s4796_s7 + $0xaf0] sm:$0xff] }
  0x67   : > { %v1174_v48 = vld [vmem:[%s4796_s7 + $0xb00] sm:$0xff]  ;;  %1171 = vst [vmem:[%s4804_s8 + $0x570] sm:$0xff] %v1170_v46  ;;  %1173 = vst [vmem:[%s4804_s8 + $0x578] sm:$0xff] %v1172_v47  ;;  %v1176_v49 = vld [vmem:[%s4796_s7 + $0xb10] sm:$0xff] }
  0x68   : > { %1175 = vst [vmem:[%s4804_s8 + $0x580] sm:$0xff] %v1174_v48  ;;  %v1178_v50 = vld [vmem:[%s4796_s7 + $0xb20] sm:$0xff]  ;;  %v1180_v51 = vld [vmem:[%s4796_s7 + $0xb30] sm:$0xff]  ;;  %1177 = vst [vmem:[%s4804_s8 + $0x588] sm:$0xff] %v1176_v49 }
  0x69   : > { %1179 = vst [vmem:[%s4804_s8 + $0x590] sm:$0xff] %v1178_v50  ;;  %1181 = vst [vmem:[%s4804_s8 + $0x598] sm:$0xff] %v1180_v51  ;;  %v1182_v52 = vld [vmem:[%s4796_s7 + $0xb40] sm:$0xff]  ;;  %v1184_v53 = vld [vmem:[%s4796_s7 + $0xb50] sm:$0xff] }
  0x6a   : > { %v1186_v54 = vld [vmem:[%s4796_s7 + $0xb60] sm:$0xff]  ;;  %1183 = vst [vmem:[%s4804_s8 + $0x5a0] sm:$0xff] %v1182_v52  ;;  %1185 = vst [vmem:[%s4804_s8 + $0x5a8] sm:$0xff] %v1184_v53  ;;  %v1188_v55 = vld [vmem:[%s4796_s7 + $0xb70] sm:$0xff] }
  0x6b   : > { %1187 = vst [vmem:[%s4804_s8 + $0x5b0] sm:$0xff] %v1186_v54  ;;  %v1190_v56 = vld [vmem:[%s4796_s7 + $0xb80] sm:$0xff]  ;;  %v1192_v57 = vld [vmem:[%s4796_s7 + $0xb90] sm:$0xff]  ;;  %1189 = vst [vmem:[%s4804_s8 + $0x5b8] sm:$0xff] %v1188_v55 }
  0x6c   : > { %1191 = vst [vmem:[%s4804_s8 + $0x5c0] sm:$0xff] %v1190_v56  ;;  %1193 = vst [vmem:[%s4804_s8 + $0x5c8] sm:$0xff] %v1192_v57  ;;  %v1194_v58 = vld [vmem:[%s4796_s7 + $0xba0] sm:$0xff]  ;;  %v1196_v59 = vld [vmem:[%s4796_s7 + $0xbb0] sm:$0xff] }
  0x6d   : > { %v1198_v60 = vld [vmem:[%s4796_s7 + $0xbc0] sm:$0xff]  ;;  %1195 = vst [vmem:[%s4804_s8 + $0x5d0] sm:$0xff] %v1194_v58  ;;  %1197 = vst [vmem:[%s4804_s8 + $0x5d8] sm:$0xff] %v1196_v59  ;;  %v1200_v61 = vld [vmem:[%s4796_s7 + $0xbd0] sm:$0xff] }
  0x6e   : > { %1199 = vst [vmem:[%s4804_s8 + $0x5e0] sm:$0xff] %v1198_v60  ;;  %v1202_v62 = vld [vmem:[%s4796_s7 + $0xbe0] sm:$0xff]  ;;  %v1204_v63 = vld [vmem:[%s4796_s7 + $0xbf0] sm:$0xff]  ;;  %1201 = vst [vmem:[%s4804_s8 + $0x5e8] sm:$0xff] %v1200_v61 }
  0x6f   : > { %1203 = vst [vmem:[%s4804_s8 + $0x5f0] sm:$0xff] %v1202_v62  ;;  %1205 = vst [vmem:[%s4804_s8 + $0x5f8] sm:$0xff] %v1204_v63  ;;  %v1206_v0 = vld [vmem:[%s4796_s7 + $0xc00] sm:$0xff]  ;;  %v1208_v1 = vld [vmem:[%s4796_s7 + $0xc10] sm:$0xff] }
  0x70   : > { %v1210_v2 = vld [vmem:[%s4796_s7 + $0xc20] sm:$0xff]  ;;  %1207 = vst [vmem:[%s4804_s8 + $0x600] sm:$0xff] %v1206_v0  ;;  %1209 = vst [vmem:[%s4804_s8 + $0x608] sm:$0xff] %v1208_v1  ;;  %v1212_v3 = vld [vmem:[%s4796_s7 + $0xc30] sm:$0xff] }
  0x71   : > { %1211 = vst [vmem:[%s4804_s8 + $0x610] sm:$0xff] %v1210_v2  ;;  %v1214_v4 = vld [vmem:[%s4796_s7 + $0xc40] sm:$0xff]  ;;  %v1216_v5 = vld [vmem:[%s4796_s7 + $0xc50] sm:$0xff]  ;;  %1213 = vst [vmem:[%s4804_s8 + $0x618] sm:$0xff] %v1212_v3 }
  0x72   : > { %1215 = vst [vmem:[%s4804_s8 + $0x620] sm:$0xff] %v1214_v4  ;;  %1217 = vst [vmem:[%s4804_s8 + $0x628] sm:$0xff] %v1216_v5  ;;  %v1218_v6 = vld [vmem:[%s4796_s7 + $0xc60] sm:$0xff]  ;;  %v1220_v7 = vld [vmem:[%s4796_s7 + $0xc70] sm:$0xff] }
  0x73   : > { %v1222_v8 = vld [vmem:[%s4796_s7 + $0xc80] sm:$0xff]  ;;  %1219 = vst [vmem:[%s4804_s8 + $0x630] sm:$0xff] %v1218_v6  ;;  %1221 = vst [vmem:[%s4804_s8 + $0x638] sm:$0xff] %v1220_v7  ;;  %v1224_v9 = vld [vmem:[%s4796_s7 + $0xc90] sm:$0xff] }
  0x74   : > { %1223 = vst [vmem:[%s4804_s8 + $0x640] sm:$0xff] %v1222_v8  ;;  %v1226_v10 = vld [vmem:[%s4796_s7 + $0xca0] sm:$0xff]  ;;  %v1228_v11 = vld [vmem:[%s4796_s7 + $0xcb0] sm:$0xff]  ;;  %1225 = vst [vmem:[%s4804_s8 + $0x648] sm:$0xff] %v1224_v9 }
  0x75   : > { %1227 = vst [vmem:[%s4804_s8 + $0x650] sm:$0xff] %v1226_v10  ;;  %1229 = vst [vmem:[%s4804_s8 + $0x658] sm:$0xff] %v1228_v11  ;;  %v1230_v12 = vld [vmem:[%s4796_s7 + $0xcc0] sm:$0xff]  ;;  %v1232_v13 = vld [vmem:[%s4796_s7 + $0xcd0] sm:$0xff] }
  0x76   : > { %v1234_v14 = vld [vmem:[%s4796_s7 + $0xce0] sm:$0xff]  ;;  %1231 = vst [vmem:[%s4804_s8 + $0x660] sm:$0xff] %v1230_v12  ;;  %1233 = vst [vmem:[%s4804_s8 + $0x668] sm:$0xff] %v1232_v13  ;;  %v1236_v15 = vld [vmem:[%s4796_s7 + $0xcf0] sm:$0xff] }
  0x77   : > { %1235 = vst [vmem:[%s4804_s8 + $0x670] sm:$0xff] %v1234_v14  ;;  %v1238_v16 = vld [vmem:[%s4796_s7 + $0xd00] sm:$0xff]  ;;  %v1240_v17 = vld [vmem:[%s4796_s7 + $0xd10] sm:$0xff]  ;;  %1237 = vst [vmem:[%s4804_s8 + $0x678] sm:$0xff] %v1236_v15 }
  0x78   : > { %1239 = vst [vmem:[%s4804_s8 + $0x680] sm:$0xff] %v1238_v16  ;;  %1241 = vst [vmem:[%s4804_s8 + $0x688] sm:$0xff] %v1240_v17  ;;  %v1242_v18 = vld [vmem:[%s4796_s7 + $0xd20] sm:$0xff]  ;;  %v1244_v19 = vld [vmem:[%s4796_s7 + $0xd30] sm:$0xff] }
  0x79   : > { %v1246_v20 = vld [vmem:[%s4796_s7 + $0xd40] sm:$0xff]  ;;  %1243 = vst [vmem:[%s4804_s8 + $0x690] sm:$0xff] %v1242_v18  ;;  %1245 = vst [vmem:[%s4804_s8 + $0x698] sm:$0xff] %v1244_v19  ;;  %v1248_v21 = vld [vmem:[%s4796_s7 + $0xd50] sm:$0xff] }
  0x7a   : > { %1247 = vst [vmem:[%s4804_s8 + $0x6a0] sm:$0xff] %v1246_v20  ;;  %v1250_v22 = vld [vmem:[%s4796_s7 + $0xd60] sm:$0xff]  ;;  %v1252_v23 = vld [vmem:[%s4796_s7 + $0xd70] sm:$0xff]  ;;  %1249 = vst [vmem:[%s4804_s8 + $0x6a8] sm:$0xff] %v1248_v21 }
  0x7b   : > { %1251 = vst [vmem:[%s4804_s8 + $0x6b0] sm:$0xff] %v1250_v22  ;;  %1253 = vst [vmem:[%s4804_s8 + $0x6b8] sm:$0xff] %v1252_v23  ;;  %v1254_v24 = vld [vmem:[%s4796_s7 + $0xd80] sm:$0xff]  ;;  %v1256_v25 = vld [vmem:[%s4796_s7 + $0xd90] sm:$0xff] }
  0x7c   : > { %v1258_v26 = vld [vmem:[%s4796_s7 + $0xda0] sm:$0xff]  ;;  %1255 = vst [vmem:[%s4804_s8 + $0x6c0] sm:$0xff] %v1254_v24  ;;  %1257 = vst [vmem:[%s4804_s8 + $0x6c8] sm:$0xff] %v1256_v25  ;;  %v1260_v27 = vld [vmem:[%s4796_s7 + $0xdb0] sm:$0xff] }
  0x7d   : > { %1259 = vst [vmem:[%s4804_s8 + $0x6d0] sm:$0xff] %v1258_v26  ;;  %v1262_v28 = vld [vmem:[%s4796_s7 + $0xdc0] sm:$0xff]  ;;  %v1264_v29 = vld [vmem:[%s4796_s7 + $0xdd0] sm:$0xff]  ;;  %1261 = vst [vmem:[%s4804_s8 + $0x6d8] sm:$0xff] %v1260_v27 }
  0x7e   : > { %1263 = vst [vmem:[%s4804_s8 + $0x6e0] sm:$0xff] %v1262_v28  ;;  %1265 = vst [vmem:[%s4804_s8 + $0x6e8] sm:$0xff] %v1264_v29  ;;  %v1266_v30 = vld [vmem:[%s4796_s7 + $0xde0] sm:$0xff]  ;;  %v1268_v31 = vld [vmem:[%s4796_s7 + $0xdf0] sm:$0xff] }
  0x7f   : > { %v1270_v32 = vld [vmem:[%s4796_s7 + $0xe00] sm:$0xff]  ;;  %1267 = vst [vmem:[%s4804_s8 + $0x6f0] sm:$0xff] %v1266_v30  ;;  %1269 = vst [vmem:[%s4804_s8 + $0x6f8] sm:$0xff] %v1268_v31  ;;  %v1272_v33 = vld [vmem:[%s4796_s7 + $0xe10] sm:$0xff] }
  0x80   : > { %1271 = vst [vmem:[%s4804_s8 + $0x700] sm:$0xff] %v1270_v32  ;;  %v1274_v34 = vld [vmem:[%s4796_s7 + $0xe20] sm:$0xff]  ;;  %v1276_v35 = vld [vmem:[%s4796_s7 + $0xe30] sm:$0xff]  ;;  %1273 = vst [vmem:[%s4804_s8 + $0x708] sm:$0xff] %v1272_v33 }
  0x81   : > { %1275 = vst [vmem:[%s4804_s8 + $0x710] sm:$0xff] %v1274_v34  ;;  %1277 = vst [vmem:[%s4804_s8 + $0x718] sm:$0xff] %v1276_v35  ;;  %v1278_v36 = vld [vmem:[%s4796_s7 + $0xe40] sm:$0xff]  ;;  %v1280_v37 = vld [vmem:[%s4796_s7 + $0xe50] sm:$0xff] }
  0x82   : > { %v1282_v38 = vld [vmem:[%s4796_s7 + $0xe60] sm:$0xff]  ;;  %1279 = vst [vmem:[%s4804_s8 + $0x720] sm:$0xff] %v1278_v36  ;;  %1281 = vst [vmem:[%s4804_s8 + $0x728] sm:$0xff] %v1280_v37  ;;  %v1284_v39 = vld [vmem:[%s4796_s7 + $0xe70] sm:$0xff] }
  0x83   : > { %1283 = vst [vmem:[%s4804_s8 + $0x730] sm:$0xff] %v1282_v38  ;;  %v1286_v40 = vld [vmem:[%s4796_s7 + $0xe80] sm:$0xff]  ;;  %v1288_v41 = vld [vmem:[%s4796_s7 + $0xe90] sm:$0xff]  ;;  %1285 = vst [vmem:[%s4804_s8 + $0x738] sm:$0xff] %v1284_v39 }
  0x84   : > { %1287 = vst [vmem:[%s4804_s8 + $0x740] sm:$0xff] %v1286_v40  ;;  %1289 = vst [vmem:[%s4804_s8 + $0x748] sm:$0xff] %v1288_v41  ;;  %v1290_v42 = vld [vmem:[%s4796_s7 + $0xea0] sm:$0xff]  ;;  %v1292_v43 = vld [vmem:[%s4796_s7 + $0xeb0] sm:$0xff] }
  0x85   : > { %v1294_v44 = vld [vmem:[%s4796_s7 + $0xec0] sm:$0xff]  ;;  %1291 = vst [vmem:[%s4804_s8 + $0x750] sm:$0xff] %v1290_v42  ;;  %1293 = vst [vmem:[%s4804_s8 + $0x758] sm:$0xff] %v1292_v43  ;;  %v1296_v45 = vld [vmem:[%s4796_s7 + $0xed0] sm:$0xff] }
  0x86   : > { %1295 = vst [vmem:[%s4804_s8 + $0x760] sm:$0xff] %v1294_v44  ;;  %v1298_v46 = vld [vmem:[%s4796_s7 + $0xee0] sm:$0xff]  ;;  %v1300_v47 = vld [vmem:[%s4796_s7 + $0xef0] sm:$0xff]  ;;  %1297 = vst [vmem:[%s4804_s8 + $0x768] sm:$0xff] %v1296_v45 }
  0x87   : > { %1299 = vst [vmem:[%s4804_s8 + $0x770] sm:$0xff] %v1298_v46  ;;  %1301 = vst [vmem:[%s4804_s8 + $0x778] sm:$0xff] %v1300_v47  ;;  %v1302_v48 = vld [vmem:[%s4796_s7 + $0xf00] sm:$0xff]  ;;  %v1304_v49 = vld [vmem:[%s4796_s7 + $0xf10] sm:$0xff] }
  0x88   : > { %v1306_v50 = vld [vmem:[%s4796_s7 + $0xf20] sm:$0xff]  ;;  %1303 = vst [vmem:[%s4804_s8 + $0x780] sm:$0xff] %v1302_v48  ;;  %1305 = vst [vmem:[%s4804_s8 + $0x788] sm:$0xff] %v1304_v49  ;;  %v1308_v51 = vld [vmem:[%s4796_s7 + $0xf30] sm:$0xff] }
  0x89   : > { %1307 = vst [vmem:[%s4804_s8 + $0x790] sm:$0xff] %v1306_v50  ;;  %v1310_v52 = vld [vmem:[%s4796_s7 + $0xf40] sm:$0xff]  ;;  %v1312_v53 = vld [vmem:[%s4796_s7 + $0xf50] sm:$0xff]  ;;  %1309 = vst [vmem:[%s4804_s8 + $0x798] sm:$0xff] %v1308_v51 }
  0x8a   : > { %1311 = vst [vmem:[%s4804_s8 + $0x7a0] sm:$0xff] %v1310_v52  ;;  %1313 = vst [vmem:[%s4804_s8 + $0x7a8] sm:$0xff] %v1312_v53  ;;  %v1314_v54 = vld [vmem:[%s4796_s7 + $0xf60] sm:$0xff]  ;;  %v1316_v55 = vld [vmem:[%s4796_s7 + $0xf70] sm:$0xff] }
  0x8b   : > { %v1318_v56 = vld [vmem:[%s4796_s7 + $0xf80] sm:$0xff]  ;;  %1315 = vst [vmem:[%s4804_s8 + $0x7b0] sm:$0xff] %v1314_v54  ;;  %1317 = vst [vmem:[%s4804_s8 + $0x7b8] sm:$0xff] %v1316_v55  ;;  %v1320_v57 = vld [vmem:[%s4796_s7 + $0xf90] sm:$0xff] }
  0x8c   : > { %1319 = vst [vmem:[%s4804_s8 + $0x7c0] sm:$0xff] %v1318_v56  ;;  %v1322_v58 = vld [vmem:[%s4796_s7 + $0xfa0] sm:$0xff]  ;;  %v1324_v59 = vld [vmem:[%s4796_s7 + $0xfb0] sm:$0xff]  ;;  %1321 = vst [vmem:[%s4804_s8 + $0x7c8] sm:$0xff] %v1320_v57 }
  0x8d   : > { %1323 = vst [vmem:[%s4804_s8 + $0x7d0] sm:$0xff] %v1322_v58  ;;  %1325 = vst [vmem:[%s4804_s8 + $0x7d8] sm:$0xff] %v1324_v59  ;;  %v1326_v60 = vld [vmem:[%s4796_s7 + $0xfc0] sm:$0xff]  ;;  %v1328_v61 = vld [vmem:[%s4796_s7 + $0xfd0] sm:$0xff] }
  0x8e   : > { %v1330_v62 = vld [vmem:[%s4796_s7 + $0xfe0] sm:$0xff]  ;;  %1327 = vst [vmem:[%s4804_s8 + $0x7e0] sm:$0xff] %v1326_v60  ;;  %1329 = vst [vmem:[%s4804_s8 + $0x7e8] sm:$0xff] %v1328_v61  ;;  %v1332_v63 = vld [vmem:[%s4796_s7 + $0xff0] sm:$0xff] }
  0x8f   : > { %1331 = vst [vmem:[%s4804_s8 + $0x7f0] sm:$0xff] %v1330_v62  ;;  %v1334_v0 = vld [vmem:[%s4796_s7 + $0x1000] sm:$0xff]  ;;  %v1336_v1 = vld [vmem:[%s4796_s7 + $0x1010] sm:$0xff]  ;;  %1333 = vst [vmem:[%s4804_s8 + $0x7f8] sm:$0xff] %v1332_v63 }
  0x90   : > { %1335 = vst [vmem:[%s4804_s8 + $0x800] sm:$0xff] %v1334_v0  ;;  %1337 = vst [vmem:[%s4804_s8 + $0x808] sm:$0xff] %v1336_v1  ;;  %v1338_v2 = vld [vmem:[%s4796_s7 + $0x1020] sm:$0xff]  ;;  %v1340_v3 = vld [vmem:[%s4796_s7 + $0x1030] sm:$0xff] }
  0x91   : > { %v1342_v4 = vld [vmem:[%s4796_s7 + $0x1040] sm:$0xff]  ;;  %1339 = vst [vmem:[%s4804_s8 + $0x810] sm:$0xff] %v1338_v2  ;;  %1341 = vst [vmem:[%s4804_s8 + $0x818] sm:$0xff] %v1340_v3  ;;  %v1344_v5 = vld [vmem:[%s4796_s7 + $0x1050] sm:$0xff] }
  0x92   : > { %1343 = vst [vmem:[%s4804_s8 + $0x820] sm:$0xff] %v1342_v4  ;;  %v1346_v6 = vld [vmem:[%s4796_s7 + $0x1060] sm:$0xff]  ;;  %v1348_v7 = vld [vmem:[%s4796_s7 + $0x1070] sm:$0xff]  ;;  %1345 = vst [vmem:[%s4804_s8 + $0x828] sm:$0xff] %v1344_v5 }
  0x93   : > { %1347 = vst [vmem:[%s4804_s8 + $0x830] sm:$0xff] %v1346_v6  ;;  %1349 = vst [vmem:[%s4804_s8 + $0x838] sm:$0xff] %v1348_v7  ;;  %v1350_v8 = vld [vmem:[%s4796_s7 + $0x1080] sm:$0xff]  ;;  %v1352_v9 = vld [vmem:[%s4796_s7 + $0x1090] sm:$0xff] }
  0x94   : > { %v1354_v10 = vld [vmem:[%s4796_s7 + $0x10a0] sm:$0xff]  ;;  %1351 = vst [vmem:[%s4804_s8 + $0x840] sm:$0xff] %v1350_v8  ;;  %1353 = vst [vmem:[%s4804_s8 + $0x848] sm:$0xff] %v1352_v9  ;;  %v1356_v11 = vld [vmem:[%s4796_s7 + $0x10b0] sm:$0xff] }
  0x95   : > { %1355 = vst [vmem:[%s4804_s8 + $0x850] sm:$0xff] %v1354_v10  ;;  %v1358_v12 = vld [vmem:[%s4796_s7 + $0x10c0] sm:$0xff]  ;;  %v1360_v13 = vld [vmem:[%s4796_s7 + $0x10d0] sm:$0xff]  ;;  %1357 = vst [vmem:[%s4804_s8 + $0x858] sm:$0xff] %v1356_v11 }
  0x96   : > { %1359 = vst [vmem:[%s4804_s8 + $0x860] sm:$0xff] %v1358_v12  ;;  %1361 = vst [vmem:[%s4804_s8 + $0x868] sm:$0xff] %v1360_v13  ;;  %v1362_v14 = vld [vmem:[%s4796_s7 + $0x10e0] sm:$0xff]  ;;  %v1364_v15 = vld [vmem:[%s4796_s7 + $0x10f0] sm:$0xff] }
  0x97   : > { %v1366_v16 = vld [vmem:[%s4796_s7 + $0x1100] sm:$0xff]  ;;  %1363 = vst [vmem:[%s4804_s8 + $0x870] sm:$0xff] %v1362_v14  ;;  %1365 = vst [vmem:[%s4804_s8 + $0x878] sm:$0xff] %v1364_v15  ;;  %v1368_v17 = vld [vmem:[%s4796_s7 + $0x1110] sm:$0xff] }
  0x98   : > { %1367 = vst [vmem:[%s4804_s8 + $0x880] sm:$0xff] %v1366_v16  ;;  %v1370_v18 = vld [vmem:[%s4796_s7 + $0x1120] sm:$0xff]  ;;  %v1372_v19 = vld [vmem:[%s4796_s7 + $0x1130] sm:$0xff]  ;;  %1369 = vst [vmem:[%s4804_s8 + $0x888] sm:$0xff] %v1368_v17 }
  0x99   : > { %1371 = vst [vmem:[%s4804_s8 + $0x890] sm:$0xff] %v1370_v18  ;;  %1373 = vst [vmem:[%s4804_s8 + $0x898] sm:$0xff] %v1372_v19  ;;  %v1374_v20 = vld [vmem:[%s4796_s7 + $0x1140] sm:$0xff]  ;;  %v1376_v21 = vld [vmem:[%s4796_s7 + $0x1150] sm:$0xff] }
  0x9a   : > { %v1378_v22 = vld [vmem:[%s4796_s7 + $0x1160] sm:$0xff]  ;;  %1375 = vst [vmem:[%s4804_s8 + $0x8a0] sm:$0xff] %v1374_v20  ;;  %1377 = vst [vmem:[%s4804_s8 + $0x8a8] sm:$0xff] %v1376_v21  ;;  %v1380_v23 = vld [vmem:[%s4796_s7 + $0x1170] sm:$0xff] }
  0x9b   : > { %1379 = vst [vmem:[%s4804_s8 + $0x8b0] sm:$0xff] %v1378_v22  ;;  %v1382_v24 = vld [vmem:[%s4796_s7 + $0x1180] sm:$0xff]  ;;  %v1384_v25 = vld [vmem:[%s4796_s7 + $0x1190] sm:$0xff]  ;;  %1381 = vst [vmem:[%s4804_s8 + $0x8b8] sm:$0xff] %v1380_v23 }
  0x9c   : > { %1383 = vst [vmem:[%s4804_s8 + $0x8c0] sm:$0xff] %v1382_v24  ;;  %1385 = vst [vmem:[%s4804_s8 + $0x8c8] sm:$0xff] %v1384_v25  ;;  %v1386_v26 = vld [vmem:[%s4796_s7 + $0x11a0] sm:$0xff]  ;;  %v1388_v27 = vld [vmem:[%s4796_s7 + $0x11b0] sm:$0xff] }
  0x9d   : > { %v1390_v28 = vld [vmem:[%s4796_s7 + $0x11c0] sm:$0xff]  ;;  %1387 = vst [vmem:[%s4804_s8 + $0x8d0] sm:$0xff] %v1386_v26  ;;  %1389 = vst [vmem:[%s4804_s8 + $0x8d8] sm:$0xff] %v1388_v27  ;;  %v1392_v29 = vld [vmem:[%s4796_s7 + $0x11d0] sm:$0xff] }
  0x9e   : > { %1391 = vst [vmem:[%s4804_s8 + $0x8e0] sm:$0xff] %v1390_v28  ;;  %v1394_v30 = vld [vmem:[%s4796_s7 + $0x11e0] sm:$0xff]  ;;  %v1396_v31 = vld [vmem:[%s4796_s7 + $0x11f0] sm:$0xff]  ;;  %1393 = vst [vmem:[%s4804_s8 + $0x8e8] sm:$0xff] %v1392_v29 }
  0x9f   : > { %1395 = vst [vmem:[%s4804_s8 + $0x8f0] sm:$0xff] %v1394_v30  ;;  %1397 = vst [vmem:[%s4804_s8 + $0x8f8] sm:$0xff] %v1396_v31 }
  0xa0 PF: > { %p3875_p6 = scmp.ge.s32.totalorder %s4721_s22, 1  ;;  %p1431_p7 = scmp.lt.s32.totalorder %s4721_s22, 3 }
  0xa2   : > { %p1432_p8 = pnand %p3875_p6, %p1431_p7 }
  0xa3   : > { %s1438_s9 = sand.u32 (!%p1432_p8), 1, %s4705_s18   ;;  %s3876_s11 = sshll.u32 (!%p1432_p8), %s4713_s20, 1 }
  0xa4   : > { %1435 = sbr.rel (%p1432_p8) target bundleno = 694 (0x2b6), region = 74  ;;  %p1498_p9 = scmp.lt.s32.totalorder (!%p1432_p8), %s3876_s11, 3 }
  0xa5   : > { %s4192_s14 = smul.u32 (!%p1432_p8), 2304, %s1438_s9 }
  0xa7   : > { %s5393_s15 = scalar_lea.vmem (!%p1432_p8), [#allocation2], %s4192_s14 }
  0xa9   : > { %v5382_v32 = vld [vmem:[%s5784_s0] sm:$0xff]  ;;  %v5387_v33 = vld [vmem:[%s5784_s0 + $0x8] sm:$0xff]  ;;  %v4233_v36 = vld [vmem:[%s5393_s15 + $0x74] ss:$8 sps:$4 sm:$0xff]   ;;  %s5797_s11 = smov (!%p1498_p9, %s3876_s11), 3 }
  0xaa   : > { %v3883_v34 = vcombine.high %v5382_v32, %v5382_v32  ;;  %v3885_v35 = vcombine.high %v5387_v33, %v5387_v33  ;;  %v4235_v37 = vld [vmem:[%s5393_s15 + $0x174] ss:$8 sps:$4 sm:$0xff]   ;;  %3327 = vmatprep.subr.bf16.mxu0 %v4233_v36  ;;  %v4237_v38 = vld [vmem:[%s5393_s15 + $0x70] ss:$8 sps:$4 sm:$0xff]   ;;  %v4239_v40 = vld [vmem:[%s5393_s15 + $0x64] ss:$8 sps:$4 sm:$0xff]   ;;  %s1500_s14 = scalar_lea.vmem %s5786_s2, %s5797_s11  ;;  %s1505_s17 = scalar_lea.vmem %s5787_s3, %s5797_s11 }
  0xab   : > { %v4238_v39 = vld [vmem:[%s5393_s15 + $0x170] ss:$8 sps:$4 sm:$0xff]   ;;  %3368 = vmatprep.subr.bf16.mxu1 %v4235_v37  ;;  %3328 = vmatpush1.bf16.msra.mxu0 %v4237_v38  ;;  %v4241_v41 = vld [vmem:[%s5393_s15 + $0x164] ss:$8 sps:$4 sm:$0xff]   ;;  %v4243_v42 = vld [vmem:[%s5393_s15 + $0x60] ss:$8 sps:$4 sm:$0xff]  }
  0xac   : > { %3359 = vmatprep.mubr.bf16.mxu0 %v3883_v34  ;;  %3400 = vmatprep.mubr.bf16.mxu1 %v3885_v35  ;;  %v4244_v43 = vld [vmem:[%s5393_s15 + $0x160] ss:$8 sps:$4 sm:$0xff]   ;;  %v4245_v44 = vld [vmem:[%s5393_s15 + $0x54] ss:$8 sps:$4 sm:$0xff]   ;;  %v4249_v46 = vld [vmem:[%s5393_s15 + $0x50] ss:$8 sps:$4 sm:$0xff]  }
  0xad   : > { %3369 = vmatpush1.bf16.msra.mxu1 %v4238_v39  ;;  %3329 = vmatprep.subr.bf16.mxu0 %v4239_v40  ;;  %v4247_v45 = vld [vmem:[%s5393_s15 + $0x154] ss:$8 sps:$4 sm:$0xff]   ;;  %v4250_v47 = vld [vmem:[%s5393_s15 + $0x150] ss:$8 sps:$4 sm:$0xff]   ;;  %v4251_v48 = vld [vmem:[%s5393_s15 + $0x44] ss:$8 sps:$4 sm:$0xff]  }
  0xae   : > { %3370 = vmatprep.subr.bf16.mxu1 %v4241_v41  ;;  %v4253_v49 = vld [vmem:[%s5393_s15 + $0x144] ss:$8 sps:$4 sm:$0xff]   ;;  %v4255_v50 = vld [vmem:[%s5393_s15 + $0x40] ss:$8 sps:$4 sm:$0xff]   ;;  %v4257_v52 = vld [vmem:[%s5393_s15 + $0x34] ss:$8 sps:$4 sm:$0xff]   ;;  %v3882_v41 = vcombine.low %v5382_v32, %v5382_v32 }
  0xaf   : > { %3330 = vmatpush1.bf16.msra.mxu0 %v4243_v42  ;;  %v4256_v51 = vld [vmem:[%s5393_s15 + $0x140] ss:$8 sps:$4 sm:$0xff]   ;;  %v4259_v53 = vld [vmem:[%s5393_s15 + $0x134] ss:$8 sps:$4 sm:$0xff]   ;;  %v4261_v54 = vld [vmem:[%s5393_s15 + $0x30] ss:$8 sps:$4 sm:$0xff]   ;;  %v3884_v42 = vcombine.low %v5387_v33, %v5387_v33 }
  0xb0   : > { %3331 = vmatprep.subr.bf16.mxu0 %v4245_v44  ;;  %v4262_v55 = vld [vmem:[%s5393_s15 + $0x130] ss:$8 sps:$4 sm:$0xff]   ;;  %v4263_v56 = vld [vmem:[%s5393_s15 + $0x24] ss:$8 sps:$4 sm:$0xff]   ;;  %v4267_v58 = vld [vmem:[%s5393_s15 + $0x20] ss:$8 sps:$4 sm:$0xff]  }
  0xb1   : > { %3371 = vmatpush1.bf16.msra.mxu1 %v4244_v43  ;;  %v4265_v57 = vld [vmem:[%s5393_s15 + $0x124] ss:$8 sps:$4 sm:$0xff]   ;;  %v4268_v59 = vld [vmem:[%s5393_s15 + $0x120] ss:$8 sps:$4 sm:$0xff]   ;;  %v4269_v60 = vld [vmem:[%s5393_s15 + $0x14] ss:$8 sps:$4 sm:$0xff]  }
  0xb2   : > { %3372 = vmatprep.subr.bf16.mxu1 %v4247_v45  ;;  %v4271_v61 = vld [vmem:[%s5393_s15 + $0x114] ss:$8 sps:$4 sm:$0xff]   ;;  %v4273_v62 = vld [vmem:[%s5393_s15 + $0x10] ss:$8 sps:$4 sm:$0xff]   ;;  %v4275_v0 = vld [vmem:[%s5393_s15 + $0x4] ss:$8 sps:$4 sm:$0xff]  }
  0xb3   : > { %3332 = vmatpush1.bf16.msra.mxu0 %v4249_v46  ;;  %v4274_v63 = vld [vmem:[%s5393_s15 + $0x110] ss:$8 sps:$4 sm:$0xff]   ;;  %v4277_v1 = vld [vmem:[%s5393_s15 + $0x104] ss:$8 sps:$4 sm:$0xff]   ;;  %v4279_v2 = vld [vmem:[%s5393_s15] ss:$8 sps:$4 sm:$0xff]  }
  0xb4   : > { %3333 = vmatprep.subr.bf16.mxu0 %v4251_v48  ;;  %v4280_v3 = vld [vmem:[%s5393_s15 + $0x100] ss:$8 sps:$4 sm:$0xff]   ;;  %v4281_v4 = vld [vmem:[%s5393_s15 + $0xf4] ss:$8 sps:$4 sm:$0xff]   ;;  %v4285_v6 = vld [vmem:[%s5393_s15 + $0xf0] ss:$8 sps:$4 sm:$0xff]  }
  0xb5   : > { %3373 = vmatpush1.bf16.msra.mxu1 %v4250_v47  ;;  %v4283_v5 = vld [vmem:[%s5393_s15 + $0x1f4] ss:$8 sps:$4 sm:$0xff]   ;;  %v4286_v7 = vld [vmem:[%s5393_s15 + $0x1f0] ss:$8 sps:$4 sm:$0xff]   ;;  %v4287_v8 = vld [vmem:[%s5393_s15 + $0xe4] ss:$8 sps:$4 sm:$0xff]  }
  0xb6   : > { %3374 = vmatprep.subr.bf16.mxu1 %v4253_v49  ;;  %v4289_v9 = vld [vmem:[%s5393_s15 + $0x1e4] ss:$8 sps:$4 sm:$0xff]   ;;  %v4291_v10 = vld [vmem:[%s5393_s15 + $0xe0] ss:$8 sps:$4 sm:$0xff]   ;;  %v4293_v12 = vld [vmem:[%s5393_s15 + $0xd4] ss:$8 sps:$4 sm:$0xff]  }
  0xb7   : > { %3334 = vmatpush1.bf16.msra.mxu0 %v4255_v50  ;;  %v4292_v11 = vld [vmem:[%s5393_s15 + $0x1e0] ss:$8 sps:$4 sm:$0xff]   ;;  %v4295_v13 = vld [vmem:[%s5393_s15 + $0x1d4] ss:$8 sps:$4 sm:$0xff]   ;;  %v4297_v14 = vld [vmem:[%s5393_s15 + $0xd0] ss:$8 sps:$4 sm:$0xff]  }
  0xb8   : > { %3335 = vmatprep.subr.bf16.mxu0 %v4257_v52  ;;  %v4298_v15 = vld [vmem:[%s5393_s15 + $0x1d0] ss:$8 sps:$4 sm:$0xff]   ;;  %v4299_v16 = vld [vmem:[%s5393_s15 + $0xc4] ss:$8 sps:$4 sm:$0xff]   ;;  %v4303_v18 = vld [vmem:[%s5393_s15 + $0xc0] ss:$8 sps:$4 sm:$0xff]  }
  0xb9   : > { %3375 = vmatpush1.bf16.msra.mxu1 %v4256_v51  ;;  %v4301_v17 = vld [vmem:[%s5393_s15 + $0x1c4] ss:$8 sps:$4 sm:$0xff]   ;;  %v4304_v19 = vld [vmem:[%s5393_s15 + $0x1c0] ss:$8 sps:$4 sm:$0xff]   ;;  %v4305_v20 = vld [vmem:[%s5393_s15 + $0xb4] ss:$8 sps:$4 sm:$0xff]  }
  0xba   : > { %3376 = vmatprep.subr.bf16.mxu1 %v4259_v53  ;;  %v4307_v21 = vld [vmem:[%s5393_s15 + $0x1b4] ss:$8 sps:$4 sm:$0xff]   ;;  %v4309_v22 = vld [vmem:[%s5393_s15 + $0xb0] ss:$8 sps:$4 sm:$0xff]   ;;  %v4311_v24 = vld [vmem:[%s5393_s15 + $0xa4] ss:$8 sps:$4 sm:$0xff]  }
  0xbb   : > { %3336 = vmatpush1.bf16.msra.mxu0 %v4261_v54  ;;  %v4310_v23 = vld [vmem:[%s5393_s15 + $0x1b0] ss:$8 sps:$4 sm:$0xff]   ;;  %v4313_v25 = vld [vmem:[%s5393_s15 + $0x1a4] ss:$8 sps:$4 sm:$0xff]   ;;  %v4315_v26 = vld [vmem:[%s5393_s15 + $0xa0] ss:$8 sps:$4 sm:$0xff]  }
  0xbc   : > { %3337 = vmatprep.subr.bf16.mxu0 %v4263_v56  ;;  %v4316_v27 = vld [vmem:[%s5393_s15 + $0x1a0] ss:$8 sps:$4 sm:$0xff]   ;;  %v4317_v28 = vld [vmem:[%s5393_s15 + $0x94] ss:$8 sps:$4 sm:$0xff]   ;;  %v4321_v30 = vld [vmem:[%s5393_s15 + $0x90] ss:$8 sps:$4 sm:$0xff]  }
  0xbd   : > { %3377 = vmatpush1.bf16.msra.mxu1 %v4262_v55  ;;  %v4319_v29 = vld [vmem:[%s5393_s15 + $0x194] ss:$8 sps:$4 sm:$0xff]   ;;  %v4322_v31 = vld [vmem:[%s5393_s15 + $0x190] ss:$8 sps:$4 sm:$0xff]   ;;  %v4323_v34 = vld [vmem:[%s5393_s15 + $0x84] ss:$8 sps:$4 sm:$0xff]  }
  0xbe   : > { %3378 = vmatprep.subr.bf16.mxu1 %v4265_v57  ;;  %v4325_v35 = vld [vmem:[%s5393_s15 + $0x184] ss:$8 sps:$4 sm:$0xff]   ;;  %v4327_v36 = vld [vmem:[%s5393_s15 + $0x80] ss:$8 sps:$4 sm:$0xff]   ;;  %v4335_v38 = vld [vmem:[%s5393_s15 + $0x274] ss:$8 sps:$4 sm:$0xff]  }
  0xbf   : > { %3338 = vmatpush1.bf16.msra.mxu0 %v4267_v58  ;;  %v4328_v37 = vld [vmem:[%s5393_s15 + $0x180] ss:$8 sps:$4 sm:$0xff]   ;;  %v4338_v39 = vld [vmem:[%s5393_s15 + $0x374] ss:$8 sps:$4 sm:$0xff]   ;;  %v4333_v43 = vld [vmem:[%s5393_s15 + $0x270] ss:$8 sps:$4 sm:$0xff]  }
  0xc0   : > { %3339 = vmatprep.subr.bf16.mxu0 %v4269_v60  ;;  %v5464_v40 = vld [vmem:[%s5784_s0 + $0x10] sm:$0xff]  ;;  %v4341_v45 = vld [vmem:[%s5393_s15 + $0x264] ss:$8 sps:$4 sm:$0xff]   ;;  %v4339_v32 = vld [vmem:[%s5393_s15 + $0x260] ss:$8 sps:$4 sm:$0xff]   ;;  %s3879_s18 = sshll.u32 %s5797_s11, 3 }
  0xc1   : > { %3379 = vmatpush1.bf16.msra.mxu1 %v4268_v59  ;;  %v4336_v44 = vld [vmem:[%s5393_s15 + $0x370] ss:$8 sps:$4 sm:$0xff]   ;;  %v4344_v46 = vld [vmem:[%s5393_s15 + $0x364] ss:$8 sps:$4 sm:$0xff]   ;;  %v3887_v47 = vcombine.high %v5464_v40, %v5464_v40  ;;  %v4342_v33 = vld [vmem:[%s5393_s15 + $0x360] ss:$8 sps:$4 sm:$0xff]   ;;  %s1515_s25 = scalar_lea.vmem %s5788_s4, %s3879_s18  ;;  %s1525_s29 = scalar_lea.vmem %s5789_s5, %s3879_s18 }
  0xc2   : > { %3380 = vmatprep.subr.bf16.mxu1 %v4271_v61  ;;  %v4347_v48 = vld [vmem:[%s5393_s15 + $0x254] ss:$8 sps:$4 sm:$0xff]   ;;  %v4345_v50 = vld [vmem:[%s5393_s15 + $0x250] ss:$8 sps:$4 sm:$0xff]   ;;  %v4353_v52 = vld [vmem:[%s5393_s15 + $0x244] ss:$8 sps:$4 sm:$0xff]  }
  0xc3   : > { %3340 = vmatpush1.bf16.msra.mxu0 %v4273_v62  ;;  %v4350_v49 = vld [vmem:[%s5393_s15 + $0x354] ss:$8 sps:$4 sm:$0xff]   ;;  %v4348_v51 = vld [vmem:[%s5393_s15 + $0x350] ss:$8 sps:$4 sm:$0xff]   ;;  %v4356_v53 = vld [vmem:[%s5393_s15 + $0x344] ss:$8 sps:$4 sm:$0xff]  }
  0xc4   : > { %3341 = vmatprep.subr.bf16.mxu0 %v4275_v0  ;;  %v4351_v54 = vld [vmem:[%s5393_s15 + $0x240] ss:$8 sps:$4 sm:$0xff]   ;;  %v4359_v56 = vld [vmem:[%s5393_s15 + $0x234] ss:$8 sps:$4 sm:$0xff]   ;;  %v4357_v58 = vld [vmem:[%s5393_s15 + $0x230] ss:$8 sps:$4 sm:$0xff]  }
  0xc5   : > { %3381 = vmatpush1.bf16.msra.mxu1 %v4274_v63  ;;  %v4354_v55 = vld [vmem:[%s5393_s15 + $0x340] ss:$8 sps:$4 sm:$0xff]   ;;  %v4362_v57 = vld [vmem:[%s5393_s15 + $0x334] ss:$8 sps:$4 sm:$0xff]   ;;  %v4360_v59 = vld [vmem:[%s5393_s15 + $0x330] ss:$8 sps:$4 sm:$0xff]  }
  0xc6   : > { %3382 = vmatprep.subr.bf16.mxu1 %v4277_v1  ;;  %v4365_v60 = vld [vmem:[%s5393_s15 + $0x224] ss:$8 sps:$4 sm:$0xff]   ;;  %v4363_v62 = vld [vmem:[%s5393_s15 + $0x220] ss:$8 sps:$4 sm:$0xff]   ;;  %v4371_v0 = vld [vmem:[%s5393_s15 + $0x214] ss:$8 sps:$4 sm:$0xff]  }
  0xc7   : > { %3342 = vmatpush1.bf16.msra.mxu0 %v4279_v2  ;;  %v4368_v61 = vld [vmem:[%s5393_s15 + $0x324] ss:$8 sps:$4 sm:$0xff]   ;;  %v4366_v63 = vld [vmem:[%s5393_s15 + $0x320] ss:$8 sps:$4 sm:$0xff]   ;;  %v4374_v1 = vld [vmem:[%s5393_s15 + $0x314] ss:$8 sps:$4 sm:$0xff]  }
  0xc8   : > { %3343 = vmatprep.subr.bf16.mxu0 %v4281_v4  ;;  %v5499_v2 = vld [vmem:[%s5784_s0 + $0x18] sm:$0xff] }
  0xc9   : > { %3383 = vmatpush1.bf16.msra.mxu1 %v4280_v3  ;;  %v4369_v3 = vld [vmem:[%s5393_s15 + $0x210] ss:$8 sps:$4 sm:$0xff]   ;;  %v3889_v4 = vcombine.high %v5499_v2, %v5499_v2 }
  0xca   : > { %3384 = vmatprep.subr.bf16.mxu1 %v4283_v5  ;;  %v4372_v5 = vld [vmem:[%s5393_s15 + $0x310] ss:$8 sps:$4 sm:$0xff]  }
  0xcb   : > { %3344 = vmatpush2.bf16.msra.mxu0 %v4285_v6  ;;  %v4377_v6 = vld [vmem:[%s5393_s15 + $0x204] ss:$8 sps:$4 sm:$0xff]  }
  0xcc   : > { %3345 = vmatprep.subr.bf16.mxu0 %v4287_v8  ;;  %v4375_v8 = vld [vmem:[%s5393_s15 + $0x200] ss:$8 sps:$4 sm:$0xff]  }
  0xcd   : > { %3385 = vmatpush2.bf16.msra.mxu1 %v4286_v7  ;;  %v4380_v7 = vld [vmem:[%s5393_s15 + $0x304] ss:$8 sps:$4 sm:$0xff]  }
  0xce   : > { %3386 = vmatprep.subr.bf16.mxu1 %v4289_v9  ;;  %v4378_v9 = vld [vmem:[%s5393_s15 + $0x300] ss:$8 sps:$4 sm:$0xff]  }
  0xcf   : > { %3346 = vmatpush2.bf16.msra.mxu0 %v4291_v10  ;;  %v4383_v10 = vld [vmem:[%s5393_s15 + $0x2f4] ss:$8 sps:$4 sm:$0xff]  }
  0xd0   : > { %3347 = vmatprep.subr.bf16.mxu0 %v4293_v12  ;;  %v4381_v12 = vld [vmem:[%s5393_s15 + $0x2f0] ss:$8 sps:$4 sm:$0xff]  }
  0xd1   : > { %3387 = vmatpush2.bf16.msra.mxu1 %v4292_v11  ;;  %v4386_v11 = vld [vmem:[%s5393_s15 + $0x3f4] ss:$8 sps:$4 sm:$0xff]  }
  0xd2   : > { %3388 = vmatprep.subr.bf16.mxu1 %v4295_v13  ;;  %v4384_v13 = vld [vmem:[%s5393_s15 + $0x3f0] ss:$8 sps:$4 sm:$0xff]  }
  0xd3   : > { %3348 = vmatpush2.bf16.msra.mxu0 %v4297_v14  ;;  %v4389_v14 = vld [vmem:[%s5393_s15 + $0x2e4] ss:$8 sps:$4 sm:$0xff]  }
  0xd4   : > { %3349 = vmatprep.subr.bf16.mxu0 %v4299_v16  ;;  %v4387_v16 = vld [vmem:[%s5393_s15 + $0x2e0] ss:$8 sps:$4 sm:$0xff]  }
  0xd5   : > { %3389 = vmatpush2.bf16.msra.mxu1 %v4298_v15  ;;  %v4392_v15 = vld [vmem:[%s5393_s15 + $0x3e4] ss:$8 sps:$4 sm:$0xff]  }
  0xd6   : > { %3390 = vmatprep.subr.bf16.mxu1 %v4301_v17  ;;  %v4390_v17 = vld [vmem:[%s5393_s15 + $0x3e0] ss:$8 sps:$4 sm:$0xff]  }
  0xd7   : > { %3350 = vmatpush2.bf16.msra.mxu0 %v4303_v18  ;;  %v4395_v18 = vld [vmem:[%s5393_s15 + $0x2d4] ss:$8 sps:$4 sm:$0xff]  }
  0xd8   : > { %3351 = vmatprep.subr.bf16.mxu0 %v4305_v20  ;;  %v4393_v20 = vld [vmem:[%s5393_s15 + $0x2d0] ss:$8 sps:$4 sm:$0xff]  }
  0xd9   : > { %3391 = vmatpush2.bf16.msra.mxu1 %v4304_v19  ;;  %v4398_v19 = vld [vmem:[%s5393_s15 + $0x3d4] ss:$8 sps:$4 sm:$0xff]  }
  0xda   : > { %3392 = vmatprep.subr.bf16.mxu1 %v4307_v21  ;;  %v4396_v21 = vld [vmem:[%s5393_s15 + $0x3d0] ss:$8 sps:$4 sm:$0xff]  }
  0xdb   : > { %3352 = vmatpush2.bf16.msra.mxu0 %v4309_v22  ;;  %v4401_v22 = vld [vmem:[%s5393_s15 + $0x2c4] ss:$8 sps:$4 sm:$0xff]  }
  0xdc   : > { %3353 = vmatprep.subr.bf16.mxu0 %v4311_v24  ;;  %v4399_v24 = vld [vmem:[%s5393_s15 + $0x2c0] ss:$8 sps:$4 sm:$0xff]  }
  0xdd   : > { %3393 = vmatpush2.bf16.msra.mxu1 %v4310_v23  ;;  %v4404_v23 = vld [vmem:[%s5393_s15 + $0x3c4] ss:$8 sps:$4 sm:$0xff]  }
  0xde   : > { %3394 = vmatprep.subr.bf16.mxu1 %v4313_v25  ;;  %v4402_v25 = vld [vmem:[%s5393_s15 + $0x3c0] ss:$8 sps:$4 sm:$0xff]  }
  0xdf   : > { %3354 = vmatpush2.bf16.msra.mxu0 %v4315_v26  ;;  %v4407_v26 = vld [vmem:[%s5393_s15 + $0x2b4] ss:$8 sps:$4 sm:$0xff]  }
  0xe0   : > { %3355 = vmatprep.subr.bf16.mxu0 %v4317_v28  ;;  %v4405_v28 = vld [vmem:[%s5393_s15 + $0x2b0] ss:$8 sps:$4 sm:$0xff]  }
  0xe1   : > { %3395 = vmatpush2.bf16.msra.mxu1 %v4316_v27  ;;  %v4410_v27 = vld [vmem:[%s5393_s15 + $0x3b4] ss:$8 sps:$4 sm:$0xff]  }
  0xe2   : > { %3396 = vmatprep.subr.bf16.mxu1 %v4319_v29  ;;  %v4408_v29 = vld [vmem:[%s5393_s15 + $0x3b0] ss:$8 sps:$4 sm:$0xff]  }
  0xe3   : > { %3356 = vmatpush2.bf16.msra.mxu0 %v4321_v30  ;;  %v4413_v30 = vld [vmem:[%s5393_s15 + $0x2a4] ss:$8 sps:$4 sm:$0xff]  }
  0xe4   : > { %3357 = vmatprep.subr.bf16.mxu0 %v4323_v34  ;;  %v4411_v34 = vld [vmem:[%s5393_s15 + $0x2a0] ss:$8 sps:$4 sm:$0xff]  }
  0xe5   : > { %3397 = vmatpush2.bf16.msra.mxu1 %v4322_v31  ;;  %v4416_v31 = vld [vmem:[%s5393_s15 + $0x3a4] ss:$8 sps:$4 sm:$0xff]  }
  0xe6   : > { %3398 = vmatprep.subr.bf16.mxu1 %v4325_v35  ;;  %v4414_v35 = vld [vmem:[%s5393_s15 + $0x3a0] ss:$8 sps:$4 sm:$0xff]  }
  0xe7   : > { %3358 = vmatpush2.bf16.msra.mxu0 %v4327_v36  ;;  %v4419_v36 = vld [vmem:[%s5393_s15 + $0x294] ss:$8 sps:$4 sm:$0xff]  }
  0xe8   : > { %3409 = vmatprep.subr.bf16.mxu0 %v4335_v38  ;;  %v4417_v38 = vld [vmem:[%s5393_s15 + $0x290] ss:$8 sps:$4 sm:$0xff]  }
  0xe9   : > { %3399 = vmatpush2.bf16.msra.mxu1 %v4328_v37  ;;  %v4422_v37 = vld [vmem:[%s5393_s15 + $0x394] ss:$8 sps:$4 sm:$0xff]  }
  0xea   : > { %3450 = vmatprep.subr.bf16.mxu1 %v4338_v39  ;;  %3360 = vmatmul.mubr.bf16.vlgmr.msra.gmra.mxu0 %v3882_v41  ;;  %v4420_v39 = vld [vmem:[%s5393_s15 + $0x390] ss:$8 sps:$4 sm:$0xff]   ;;  %v4425_v41 = vld [vmem:[%s5393_s15 + $0x284] ss:$8 sps:$4 sm:$0xff]  }
  0xeb   : > { %3410 = vmatpush1.bf16.msra.mxu0 %v4333_v43  ;;  %3441 = vmatprep.mubr.bf16.mxu0 %v3887_v47  ;;  %v4423_v43 = vld [vmem:[%s5393_s15 + $0x280] ss:$8 sps:$4 sm:$0xff]   ;;  %v3886_v47 = vcombine.low %v5464_v40, %v5464_v40 }
  0xec   : > { %3401 = vmatmul.mubr.bf16.vlgmr.msra.gmra.mxu1 %v3884_v42  ;;  %3411 = vmatprep.subr.bf16.mxu0 %v4341_v45  ;;  %v4428_v42 = vld [vmem:[%s5393_s15 + $0x384] ss:$8 sps:$4 sm:$0xff]   ;;  %v4433_v45 = vld [vmem:[%s5393_s15 + $0x474] ss:$8 sps:$4 sm:$0xff]  }
  0xed   : > { %3451 = vmatpush1.bf16.msra.mxu1 %v4336_v44  ;;  %3482 = vmatprep.mubr.bf16.mxu1 %v3889_v4  ;;  %v4426_v44 = vld [vmem:[%s5393_s15 + $0x380] ss:$8 sps:$4 sm:$0xff]   ;;  %v4465_v4 = vld [vmem:[%s5393_s15 + $0x424] ss:$8 sps:$4 sm:$0xff]  }
  0xee   : > { %3452 = vmatprep.subr.bf16.mxu1 %v4344_v46  ;;  %v4438_v46 = vld [vmem:[%s5393_s15 + $0x574] ss:$8 sps:$4 sm:$0xff]  }
  0xef   : > { %3412 = vmatpush1.bf16.msra.mxu0 %v4339_v32  ;;  %v4431_v32 = vld [vmem:[%s5393_s15 + $0x470] ss:$8 sps:$4 sm:$0xff]  }
  0xf0   : > { %3413 = vmatprep.subr.bf16.mxu0 %v4347_v48  ;;  %v4436_v48 = vld [vmem:[%s5393_s15 + $0x570] ss:$8 sps:$4 sm:$0xff]  }
  0xf1   : > { %3453 = vmatpush1.bf16.msra.mxu1 %v4342_v33  ;;  %v3888_v33 = vcombine.low %v5499_v2, %v5499_v2  ;;  %v4457_v2 = vld [vmem:[%s5393_s15 + $0x430] ss:$8 sps:$4 sm:$0xff]  }
  0xf2   : > { %3454 = vmatprep.subr.bf16.mxu1 %v4350_v49  ;;  %v5552_v49 = vld [vmem:[%s5784_s0 + $0x20] sm:$0xff] }
  0xf3   : > { %3414 = vmatpush1.bf16.msra.mxu0 %v4345_v50  ;;  %v4441_v50 = vld [vmem:[%s5393_s15 + $0x464] ss:$8 sps:$4 sm:$0xff]   ;;  %v3891_v40 = vcombine.high %v5552_v49, %v5552_v49 }
  0xf4   : > { %3415 = vmatprep.subr.bf16.mxu0 %v4353_v52  ;;  %v5561_v52 = vld [vmem:[%s5784_s0 + $0x28] sm:$0xff] }
  0xf5   : > { %3455 = vmatpush1.bf16.msra.mxu1 %v4348_v51  ;;  %v4444_v51 = vld [vmem:[%s5393_s15 + $0x564] ss:$8 sps:$4 sm:$0xff]  }
  0xf6   : > { %3456 = vmatprep.subr.bf16.mxu1 %v4356_v53  ;;  %v4439_v53 = vld [vmem:[%s5393_s15 + $0x460] ss:$8 sps:$4 sm:$0xff]  }
  0xf7   : > { %3416 = vmatpush1.bf16.msra.mxu0 %v4351_v54  ;;  %v3893_v54 = vcombine.high %v5561_v52, %v5561_v52 }
  0xf8   : > { %3417 = vmatprep.subr.bf16.mxu0 %v4359_v56  ;;  %v4447_v56 = vld [vmem:[%s5393_s15 + $0x454] ss:$8 sps:$4 sm:$0xff]  }
  0xf9   : > { %3457 = vmatpush1.bf16.msra.mxu1 %v4354_v55  ;;  %v4442_v55 = vld [vmem:[%s5393_s15 + $0x560] ss:$8 sps:$4 sm:$0xff]  }
  0xfa   : > { %3458 = vmatprep.subr.bf16.mxu1 %v4362_v57  ;;  %v4450_v57 = vld [vmem:[%s5393_s15 + $0x554] ss:$8 sps:$4 sm:$0xff]  }
  0xfb   : > { %3418 = vmatpush1.bf16.msra.mxu0 %v4357_v58  ;;  %v4445_v58 = vld [vmem:[%s5393_s15 + $0x450] ss:$8 sps:$4 sm:$0xff]  }
  0xfc   : > { %3419 = vmatprep.subr.bf16.mxu0 %v4365_v60  ;;  %v4453_v60 = vld [vmem:[%s5393_s15 + $0x444] ss:$8 sps:$4 sm:$0xff]  }
  0xfd   : > { %3459 = vmatpush1.bf16.msra.mxu1 %v4360_v59  ;;  %v4448_v59 = vld [vmem:[%s5393_s15 + $0x550] ss:$8 sps:$4 sm:$0xff]  }
  0xfe   : > { %3460 = vmatprep.subr.bf16.mxu1 %v4368_v61  ;;  %v4456_v61 = vld [vmem:[%s5393_s15 + $0x544] ss:$8 sps:$4 sm:$0xff]  }
  0xff   : > { %3420 = vmatpush1.bf16.msra.mxu0 %v4363_v62  ;;  %v4451_v62 = vld [vmem:[%s5393_s15 + $0x440] ss:$8 sps:$4 sm:$0xff]  }
 0x100   : > { %3421 = vmatprep.subr.bf16.mxu0 %v4371_v0  ;;  %v4459_v0 = vld [vmem:[%s5393_s15 + $0x434] ss:$8 sps:$4 sm:$0xff]  }
 0x101   : > { %3461 = vmatpush1.bf16.msra.mxu1 %v4366_v63  ;;  %v4454_v63 = vld [vmem:[%s5393_s15 + $0x540] ss:$8 sps:$4 sm:$0xff]  }
 0x102   : > { %3462 = vmatprep.subr.bf16.mxu1 %v4374_v1  ;;  %v4462_v1 = vld [vmem:[%s5393_s15 + $0x534] ss:$8 sps:$4 sm:$0xff]  }
 0x103   : > { %3422 = vmatpush1.bf16.msra.mxu0 %v4369_v3  ;;  %v4460_v3 = vld [vmem:[%s5393_s15 + $0x530] ss:$8 sps:$4 sm:$0xff]  }
 0x104   : > { %3423 = vmatprep.subr.bf16.mxu0 %v4377_v6  ;;  %v4463_v6 = vld [vmem:[%s5393_s15 + $0x420] ss:$8 sps:$4 sm:$0xff]  }
 0x105   : > { %3463 = vmatpush1.bf16.msra.mxu1 %v4372_v5  ;;  %v4468_v5 = vld [vmem:[%s5393_s15 + $0x524] ss:$8 sps:$4 sm:$0xff]  }
 0x106   : > { %3464 = vmatprep.subr.bf16.mxu1 %v4380_v7  ;;  %v4466_v7 = vld [vmem:[%s5393_s15 + $0x520] ss:$8 sps:$4 sm:$0xff]  }
 0x107   : > { %3424 = vmatpush1.bf16.msra.mxu0 %v4375_v8  ;;  %v4471_v8 = vld [vmem:[%s5393_s15 + $0x414] ss:$8 sps:$4 sm:$0xff]  }
 0x108   : > { %3425 = vmatprep.subr.bf16.mxu0 %v4383_v10  ;;  %v4469_v10 = vld [vmem:[%s5393_s15 + $0x410] ss:$8 sps:$4 sm:$0xff]  }
 0x109   : > { %3465 = vmatpush1.bf16.msra.mxu1 %v4378_v9  ;;  %v4474_v9 = vld [vmem:[%s5393_s15 + $0x514] ss:$8 sps:$4 sm:$0xff]  }
 0x10a   : > { %3466 = vmatprep.subr.bf16.mxu1 %v4386_v11  ;;  %v4472_v11 = vld [vmem:[%s5393_s15 + $0x510] ss:$8 sps:$4 sm:$0xff]  }
 0x10b   : > { %3426 = vmatpush2.bf16.msra.mxu0 %v4381_v12  ;;  %v4477_v12 = vld [vmem:[%s5393_s15 + $0x404] ss:$8 sps:$4 sm:$0xff]  }
 0x10c   : > { %3427 = vmatprep.subr.bf16.mxu0 %v4389_v14  ;;  %v4475_v14 = vld [vmem:[%s5393_s15 + $0x400] ss:$8 sps:$4 sm:$0xff]  }
 0x10d   : > { %3467 = vmatpush2.bf16.msra.mxu1 %v4384_v13  ;;  %v4480_v13 = vld [vmem:[%s5393_s15 + $0x504] ss:$8 sps:$4 sm:$0xff]  }
 0x10e   : > { %3468 = vmatprep.subr.bf16.mxu1 %v4392_v15  ;;  %v4478_v15 = vld [vmem:[%s5393_s15 + $0x500] ss:$8 sps:$4 sm:$0xff]  }
 0x10f   : > { %3428 = vmatpush2.bf16.msra.mxu0 %v4387_v16  ;;  %v4483_v16 = vld [vmem:[%s5393_s15 + $0x4f4] ss:$8 sps:$4 sm:$0xff]  }
 0x110   : > { %3429 = vmatprep.subr.bf16.mxu0 %v4395_v18  ;;  %v4481_v18 = vld [vmem:[%s5393_s15 + $0x4f0] ss:$8 sps:$4 sm:$0xff]  }
 0x111   : > { %3469 = vmatpush2.bf16.msra.mxu1 %v4390_v17  ;;  %v4486_v17 = vld [vmem:[%s5393_s15 + $0x5f4] ss:$8 sps:$4 sm:$0xff]  }
 0x112   : > { %3470 = vmatprep.subr.bf16.mxu1 %v4398_v19  ;;  %v4484_v19 = vld [vmem:[%s5393_s15 + $0x5f0] ss:$8 sps:$4 sm:$0xff]  }
 0x113   : > { %3430 = vmatpush2.bf16.msra.mxu0 %v4393_v20  ;;  %v4489_v20 = vld [vmem:[%s5393_s15 + $0x4e4] ss:$8 sps:$4 sm:$0xff]  }
 0x114   : > { %3431 = vmatprep.subr.bf16.mxu0 %v4401_v22  ;;  %v4487_v22 = vld [vmem:[%s5393_s15 + $0x4e0] ss:$8 sps:$4 sm:$0xff]  }
 0x115   : > { %3471 = vmatpush2.bf16.msra.mxu1 %v4396_v21  ;;  %v4492_v21 = vld [vmem:[%s5393_s15 + $0x5e4] ss:$8 sps:$4 sm:$0xff]  }
 0x116   : > { %3472 = vmatprep.subr.bf16.mxu1 %v4404_v23  ;;  %v4490_v23 = vld [vmem:[%s5393_s15 + $0x5e0] ss:$8 sps:$4 sm:$0xff]  }
 0x117   : > { %3432 = vmatpush2.bf16.msra.mxu0 %v4399_v24  ;;  %v4495_v24 = vld [vmem:[%s5393_s15 + $0x4d4] ss:$8 sps:$4 sm:$0xff]  }
 0x118   : > { %3433 = vmatprep.subr.bf16.mxu0 %v4407_v26  ;;  %v4493_v26 = vld [vmem:[%s5393_s15 + $0x4d0] ss:$8 sps:$4 sm:$0xff]  }
 0x119   : > { %3473 = vmatpush2.bf16.msra.mxu1 %v4402_v25  ;;  %v4498_v25 = vld [vmem:[%s5393_s15 + $0x5d4] ss:$8 sps:$4 sm:$0xff]  }
 0x11a   : > { %3474 = vmatprep.subr.bf16.mxu1 %v4410_v27  ;;  %v4496_v27 = vld [vmem:[%s5393_s15 + $0x5d0] ss:$8 sps:$4 sm:$0xff]  }
 0x11b   : > { %3434 = vmatpush2.bf16.msra.mxu0 %v4405_v28  ;;  %v4501_v28 = vld [vmem:[%s5393_s15 + $0x4c4] ss:$8 sps:$4 sm:$0xff]  }
 0x11c   : > { %3435 = vmatprep.subr.bf16.mxu0 %v4413_v30  ;;  %v4499_v30 = vld [vmem:[%s5393_s15 + $0x4c0] ss:$8 sps:$4 sm:$0xff]  }
 0x11d   : > { %3475 = vmatpush2.bf16.msra.mxu1 %v4408_v29  ;;  %v4504_v29 = vld [vmem:[%s5393_s15 + $0x5c4] ss:$8 sps:$4 sm:$0xff]  }
 0x11e   : > { %3476 = vmatprep.subr.bf16.mxu1 %v4416_v31  ;;  %v4502_v31 = vld [vmem:[%s5393_s15 + $0x5c0] ss:$8 sps:$4 sm:$0xff]  }
 0x11f   : > { %3436 = vmatpush2.bf16.msra.mxu0 %v4411_v34  ;;  %v4507_v34 = vld [vmem:[%s5393_s15 + $0x4b4] ss:$8 sps:$4 sm:$0xff]  }
 0x120   : > { %3437 = vmatprep.subr.bf16.mxu0 %v4419_v36  ;;  %v4505_v36 = vld [vmem:[%s5393_s15 + $0x4b0] ss:$8 sps:$4 sm:$0xff]  }
 0x121   : > { %3477 = vmatpush2.bf16.msra.mxu1 %v4414_v35  ;;  %v4510_v35 = vld [vmem:[%s5393_s15 + $0x5b4] ss:$8 sps:$4 sm:$0xff]  }
 0x122   : > { %3478 = vmatprep.subr.bf16.mxu1 %v4422_v37  ;;  %v4508_v37 = vld [vmem:[%s5393_s15 + $0x5b0] ss:$8 sps:$4 sm:$0xff]  }
 0x123   : > { %3438 = vmatpush2.bf16.msra.mxu0 %v4417_v38  ;;  %v4513_v38 = vld [vmem:[%s5393_s15 + $0x4a4] ss:$8 sps:$4 sm:$0xff]  }
 0x124   : > { %3439 = vmatprep.subr.bf16.mxu0 %v4425_v41  ;;  %v4511_v41 = vld [vmem:[%s5393_s15 + $0x4a0] ss:$8 sps:$4 sm:$0xff]  }
 0x125   : > { %3479 = vmatpush2.bf16.msra.mxu1 %v4420_v39  ;;  %v4516_v39 = vld [vmem:[%s5393_s15 + $0x5a4] ss:$8 sps:$4 sm:$0xff]  }
 0x126   : > { %3480 = vmatprep.subr.bf16.mxu1 %v4428_v42  ;;  %v4514_v42 = vld [vmem:[%s5393_s15 + $0x5a0] ss:$8 sps:$4 sm:$0xff]  }
 0x127   : > { %3440 = vmatpush2.bf16.msra.mxu0 %v4423_v43  ;;  %v4519_v43 = vld [vmem:[%s5393_s15 + $0x494] ss:$8 sps:$4 sm:$0xff]  }
 0x128   : > { %3491 = vmatprep.subr.bf16.mxu0 %v4433_v45  ;;  %v4517_v45 = vld [vmem:[%s5393_s15 + $0x490] ss:$8 sps:$4 sm:$0xff]  }
 0x129   : > { %3481 = vmatpush2.bf16.msra.mxu1 %v4426_v44  ;;  %v4522_v44 = vld [vmem:[%s5393_s15 + $0x594] ss:$8 sps:$4 sm:$0xff]  }
 0x12a   : > { %3532 = vmatprep.subr.bf16.mxu1 %v4438_v46  ;;  %3442 = vmatmul.mubr.bf16.vlgmr.msra.gmra.mxu0 %v3886_v47  ;;  %v4520_v46 = vld [vmem:[%s5393_s15 + $0x590] ss:$8 sps:$4 sm:$0xff]   ;;  %v4525_v47 = vld [vmem:[%s5393_s15 + $0x484] ss:$8 sps:$4 sm:$0xff]  }
 0x12b   : > { %3492 = vmatpush1.bf16.msra.mxu0 %v4431_v32  ;;  %3523 = vmatprep.mubr.bf16.mxu0 %v3891_v40  ;;  %v4528_v32 = vld [vmem:[%s5393_s15 + $0x584] ss:$8 sps:$4 sm:$0xff]   ;;  %v4531_v40 = vld [vmem:[%s5393_s15 + $0x670] ss:$8 sps:$4 sm:$0xff]  }
 0x12c   : > { %3483 = vmatmul.mubr.bf16.vlgmr.msra.gmra.mxu1 %v3888_v33  ;;  %3493 = vmatprep.subr.bf16.mxu0 %v4441_v50  ;;  %v4523_v33 = vld [vmem:[%s5393_s15 + $0x480] ss:$8 sps:$4 sm:$0xff]   ;;  %v4533_v50 = vld [vmem:[%s5393_s15 + $0x674] ss:$8 sps:$4 sm:$0xff]  }
 0x12d   : > { %3533 = vmatpush1.bf16.msra.mxu1 %v4436_v48  ;;  %3564 = vmatprep.mubr.bf16.mxu1 %v3893_v54  ;;  %v4526_v48 = vld [vmem:[%s5393_s15 + $0x580] ss:$8 sps:$4 sm:$0xff]   ;;  %v3890_v54 = vcombine.low %v5552_v49, %v5552_v49 }
 0x12e   : > { %3534 = vmatprep.subr.bf16.mxu1 %v4444_v51  ;;  %v4538_v51 = vld [vmem:[%s5393_s15 + $0x774] ss:$8 sps:$4 sm:$0xff]  }
 0x12f   : > { %3494 = vmatpush1.bf16.msra.mxu0 %v4439_v53  ;;  %v5629_v53 = vld [vmem:[%s5784_s0 + $0x30] sm:$0xff] }
 0x130   : > { %3495 = vmatprep.subr.bf16.mxu0 %v4447_v56  ;;  %v5638_v56 = vld [vmem:[%s5784_s0 + $0x38] sm:$0xff]  ;;  %v3895_v49 = vcombine.high %v5629_v53, %v5629_v53 }
 0x131   : > { %3535 = vmatpush1.bf16.msra.mxu1 %v4442_v55  ;;  %v3892_v55 = vcombine.low %v5561_v52, %v5561_v52  ;;  %v3897_v52 = vcombine.high %v5638_v56, %v5638_v56 }
 0x132   : > { %3536 = vmatprep.subr.bf16.mxu1 %v4450_v57  ;;  %v4536_v57 = vld [vmem:[%s5393_s15 + $0x770] ss:$8 sps:$4 sm:$0xff]  }
 0x133   : > { %3496 = vmatpush1.bf16.msra.mxu0 %v4445_v58  ;;  %v4541_v58 = vld [vmem:[%s5393_s15 + $0x664] ss:$8 sps:$4 sm:$0xff]  }
 0x134   : > { %3497 = vmatprep.subr.bf16.mxu0 %v4453_v60  ;;  %v4539_v60 = vld [vmem:[%s5393_s15 + $0x660] ss:$8 sps:$4 sm:$0xff]  }
 0x135   : > { %3537 = vmatpush1.bf16.msra.mxu1 %v4448_v59  ;;  %v4544_v59 = vld [vmem:[%s5393_s15 + $0x764] ss:$8 sps:$4 sm:$0xff]  }
 0x136   : > { %3538 = vmatprep.subr.bf16.mxu1 %v4456_v61  ;;  %v4542_v61 = vld [vmem:[%s5393_s15 + $0x760] ss:$8 sps:$4 sm:$0xff]  }
 0x137   : > { %3498 = vmatpush1.bf16.msra.mxu0 %v4451_v62  ;;  %v4547_v62 = vld [vmem:[%s5393_s15 + $0x654] ss:$8 sps:$4 sm:$0xff]  }
 0x138   : > { %3499 = vmatprep.subr.bf16.mxu0 %v4459_v0  ;;  %v4545_v0 = vld [vmem:[%s5393_s15 + $0x650] ss:$8 sps:$4 sm:$0xff]  }
 0x139   : > { %3539 = vmatpush1.bf16.msra.mxu1 %v4454_v63  ;;  %v4550_v63 = vld [vmem:[%s5393_s15 + $0x754] ss:$8 sps:$4 sm:$0xff]  }
 0x13a   : > { %3540 = vmatprep.subr.bf16.mxu1 %v4462_v1  ;;  %v4548_v1 = vld [vmem:[%s5393_s15 + $0x750] ss:$8 sps:$4 sm:$0xff]  }
 0x13b   : > { %3500 = vmatpush1.bf16.msra.mxu0 %v4457_v2  ;;  %v4553_v2 = vld [vmem:[%s5393_s15 + $0x644] ss:$8 sps:$4 sm:$0xff]  }
 0x13c   : > { %3501 = vmatprep.subr.bf16.mxu0 %v4465_v4  ;;  %v4551_v4 = vld [vmem:[%s5393_s15 + $0x640] ss:$8 sps:$4 sm:$0xff]  }
 0x13d   : > { %3541 = vmatpush1.bf16.msra.mxu1 %v4460_v3  ;;  %v4556_v3 = vld [vmem:[%s5393_s15 + $0x744] ss:$8 sps:$4 sm:$0xff]  }
 0x13e   : > { %3542 = vmatprep.subr.bf16.mxu1 %v4468_v5  ;;  %v4554_v5 = vld [vmem:[%s5393_s15 + $0x740] ss:$8 sps:$4 sm:$0xff]  }
 0x13f   : > { %3502 = vmatpush1.bf16.msra.mxu0 %v4463_v6  ;;  %v4559_v6 = vld [vmem:[%s5393_s15 + $0x634] ss:$8 sps:$4 sm:$0xff]  }
 0x140   : > { %3503 = vmatprep.subr.bf16.mxu0 %v4471_v8  ;;  %v4557_v8 = vld [vmem:[%s5393_s15 + $0x630] ss:$8 sps:$4 sm:$0xff]  }
 0x141   : > { %3543 = vmatpush1.bf16.msra.mxu1 %v4466_v7  ;;  %v4562_v7 = vld [vmem:[%s5393_s15 + $0x734] ss:$8 sps:$4 sm:$0xff]  }
 0x142   : > { %3544 = vmatprep.subr.bf16.mxu1 %v4474_v9  ;;  %v4560_v9 = vld [vmem:[%s5393_s15 + $0x730] ss:$8 sps:$4 sm:$0xff]  }
 0x143   : > { %3504 = vmatpush1.bf16.msra.mxu0 %v4469_v10  ;;  %v4565_v10 = vld [vmem:[%s5393_s15 + $0x624] ss:$8 sps:$4 sm:$0xff]  }
 0x144   : > { %3505 = vmatprep.subr.bf16.mxu0 %v4477_v12  ;;  %v4563_v12 = vld [vmem:[%s5393_s15 + $0x620] ss:$8 sps:$4 sm:$0xff]  }
 0x145   : > { %3545 = vmatpush1.bf16.msra.mxu1 %v4472_v11  ;;  %v4568_v11 = vld [vmem:[%s5393_s15 + $0x724] ss:$8 sps:$4 sm:$0xff]  }
 0x146   : > { %3546 = vmatprep.subr.bf16.mxu1 %v4480_v13  ;;  %v4566_v13 = vld [vmem:[%s5393_s15 + $0x720] ss:$8 sps:$4 sm:$0xff]  }
 0x147   : > { %3506 = vmatpush1.bf16.msra.mxu0 %v4475_v14  ;;  %v4571_v14 = vld [vmem:[%s5393_s15 + $0x614] ss:$8 sps:$4 sm:$0xff]  }
 0x148   : > { %3507 = vmatprep.subr.bf16.mxu0 %v4483_v16  ;;  %v4569_v16 = vld [vmem:[%s5393_s15 + $0x610] ss:$8 sps:$4 sm:$0xff]  }
 0x149   : > { %3547 = vmatpush1.bf16.msra.mxu1 %v4478_v15  ;;  %v4574_v15 = vld [vmem:[%s5393_s15 + $0x714] ss:$8 sps:$4 sm:$0xff]  }
 0x14a   : > { %3548 = vmatprep.subr.bf16.mxu1 %v4486_v17  ;;  %v4572_v17 = vld [vmem:[%s5393_s15 + $0x710] ss:$8 sps:$4 sm:$0xff]  }
 0x14b   : > { %3508 = vmatpush2.bf16.msra.mxu0 %v4481_v18  ;;  %v4577_v18 = vld [vmem:[%s5393_s15 + $0x604] ss:$8 sps:$4 sm:$0xff]  }
 0x14c   : > { %3509 = vmatprep.subr.bf16.mxu0 %v4489_v20  ;;  %v4575_v20 = vld [vmem:[%s5393_s15 + $0x600] ss:$8 sps:$4 sm:$0xff]  }
 0x14d   : > { %3549 = vmatpush2.bf16.msra.mxu1 %v4484_v19  ;;  %v4580_v19 = vld [vmem:[%s5393_s15 + $0x704] ss:$8 sps:$4 sm:$0xff]  }
 0x14e   : > { %3550 = vmatprep.subr.bf16.mxu1 %v4492_v21  ;;  %v4578_v21 = vld [vmem:[%s5393_s15 + $0x700] ss:$8 sps:$4 sm:$0xff]  }
 0x14f   : > { %3510 = vmatpush2.bf16.msra.mxu0 %v4487_v22  ;;  %v4583_v22 = vld [vmem:[%s5393_s15 + $0x6f4] ss:$8 sps:$4 sm:$0xff]  }
 0x150   : > { %3511 = vmatprep.subr.bf16.mxu0 %v4495_v24  ;;  %v4581_v24 = vld [vmem:[%s5393_s15 + $0x6f0] ss:$8 sps:$4 sm:$0xff]  }
 0x151   : > { %3551 = vmatpush2.bf16.msra.mxu1 %v4490_v23  ;;  %v4586_v23 = vld [vmem:[%s5393_s15 + $0x7f4] ss:$8 sps:$4 sm:$0xff]  }
 0x152   : > { %3552 = vmatprep.subr.bf16.mxu1 %v4498_v25  ;;  %v4584_v25 = vld [vmem:[%s5393_s15 + $0x7f0] ss:$8 sps:$4 sm:$0xff]  }
 0x153   : > { %3512 = vmatpush2.bf16.msra.mxu0 %v4493_v26  ;;  %v4589_v26 = vld [vmem:[%s5393_s15 + $0x6e4] ss:$8 sps:$4 sm:$0xff]  }
 0x154   : > { %3513 = vmatprep.subr.bf16.mxu0 %v4501_v28  ;;  %v4587_v28 = vld [vmem:[%s5393_s15 + $0x6e0] ss:$8 sps:$4 sm:$0xff]  }
 0x155   : > { %3553 = vmatpush2.bf16.msra.mxu1 %v4496_v27  ;;  %v4592_v27 = vld [vmem:[%s5393_s15 + $0x7e4] ss:$8 sps:$4 sm:$0xff]  }
 0x156   : > { %3554 = vmatprep.subr.bf16.mxu1 %v4504_v29  ;;  %v4590_v29 = vld [vmem:[%s5393_s15 + $0x7e0] ss:$8 sps:$4 sm:$0xff]  }
 0x157   : > { %3514 = vmatpush2.bf16.msra.mxu0 %v4499_v30  ;;  %v4595_v30 = vld [vmem:[%s5393_s15 + $0x6d4] ss:$8 sps:$4 sm:$0xff]  }
 0x158   : > { %3515 = vmatprep.subr.bf16.mxu0 %v4507_v34  ;;  %v4593_v34 = vld [vmem:[%s5393_s15 + $0x6d0] ss:$8 sps:$4 sm:$0xff]  }
 0x159   : > { %3555 = vmatpush2.bf16.msra.mxu1 %v4502_v31  ;;  %v4598_v31 = vld [vmem:[%s5393_s15 + $0x7d4] ss:$8 sps:$4 sm:$0xff]  }
 0x15a   : > { %3556 = vmatprep.subr.bf16.mxu1 %v4510_v35  ;;  %v4596_v35 = vld [vmem:[%s5393_s15 + $0x7d0] ss:$8 sps:$4 sm:$0xff]  }
 0x15b   : > { %3516 = vmatpush2.bf16.msra.mxu0 %v4505_v36  ;;  %v4601_v36 = vld [vmem:[%s5393_s15 + $0x6c4] ss:$8 sps:$4 sm:$0xff]  }
 0x15c   : > { %3517 = vmatprep.subr.bf16.mxu0 %v4513_v38  ;;  %v4599_v38 = vld [vmem:[%s5393_s15 + $0x6c0] ss:$8 sps:$4 sm:$0xff]  }
 0x15d   : > { %3557 = vmatpush2.bf16.msra.mxu1 %v4508_v37  ;;  %v4604_v37 = vld [vmem:[%s5393_s15 + $0x7c4] ss:$8 sps:$4 sm:$0xff]  }
 0x15e   : > { %3558 = vmatprep.subr.bf16.mxu1 %v4516_v39  ;;  %v4602_v39 = vld [vmem:[%s5393_s15 + $0x7c0] ss:$8 sps:$4 sm:$0xff]  }
 0x15f   : > { %3518 = vmatpush2.bf16.msra.mxu0 %v4511_v41  ;;  %v4607_v41 = vld [vmem:[%s5393_s15 + $0x6b4] ss:$8 sps:$4 sm:$0xff]  }
 0x160   : > { %3519 = vmatprep.subr.bf16.mxu0 %v4519_v43  ;;  %v4605_v43 = vld [vmem:[%s5393_s15 + $0x6b0] ss:$8 sps:$4 sm:$0xff]  }
 0x161   : > { %3559 = vmatpush2.bf16.msra.mxu1 %v4514_v42  ;;  %v4610_v42 = vld [vmem:[%s5393_s15 + $0x7b4] ss:$8 sps:$4 sm:$0xff]  }
 0x162   : > { %3560 = vmatprep.subr.bf16.mxu1 %v4522_v44  ;;  %v4608_v44 = vld [vmem:[%s5393_s15 + $0x7b0] ss:$8 sps:$4 sm:$0xff]  }
 0x163   : > { %3520 = vmatpush2.bf16.msra.mxu0 %v4517_v45  ;;  %v4613_v45 = vld [vmem:[%s5393_s15 + $0x6a4] ss:$8 sps:$4 sm:$0xff]  }
 0x164   : > { %3521 = vmatprep.subr.bf16.mxu0 %v4525_v47  ;;  %v4611_v47 = vld [vmem:[%s5393_s15 + $0x6a0] ss:$8 sps:$4 sm:$0xff]  }
 0x165   : > { %3561 = vmatpush2.bf16.msra.mxu1 %v4520_v46  ;;  %v4616_v46 = vld [vmem:[%s5393_s15 + $0x7a4] ss:$8 sps:$4 sm:$0xff]  }
 0x166   : > { %3562 = vmatprep.subr.bf16.mxu1 %v4528_v32  ;;  %v4614_v32 = vld [vmem:[%s5393_s15 + $0x7a0] ss:$8 sps:$4 sm:$0xff]  }
 0x167   : > { %3522 = vmatpush2.bf16.msra.mxu0 %v4523_v33  ;;  %v4619_v33 = vld [vmem:[%s5393_s15 + $0x694] ss:$8 sps:$4 sm:$0xff]  }
 0x168   : > { %3573 = vmatprep.subr.bf16.mxu0 %v4533_v50  ;;  %v4617_v50 = vld [vmem:[%s5393_s15 + $0x690] ss:$8 sps:$4 sm:$0xff]  }
 0x169   : > { %3563 = vmatpush2.bf16.msra.mxu1 %v4526_v48  ;;  %v4622_v48 = vld [vmem:[%s5393_s15 + $0x794] ss:$8 sps:$4 sm:$0xff]  }
 0x16a   : > { %3614 = vmatprep.subr.bf16.mxu1 %v4538_v51  ;;  %3524 = vmatmul.mubr.bf16.vlgmr.msra.gmra.mxu0 %v3890_v54  ;;  %v4620_v51 = vld [vmem:[%s5393_s15 + $0x790] ss:$8 sps:$4 sm:$0xff]   ;;  %v4628_v54 = vld [vmem:[%s5393_s15 + $0x784] ss:$8 sps:$4 sm:$0xff]  }
 0x16b   : > { %3574 = vmatpush1.bf16.msra.mxu0 %v4531_v40  ;;  %3605 = vmatprep.mubr.bf16.mxu0 %v3895_v49  ;;  %v4625_v40 = vld [vmem:[%s5393_s15 + $0x684] ss:$8 sps:$4 sm:$0xff]   ;;  %v3894_v49 = vcombine.low %v5629_v53, %v5629_v53  ;;  %v4636_v53 = vld [vmem:[%s5393_s15 + $0x860] ss:$8 sps:$4 sm:$0xff]  }
 0x16c   : > { %3565 = vmatmul.mubr.bf16.vlgmr.msra.gmra.mxu1 %v3892_v55  ;;  %3575 = vmatprep.subr.bf16.mxu0 %v4541_v58  ;;  %v4623_v55 = vld [vmem:[%s5393_s15 + $0x680] ss:$8 sps:$4 sm:$0xff]   ;;  %v4633_v58 = vld [vmem:[%s5393_s15 + $0x874] ss:$8 sps:$4 sm:$0xff]  }
 0x16d   : > { %3615 = vmatpush1.bf16.msra.mxu1 %v4536_v57  ;;  %3646 = vmatprep.mubr.bf16.mxu1 %v3897_v52  ;;  %v4626_v57 = vld [vmem:[%s5393_s15 + $0x780] ss:$8 sps:$4 sm:$0xff]   ;;  %v3896_v52 = vcombine.low %v5638_v56, %v5638_v56 }
 0x16e   : > { %3616 = vmatprep.subr.bf16.mxu1 %v4544_v59  ;;  %v5709_v59 = vld [vmem:[%s5784_s0 + $0x40] sm:$0xff] }
 0x16f   : > { %3576 = vmatpush1.bf16.msra.mxu0 %v4539_v60  ;;  %v4631_v60 = vld [vmem:[%s5393_s15 + $0x870] ss:$8 sps:$4 sm:$0xff]  }
 0x170   : > { %3577 = vmatprep.subr.bf16.mxu0 %v4547_v62  ;;  %v4638_v62 = vld [vmem:[%s5393_s15 + $0x864] ss:$8 sps:$4 sm:$0xff]  }
 0x171   : > { %3617 = vmatpush1.bf16.msra.mxu1 %v4542_v61  ;;  %v3899_v61 = vcombine.high %v5709_v59, %v5709_v59 }
 0x172   : > { %3618 = vmatprep.subr.bf16.mxu1 %v4550_v63 }
 0x173   : > { %3578 = vmatpush1.bf16.msra.mxu0 %v4545_v0 }
 0x174   : > { %3579 = vmatprep.subr.bf16.mxu0 %v4553_v2 }
 0x175   : > { %3619 = vmatpush1.bf16.msra.mxu1 %v4548_v1 }
 0x176   : > { %3620 = vmatprep.subr.bf16.mxu1 %v4556_v3  ;;  %v4641_v3 = vld [vmem:[%s5393_s15 + $0x854] ss:$8 sps:$4 sm:$0xff]  }
 0x177   : > { %3580 = vmatpush1.bf16.msra.mxu0 %v4551_v4 }
 0x178   : > { %3581 = vmatprep.subr.bf16.mxu0 %v4559_v6 }
 0x179   : > { %3621 = vmatpush1.bf16.msra.mxu1 %v4554_v5 }
 0x17a   : > { %3622 = vmatprep.subr.bf16.mxu1 %v4562_v7  ;;  %v4639_v7 = vld [vmem:[%s5393_s15 + $0x850] ss:$8 sps:$4 sm:$0xff]  }
 0x17b   : > { %3582 = vmatpush1.bf16.msra.mxu0 %v4557_v8 }
 0x17c   : > { %3583 = vmatprep.subr.bf16.mxu0 %v4565_v10 }
 0x17d   : > { %3623 = vmatpush1.bf16.msra.mxu1 %v4560_v9  ;;  %v4644_v9 = vld [vmem:[%s5393_s15 + $0x844] ss:$8 sps:$4 sm:$0xff]  }
 0x17e   : > { %3624 = vmatprep.subr.bf16.mxu1 %v4568_v11  ;;  %v4642_v11 = vld [vmem:[%s5393_s15 + $0x840] ss:$8 sps:$4 sm:$0xff]  }
 0x17f   : > { %3584 = vmatpush1.bf16.msra.mxu0 %v4563_v12  ;;  %v4647_v12 = vld [vmem:[%s5393_s15 + $0x834] ss:$8 sps:$4 sm:$0xff]  }
 0x180   : > { %3585 = vmatprep.subr.bf16.mxu0 %v4571_v14  ;;  %v4650_v14 = vld [vmem:[%s5393_s15 + $0x824] ss:$8 sps:$4 sm:$0xff]  }
 0x181   : > { %3625 = vmatpush1.bf16.msra.mxu1 %v4566_v13  ;;  %v4645_v13 = vld [vmem:[%s5393_s15 + $0x830] ss:$8 sps:$4 sm:$0xff]  }
 0x182   : > { %3626 = vmatprep.subr.bf16.mxu1 %v4574_v15  ;;  %v4648_v15 = vld [vmem:[%s5393_s15 + $0x820] ss:$8 sps:$4 sm:$0xff]  }
 0x183   : > { %3586 = vmatpush1.bf16.msra.mxu0 %v4569_v16  ;;  %v4653_v16 = vld [vmem:[%s5393_s15 + $0x814] ss:$8 sps:$4 sm:$0xff]  }
 0x184   : > { %3587 = vmatprep.subr.bf16.mxu0 %v4577_v18  ;;  %v4656_v18 = vld [vmem:[%s5393_s15 + $0x804] ss:$8 sps:$4 sm:$0xff]  }
 0x185   : > { %3627 = vmatpush1.bf16.msra.mxu1 %v4572_v17  ;;  %v4651_v17 = vld [vmem:[%s5393_s15 + $0x810] ss:$8 sps:$4 sm:$0xff]  }
 0x186   : > { %3628 = vmatprep.subr.bf16.mxu1 %v4580_v19  ;;  %v4654_v19 = vld [vmem:[%s5393_s15 + $0x800] ss:$8 sps:$4 sm:$0xff]  }
 0x187   : > { %3588 = vmatpush1.bf16.msra.mxu0 %v4575_v20  ;;  %v4659_v20 = vld [vmem:[%s5393_s15 + $0x8f4] ss:$8 sps:$4 sm:$0xff]  }
 0x188   : > { %3589 = vmatprep.subr.bf16.mxu0 %v4583_v22  ;;  %v4662_v22 = vld [vmem:[%s5393_s15 + $0x8e4] ss:$8 sps:$4 sm:$0xff]  }
 0x189   : > { %3629 = vmatpush1.bf16.msra.mxu1 %v4578_v21  ;;  %v4657_v21 = vld [vmem:[%s5393_s15 + $0x8f0] ss:$8 sps:$4 sm:$0xff]  }
 0x18a   : > { %3630 = vmatprep.subr.bf16.mxu1 %v4586_v23  ;;  %v4660_v23 = vld [vmem:[%s5393_s15 + $0x8e0] ss:$8 sps:$4 sm:$0xff]  }
 0x18b   : > { %3590 = vmatpush2.bf16.msra.mxu0 %v4581_v24  ;;  %v4665_v24 = vld [vmem:[%s5393_s15 + $0x8d4] ss:$8 sps:$4 sm:$0xff]  }
 0x18c   : > { %3591 = vmatprep.subr.bf16.mxu0 %v4589_v26  ;;  %v4668_v26 = vld [vmem:[%s5393_s15 + $0x8c4] ss:$8 sps:$4 sm:$0xff]  }
 0x18d   : > { %3631 = vmatpush2.bf16.msra.mxu1 %v4584_v25  ;;  %v4663_v25 = vld [vmem:[%s5393_s15 + $0x8d0] ss:$8 sps:$4 sm:$0xff]  }
 0x18e   : > { %3632 = vmatprep.subr.bf16.mxu1 %v4592_v27  ;;  %v4666_v27 = vld [vmem:[%s5393_s15 + $0x8c0] ss:$8 sps:$4 sm:$0xff]  }
 0x18f   : > { %3592 = vmatpush2.bf16.msra.mxu0 %v4587_v28  ;;  %v4671_v28 = vld [vmem:[%s5393_s15 + $0x8b4] ss:$8 sps:$4 sm:$0xff]  }
 0x190   : > { %3593 = vmatprep.subr.bf16.mxu0 %v4595_v30  ;;  %v4674_v30 = vld [vmem:[%s5393_s15 + $0x8a4] ss:$8 sps:$4 sm:$0xff]  }
 0x191   : > { %3633 = vmatpush2.bf16.msra.mxu1 %v4590_v29  ;;  %v4669_v29 = vld [vmem:[%s5393_s15 + $0x8b0] ss:$8 sps:$4 sm:$0xff]  }
 0x192   : > { %3634 = vmatprep.subr.bf16.mxu1 %v4598_v31  ;;  %v4672_v31 = vld [vmem:[%s5393_s15 + $0x8a0] ss:$8 sps:$4 sm:$0xff]  }
 0x193   : > { %3594 = vmatpush2.bf16.msra.mxu0 %v4593_v34  ;;  %v4677_v34 = vld [vmem:[%s5393_s15 + $0x894] ss:$8 sps:$4 sm:$0xff]  }
 0x194   : > { %3595 = vmatprep.subr.bf16.mxu0 %v4601_v36  ;;  %v4680_v36 = vld [vmem:[%s5393_s15 + $0x884] ss:$8 sps:$4 sm:$0xff]  }
 0x195   : > { %3635 = vmatpush2.bf16.msra.mxu1 %v4596_v35  ;;  %v4675_v35 = vld [vmem:[%s5393_s15 + $0x890] ss:$8 sps:$4 sm:$0xff]  }
 0x196   : > { %3636 = vmatprep.subr.bf16.mxu1 %v4604_v37  ;;  %v4678_v37 = vld [vmem:[%s5393_s15 + $0x880] ss:$8 sps:$4 sm:$0xff]  }
 0x197   : > { %3596 = vmatpush2.bf16.msra.mxu0 %v4599_v38  ;;  %v3898_v38 = vcombine.low %v5709_v59, %v5709_v59 }
 0x198   : > { %3597 = vmatprep.subr.bf16.mxu0 %v4607_v41 }
 0x199   : > { %3637 = vmatpush2.bf16.msra.mxu1 %v4602_v39 }
 0x19a   : > { %3638 = vmatprep.subr.bf16.mxu1 %v4610_v42 }
 0x19b   : > { %3598 = vmatpush2.bf16.msra.mxu0 %v4605_v43 }
 0x19c   : > { %3599 = vmatprep.subr.bf16.mxu0 %v4613_v45 }
 0x19d   : > { %3639 = vmatpush2.bf16.msra.mxu1 %v4608_v44 }
 0x19e   : > { %3640 = vmatprep.subr.bf16.mxu1 %v4616_v46 }
 0x19f   : > { %3600 = vmatpush2.bf16.msra.mxu0 %v4611_v47 }
 0x1a0   : > { %3601 = vmatprep.subr.bf16.mxu0 %v4619_v33 }
 0x1a1   : > { %3641 = vmatpush2.bf16.msra.mxu1 %v4614_v32 }
 0x1a2   : > { %3642 = vmatprep.subr.bf16.mxu1 %v4622_v48 }
 0x1a3   : > { %3602 = vmatpush2.bf16.msra.mxu0 %v4617_v50 }
 0x1a4   : > { %3603 = vmatprep.subr.bf16.mxu0 %v4625_v40 }
 0x1a5   : > { %3643 = vmatpush2.bf16.msra.mxu1 %v4620_v51 }
 0x1a6   : > { %3644 = vmatprep.subr.bf16.mxu1 %v4628_v54 }
 0x1a7   : > { %3604 = vmatpush2.bf16.msra.mxu0 %v4623_v55 }
 0x1a8   : > { %3655 = vmatprep.subr.bf16.mxu0 %v4633_v58 }
 0x1a9   : > { %3645 = vmatpush2.bf16.msra.mxu1 %v4626_v57 }
 0x1aa   : > { %v3361_v63 = vpop.f32.mrf.mxu0  ;;  %3606 = vmatmul.mubr.bf16.vlgmr.msra.gmra.mxu0 %v3894_v49 }
 0x1ab   : > { %3656 = vmatpush1.bf16.msra.mxu0 %v4631_v60  ;;  %3687 = vmatprep.mubr.bf16.mxu0 %v3899_v61 }
 0x1ac   : > { %v3402_v0 = vpop.f32.mrf.mxu1  ;;  %3647 = vmatmul.mubr.bf16.vlgmr.msra.gmra.mxu1 %v3896_v52  ;;  %v3363_v56 = vpop.f32.mrf.mxu0  ;;  %3657 = vmatprep.subr.bf16.mxu0 %v4638_v62 }
 0x1ad   : > { %v5719_v1 = vadd.f32 %v3402_v0, %v3361_v63 }
 0x1ae   : > { %v3404_v2 = vpop.f32.mrf.mxu1  ;;  %v3365_v5 = vpop.f32.mrf.mxu0 }
 0x1af   : > { %v5723_v4 = vadd.f32 %v3404_v2, %v3363_v56  ;;  %3658 = vmatpush1.bf16.msra.mxu0 %v4636_v53  ;;  %v3698_v5 = vlaneseq }
 0x1b0   : > { %v3406_v6 = vpop.f32.mrf.mxu1  ;;  %v3366_v8 = vpop.f32.mrf.mxu0  ;;  %3659 = vmatprep.subr.bf16.mxu0 %v4641_v3 }
 0x1b1   : > { %v3699_v6 = vshrl.u32 %v3698_v5, 7 }
 0x1b2   : > { %v3407_v10 = vpop.f32.mrf.mxu1 }
 0x1b3   : > { %3660 = vmatpush1.bf16.msra.mxu0 %v4639_v7  ;;  %v3700_v8 = vsub.s32 0, %v3699_v6 }
 0x1b4   : > { %3661 = vmatprep.subr.bf16.mxu0 %v4644_v9  ;;  %v3696_v9 = vld [vmem:[%s1500_s14] sm:$0x3] }
 0x1b7   : > { %3662 = vmatpush1.bf16.msra.mxu0 %v4642_v11  ;;  %v3704_v11 = vsub.s32 1, %v3699_v6 }
 0x1b8   : > { %3663 = vmatprep.subr.bf16.mxu0 %v4647_v12  ;;  %v3710_v12 = vld [vmem:[%s1505_s17] sm:$0x3] }
 0x1bb   : > { %3664 = vmatpush1.bf16.msra.mxu0 %v4645_v13 }
 0x1bc   : > { %3665 = vmatprep.subr.bf16.mxu0 %v4650_v14  ;;  %v3701_v14 = vrot.slane %v3696_v9, %v3700_v8 }
 0x1bf   : > { %3666 = vmatpush1.bf16.msra.mxu0 %v4648_v15 }
 0x1c0   : > { %3667 = vmatprep.subr.bf16.mxu0 %v4653_v16 }
 0x1c3   : > { %3668 = vmatpush1.bf16.msra.mxu0 %v4651_v17 }
 0x1c4   : > { %3669 = vmatprep.subr.bf16.mxu0 %v4656_v18  ;;  %v3715_v18 = vrot.slane %v3710_v12, %v3700_v8 }
 0x1c7   : > { %3670 = vmatpush1.bf16.msra.mxu0 %v4654_v19  ;;  %v3705_v19 = vrot.slane %v3696_v9, %v3704_v11 }
 0x1c8   : > { %3671 = vmatprep.subr.bf16.mxu0 %v4659_v20 }
 0x1cb   : > { %3672 = vmatpush2.bf16.msra.mxu0 %v4657_v21 }
 0x1cc   : > { %3673 = vmatprep.subr.bf16.mxu0 %v4662_v22 }
 0x1cf   : > { %3674 = vmatpush2.bf16.msra.mxu0 %v4660_v23  ;;  %v3719_v23 = vrot.slane %v3710_v12, %v3704_v11 }
 0x1d0   : > { %3675 = vmatprep.subr.bf16.mxu0 %v4665_v24  ;;  %v3724_v24 = vld [vmem:[%s1515_s25] sm:$0xff] }
 0x1d3   : > { %3676 = vmatpush2.bf16.msra.mxu0 %v4663_v25 }
 0x1d4   : > { %3677 = vmatprep.subr.bf16.mxu0 %v4668_v26 }
 0x1d7   : > { %3678 = vmatpush2.bf16.msra.mxu0 %v4666_v27 }
 0x1d8   : > { %3679 = vmatprep.subr.bf16.mxu0 %v4671_v28  ;;  %v3725_v28 = vld [vmem:[%s1515_s25 + $0x8] sm:$0xff] }
 0x1db   : > { %3680 = vmatpush2.bf16.msra.mxu0 %v4669_v29 }
 0x1dc   : > { %3681 = vmatprep.subr.bf16.mxu0 %v4674_v30 }
 0x1df   : > { %3682 = vmatpush2.bf16.msra.mxu0 %v4672_v31 }
 0x1e0   : > { %3683 = vmatprep.subr.bf16.mxu0 %v4677_v34 }
 0x1e3   : > { %3684 = vmatpush2.bf16.msra.mxu0 %v4675_v35 }
 0x1e4   : > { %3685 = vmatprep.subr.bf16.mxu0 %v4680_v36 }
 0x1e7   : > { %3686 = vmatpush2.bf16.msra.mxu0 %v4678_v37 }
 0x1ea   : > { %v3443_v39 = vpop.f32.mrf.mxu0  ;;  %3688 = vmatmul.mubr.bf16.vlgmr.msra.gmra.mxu0 %v3898_v38 }
 0x1eb   : > { %v3444_v42 = vadd.f32 %v3443_v39, %v5719_v1 }
 0x1ec   : > { %v3484_v41 = vpop.f32.mrf.mxu1  ;;  %v3445_v43 = vpop.f32.mrf.mxu0 }
 0x1ed   : > { %v3446_v45 = vadd.f32 %v3445_v43, %v5723_v4  ;;  %v3485_v46 = vadd.f32 %v3484_v41, %v3444_v42 }
 0x1ee   : > { %v3486_v44 = vpop.f32.mrf.mxu1  ;;  %v3447_v47 = vpop.f32.mrf.mxu0 }
 0x1ef   : > { %v3487_v33 = vadd.f32 %v3486_v44, %v3446_v45 }
 0x1f0   : > { %v3488_v32 = vpop.f32.mrf.mxu1  ;;  %v3448_v48 = vpop.f32.mrf.mxu0 }
 0x1f2   : > { %v3489_v50 = vpop.f32.mrf.mxu1 }
 0x22a   : > { %v3525_v51 = vpop.f32.mrf.mxu0 }
 0x22b   : > { %v3526_v54 = vadd.f32 %v3525_v51, %v3485_v46 }
 0x22c   : > { %v3566_v40 = vpop.f32.mrf.mxu1  ;;  %v3527_v55 = vpop.f32.mrf.mxu0 }
 0x22d   : > { %v3528_v58 = vadd.f32 %v3527_v55, %v3487_v33  ;;  %v3567_v59 = vadd.f32 %v3566_v40, %v3526_v54 }
 0x22e   : > { %v3568_v57 = vpop.f32.mrf.mxu1  ;;  %v3529_v49 = vpop.f32.mrf.mxu0 }
 0x22f   : > { %v3569_v60 = vadd.f32 %v3568_v57, %v3528_v58 }
 0x230   : > { %v3570_v52 = vpop.f32.mrf.mxu1  ;;  %v3530_v61 = vpop.f32.mrf.mxu0 }
 0x232   : > { %v3571_v62 = vpop.f32.mrf.mxu1 }
 0x26a   : > { %v3607_v63 = vpop.f32.mrf.mxu0 }
 0x26b   : > { %v3608_v7 = vadd.f32 %v3607_v63, %v3567_v59 }
 0x26c   : > { %v3648_v0 = vpop.f32.mrf.mxu1  ;;  %v3609_v1 = vpop.f32.mrf.mxu0 }
 0x26d   : > { %v3610_v10 = vadd.f32 %v3609_v1, %v3569_v60  ;;  %v3649_v13 = vadd.f32 %v3648_v0, %v3608_v7 }
 0x26e   : > { %v3650_v53 = vpop.f32.mrf.mxu1  ;;  %v3611_v56 = vpop.f32.mrf.mxu0 }
 0x26f   : > { %v3651_v16 = vadd.f32 %v3650_v53, %v3610_v10 }
 0x270   : > { %v3652_v2 = vpop.f32.mrf.mxu1  ;;  %v3612_v3 = vpop.f32.mrf.mxu0 }
 0x272   : > { %v3653_v4 = vpop.f32.mrf.mxu1 }
 0x2aa   : > { %v3689_v15 = vpop.f32.mrf.mxu0 }
 0x2ab   : > { %v3690_v17 = vadd.f32 %v3689_v15, %v3649_v13 }
 0x2ac   : > { %v3691_v20 = vpop.f32.mrf.mxu0 }
 0x2ad   : > { %v3708_v21 = vmul.f32 %v3701_v14, %v3690_v17  ;;  %v3692_v22 = vadd.f32 %v3691_v20, %v3651_v16 }
 0x2ae   : > { %v3693_v25 = vpop.f32.mrf.mxu0 }
 0x2af   : > { %v3722_v26 = vadd.f32 %v3715_v18, %v3708_v21  ;;  %v3709_v27 = vmul.f32 %v3705_v19, %v3692_v22 }
 0x2b0   : > { %v3694_v29 = vpop.f32.mrf.mxu0 }
 0x2b1   : > { %v3726_v30 = vadd.f32 %v3724_v24, %v3722_v26  ;;  %v3723_v31 = vadd.f32 %v3719_v23, %v3709_v27 }
 0x2b3   : > { %3728 = vst [vmem:[%s1525_s29] sm:$0xff] %v3726_v30  ;;  %v3727_v34 = vadd.f32 %v3725_v28, %v3723_v31 }
 0x2b5   : > { %3729 = vst [vmem:[%s1525_s29 + $0x8] sm:$0xff] %v3727_v34 }
 0x2b6 PF: > { %s15_s22 = sadd.s32 1, %s4721_s22   ;;  %s5790_s18 = smov %s4709_s19 }
 0x2b7   : > { %p12_p10 = scmp.ge.s32.totalorder %s15_s22, 4   ;;  %s5791_s19 = smov %s4788_s26 }
 0x2b8   : > { %s5792_s20 = smov %s4717_s21  ;;  %s5793_s21 = smov %s5795_s23 }
 0x2b9   :  { %14 = sbr.rel (!%p12_p10) target bundleno = 3 (0x3), region = 125 }

</bundles_post_ra>
